<compile_context>
chip_gen: v6e
topology: v6e:2x2x1
jax: 0.10.0
libtpu: 0.0.40
codegen_flags: <defaults>
</compile_context>

<pallas_src>
import functools

import jax
import jax.numpy as jnp
from jax import lax
from jax.experimental import pallas as pl
from jax.experimental.pallas import tpu as pltpu


# ----------------------------------------------------------------------------- kernel
def lstm_mlp_kernel(
    x_ref,       # (1, T*bb, D)  time-major rows (row = t*bb + b) for this batch block
    wih0_ref,    # (D, 8H)       layer-0 input weights, gate-permuted, layer-1 cols zero
    wbig_ref,    # (2H, 8H)      fused recurrent weights [whh0 pad ; wih1 ; whh1], permuted
    bbig_ref,    # (1, 8H)       combined biases (b_ih + b_hh per layer), gate-permuted
    wfc1_ref,    # (H, 32)
    bfc1_ref,    # (1, 32)
    wfc2_ref,    # (32, 16)
    bfc2_ref,    # (1, 16)
    wfc3_ref,    # (16, 1)
    bfc3_ref,    # (1, 1)
    out_ref,     # (bb, 1)
    xp_ref,      # (T*bb, 8H)    VMEM scratch: hoisted input projection, time-major
    *,
    T,
):
    bb = out_ref.shape[0]
    H2 = wbig_ref.shape[0]          # 2H = fused state width (128 for H=64)
    H = H2 // 2

    # --- hoisted layer-0 input projection for ALL timesteps -----------------------
    # One well-shaped (T*bb, D) @ (D, 8H) matmul, with BOTH layers' biases folded in
    # (the layer-1 columns of wih0_big are zero, so those columns come out as b1).
    xp_ref[...] = (
        jnp.dot(x_ref[0], wih0_ref[...], preferred_element_type=jnp.float32)
        + bbig_ref[...]
    )

    def cell(gates, c):
        # Permuted gate layout [i0 i1 | f0 f1 | g0 g1 | o0 o1]: every slice below is a
        # lane-aligned 2H-wide slab, lane-matched with c=[c0|c1] / h=[h0|h1] — whole-vreg
        # VPU/EUP work, no cross-lane rotates.
        i = jax.nn.sigmoid(gates[:, 0 * H2:1 * H2])
        f = jax.nn.sigmoid(gates[:, 1 * H2:2 * H2])
        g = jnp.tanh(gates[:, 2 * H2:3 * H2])
        o = jax.nn.sigmoid(gates[:, 3 * H2:4 * H2])
        c_new = f * c + i * g
        h_new = o * jnp.tanh(c_new)
        return h_new, c_new

    # --- wavefront recurrence: one fused (bb,2H)@(2H,8H) matmul per step ----------
    # Carried state at iteration k is [h0(k-1) | h1(k-2)], exactly the rows W_big needs
    # for layer-0 time k and layer-1 time k-1.
    #
    # k = 0: carried state is zero so the matmul contributes nothing; the layer-1 half
    # of the update is for "time -1" and is masked back to zero.
    l0_mask = (lax.broadcasted_iota(jnp.int32, (bb, H2), 1) < H).astype(jnp.float32)
    h, c = cell(xp_ref[0:bb, :], jnp.zeros((bb, H2), jnp.float32))
    h = h * l0_mask
    c = c * l0_mask

    # k = 1 .. T-1 (static unroll).  NOTE: wbig_ref is read at every use site rather
    # than hoisted, so the unrolled loop does not keep the full weight slab live.
    for k in range(1, T):
        gates = xp_ref[k * bb:(k + 1) * bb, :] + jnp.dot(
            h, wbig_ref[...], preferred_element_type=jnp.float32)
        h, c = cell(gates, c)

    # k = T: drain step — only layer 1 (time T-1) is still pending; its addend is just
    # the bias (the layer-0 half of this update is discarded).
    gates = bbig_ref[...] + jnp.dot(h, wbig_ref[...], preferred_element_type=jnp.float32)
    h, _ = cell(gates, c)
    h1_last = h[:, H:H2]            # top-layer hidden state at the final timestep

    # --- MLP head (Dropout = identity in eval mode) --------------------------------
    z = jnp.dot(h1_last, wfc1_ref[...], preferred_element_type=jnp.float32) + bfc1_ref[...]
    z = jnp.maximum(z, 0.0)
    z = jnp.dot(z, wfc2_ref[...], preferred_element_type=jnp.float32) + bfc2_ref[...]
    z = jnp.maximum(z, 0.0)
    out_ref[...] = (
        jnp.dot(z, wfc3_ref[...], preferred_element_type=jnp.float32) + bfc3_ref[...]
    )


# ----------------------------------------------------------------------------- packing
def pack_params(params):
    """Build the kernel's fused / gate-permuted weight pytree ONCE (outside the jit)."""
    H = params["whh0_T"].shape[0]
    D = params["wih0_T"].shape[0]

    # Layer-1 stacked weights: rows = [h0 ; h1]  ->  h0 @ W_ih1 + h1 @ W_hh1.
    w1s = jnp.concatenate([params["wih1_T"], params["whh1_T"]], axis=0)        # (2H, 4H)
    # Layer-0 recurrent weights zero-padded to 2H rows (h1 rows contribute nothing).
    whh0_pad = jnp.concatenate(
        [params["whh0_T"], jnp.zeros((H, 4 * H), jnp.float32)], axis=0)        # (2H, 4H)

    def permute(l0_cols, l1_cols):
        # (R,4H),(R,4H) -> (R,8H) with gate-column order [i0 i1 f0 f1 g0 g1 o0 o1].
        parts = []
        for g in range(4):
            parts.append(l0_cols[:, g * H:(g + 1) * H])
            parts.append(l1_cols[:, g * H:(g + 1) * H])
        return jnp.concatenate(parts, axis=1)

    wbig = permute(whh0_pad, w1s)                                               # (2H, 8H)
    wih0_big = permute(params["wih0_T"], jnp.zeros((D, 4 * H), jnp.float32))    # (D, 8H)
    bbig = permute(params["b0"], params["b1"])                                  # (1, 8H)

    return dict(
        wih0_big=wih0_big, wbig=wbig, bbig=bbig,
        wfc1_T=params["wfc1_T"], bfc1=params["bfc1"],
        wfc2_T=params["wfc2_T"], bfc2=params["bfc2"],
        wfc3_T=params["wfc3_T"], bfc3=params["bfc3"],
    )


# ----------------------------------------------------------------------------- wrapper
@jax.jit
def lstm_predictor_forward(x, packed):
    """x: (B, T, D) float32, packed = pack_params(params) -> (B, 1) float32."""
    B, T, D = x.shape
    H2, H8 = packed["wbig"].shape       # (2H, 8H)
    H = H2 // 2
    F1 = packed["wfc1_T"].shape[1]
    F2 = packed["wfc2_T"].shape[1]
    F3 = packed["wfc3_T"].shape[1]

    # Batch block: full batch when small, 8-aligned blocks otherwise so the grid can be
    # sharded across TensorCores (v7x) via dimension_semantics=("parallel",).
    if B % 8 == 0 and B > 8:
        bb = 8
        for cand in (512, 256, 128, 64, 32, 16):
            if B % cand == 0:
                bb = cand
                break
    else:
        bb = B
    nb = B // bb

    # Time-major, batch-blocked layout: block i holds rows [t*bb + b] for its bb batch
    # entries, so the kernel's hoisted projection is one contiguous matmul and each step
    # reads a contiguous row block.  KB-sized transpose; fused by XLA.
    xt = x.reshape(nb, bb, T, D).transpose(0, 2, 1, 3).reshape(nb, T * bb, D)

    kernel = functools.partial(lstm_mlp_kernel, T=T)
    return pl.pallas_call(
        kernel,
        out_shape=jax.ShapeDtypeStruct((B, 1), jnp.float32),
        grid=(nb,),
        in_specs=[
            pl.BlockSpec((1, T * bb, D), lambda i: (i, 0, 0)),
            pl.BlockSpec((D, H8), lambda i: (0, 0)),
            pl.BlockSpec((H2, H8), lambda i: (0, 0)),
            pl.BlockSpec((1, H8), lambda i: (0, 0)),
            pl.BlockSpec((H, F1), lambda i: (0, 0)),
            pl.BlockSpec((1, F1), lambda i: (0, 0)),
            pl.BlockSpec((F1, F2), lambda i: (0, 0)),
            pl.BlockSpec((1, F2), lambda i: (0, 0)),
            pl.BlockSpec((F2, F3), lambda i: (0, 0)),
            pl.BlockSpec((1, F3), lambda i: (0, 0)),
        ],
        out_specs=pl.BlockSpec((bb, 1), lambda i: (i, 0)),
        scratch_shapes=[pltpu.VMEM((T * bb, H8), jnp.float32)],
        compiler_params=pltpu.CompilerParams(dimension_semantics=("parallel",)),
    )(xt, packed["wih0_big"], packed["wbig"], packed["bbig"],
      packed["wfc1_T"], packed["bfc1"], packed["wfc2_T"], packed["bfc2"],
      packed["wfc3_T"], packed["bfc3"])


# ----------------------------------------------------------------------------- params
def init_params(key, input_size, hidden_size):
    """PyTorch-style uniform init; weights stored pre-transposed (in_features, out)."""
    H = hidden_size
    ks = jax.random.split(key, 14)

    def u(k, shape, bound):
        return jax.random.uniform(k, shape, jnp.float32, minval=-bound, maxval=bound)

    k_lstm = 1.0 / jnp.sqrt(H)
    wih0_T = u(ks[0], (input_size, 4 * H), k_lstm)
    whh0_T = u(ks[1], (H, 4 * H), k_lstm)
    b0 = u(ks[2], (1, 4 * H), k_lstm) + u(ks[3], (1, 4 * H), k_lstm)   # b_ih + b_hh
    wih1_T = u(ks[4], (H, 4 * H), k_lstm)
    whh1_T = u(ks[5], (H, 4 * H), k_lstm)
    b1 = u(ks[6], (1, 4 * H), k_lstm) + u(ks[7], (1, 4 * H), k_lstm)

    wfc1_T = u(ks[8], (H, 32), 1.0 / jnp.sqrt(H))
    bfc1 = u(ks[9], (1, 32), 1.0 / jnp.sqrt(H))
    wfc2_T = u(ks[10], (32, 16), 1.0 / jnp.sqrt(32.0))
    bfc2 = u(ks[11], (1, 16), 1.0 / jnp.sqrt(32.0))
    wfc3_T = u(ks[12], (16, 1), 1.0 / jnp.sqrt(16.0))
    bfc3 = u(ks[13], (1, 1), 1.0 / jnp.sqrt(16.0))

    return dict(
        wih0_T=wih0_T, whh0_T=whh0_T, b0=b0,
        wih1_T=wih1_T, whh1_T=whh1_T, b1=b1,
        wfc1_T=wfc1_T, bfc1=bfc1, wfc2_T=wfc2_T, bfc2=bfc2, wfc3_T=wfc3_T, bfc3=bfc3,
    )


# ----------------------------------------------------------------------------- reference
def reference_forward(x, params):
    """Pure-JAX reference matching nn.LSTM(2 layers, batch_first) + MLP head (eval mode)."""
    # TODO(synk): add a one-off torch.nn.LSTM parity check if bit-level parity matters.
    B, T, D = x.shape
    H = params["whh0_T"].shape[0]

    def cell(x_t, h, c, wih, whh, b):
        g = x_t @ wih + h @ whh + b
        i = jax.nn.sigmoid(g[:, 0 * H:1 * H])
        f = jax.nn.sigmoid(g[:, 1 * H:2 * H])
        gg = jnp.tanh(g[:, 2 * H:3 * H])
        o = jax.nn.sigmoid(g[:, 3 * H:4 * H])
        c = f * c + i * gg
        return o * jnp.tanh(c), c

    def step(carry, x_t):
        h0, c0, h1, c1 = carry
        h0, c0 = cell(x_t, h0, c0, params["wih0_T"], params["whh0_T"], params["b0"])
        h1, c1 = cell(h0, h1, c1, params["wih1_T"], params["whh1_T"], params["b1"])
        return (h0, c0, h1, c1), None

    zeros = jnp.zeros((B, H), jnp.float32)
    (h0, c0, h1, c1), _ = lax.scan(step, (zeros, zeros, zeros, zeros),
                                   jnp.transpose(x, (1, 0, 2)))
    z = jnp.maximum(h1 @ params["wfc1_T"] + params["bfc1"], 0.0)
    z = jnp.maximum(z @ params["wfc2_T"] + params["bfc2"], 0.0)
    return z @ params["wfc3_T"] + params["bfc3"]


# ----------------------------------------------------------------------------- main
if __name__ == "__main__":
    # Full-f32 matmuls everywhere so the kernel/reference comparison can be tight.
    jax.config.update("jax_default_matmul_precision", "highest")

    B, T, D, H = 2, 8, 8, 64  # batch, seq_len, input_size, hidden_size

    key = jax.random.PRNGKey(0)
    k_x, k_p = jax.random.split(key)
    x = jax.random.normal(k_x, (B, T, D), jnp.float32)
    params = init_params(k_p, D, H)

    packed = pack_params(params)        # built once, outside the jitted per-call path

    out = lstm_predictor_forward(x, packed)
    out = jax.block_until_ready(out)

    ref = reference_forward(x, params)
    assert out.shape == (B, 1)
    assert jnp.allclose(out, ref, rtol=1e-4, atol=1e-4), (out, ref)

    print("KERNEL_OK")
</pallas_src>

<mosaic_0001>
module attributes {stable_mosaic.version = 11 : i64} {
  func.func @lstm_mlp_kernel(%arg0: i32, %arg1: memref<1x16x8xf32, #tpu.memory_space<vmem>>, %arg2: memref<8x512xf32, #tpu.memory_space<vmem>>, %arg3: memref<128x512xf32, #tpu.memory_space<vmem>>, %arg4: memref<1x512xf32, #tpu.memory_space<vmem>>, %arg5: memref<64x32xf32, #tpu.memory_space<vmem>>, %arg6: memref<1x32xf32, #tpu.memory_space<vmem>>, %arg7: memref<32x16xf32, #tpu.memory_space<vmem>>, %arg8: memref<1x16xf32, #tpu.memory_space<vmem>>, %arg9: memref<16x1xf32, #tpu.memory_space<vmem>>, %arg10: memref<1x1xf32, #tpu.memory_space<vmem>>, %arg11: memref<2x1xf32, #tpu.memory_space<vmem>>, %arg12: memref<16x512xf32, #tpu.memory_space<vmem>>) attributes {dimension_semantics = [#tpu.dimension_semantics<parallel>], iteration_bounds = array<i64: 1>, scalar_prefetch = 0 : i64, scratch_operands = 1 : i64, tpu.core_type = #tpu.core_type<tc>, window_params = [{transform_indices = @transform_0, window_bounds = array<i64: 1, 16, 8>}, {pipeline_mode = #tpu.pipeline_mode<synchronous>, transform_indices = @transform_1, window_bounds = array<i64: 8, 512>}, {pipeline_mode = #tpu.pipeline_mode<synchronous>, transform_indices = @transform_2, window_bounds = array<i64: 128, 512>}, {pipeline_mode = #tpu.pipeline_mode<synchronous>, transform_indices = @transform_3, window_bounds = array<i64: 1, 512>}, {pipeline_mode = #tpu.pipeline_mode<synchronous>, transform_indices = @transform_4, window_bounds = array<i64: 64, 32>}, {pipeline_mode = #tpu.pipeline_mode<synchronous>, transform_indices = @transform_5, window_bounds = array<i64: 1, 32>}, {pipeline_mode = #tpu.pipeline_mode<synchronous>, transform_indices = @transform_6, window_bounds = array<i64: 32, 16>}, {pipeline_mode = #tpu.pipeline_mode<synchronous>, transform_indices = @transform_7, window_bounds = array<i64: 1, 16>}, {pipeline_mode = #tpu.pipeline_mode<synchronous>, transform_indices = @transform_8, window_bounds = array<i64: 16, 1>}, {pipeline_mode = #tpu.pipeline_mode<synchronous>, transform_indices = @transform_9, window_bounds = array<i64: 1, 1>}, {transform_indices = @transform_10, window_bounds = array<i64: 2, 1>}]} {
    %c0 = arith.constant 0 : index
    %c0_0 = arith.constant 0 : index
    %c0_1 = arith.constant 0 : index
    %0 = vector.load %arg1[%c0, %c0_0, %c0_1] : memref<1x16x8xf32, #tpu.memory_space<vmem>>, vector<1x16x8xf32>
    %1 = vector.shape_cast %0 : vector<1x16x8xf32> to vector<16x8xf32>
    %c0_2 = arith.constant 0 : index
    %c0_3 = arith.constant 0 : index
    %2 = vector.load %arg2[%c0_2, %c0_3] : memref<8x512xf32, #tpu.memory_space<vmem>>, vector<8x512xf32>
    %cst = arith.constant dense<0.000000e+00> : vector<16x512xf32>
    %3 = tpu.matmul %1, %2, %cst {dimension_numbers = #tpu.dot_dimension_numbers<[1], [0], [0], [1], [0, 0, 1, 1], [], []>, precision = #tpu.contract_precision<fp32>} : vector<16x8xf32>, vector<8x512xf32>, vector<16x512xf32> -> vector<16x512xf32>
    %c0_4 = arith.constant 0 : index
    %c0_5 = arith.constant 0 : index
    %4 = vector.load %arg4[%c0_4, %c0_5] : memref<1x512xf32, #tpu.memory_space<vmem>>, vector<1x512xf32>
    %5 = vector.broadcast %4 : vector<1x512xf32> to vector<16x512xf32>
    %6 = arith.addf %3, %5 : vector<16x512xf32>
    %c0_6 = arith.constant 0 : index
    %c0_7 = arith.constant 0 : index
    %7 = vector.load %arg12[%c0_6, %c0_7] : memref<16x512xf32, #tpu.memory_space<vmem>>, vector<16x512xf32>
    tpu.vector_store %arg12[%c0_6, %c0_7], %6 {strides = array<i32>} : memref<16x512xf32, #tpu.memory_space<vmem>>, vector<16x512xf32>,
    %8 = tpu.iota {dimensions = array<i32: 1>} : vector<2x128xi32>
    %c64_i32 = arith.constant 64 : i32
    %9 = vector.broadcast %c64_i32 : i32 to vector<2x128xi32>
    %10 = arith.cmpi slt, %8, %9 : vector<2x128xi32>
    %11 = arith.extui %10 : vector<2x128xi1> to vector<2x128xi32>
    %12 = arith.sitofp %11 : vector<2x128xi32> to vector<2x128xf32>
    %c0_8 = arith.constant 0 : index
    %c0_9 = arith.constant 0 : index
    %13 = vector.load %arg12[%c0_8, %c0_9] : memref<16x512xf32, #tpu.memory_space<vmem>>, vector<2x512xf32>
    %cst_10 = arith.constant 0.000000e+00 : f32
    %14 = vector.broadcast %cst_10 : f32 to vector<2x128xf32>
    %15 = vector.extract_strided_slice %13 {offsets = [0, 0], sizes = [2, 128], strides = [1, 1]} : vector<2x512xf32> to vector<2x128xf32>
    %16 = arith.negf %15 : vector<2x128xf32>
    %17 = math.exp %16 : vector<2x128xf32>
    %cst_11 = arith.constant 1.000000e+00 : f32
    %18 = vector.broadcast %cst_11 : f32 to vector<2x128xf32>
    %19 = arith.addf %18, %17 : vector<2x128xf32>
    %20 = arith.divf %18, %19 : vector<2x128xf32>
    %21 = vector.extract_strided_slice %13 {offsets = [0, 128], sizes = [2, 128], strides = [1, 1]} : vector<2x512xf32> to vector<2x128xf32>
    %22 = arith.negf %21 : vector<2x128xf32>
    %23 = math.exp %22 : vector<2x128xf32>
    %cst_12 = arith.constant 1.000000e+00 : f32
    %24 = vector.broadcast %cst_12 : f32 to vector<2x128xf32>
    %25 = arith.addf %24, %23 : vector<2x128xf32>
    %26 = arith.divf %24, %25 : vector<2x128xf32>
    %27 = vector.extract_strided_slice %13 {offsets = [0, 256], sizes = [2, 128], strides = [1, 1]} : vector<2x512xf32> to vector<2x128xf32>
    %28 = math.tanh %27 : vector<2x128xf32>
    %29 = vector.extract_strided_slice %13 {offsets = [0, 384], sizes = [2, 128], strides = [1, 1]} : vector<2x512xf32> to vector<2x128xf32>
    %30 = arith.negf %29 : vector<2x128xf32>
    %31 = math.exp %30 : vector<2x128xf32>
    %cst_13 = arith.constant 1.000000e+00 : f32
    %32 = vector.broadcast %cst_13 : f32 to vector<2x128xf32>
    %33 = arith.addf %32, %31 : vector<2x128xf32>
    %34 = arith.divf %32, %33 : vector<2x128xf32>
    %35 = arith.mulf %26, %14 : vector<2x128xf32>
    %36 = arith.mulf %20, %28 : vector<2x128xf32>
    %37 = arith.addf %35, %36 : vector<2x128xf32>
    %38 = math.tanh %37 : vector<2x128xf32>
    %39 = arith.mulf %34, %38 : vector<2x128xf32>
    %40 = arith.mulf %39, %12 : vector<2x128xf32>
    %41 = arith.mulf %37, %12 : vector<2x128xf32>
    %c2 = arith.constant 2 : index
    %c0_14 = arith.constant 0 : index
    %42 = vector.load %arg12[%c2, %c0_14] : memref<16x512xf32, #tpu.memory_space<vmem>>, vector<2x512xf32>
    %c0_15 = arith.constant 0 : index
    %c0_16 = arith.constant 0 : index
    %43 = vector.load %arg3[%c0_15, %c0_16] : memref<128x512xf32, #tpu.memory_space<vmem>>, vector<128x512xf32>
    %cst_17 = arith.constant dense<0.000000e+00> : vector<2x512xf32>
    %44 = tpu.matmul %40, %43, %cst_17 {dimension_numbers = #tpu.dot_dimension_numbers<[1], [0], [0], [1], [0, 0, 1, 1], [], []>, precision = #tpu.contract_precision<fp32>} : vector<2x128xf32>, vector<128x512xf32>, vector<2x512xf32> -> vector<2x512xf32>
    %45 = arith.addf %42, %44 : vector<2x512xf32>
    %46 = vector.extract_strided_slice %45 {offsets = [0, 0], sizes = [2, 128], strides = [1, 1]} : vector<2x512xf32> to vector<2x128xf32>
    %47 = arith.negf %46 : vector<2x128xf32>
    %48 = math.exp %47 : vector<2x128xf32>
    %cst_18 = arith.constant 1.000000e+00 : f32
    %49 = vector.broadcast %cst_18 : f32 to vector<2x128xf32>
    %50 = arith.addf %49, %48 : vector<2x128xf32>
    %51 = arith.divf %49, %50 : vector<2x128xf32>
    %52 = vector.extract_strided_slice %45 {offsets = [0, 128], sizes = [2, 128], strides = [1, 1]} : vector<2x512xf32> to vector<2x128xf32>
    %53 = arith.negf %52 : vector<2x128xf32>
    %54 = math.exp %53 : vector<2x128xf32>
    %cst_19 = arith.constant 1.000000e+00 : f32
    %55 = vector.broadcast %cst_19 : f32 to vector<2x128xf32>
    %56 = arith.addf %55, %54 : vector<2x128xf32>
    %57 = arith.divf %55, %56 : vector<2x128xf32>
    %58 = vector.extract_strided_slice %45 {offsets = [0, 256], sizes = [2, 128], strides = [1, 1]} : vector<2x512xf32> to vector<2x128xf32>
    %59 = math.tanh %58 : vector<2x128xf32>
    %60 = vector.extract_strided_slice %45 {offsets = [0, 384], sizes = [2, 128], strides = [1, 1]} : vector<2x512xf32> to vector<2x128xf32>
    %61 = arith.negf %60 : vector<2x128xf32>
    %62 = math.exp %61 : vector<2x128xf32>
    %cst_20 = arith.constant 1.000000e+00 : f32
    %63 = vector.broadcast %cst_20 : f32 to vector<2x128xf32>
    %64 = arith.addf %63, %62 : vector<2x128xf32>
    %65 = arith.divf %63, %64 : vector<2x128xf32>
    %66 = arith.mulf %57, %41 : vector<2x128xf32>
    %67 = arith.mulf %51, %59 : vector<2x128xf32>
    %68 = arith.addf %66, %67 : vector<2x128xf32>
    %69 = math.tanh %68 : vector<2x128xf32>
    %70 = arith.mulf %65, %69 : vector<2x128xf32>
    %c4 = arith.constant 4 : index
    %c0_21 = arith.constant 0 : index
    %71 = vector.load %arg12[%c4, %c0_21] : memref<16x512xf32, #tpu.memory_space<vmem>>, vector<2x512xf32>
    %c0_22 = arith.constant 0 : index
    %c0_23 = arith.constant 0 : index
    %72 = vector.load %arg3[%c0_22, %c0_23] : memref<128x512xf32, #tpu.memory_space<vmem>>, vector<128x512xf32>
    %cst_24 = arith.constant dense<0.000000e+00> : vector<2x512xf32>
    %73 = tpu.matmul %70, %72, %cst_24 {dimension_numbers = #tpu.dot_dimension_numbers<[1], [0], [0], [1], [0, 0, 1, 1], [], []>, precision = #tpu.contract_precision<fp32>} : vector<2x128xf32>, vector<128x512xf32>, vector<2x512xf32> -> vector<2x512xf32>
    %74 = arith.addf %71, %73 : vector<2x512xf32>
    %75 = vector.extract_strided_slice %74 {offsets = [0, 0], sizes = [2, 128], strides = [1, 1]} : vector<2x512xf32> to vector<2x128xf32>
    %76 = arith.negf %75 : vector<2x128xf32>
    %77 = math.exp %76 : vector<2x128xf32>
    %cst_25 = arith.constant 1.000000e+00 : f32
    %78 = vector.broadcast %cst_25 : f32 to vector<2x128xf32>
    %79 = arith.addf %78, %77 : vector<2x128xf32>
    %80 = arith.divf %78, %79 : vector<2x128xf32>
    %81 = vector.extract_strided_slice %74 {offsets = [0, 128], sizes = [2, 128], strides = [1, 1]} : vector<2x512xf32> to vector<2x128xf32>
    %82 = arith.negf %81 : vector<2x128xf32>
    %83 = math.exp %82 : vector<2x128xf32>
    %cst_26 = arith.constant 1.000000e+00 : f32
    %84 = vector.broadcast %cst_26 : f32 to vector<2x128xf32>
    %85 = arith.addf %84, %83 : vector<2x128xf32>
    %86 = arith.divf %84, %85 : vector<2x128xf32>
    %87 = vector.extract_strided_slice %74 {offsets = [0, 256], sizes = [2, 128], strides = [1, 1]} : vector<2x512xf32> to vector<2x128xf32>
    %88 = math.tanh %87 : vector<2x128xf32>
    %89 = vector.extract_strided_slice %74 {offsets = [0, 384], sizes = [2, 128], strides = [1, 1]} : vector<2x512xf32> to vector<2x128xf32>
    %90 = arith.negf %89 : vector<2x128xf32>
    %91 = math.exp %90 : vector<2x128xf32>
    %cst_27 = arith.constant 1.000000e+00 : f32
    %92 = vector.broadcast %cst_27 : f32 to vector<2x128xf32>
    %93 = arith.addf %92, %91 : vector<2x128xf32>
    %94 = arith.divf %92, %93 : vector<2x128xf32>
    %95 = arith.mulf %86, %68 : vector<2x128xf32>
    %96 = arith.mulf %80, %88 : vector<2x128xf32>
    %97 = arith.addf %95, %96 : vector<2x128xf32>
    %98 = math.tanh %97 : vector<2x128xf32>
    %99 = arith.mulf %94, %98 : vector<2x128xf32>
    %c6 = arith.constant 6 : index
    %c0_28 = arith.constant 0 : index
    %100 = vector.load %arg12[%c6, %c0_28] : memref<16x512xf32, #tpu.memory_space<vmem>>, vector<2x512xf32>
    %c0_29 = arith.constant 0 : index
    %c0_30 = arith.constant 0 : index
    %101 = vector.load %arg3[%c0_29, %c0_30] : memref<128x512xf32, #tpu.memory_space<vmem>>, vector<128x512xf32>
    %cst_31 = arith.constant dense<0.000000e+00> : vector<2x512xf32>
    %102 = tpu.matmul %99, %101, %cst_31 {dimension_numbers = #tpu.dot_dimension_numbers<[1], [0], [0], [1], [0, 0, 1, 1], [], []>, precision = #tpu.contract_precision<fp32>} : vector<2x128xf32>, vector<128x512xf32>, vector<2x512xf32> -> vector<2x512xf32>
    %103 = arith.addf %100, %102 : vector<2x512xf32>
    %104 = vector.extract_strided_slice %103 {offsets = [0, 0], sizes = [2, 128], strides = [1, 1]} : vector<2x512xf32> to vector<2x128xf32>
    %105 = arith.negf %104 : vector<2x128xf32>
    %106 = math.exp %105 : vector<2x128xf32>
    %cst_32 = arith.constant 1.000000e+00 : f32
    %107 = vector.broadcast %cst_32 : f32 to vector<2x128xf32>
    %108 = arith.addf %107, %106 : vector<2x128xf32>
    %109 = arith.divf %107, %108 : vector<2x128xf32>
    %110 = vector.extract_strided_slice %103 {offsets = [0, 128], sizes = [2, 128], strides = [1, 1]} : vector<2x512xf32> to vector<2x128xf32>
    %111 = arith.negf %110 : vector<2x128xf32>
    %112 = math.exp %111 : vector<2x128xf32>
    %cst_33 = arith.constant 1.000000e+00 : f32
    %113 = vector.broadcast %cst_33 : f32 to vector<2x128xf32>
    %114 = arith.addf %113, %112 : vector<2x128xf32>
    %115 = arith.divf %113, %114 : vector<2x128xf32>
    %116 = vector.extract_strided_slice %103 {offsets = [0, 256], sizes = [2, 128], strides = [1, 1]} : vector<2x512xf32> to vector<2x128xf32>
    %117 = math.tanh %116 : vector<2x128xf32>
    %118 = vector.extract_strided_slice %103 {offsets = [0, 384], sizes = [2, 128], strides = [1, 1]} : vector<2x512xf32> to vector<2x128xf32>
    %119 = arith.negf %118 : vector<2x128xf32>
    %120 = math.exp %119 : vector<2x128xf32>
    %cst_34 = arith.constant 1.000000e+00 : f32
    %121 = vector.broadcast %cst_34 : f32 to vector<2x128xf32>
    %122 = arith.addf %121, %120 : vector<2x128xf32>
    %123 = arith.divf %121, %122 : vector<2x128xf32>
    %124 = arith.mulf %115, %97 : vector<2x128xf32>
    %125 = arith.mulf %109, %117 : vector<2x128xf32>
    %126 = arith.addf %124, %125 : vector<2x128xf32>
    %127 = math.tanh %126 : vector<2x128xf32>
    %128 = arith.mulf %123, %127 : vector<2x128xf32>
    %c8 = arith.constant 8 : index
    %c0_35 = arith.constant 0 : index
    %129 = vector.load %arg12[%c8, %c0_35] : memref<16x512xf32, #tpu.memory_space<vmem>>, vector<2x512xf32>
    %c0_36 = arith.constant 0 : index
    %c0_37 = arith.constant 0 : index
    %130 = vector.load %arg3[%c0_36, %c0_37] : memref<128x512xf32, #tpu.memory_space<vmem>>, vector<128x512xf32>
    %cst_38 = arith.constant dense<0.000000e+00> : vector<2x512xf32>
    %131 = tpu.matmul %128, %130, %cst_38 {dimension_numbers = #tpu.dot_dimension_numbers<[1], [0], [0], [1], [0, 0, 1, 1], [], []>, precision = #tpu.contract_precision<fp32>} : vector<2x128xf32>, vector<128x512xf32>, vector<2x512xf32> -> vector<2x512xf32>
    %132 = arith.addf %129, %131 : vector<2x512xf32>
    %133 = vector.extract_strided_slice %132 {offsets = [0, 0], sizes = [2, 128], strides = [1, 1]} : vector<2x512xf32> to vector<2x128xf32>
    %134 = arith.negf %133 : vector<2x128xf32>
    %135 = math.exp %134 : vector<2x128xf32>
    %cst_39 = arith.constant 1.000000e+00 : f32
    %136 = vector.broadcast %cst_39 : f32 to vector<2x128xf32>
    %137 = arith.addf %136, %135 : vector<2x128xf32>
    %138 = arith.divf %136, %137 : vector<2x128xf32>
    %139 = vector.extract_strided_slice %132 {offsets = [0, 128], sizes = [2, 128], strides = [1, 1]} : vector<2x512xf32> to vector<2x128xf32>
    %140 = arith.negf %139 : vector<2x128xf32>
    %141 = math.exp %140 : vector<2x128xf32>
    %cst_40 = arith.constant 1.000000e+00 : f32
    %142 = vector.broadcast %cst_40 : f32 to vector<2x128xf32>
    %143 = arith.addf %142, %141 : vector<2x128xf32>
    %144 = arith.divf %142, %143 : vector<2x128xf32>
    %145 = vector.extract_strided_slice %132 {offsets = [0, 256], sizes = [2, 128], strides = [1, 1]} : vector<2x512xf32> to vector<2x128xf32>
    %146 = math.tanh %145 : vector<2x128xf32>
    %147 = vector.extract_strided_slice %132 {offsets = [0, 384], sizes = [2, 128], strides = [1, 1]} : vector<2x512xf32> to vector<2x128xf32>
    %148 = arith.negf %147 : vector<2x128xf32>
    %149 = math.exp %148 : vector<2x128xf32>
    %cst_41 = arith.constant 1.000000e+00 : f32
    %150 = vector.broadcast %cst_41 : f32 to vector<2x128xf32>
    %151 = arith.addf %150, %149 : vector<2x128xf32>
    %152 = arith.divf %150, %151 : vector<2x128xf32>
    %153 = arith.mulf %144, %126 : vector<2x128xf32>
    %154 = arith.mulf %138, %146 : vector<2x128xf32>
    %155 = arith.addf %153, %154 : vector<2x128xf32>
    %156 = math.tanh %155 : vector<2x128xf32>
    %157 = arith.mulf %152, %156 : vector<2x128xf32>
    %c10 = arith.constant 10 : index
    %c0_42 = arith.constant 0 : index
    %158 = vector.load %arg12[%c10, %c0_42] : memref<16x512xf32, #tpu.memory_space<vmem>>, vector<2x512xf32>
    %c0_43 = arith.constant 0 : index
    %c0_44 = arith.constant 0 : index
    %159 = vector.load %arg3[%c0_43, %c0_44] : memref<128x512xf32, #tpu.memory_space<vmem>>, vector<128x512xf32>
    %cst_45 = arith.constant dense<0.000000e+00> : vector<2x512xf32>
    %160 = tpu.matmul %157, %159, %cst_45 {dimension_numbers = #tpu.dot_dimension_numbers<[1], [0], [0], [1], [0, 0, 1, 1], [], []>, precision = #tpu.contract_precision<fp32>} : vector<2x128xf32>, vector<128x512xf32>, vector<2x512xf32> -> vector<2x512xf32>
    %161 = arith.addf %158, %160 : vector<2x512xf32>
    %162 = vector.extract_strided_slice %161 {offsets = [0, 0], sizes = [2, 128], strides = [1, 1]} : vector<2x512xf32> to vector<2x128xf32>
    %163 = arith.negf %162 : vector<2x128xf32>
    %164 = math.exp %163 : vector<2x128xf32>
    %cst_46 = arith.constant 1.000000e+00 : f32
    %165 = vector.broadcast %cst_46 : f32 to vector<2x128xf32>
    %166 = arith.addf %165, %164 : vector<2x128xf32>
    %167 = arith.divf %165, %166 : vector<2x128xf32>
    %168 = vector.extract_strided_slice %161 {offsets = [0, 128], sizes = [2, 128], strides = [1, 1]} : vector<2x512xf32> to vector<2x128xf32>
    %169 = arith.negf %168 : vector<2x128xf32>
    %170 = math.exp %169 : vector<2x128xf32>
    %cst_47 = arith.constant 1.000000e+00 : f32
    %171 = vector.broadcast %cst_47 : f32 to vector<2x128xf32>
    %172 = arith.addf %171, %170 : vector<2x128xf32>
    %173 = arith.divf %171, %172 : vector<2x128xf32>
    %174 = vector.extract_strided_slice %161 {offsets = [0, 256], sizes = [2, 128], strides = [1, 1]} : vector<2x512xf32> to vector<2x128xf32>
    %175 = math.tanh %174 : vector<2x128xf32>
    %176 = vector.extract_strided_slice %161 {offsets = [0, 384], sizes = [2, 128], strides = [1, 1]} : vector<2x512xf32> to vector<2x128xf32>
    %177 = arith.negf %176 : vector<2x128xf32>
    %178 = math.exp %177 : vector<2x128xf32>
    %cst_48 = arith.constant 1.000000e+00 : f32
    %179 = vector.broadcast %cst_48 : f32 to vector<2x128xf32>
    %180 = arith.addf %179, %178 : vector<2x128xf32>
    %181 = arith.divf %179, %180 : vector<2x128xf32>
    %182 = arith.mulf %173, %155 : vector<2x128xf32>
    %183 = arith.mulf %167, %175 : vector<2x128xf32>
    %184 = arith.addf %182, %183 : vector<2x128xf32>
    %185 = math.tanh %184 : vector<2x128xf32>
    %186 = arith.mulf %181, %185 : vector<2x128xf32>
    %c12 = arith.constant 12 : index
    %c0_49 = arith.constant 0 : index
    %187 = vector.load %arg12[%c12, %c0_49] : memref<16x512xf32, #tpu.memory_space<vmem>>, vector<2x512xf32>
    %c0_50 = arith.constant 0 : index
    %c0_51 = arith.constant 0 : index
    %188 = vector.load %arg3[%c0_50, %c0_51] : memref<128x512xf32, #tpu.memory_space<vmem>>, vector<128x512xf32>
    %cst_52 = arith.constant dense<0.000000e+00> : vector<2x512xf32>
    %189 = tpu.matmul %186, %188, %cst_52 {dimension_numbers = #tpu.dot_dimension_numbers<[1], [0], [0], [1], [0, 0, 1, 1], [], []>, precision = #tpu.contract_precision<fp32>} : vector<2x128xf32>, vector<128x512xf32>, vector<2x512xf32> -> vector<2x512xf32>
    %190 = arith.addf %187, %189 : vector<2x512xf32>
    %191 = vector.extract_strided_slice %190 {offsets = [0, 0], sizes = [2, 128], strides = [1, 1]} : vector<2x512xf32> to vector<2x128xf32>
    %192 = arith.negf %191 : vector<2x128xf32>
    %193 = math.exp %192 : vector<2x128xf32>
    %cst_53 = arith.constant 1.000000e+00 : f32
    %194 = vector.broadcast %cst_53 : f32 to vector<2x128xf32>
    %195 = arith.addf %194, %193 : vector<2x128xf32>
    %196 = arith.divf %194, %195 : vector<2x128xf32>
    %197 = vector.extract_strided_slice %190 {offsets = [0, 128], sizes = [2, 128], strides = [1, 1]} : vector<2x512xf32> to vector<2x128xf32>
    %198 = arith.negf %197 : vector<2x128xf32>
    %199 = math.exp %198 : vector<2x128xf32>
    %cst_54 = arith.constant 1.000000e+00 : f32
    %200 = vector.broadcast %cst_54 : f32 to vector<2x128xf32>
    %201 = arith.addf %200, %199 : vector<2x128xf32>
    %202 = arith.divf %200, %201 : vector<2x128xf32>
    %203 = vector.extract_strided_slice %190 {offsets = [0, 256], sizes = [2, 128], strides = [1, 1]} : vector<2x512xf32> to vector<2x128xf32>
    %204 = math.tanh %203 : vector<2x128xf32>
    %205 = vector.extract_strided_slice %190 {offsets = [0, 384], sizes = [2, 128], strides = [1, 1]} : vector<2x512xf32> to vector<2x128xf32>
    %206 = arith.negf %205 : vector<2x128xf32>
    %207 = math.exp %206 : vector<2x128xf32>
    %cst_55 = arith.constant 1.000000e+00 : f32
    %208 = vector.broadcast %cst_55 : f32 to vector<2x128xf32>
    %209 = arith.addf %208, %207 : vector<2x128xf32>
    %210 = arith.divf %208, %209 : vector<2x128xf32>
    %211 = arith.mulf %202, %184 : vector<2x128xf32>
    %212 = arith.mulf %196, %204 : vector<2x128xf32>
    %213 = arith.addf %211, %212 : vector<2x128xf32>
    %214 = math.tanh %213 : vector<2x128xf32>
    %215 = arith.mulf %210, %214 : vector<2x128xf32>
    %c14 = arith.constant 14 : index
    %c0_56 = arith.constant 0 : index
    %216 = vector.load %arg12[%c14, %c0_56] : memref<16x512xf32, #tpu.memory_space<vmem>>, vector<2x512xf32>
    %c0_57 = arith.constant 0 : index
    %c0_58 = arith.constant 0 : index
    %217 = vector.load %arg3[%c0_57, %c0_58] : memref<128x512xf32, #tpu.memory_space<vmem>>, vector<128x512xf32>
    %cst_59 = arith.constant dense<0.000000e+00> : vector<2x512xf32>
    %218 = tpu.matmul %215, %217, %cst_59 {dimension_numbers = #tpu.dot_dimension_numbers<[1], [0], [0], [1], [0, 0, 1, 1], [], []>, precision = #tpu.contract_precision<fp32>} : vector<2x128xf32>, vector<128x512xf32>, vector<2x512xf32> -> vector<2x512xf32>
    %219 = arith.addf %216, %218 : vector<2x512xf32>
    %220 = vector.extract_strided_slice %219 {offsets = [0, 0], sizes = [2, 128], strides = [1, 1]} : vector<2x512xf32> to vector<2x128xf32>
    %221 = arith.negf %220 : vector<2x128xf32>
    %222 = math.exp %221 : vector<2x128xf32>
    %cst_60 = arith.constant 1.000000e+00 : f32
    %223 = vector.broadcast %cst_60 : f32 to vector<2x128xf32>
    %224 = arith.addf %223, %222 : vector<2x128xf32>
    %225 = arith.divf %223, %224 : vector<2x128xf32>
    %226 = vector.extract_strided_slice %219 {offsets = [0, 128], sizes = [2, 128], strides = [1, 1]} : vector<2x512xf32> to vector<2x128xf32>
    %227 = arith.negf %226 : vector<2x128xf32>
    %228 = math.exp %227 : vector<2x128xf32>
    %cst_61 = arith.constant 1.000000e+00 : f32
    %229 = vector.broadcast %cst_61 : f32 to vector<2x128xf32>
    %230 = arith.addf %229, %228 : vector<2x128xf32>
    %231 = arith.divf %229, %230 : vector<2x128xf32>
    %232 = vector.extract_strided_slice %219 {offsets = [0, 256], sizes = [2, 128], strides = [1, 1]} : vector<2x512xf32> to vector<2x128xf32>
    %233 = math.tanh %232 : vector<2x128xf32>
    %234 = vector.extract_strided_slice %219 {offsets = [0, 384], sizes = [2, 128], strides = [1, 1]} : vector<2x512xf32> to vector<2x128xf32>
    %235 = arith.negf %234 : vector<2x128xf32>
    %236 = math.exp %235 : vector<2x128xf32>
    %cst_62 = arith.constant 1.000000e+00 : f32
    %237 = vector.broadcast %cst_62 : f32 to vector<2x128xf32>
    %238 = arith.addf %237, %236 : vector<2x128xf32>
    %239 = arith.divf %237, %238 : vector<2x128xf32>
    %240 = arith.mulf %231, %213 : vector<2x128xf32>
    %241 = arith.mulf %225, %233 : vector<2x128xf32>
    %242 = arith.addf %240, %241 : vector<2x128xf32>
    %243 = math.tanh %242 : vector<2x128xf32>
    %244 = arith.mulf %239, %243 : vector<2x128xf32>
    %c0_63 = arith.constant 0 : index
    %c0_64 = arith.constant 0 : index
    %245 = vector.load %arg4[%c0_63, %c0_64] : memref<1x512xf32, #tpu.memory_space<vmem>>, vector<1x512xf32>
    %c0_65 = arith.constant 0 : index
    %c0_66 = arith.constant 0 : index
    %246 = vector.load %arg3[%c0_65, %c0_66] : memref<128x512xf32, #tpu.memory_space<vmem>>, vector<128x512xf32>
    %cst_67 = arith.constant dense<0.000000e+00> : vector<2x512xf32>
    %247 = tpu.matmul %244, %246, %cst_67 {dimension_numbers = #tpu.dot_dimension_numbers<[1], [0], [0], [1], [0, 0, 1, 1], [], []>, precision = #tpu.contract_precision<fp32>} : vector<2x128xf32>, vector<128x512xf32>, vector<2x512xf32> -> vector<2x512xf32>
    %248 = vector.broadcast %245 : vector<1x512xf32> to vector<2x512xf32>
    %249 = arith.addf %248, %247 : vector<2x512xf32>
    %250 = vector.extract_strided_slice %249 {offsets = [0, 0], sizes = [2, 128], strides = [1, 1]} : vector<2x512xf32> to vector<2x128xf32>
    %251 = arith.negf %250 : vector<2x128xf32>
    %252 = math.exp %251 : vector<2x128xf32>
    %cst_68 = arith.constant 1.000000e+00 : f32
    %253 = vector.broadcast %cst_68 : f32 to vector<2x128xf32>
    %254 = arith.addf %253, %252 : vector<2x128xf32>
    %255 = arith.divf %253, %254 : vector<2x128xf32>
    %256 = vector.extract_strided_slice %249 {offsets = [0, 128], sizes = [2, 128], strides = [1, 1]} : vector<2x512xf32> to vector<2x128xf32>
    %257 = arith.negf %256 : vector<2x128xf32>
    %258 = math.exp %257 : vector<2x128xf32>
    %cst_69 = arith.constant 1.000000e+00 : f32
    %259 = vector.broadcast %cst_69 : f32 to vector<2x128xf32>
    %260 = arith.addf %259, %258 : vector<2x128xf32>
    %261 = arith.divf %259, %260 : vector<2x128xf32>
    %262 = vector.extract_strided_slice %249 {offsets = [0, 256], sizes = [2, 128], strides = [1, 1]} : vector<2x512xf32> to vector<2x128xf32>
    %263 = math.tanh %262 : vector<2x128xf32>
    %264 = vector.extract_strided_slice %249 {offsets = [0, 384], sizes = [2, 128], strides = [1, 1]} : vector<2x512xf32> to vector<2x128xf32>
    %265 = arith.negf %264 : vector<2x128xf32>
    %266 = math.exp %265 : vector<2x128xf32>
    %cst_70 = arith.constant 1.000000e+00 : f32
    %267 = vector.broadcast %cst_70 : f32 to vector<2x128xf32>
    %268 = arith.addf %267, %266 : vector<2x128xf32>
    %269 = arith.divf %267, %268 : vector<2x128xf32>
    %270 = arith.mulf %261, %242 : vector<2x128xf32>
    %271 = arith.mulf %255, %263 : vector<2x128xf32>
    %272 = arith.addf %270, %271 : vector<2x128xf32>
    %273 = math.tanh %272 : vector<2x128xf32>
    %274 = arith.mulf %269, %273 : vector<2x128xf32>
    %275 = vector.extract_strided_slice %274 {offsets = [0, 64], sizes = [2, 64], strides = [1, 1]} : vector<2x128xf32> to vector<2x64xf32>
    %c0_71 = arith.constant 0 : index
    %c0_72 = arith.constant 0 : index
    %276 = vector.load %arg5[%c0_71, %c0_72] : memref<64x32xf32, #tpu.memory_space<vmem>>, vector<64x32xf32>
    %cst_73 = arith.constant dense<0.000000e+00> : vector<2x32xf32>
    %277 = tpu.matmul %275, %276, %cst_73 {dimension_numbers = #tpu.dot_dimension_numbers<[1], [0], [0], [1], [0, 0, 1, 1], [], []>, precision = #tpu.contract_precision<fp32>} : vector<2x64xf32>, vector<64x32xf32>, vector<2x32xf32> -> vector<2x32xf32>
    %c0_74 = arith.constant 0 : index
    %c0_75 = arith.constant 0 : index
    %278 = vector.load %arg6[%c0_74, %c0_75] : memref<1x32xf32, #tpu.memory_space<vmem>>, vector<1x32xf32>
    %279 = vector.broadcast %278 : vector<1x32xf32> to vector<2x32xf32>
    %280 = arith.addf %277, %279 : vector<2x32xf32>
    %cst_76 = arith.constant 0.000000e+00 : f32
    %281 = vector.broadcast %cst_76 : f32 to vector<2x32xf32>
    %282 = arith.maximumf %280, %281 : vector<2x32xf32>
    %c0_77 = arith.constant 0 : index
    %c0_78 = arith.constant 0 : index
    %283 = vector.load %arg7[%c0_77, %c0_78] : memref<32x16xf32, #tpu.memory_space<vmem>>, vector<32x16xf32>
    %cst_79 = arith.constant dense<0.000000e+00> : vector<2x16xf32>
    %284 = tpu.matmul %282, %283, %cst_79 {dimension_numbers = #tpu.dot_dimension_numbers<[1], [0], [0], [1], [0, 0, 1, 1], [], []>, precision = #tpu.contract_precision<fp32>} : vector<2x32xf32>, vector<32x16xf32>, vector<2x16xf32> -> vector<2x16xf32>
    %c0_80 = arith.constant 0 : index
    %c0_81 = arith.constant 0 : index
    %285 = vector.load %arg8[%c0_80, %c0_81] : memref<1x16xf32, #tpu.memory_space<vmem>>, vector<1x16xf32>
    %286 = vector.broadcast %285 : vector<1x16xf32> to vector<2x16xf32>
    %287 = arith.addf %284, %286 : vector<2x16xf32>
    %cst_82 = arith.constant 0.000000e+00 : f32
    %288 = vector.broadcast %cst_82 : f32 to vector<2x16xf32>
    %289 = arith.maximumf %287, %288 : vector<2x16xf32>
    %c0_83 = arith.constant 0 : index
    %c0_84 = arith.constant 0 : index
    %290 = vector.load %arg9[%c0_83, %c0_84] : memref<16x1xf32, #tpu.memory_space<vmem>>, vector<16x1xf32>
    %cst_85 = arith.constant dense<0.000000e+00> : vector<2x1xf32>
    %291 = tpu.matmul %289, %290, %cst_85 {dimension_numbers = #tpu.dot_dimension_numbers<[1], [0], [0], [1], [0, 0, 1, 1], [], []>, precision = #tpu.contract_precision<fp32>} : vector<2x16xf32>, vector<16x1xf32>, vector<2x1xf32> -> vector<2x1xf32>
    %c0_86 = arith.constant 0 : index
    %c0_87 = arith.constant 0 : index
    %292 = vector.load %arg10[%c0_86, %c0_87] : memref<1x1xf32, #tpu.memory_space<vmem>>, vector<1x1xf32>
    %293 = vector.broadcast %292 : vector<1x1xf32> to vector<2x1xf32>
    %294 = arith.addf %291, %293 : vector<2x1xf32>
    %c0_88 = arith.constant 0 : index
    %c0_89 = arith.constant 0 : index
    %295 = vector.load %arg11[%c0_88, %c0_89] : memref<2x1xf32, #tpu.memory_space<vmem>>, vector<2x1xf32>
    tpu.vector_store %arg11[%c0_88, %c0_89], %294 {strides = array<i32>} : memref<2x1xf32, #tpu.memory_space<vmem>>, vector<2x1xf32>,
    return
  }
  func.func @transform_0(%arg0: i32) -> (i32, i32, i32) {
    %c0_i32 = arith.constant 0 : i32
    %c0_i32_0 = arith.constant 0 : i32
    %c0_i32_1 = arith.constant 0 : i32
    return %arg0, %c0_i32, %c0_i32_0 : i32, i32, i32
  }
  func.func @transform_1(%arg0: i32) -> (i32, i32) {
    %c0_i32 = arith.constant 0 : i32
    %c0_i32_0 = arith.constant 0 : i32
    %c0_i32_1 = arith.constant 0 : i32
    return %c0_i32, %c0_i32_0 : i32, i32
  }
  func.func @transform_2(%arg0: i32) -> (i32, i32) {
    %c0_i32 = arith.constant 0 : i32
    %c0_i32_0 = arith.constant 0 : i32
    %c0_i32_1 = arith.constant 0 : i32
    return %c0_i32, %c0_i32_0 : i32, i32
  }
  func.func @transform_3(%arg0: i32) -> (i32, i32) {
    %c0_i32 = arith.constant 0 : i32
    %c0_i32_0 = arith.constant 0 : i32
    %c0_i32_1 = arith.constant 0 : i32
    return %c0_i32, %c0_i32_0 : i32, i32
  }
  func.func @transform_4(%arg0: i32) -> (i32, i32) {
    %c0_i32 = arith.constant 0 : i32
    %c0_i32_0 = arith.constant 0 : i32
    %c0_i32_1 = arith.constant 0 : i32
    return %c0_i32, %c0_i32_0 : i32, i32
  }
  func.func @transform_5(%arg0: i32) -> (i32, i32) {
    %c0_i32 = arith.constant 0 : i32
    %c0_i32_0 = arith.constant 0 : i32
    %c0_i32_1 = arith.constant 0 : i32
    return %c0_i32, %c0_i32_0 : i32, i32
  }
  func.func @transform_6(%arg0: i32) -> (i32, i32) {
    %c0_i32 = arith.constant 0 : i32
    %c0_i32_0 = arith.constant 0 : i32
    %c0_i32_1 = arith.constant 0 : i32
    return %c0_i32, %c0_i32_0 : i32, i32
  }
  func.func @transform_7(%arg0: i32) -> (i32, i32) {
    %c0_i32 = arith.constant 0 : i32
    %c0_i32_0 = arith.constant 0 : i32
    %c0_i32_1 = arith.constant 0 : i32
    return %c0_i32, %c0_i32_0 : i32, i32
  }
  func.func @transform_8(%arg0: i32) -> (i32, i32) {
    %c0_i32 = arith.constant 0 : i32
    %c0_i32_0 = arith.constant 0 : i32
    %c0_i32_1 = arith.constant 0 : i32
    return %c0_i32, %c0_i32_0 : i32, i32
  }
  func.func @transform_9(%arg0: i32) -> (i32, i32) {
    %c0_i32 = arith.constant 0 : i32
    %c0_i32_0 = arith.constant 0 : i32
    %c0_i32_1 = arith.constant 0 : i32
    return %c0_i32, %c0_i32_0 : i32, i32
  }
  func.func @transform_10(%arg0: i32) -> (i32, i32) {
    %c0_i32 = arith.constant 0 : i32
    %c0_i32_0 = arith.constant 0 : i32
    return %arg0, %c0_i32 : i32, i32
  }
}

</mosaic_0001>

<bundles_post_ra>
// kernel: lstm_predictor_forward.1
= control target key start
LH: loop header
LB: loop body
LE: loop exit
PB: predicated region body
PF: predicated region fallthrough
CT: control target
= control target key end

     0   :  { %s22062_s0 = inlined_call_operand.vmem [shape: f32[1,16,8], index: 0, kind: input, shape index: {}]   ;;  %s22063_s1 = inlined_call_operand.vmem [shape: f32[8,512], index: 1, kind: input, shape index: {}]   ;;  %s22064_s2 = inlined_call_operand.hbm [shape: f32[128,512], index: 2, kind: input, shape index: {}]   ;;  %s22065_s3 = inlined_call_operand.vmem [shape: f32[1,512], index: 3, kind: input, shape index: {}]   ;;  %s22066_s4 = inlined_call_operand.vmem [shape: f32[64,32], index: 4, kind: input, shape index: {}]   ;;  %s22067_s5 = inlined_call_operand.vmem [shape: f32[1,32], index: 5, kind: input, shape index: {}]   ;;  %s22068_s6 = inlined_call_operand.vmem [shape: f32[32,16], index: 6, kind: input, shape index: {}]   ;;  %s22069_s7 = inlined_call_operand.vmem [shape: f32[1,16], index: 7, kind: input, shape index: {}]   ;;  %s22070_s8 = inlined_call_operand.vmem [shape: f32[16,1], index: 8, kind: input, shape index: {}]   ;;  %s22071_s9 = inlined_call_operand.<no memory space> [shape: f32[1,1], index: 9, kind: input, shape index: {}]   ;;  %s22072_s10 = inlined_call_operand.vmem [shape: f32[2,1], index: 10, kind: output, shape index: {}]  }
   0x1   :  { %v15_v0 = vstv %s22071_s9 }
   0x2   :  { %16 = vst [vmem:[#allocation3] sm:$0x1] %v15_v0 }
   0x3   :  { %17 = vsyncpa [#allocation5], 0  ;;  %s17355_s15 = smov [#allocation4]  }
   0x4   :  { %s27_s16 = sshll.u32 %s17355_s15, 4  ;;  %s28_s16 = int_to_ptr.vmem [resolvable:$true] %s27_s16 }
   0x5   :  { %s17341_s17 = scalar_lea.vmem %s28_s16, 8192  ;;  %p17346_p1 = scmp.lt.s32.totalorder %s28_s16, %s28_s16 }
   0x6   :  { %p17342_p0 = scmp.ne.s32.totalorder %s28_s16, %s17341_s17  ;;  %p17347_p2 = scmp.lt.s32.totalorder %s17341_s17, %s17341_s17 }
   0x8   :  { %p17348_p3 = por %p17347_p2, %p17346_p1 }
   0xa   :  { %p17349_p4 = pnand %p17348_p3, %p17342_p0 }
   0xc   :  { %17352 = shalt.err (!%p17349_p4)
}
   0xd   :  { %s17356_s18 = smov 512   ;;  %s17357_s19 = smov 32  }
   0xe   :  { %33 = dma.hbm_to_vmem [thread:$0]  %s22064_s2, 8192, %s28_s16, [#allocation5], %s17356_s18, %s17356_s18, %s17357_s19  }
   0xf   :  { %17353 = dma.done.wait [#allocation5], 8192  }
  0x10   :  { %17354 = vsyncadd [#allocation5], 4294959104  ;;  %v22073_v1 = vmov 0.0   ;;  %vm79_vm0 = vcmask 64512   ;;  %v54_v2 = vld [vmem:[%s22063_s1 + $0x8] sm:$0xff]  ;;  %v53_v3 = vld [vmem:[%s22063_s1] sm:$0xff] }
  0x11   :  { %152 = vmatprep.mubr.f32.mxu0 %v22073_v1  ;;  %249 = vmatprep.mubr.f32.mxu1 %v22073_v1  ;;  %v51_v4 = vld [vmem:[%s22062_s0] sm:$0xff]  ;;  %v116_v5 = vand.u32 4294901760, %v54_v2  ;;  %v118_v6 = vand.u32 4294901760, %v53_v3  ;;  %v52_v8 = vld [vmem:[%s22062_s0 + $0x8] sm:$0xff]  ;;  %v56_v9 = vld [vmem:[%s22063_s1 + $0x18] sm:$0xff]  ;;  %vm17359_vm2 = vmmov 0  }
  0x12   :  { %v81_v7 = vsel %vm79_vm0, %v51_v4, 0  ;;  %v84_v11 = vsel %vm79_vm0, %v52_v8, 0  ;;  %v17446_v16 = vand.u32 4294901760, %v56_v9  ;;  %v55_v24 = vld [vmem:[%s22063_s1 + $0x10] sm:$0xff]  ;;  %v1221_v42 = vld [vmem:[#allocation4 + $0x1e0] sm:$0xff]  ;;  %vm15307_vm3 = vcmask 523264  }
  0x13   :  { %v17439_v10 = vand.u32 4294901760, %v81_v7  ;;  %117 = vmatprep.subr.mxu0 %v116_v5  ;;  %v206_v12 = vsub.f32 %v54_v2, %v116_v5  ;;  %v212_v13 = vsub.f32 %v53_v3, %v118_v6  ;;  %v17441_v14 = vand.u32 4294901760, %v84_v11  ;;  %v1222_v40 = vld [vmem:[#allocation4 + $0x1e8] sm:$0xff]  ;;  %v1217_v47 = vld [vmem:[#allocation4 + $0x1c0] sm:$0xff] }
  0x14   :  { %119 = vmatpush1.msra.mxu0 %v118_v6  ;;  %v720_v26 = vsub.f32 %v56_v9, %v17446_v16  ;;  %v632_v31 = vand.u32 4294901760, %v55_v24  ;;  %v17512_v41 = vand.u32 4294901760, %v1222_v40  ;;  %v17514_v43 = vand.u32 4294901760, %v1221_v42  ;;  %v1218_v44 = vld [vmem:[#allocation4 + $0x1c8] sm:$0xff]  ;;  %v1213_v54 = vld [vmem:[#allocation4 + $0x1a0] sm:$0xff] }
  0x15   :  { %v17444_v15 = vsub.f32 %v81_v7, %v17439_v10  ;;  %v207_v17 = vand.u32 4294901760, %v206_v12  ;;  %296 = vmatprep.subr.mxu0 %v206_v12  ;;  %v213_v18 = vand.u32 4294901760, %v212_v13  ;;  %v17449_v19 = vsub.f32 %v84_v11, %v17441_v14  ;;  %v1214_v50 = vld [vmem:[#allocation4 + $0x1a8] sm:$0xff]  ;;  %v1209_v63 = vld [vmem:[#allocation4 + $0x180] sm:$0xff] }
  0x16   :  { %v721_v33 = vand.u32 4294901760, %v720_v26  ;;  %v726_v34 = vsub.f32 %v55_v24, %v632_v31  ;;  %22827 = vst [vmem:[#allocation7_spill] sm:$0xff] %v17512_v41  ;;  %22828 = vst [vmem:[#allocation8_spill] sm:$0xff] %v17514_v43  ;;  %v17517_v45 = vsub.f32 %v1222_v40, %v17512_v41  ;;  %v17519_v46 = vand.u32 4294901760, %v1218_v44  ;;  %v1210_v58 = vld [vmem:[#allocation4 + $0x188] sm:$0xff]  ;;  %v1193_v40 = vld [vmem:[#allocation4 + $0x100] sm:$0xff] }
  0x17   :  { %v17452_v20 = vand.u32 4294901760, %v17444_v15  ;;  %v208_v21 = vsub.f32 %v206_v12, %v207_v17  ;;  %v214_v22 = vsub.f32 %v212_v13, %v213_v18  ;;  %v17455_v23 = vand.u32 4294901760, %v17449_v19 }
  0x18   :  { %v722_v35 = vsub.f32 %v720_v26, %v721_v33  ;;  %v727_v36 = vand.u32 4294901760, %v726_v34  ;;  %22829 = vst [vmem:[#allocation9_spill] sm:$0xff] %v17517_v45  ;;  %22830 = vst [vmem:[#allocation10_spill] sm:$0xff] %v17519_v46  ;;  %v17523_v48 = vsub.f32 %v1221_v42, %v17514_v43  ;;  %v17525_v49 = vand.u32 4294901760, %v1217_v47 }
  0x19   :  { %v156_v25 = vsub.f32 %v17444_v15, %v17452_v20  ;;  %v209_v27 = vand.u32 4294901760, %v208_v21  ;;  %v215_v28 = vand.u32 4294901760, %v214_v22  ;;  %v167_v29 = vsub.f32 %v17449_v19, %v17455_v23 }
  0x1a   :  { %v723_v37 = vand.u32 4294901760, %v722_v35  ;;  %v728_v38 = vsub.f32 %v726_v34, %v727_v36  ;;  %22831 = vst [vmem:[#allocation11_spill] sm:$0xff] %v17523_v48  ;;  %22832 = vst [vmem:[#allocation12_spill] sm:$0xff] %v17525_v49  ;;  %v17529_v51 = vand.u32 4294901760, %v17517_v45  ;;  %v17532_v52 = vsub.f32 %v1218_v44, %v17519_v46  ;;  %v1194_v35 = vld [vmem:[#allocation4 + $0x108] sm:$0xff] }
  0x1b   :  { %v157_v30 = vand.u32 4294901760, %v156_v25  ;;  %210 = vmatprep.subr.mxu1 %v209_v27  ;;  %v168_v32 = vand.u32 4294901760, %v167_v29  ;;  %v17534_v53 = vand.u32 4294901760, %v1214_v50  ;;  %v17538_v55 = vand.u32 4294901760, %v17523_v48  ;;  %v1198_v25 = vld [vmem:[#allocation4 + $0x128] sm:$0xff] }
  0x1c   :  { %216 = vmatpush1.msra.mxu1 %v215_v28  ;;  %v729_v39 = vand.u32 4294901760, %v728_v38  ;;  %22833 = vst [vmem:[#allocation13_spill] sm:$0xff] %v17529_v51  ;;  %22834 = vst [vmem:[#allocation14_spill] sm:$0xff] %v17532_v52  ;;  %v17541_v56 = vsub.f32 %v1217_v47, %v17525_v49  ;;  %v17543_v57 = vand.u32 4294901760, %v1213_v54  ;;  %v1336_v59 = vsub.f32 %v17517_v45, %v17529_v51 }
  0x1d   :  { %158 = vmatmul.mubr.f32.vlgmr.msra.gmra.mxu0 %v157_v30  ;;  %251 = vmatmul.mubr.f32.vlgmr.msra.gmra.mxu1 %v17439_v10  ;;  %22835 = vst [vmem:[#allocation15_spill] sm:$0xff] %v17534_v53  ;;  %22836 = vst [vmem:[#allocation16_spill] sm:$0xff] %v17538_v55  ;;  %v17549_v60 = vand.u32 4294901760, %v17532_v52  ;;  %v17552_v61 = vsub.f32 %v1214_v50, %v17534_v53  ;;  %v17554_v62 = vand.u32 4294901760, %v1210_v58  ;;  %v17565_v4 = vand.u32 4294901760, %v1209_v63 }
  0x1e   :  { %299 = vmatpush1.msra.mxu0 %v212_v13  ;;  %380 = vmatprep.subr.mxu1 %v116_v5  ;;  %22837 = vst [vmem:[#allocation17_spill] sm:$0xff] %v17541_v56  ;;  %22838 = vst [vmem:[#allocation18_spill] sm:$0xff] %v17543_v57  ;;  %v1342_v0 = vsub.f32 %v17523_v48, %v17538_v55  ;;  %v17560_v2 = vand.u32 4294901760, %v17541_v56  ;;  %v17563_v3 = vsub.f32 %v1213_v54, %v17543_v57  ;;  %v1169_v55 = vld [vmem:[#allocation4 + $0x40] sm:$0xff]  ;;  %vm15859_vm4 = vcmask 261120  }
  0x1f   :  { %163 = vmatprep.mubr.f32.mxu0 %v22073_v1  ;;  %382 = vmatpush1.msra.mxu1 %v118_v6  ;;  %22839 = vst [vmem:[#allocation19_spill] sm:$0xff] %v17549_v60  ;;  %22840 = vst [vmem:[#allocation20_spill] sm:$0xff] %v17552_v61  ;;  %v1348_v7 = vsub.f32 %v17532_v52, %v17549_v60  ;;  %v17573_v8 = vand.u32 4294901760, %v17552_v61  ;;  %v17576_v9 = vsub.f32 %v1210_v58, %v17554_v62  ;;  %vm16358_vm5 = vcmask 130048  }
  0x20   :  { %256 = vmatprep.mubr.f32.mxu1 %v22073_v1  ;;  %467 = vmatprep.subr.mxu0 %v207_v17  ;;  %22841 = vst [vmem:[#allocation21_spill] sm:$0xff] %v17554_v62  ;;  %22842 = vst [vmem:[#allocation22_spill] sm:$0xff] %v17560_v2  ;;  %v17579_v11 = vand.u32 4294901760, %v1342_v0  ;;  %v1354_v12 = vsub.f32 %v17541_v56, %v17560_v2  ;;  %v17584_v13 = vand.u32 4294901760, %v17563_v3  ;;  %vm16821_vm6 = vcmask 1024  }
  0x21   :  { %169 = vmatmul.mubr.f32.gmra.mxu0 %v168_v32  ;;  %258 = vmatmul.mubr.f32.gmra.mxu1 %v17441_v14  ;;  %22843 = vst [vmem:[#allocation23_spill] sm:$0xff] %v17563_v3  ;;  %22844 = vst [vmem:[#allocation24_spill] sm:$0xff] %v17565_v4  ;;  %v1360_v17 = vsub.f32 %v17552_v61, %v17573_v8 }
  0x22   :  { %332 = vmatprep.mubr.f32.mxu0 %v22073_v1  ;;  %415 = vmatprep.mubr.f32.mxu1 %v22073_v1  ;;  %22846 = vst [vmem:[#allocation26_spill] sm:$0xff] %v17573_v8  ;;  %22847 = vst [vmem:[#allocation27_spill] sm:$0xff] %v17576_v9  ;;  %v17601_v21 = vand.u32 4294901760, %v1354_v12  ;;  %v1366_v22 = vsub.f32 %v17563_v3, %v17584_v13  ;;  %v1190_v12 = vld [vmem:[#allocation4 + $0xe8] sm:$0xff] }
  0x23   :  { %550 = vmatprep.subr.mxu1 %v116_v5  ;;  %v1206_v5 = vld [vmem:[#allocation4 + $0x168] sm:$0xff]  ;;  %22848 = vst [vmem:[#allocation28_spill] sm:$0xff] %v17579_v11  ;;  %22849 = vst [vmem:[#allocation29_spill] sm:$0xff] %v17584_v13  ;;  %v1173_v13 = vld [vmem:[#allocation4 + $0x60] sm:$0xff] }
  0x24   :  { %22854 = vst [vmem:[#allocation34_spill] sm:$0xff] %v17601_v21 }
  0x25   :  { %335 = vmatmul.mubr.f32.vlgmr.msra.gmra.mxu0 %v17444_v15  ;;  %419 = vmatmul.mubr.f32.vlgmr.msra.gmra.mxu1 %v17452_v20 }
  0x26   :  { %471 = vmatpush1.msra.mxu0 %v213_v18  ;;  %552 = vmatpush1.msra.mxu1 %v118_v6  ;;  %v17568_v6 = vand.u32 4294901760, %v1336_v59  ;;  %v17596_v18 = vand.u32 4294901760, %v17576_v9 }
  0x27   :  { %340 = vmatprep.mubr.f32.mxu0 %v22073_v1  ;;  %424 = vmatprep.mubr.f32.mxu1 %v22073_v1 }
  0x28   :  { %631 = vmatprep.subr.mxu0 %v17446_v16  ;;  %724 = vmatprep.subr.mxu1 %v723_v37  ;;  %22845 = vst [vmem:[#allocation25_spill] sm:$0xff] %v17568_v6  ;;  %22852 = vst [vmem:[#allocation32_spill] sm:$0xff] %v17596_v18  ;;  %v1372_v27 = vsub.f32 %v17576_v9, %v17596_v18 }
  0x29   :  { %343 = vmatmul.mubr.f32.gmra.mxu0 %v17449_v19  ;;  %428 = vmatmul.mubr.f32.gmra.mxu1 %v17455_v23 }
  0x2a   :  { %504 = vmatprep.mubr.f32.mxu0 %v22073_v1  ;;  %585 = vmatprep.mubr.f32.mxu1 %v22073_v1 }
  0x2d   :  { %506 = vmatmul.mubr.f32.vlgmr.msra.gmra.mxu0 %v17439_v10  ;;  %587 = vmatmul.mubr.f32.vlgmr.msra.gmra.mxu1 %v17439_v10 }
  0x2e   :  { %633 = vmatpush1.msra.mxu0 %v632_v31  ;;  %730 = vmatpush1.msra.mxu1 %v729_v39  ;;  %v17641_v39 = vand.u32 4294901760, %v1198_v25 }
  0x2f   :  { %511 = vmatprep.mubr.f32.mxu0 %v22073_v1  ;;  %592 = vmatprep.mubr.f32.mxu1 %v22073_v1 }
  0x30   :  { %810 = vmatprep.subr.mxu0 %v720_v26  ;;  %894 = vmatprep.subr.mxu1 %v17446_v16  ;;  %v17611_v26 = vand.u32 4294901760, %v1360_v17  ;;  %22866 = vst [vmem:[#allocation46_spill] sm:$0xff] %v17641_v39  ;;  %v17663_v59 = vsub.f32 %v1198_v25, %v17641_v39  ;;  %v1189_v25 = vld [vmem:[#allocation4 + $0xe0] sm:$0xff] }
  0x31   :  { %513 = vmatmul.mubr.f32.gmra.mxu0 %v17441_v14  ;;  %594 = vmatmul.mubr.f32.gmra.mxu1 %v17441_v14 }
  0x32   :  { %666 = vmatprep.mubr.f32.mxu0 %v22073_v1  ;;  %763 = vmatprep.mubr.f32.mxu1 %v22073_v1  ;;  %22857 = vst [vmem:[#allocation37_spill] sm:$0xff] %v17611_v26  ;;  %22872 = vst [vmem:[#allocation52_spill] sm:$0xff] %v17663_v59 }
  0x35   :  { %672 = vmatmul.mubr.f32.vlgmr.msra.gmra.mxu0 %v157_v30  ;;  %765 = vmatmul.mubr.f32.vlgmr.msra.gmra.mxu1 %v17439_v10  ;;  %v1197_v30 = vld [vmem:[#allocation4 + $0x120] sm:$0xff] }
  0x36   :  { %813 = vmatpush1.msra.mxu0 %v726_v34  ;;  %896 = vmatpush1.msra.mxu1 %v632_v31  ;;  %v17653_v50 = vand.u32 4294901760, %v1197_v30 }
  0x37   :  { %677 = vmatprep.mubr.f32.mxu0 %v22073_v1  ;;  %770 = vmatprep.mubr.f32.mxu1 %v22073_v1 }
  0x38   :  { %981 = vmatprep.subr.mxu0 %v721_v33  ;;  %1064 = vmatprep.subr.mxu1 %v17446_v16  ;;  %v17591_v16 = vand.u32 4294901760, %v1348_v7  ;;  %22870 = vst [vmem:[#allocation50_spill] sm:$0xff] %v17653_v50  ;;  %v17675_v7 = vsub.f32 %v1197_v30, %v17653_v50 }
  0x39   :  { %683 = vmatmul.mubr.f32.gmra.mxu0 %v168_v32  ;;  %772 = vmatmul.mubr.f32.gmra.mxu1 %v17441_v14 }
  0x3a   :  { %846 = vmatprep.mubr.f32.mxu0 %v22073_v1  ;;  %929 = vmatprep.mubr.f32.mxu1 %v22073_v1  ;;  %22851 = vst [vmem:[#allocation31_spill] sm:$0xff] %v17591_v16  ;;  %22875 = vst [vmem:[#allocation55_spill] sm:$0xff] %v17675_v7 }
  0x3d   :  { %849 = vmatmul.mubr.f32.vlgmr.msra.gmra.mxu0 %v17444_v15  ;;  %933 = vmatmul.mubr.f32.vlgmr.msra.gmra.mxu1 %v17452_v20  ;;  %v1202_v15 = vld [vmem:[#allocation4 + $0x148] sm:$0xff]  ;;  %v1201_v20 = vld [vmem:[#allocation4 + $0x140] sm:$0xff] }
  0x3e   :  { %985 = vmatpush1.msra.mxu0 %v727_v36  ;;  %1066 = vmatpush1.msra.mxu1 %v632_v31  ;;  %v17618_v29 = vand.u32 4294901760, %v1202_v15  ;;  %v17622_v31 = vand.u32 4294901760, %v1366_v22  ;;  %v17629_v34 = vand.u32 4294901760, %v1201_v20  ;;  %v17633_v36 = vand.u32 4294901760, %v1372_v27 }
  0x3f   :  { %854 = vmatprep.mubr.f32.mxu0 %v22073_v1  ;;  %938 = vmatprep.mubr.f32.mxu1 %v22073_v1 }
  0x40   :  { %1226 = vmatprep.subr.mxu0 %v17512_v41  ;;  %1338 = vmatprep.subr.mxu1 %v17568_v6  ;;  %22859 = vst [vmem:[#allocation39_spill] sm:$0xff] %v17618_v29  ;;  %22860 = vst [vmem:[#allocation40_spill] sm:$0xff] %v17622_v31  ;;  %v17639_v38 = vsub.f32 %v1202_v15, %v17618_v29  ;;  %v17651_v47 = vsub.f32 %v1201_v20, %v17629_v34  ;;  %v17685_v20 = vand.u32 4294901760, %v17663_v59  ;;  %v1181_v6 = vld [vmem:[#allocation4 + $0xa0] sm:$0xff] }
  0x41   :  { %857 = vmatmul.mubr.f32.gmra.mxu0 %v17449_v19  ;;  %942 = vmatmul.mubr.f32.gmra.mxu1 %v17455_v23  ;;  %v17598_v19 = vand.u32 4294901760, %v1206_v5  ;;  %22862 = vst [vmem:[#allocation42_spill] sm:$0xff] %v17629_v34  ;;  %22863 = vst [vmem:[#allocation43_spill] sm:$0xff] %v17633_v36 }
  0x42   :  { %1018 = vmatprep.mubr.f32.mxu0 %v22073_v1  ;;  %1099 = vmatprep.mubr.f32.mxu1 %v22073_v1  ;;  %22865 = vst [vmem:[#allocation45_spill] sm:$0xff] %v17639_v38  ;;  %22869 = vst [vmem:[#allocation49_spill] sm:$0xff] %v17651_v47  ;;  %v17660_v58 = vand.u32 4294901760, %v17639_v38 }
  0x43   :  { %22853 = vst [vmem:[#allocation33_spill] sm:$0xff] %v17598_v19  ;;  %v17616_v28 = vsub.f32 %v1206_v5, %v17598_v19  ;;  %v17672_v5 = vand.u32 4294901760, %v17651_v47  ;;  %22878 = vst [vmem:[#allocation58_spill] sm:$0xff] %v17685_v20 }
  0x44   :  { %22871 = vst [vmem:[#allocation51_spill] sm:$0xff] %v17660_v58  ;;  %v1396_v17 = vsub.f32 %v17639_v38, %v17660_v58 }
  0x45   :  { %1020 = vmatmul.mubr.f32.vlgmr.msra.gmra.mxu0 %v17439_v10  ;;  %1101 = vmatmul.mubr.f32.vlgmr.msra.gmra.mxu1 %v17439_v10  ;;  %v1205_v10 = vld [vmem:[#allocation4 + $0x160] sm:$0xff]  ;;  %22858 = vst [vmem:[#allocation38_spill] sm:$0xff] %v17616_v28  ;;  %v17636_v37 = vand.u32 4294901760, %v17616_v28  ;;  %22874 = vst [vmem:[#allocation54_spill] sm:$0xff] %v17672_v5  ;;  %v1402_v30 = vsub.f32 %v17651_v47, %v17672_v5 }
  0x46   :  { %1025 = vmatprep.mubr.f32.mxu0 %v22073_v1  ;;  %1106 = vmatprep.mubr.f32.mxu1 %v22073_v1  ;;  %v17608_v24 = vand.u32 4294901760, %v1205_v10 }
  0x47   :  { %1228 = vmatpush1.msra.mxu0 %v17514_v43  ;;  %1344 = vmatpush1.msra.mxu1 %v17579_v11  ;;  %22864 = vst [vmem:[#allocation44_spill] sm:$0xff] %v17636_v37  ;;  %v1384_v54 = vsub.f32 %v17616_v28, %v17636_v37 }
  0x48   :  { %1230 = vmatprep.subr.mxu0 %v17519_v46  ;;  %22856 = vst [vmem:[#allocation36_spill] sm:$0xff] %v17608_v24  ;;  %1350 = vmatprep.subr.mxu1 %v17591_v16  ;;  %v17627_v33 = vsub.f32 %v1205_v10, %v17608_v24  ;;  %v17677_v10 = vand.u32 4294901760, %v1193_v40 }
  0x49   :  { %1027 = vmatmul.mubr.f32.gmra.mxu0 %v17441_v14  ;;  %1108 = vmatmul.mubr.f32.gmra.mxu1 %v17441_v14  ;;  %v17587_v14 = vsub.f32 %v1209_v63, %v17565_v4  ;;  %v17665_v63 = vand.u32 4294901760, %v1194_v35  ;;  %v17680_v15 = vand.u32 4294901760, %v1384_v54 }
  0x4a   :  { %1321 = vmatprep.mubr.f32.mxu0 %v22073_v1  ;;  %1557 = vmatprep.mubr.f32.mxu1 %v22073_v1  ;;  %22861 = vst [vmem:[#allocation41_spill] sm:$0xff] %v17627_v33  ;;  %v17648_v44 = vand.u32 4294901760, %v17627_v33  ;;  %22876 = vst [vmem:[#allocation56_spill] sm:$0xff] %v17677_v10  ;;  %v17699_v54 = vsub.f32 %v1193_v40, %v17677_v10  ;;  %v1186_v1 = vld [vmem:[#allocation4 + $0xc8] sm:$0xff]  ;;  %v17713_v40 = vand.u32 4294901760, %v1402_v30 }
  0x4b   :  { %1232 = vmatpush1.msra.mxu0 %v17525_v49  ;;  %22850 = vst [vmem:[#allocation30_spill] sm:$0xff] %v17587_v14  ;;  %v17606_v23 = vand.u32 4294901760, %v17587_v14  ;;  %1356 = vmatpush1.msra.mxu1 %v17601_v21  ;;  %22873 = vst [vmem:[#allocation53_spill] sm:$0xff] %v17665_v63  ;;  %v17688_v22 = vsub.f32 %v1194_v35, %v17665_v63  ;;  %v17703_v35 = vand.u32 4294901760, %v1396_v17  ;;  %v17720_v17 = vand.u32 4294901760, %v1189_v25  ;;  %v1182_v21 = vld [vmem:[#allocation4 + $0xa8] sm:$0xff] }
  0x4c   :  { %1234 = vmatprep.subr.mxu0 %v17534_v53  ;;  %1362 = vmatprep.subr.mxu1 %v17611_v26  ;;  %22868 = vst [vmem:[#allocation48_spill] sm:$0xff] %v17648_v44  ;;  %v1390_v0 = vsub.f32 %v17627_v33, %v17648_v44  ;;  %22877 = vst [vmem:[#allocation57_spill] sm:$0xff] %v17680_v15  ;;  %v17730_v30 = vand.u32 4294901760, %v1186_v1 }
  0x4d   :  { %1236 = vmatpush1.msra.mxu0 %v17543_v57  ;;  %22855 = vst [vmem:[#allocation35_spill] sm:$0xff] %v17606_v23  ;;  %v1378_v32 = vsub.f32 %v17587_v14, %v17606_v23  ;;  %1368 = vmatpush1.msra.mxu1 %v17622_v31  ;;  %22879 = vst [vmem:[#allocation59_spill] sm:$0xff] %v17688_v22  ;;  %v1185_v31 = vld [vmem:[#allocation4 + $0xc0] sm:$0xff]  ;;  %v1174_v23 = vld [vmem:[#allocation4 + $0x68] sm:$0xff] }
  0x4e   :  { %1238 = vmatprep.subr.mxu0 %v17554_v62  ;;  %1374 = vmatprep.subr.mxu1 %v17633_v36  ;;  %v17691_v27 = vand.u32 4294901760, %v1390_v0  ;;  %22882 = vst [vmem:[#allocation62_spill] sm:$0xff] %v17699_v54  ;;  %22883 = vst [vmem:[#allocation63_spill] sm:$0xff] %v17703_v35  ;;  %v1408_v0 = vsub.f32 %v17663_v59, %v17685_v20  ;;  %v17710_v36 = vand.u32 4294901760, %v1190_v12  ;;  %v17741_v20 = vand.u32 4294901760, %v1185_v31 }
  0x4f   :  { %1240 = vmatpush1.msra.mxu0 %v17565_v4  ;;  %v17645_v42 = vand.u32 4294901760, %v1378_v32  ;;  %v17696_v32 = vand.u32 4294901760, %v17675_v7  ;;  %22886 = vst [vmem:[#allocation66_spill] sm:$0xff] %v17713_v40  ;;  %22888 = vst [vmem:[#allocation68_spill] sm:$0xff] %v17720_v17 }
  0x50   :  { %1242 = vmatprep.subr.mxu0 %v17598_v19  ;;  %22880 = vst [vmem:[#allocation60_spill] sm:$0xff] %v17691_v27  ;;  %22885 = vst [vmem:[#allocation65_spill] sm:$0xff] %v17710_v36  ;;  %v17723_v16 = vand.u32 4294901760, %v1408_v0  ;;  %v17739_v0 = vsub.f32 %v1189_v25, %v17720_v17 }
  0x51   :  { %1244 = vmatpush1.msra.mxu0 %v17608_v24  ;;  %22867 = vst [vmem:[#allocation47_spill] sm:$0xff] %v17645_v42  ;;  %1380 = vmatpush1.msra.mxu1 %v17645_v42  ;;  %22881 = vst [vmem:[#allocation61_spill] sm:$0xff] %v17696_v32  ;;  %v17708_v42 = vand.u32 4294901760, %v17688_v22  ;;  %v1414_v26 = vsub.f32 %v17675_v7, %v17696_v32 }
  0x52   :  { %1246 = vmatprep.subr.mxu0 %v17618_v29  ;;  %1386 = vmatprep.subr.mxu1 %v17680_v15  ;;  %v17718_v15 = vand.u32 4294901760, %v17699_v54  ;;  %22889 = vst [vmem:[#allocation69_spill] sm:$0xff] %v17723_v16  ;;  %22891 = vst [vmem:[#allocation71_spill] sm:$0xff] %v17730_v30  ;;  %v17760_v58 = vand.u32 4294901760, %v17739_v0 }
  0x53   :  { %1248 = vmatpush1.msra.mxu0 %v17629_v34  ;;  %22884 = vst [vmem:[#allocation64_spill] sm:$0xff] %v17708_v42  ;;  %1392 = vmatpush1.msra.mxu1 %v17691_v27  ;;  %v1420_v11 = vsub.f32 %v17688_v22, %v17708_v42  ;;  %v17728_v27 = vsub.f32 %v1190_v12, %v17710_v36  ;;  %v17734_v32 = vand.u32 4294901760, %v1414_v26  ;;  %22893 = vst [vmem:[#allocation73_spill] sm:$0xff] %v17739_v0  ;;  %v1178_v42 = vld [vmem:[#allocation4 + $0x88] sm:$0xff] }
  0x54   :  { %1250 = vmatprep.subr.mxu0 %v17641_v39  ;;  %22887 = vst [vmem:[#allocation67_spill] sm:$0xff] %v17718_v15  ;;  %1398 = vmatprep.subr.mxu1 %v17703_v35  ;;  %v1426_v35 = vsub.f32 %v17699_v54, %v17718_v15  ;;  %22894 = vst [vmem:[#allocation74_spill] sm:$0xff] %v17741_v20  ;;  %v17751_v26 = vsub.f32 %v1186_v1, %v17730_v30  ;;  %v1177_v15 = vld [vmem:[#allocation4 + $0x80] sm:$0xff] }
  0x55   :  { %1252 = vmatpush1.msra.mxu0 %v17653_v50  ;;  %22890 = vst [vmem:[#allocation70_spill] sm:$0xff] %v17728_v27  ;;  %1404 = vmatpush1.msra.mxu1 %v17713_v40  ;;  %22892 = vst [vmem:[#allocation72_spill] sm:$0xff] %v17734_v32  ;;  %v17745_v12 = vand.u32 4294901760, %v1420_v11  ;;  %v17748_v5 = vand.u32 4294901760, %v17728_v27  ;;  %v17753_v40 = vand.u32 4294901760, %v1182_v21  ;;  %v17763_v11 = vsub.f32 %v1185_v31, %v17741_v20 }
  0x56   :  { %1254 = vmatprep.subr.mxu0 %v17665_v63  ;;  %1410 = vmatprep.subr.mxu1 %v17723_v16  ;;  %22897 = vst [vmem:[#allocation77_spill] sm:$0xff] %v17751_v26  ;;  %v17757_v25 = vand.u32 4294901760, %v1426_v35  ;;  %22900 = vst [vmem:[#allocation80_spill] sm:$0xff] %v17760_v58  ;;  %v17765_v16 = vand.u32 4294901760, %v1181_v6  ;;  %v17772_v44 = vand.u32 4294901760, %v17751_v26  ;;  %v1438_v31 = vsub.f32 %v17739_v0, %v17760_v58 }
  0x57   :  { %1256 = vmatpush1.msra.mxu0 %v17677_v10  ;;  %22895 = vst [vmem:[#allocation75_spill] sm:$0xff] %v17745_v12  ;;  %22896 = vst [vmem:[#allocation76_spill] sm:$0xff] %v17748_v5  ;;  %1416 = vmatpush1.msra.mxu1 %v17734_v32  ;;  %v1432_v1 = vsub.f32 %v17728_v27, %v17748_v5  ;;  %v17775_v35 = vsub.f32 %v1182_v21, %v17753_v40  ;;  %v17777_v32 = vand.u32 4294901760, %v1178_v42 }
  0x58   :  { %1258 = vmatprep.subr.mxu0 %v17710_v36  ;;  %22898 = vst [vmem:[#allocation78_spill] sm:$0xff] %v17753_v40  ;;  %22899 = vst [vmem:[#allocation79_spill] sm:$0xff] %v17757_v25  ;;  %1422 = vmatprep.subr.mxu1 %v17745_v12  ;;  %v17784_v12 = vand.u32 4294901760, %v17763_v11  ;;  %v17787_v5 = vsub.f32 %v1181_v6, %v17765_v16  ;;  %v17789_v37 = vand.u32 4294901760, %v1177_v15  ;;  %v17803_v6 = vand.u32 4294901760, %v1438_v31 }
  0x59   :  { %1260 = vmatpush1.msra.mxu0 %v17720_v17  ;;  %22901 = vst [vmem:[#allocation81_spill] sm:$0xff] %v17763_v11  ;;  %22902 = vst [vmem:[#allocation82_spill] sm:$0xff] %v17765_v16  ;;  %1428 = vmatpush1.msra.mxu1 %v17757_v25  ;;  %v17792_v21 = vand.u32 4294901760, %v1432_v1  ;;  %v1444_v18 = vsub.f32 %v17751_v26, %v17772_v44  ;;  %v17797_v25 = vand.u32 4294901760, %v17775_v35  ;;  %v1165_v26 = vld [vmem:[#allocation4 + $0x20] sm:$0xff] }
  0x5a   :  { %1262 = vmatprep.subr.mxu0 %v17730_v30  ;;  %22903 = vst [vmem:[#allocation83_spill] sm:$0xff] %v17772_v44  ;;  %22904 = vst [vmem:[#allocation84_spill] sm:$0xff] %v17775_v35  ;;  %v17800_v58 = vsub.f32 %v1178_v42, %v17777_v32  ;;  %v1450_v8 = vsub.f32 %v17763_v11, %v17784_v12  ;;  %v17808_v1 = vand.u32 4294901760, %v17787_v5  ;;  %v1170_v44 = vld [vmem:[#allocation4 + $0x48] sm:$0xff] }
  0x5b   :  { %1264 = vmatpush1.msra.mxu0 %v17741_v20  ;;  %22905 = vst [vmem:[#allocation85_spill] sm:$0xff] %v17777_v32  ;;  %22906 = vst [vmem:[#allocation86_spill] sm:$0xff] %v17784_v12  ;;  %v17811_v2 = vsub.f32 %v1177_v15, %v17789_v37  ;;  %1434 = vmatprep.subr.mxu1 %v17792_v21  ;;  %v17815_v42 = vand.u32 4294901760, %v1444_v18  ;;  %v1456_v31 = vsub.f32 %v17775_v35, %v17797_v25  ;;  %v1166_v11 = vld [vmem:[#allocation4 + $0x28] sm:$0xff] }
  0x5c   :  { %1266 = vmatprep.subr.mxu0 %v17753_v40  ;;  %22907 = vst [vmem:[#allocation87_spill] sm:$0xff] %v17787_v5  ;;  %22908 = vst [vmem:[#allocation88_spill] sm:$0xff] %v17789_v37  ;;  %v17820_v60 = vand.u32 4294901760, %v17800_v58  ;;  %v17822_v12 = vand.u32 4294901760, %v1174_v23  ;;  %1440 = vmatpush1.msra.mxu1 %v17803_v6  ;;  %v17825_v15 = vand.u32 4294901760, %v1450_v8  ;;  %v1462_v51 = vsub.f32 %v17787_v5, %v17808_v1 }
  0x5d   :  { %1268 = vmatpush1.msra.mxu0 %v17765_v16  ;;  %22909 = vst [vmem:[#allocation89_spill] sm:$0xff] %v17792_v21  ;;  %22910 = vst [vmem:[#allocation90_spill] sm:$0xff] %v17797_v25  ;;  %v17830_v21 = vand.u32 4294901760, %v17811_v2  ;;  %v17832_v18 = vand.u32 4294901760, %v1173_v13  ;;  %1446 = vmatprep.subr.mxu1 %v17815_v42  ;;  %v17835_v25 = vand.u32 4294901760, %v1456_v31  ;;  %v17842_v8 = vand.u32 4294901760, %v1170_v44 }
  0x5e   :  { %22911 = vst [vmem:[#allocation91_spill] sm:$0xff] %v17800_v58  ;;  %1270 = vmatprep.subr.mxu0 %v17777_v32  ;;  %22912 = vst [vmem:[#allocation92_spill] sm:$0xff] %v17803_v6  ;;  %v1468_v35 = vsub.f32 %v17800_v58, %v17820_v60  ;;  %v17840_v6 = vsub.f32 %v1174_v23, %v17822_v12  ;;  %1452 = vmatpush1.msra.mxu1 %v17825_v15  ;;  %v17853_v5 = vand.u32 4294901760, %v1169_v55 }
  0x5f   :  { %22913 = vst [vmem:[#allocation93_spill] sm:$0xff] %v17808_v1  ;;  %22914 = vst [vmem:[#allocation94_spill] sm:$0xff] %v17811_v2  ;;  %1272 = vmatpush1.msra.mxu0 %v17789_v37  ;;  %v17846_v1 = vand.u32 4294901760, %v1462_v51  ;;  %v17851_v31 = vsub.f32 %v1173_v13, %v17832_v18  ;;  %1458 = vmatprep.subr.mxu1 %v17835_v25  ;;  %v17863_v51 = vsub.f32 %v1170_v44, %v17842_v8 }
  0x60   :  { %22915 = vst [vmem:[#allocation95_spill] sm:$0xff] %v17815_v42  ;;  %22916 = vst [vmem:[#allocation96_spill] sm:$0xff] %v17820_v60  ;;  %1274 = vmatprep.subr.mxu0 %v17822_v12  ;;  %v1474_v42 = vsub.f32 %v17811_v2, %v17830_v21  ;;  %v1162_v60 = vld [vmem:[#allocation4 + $0x8] sm:$0xff]  ;;  %v17857_v23 = vand.u32 4294901760, %v1468_v35  ;;  %v17860_v58 = vand.u32 4294901760, %v17840_v6  ;;  %v17875_v35 = vsub.f32 %v1169_v55, %v17853_v5 }
  0x61   :  { %22917 = vst [vmem:[#allocation97_spill] sm:$0xff] %v17822_v12  ;;  %22918 = vst [vmem:[#allocation98_spill] sm:$0xff] %v17825_v15  ;;  %1276 = vmatpush1.msra.mxu0 %v17832_v18  ;;  %v17865_v15 = vand.u32 4294901760, %v1166_v11  ;;  %1464 = vmatpush1.msra.mxu1 %v17846_v1  ;;  %v17872_v2 = vand.u32 4294901760, %v17851_v31 }
  0x62   :  { %22919 = vst [vmem:[#allocation99_spill] sm:$0xff] %v17830_v21  ;;  %22920 = vst [vmem:[#allocation100_spill] sm:$0xff] %v17832_v18  ;;  %v1161_v21 = vld [vmem:[#allocation4] sm:$0xff]  ;;  %1278 = vmatprep.subr.mxu0 %v17842_v8  ;;  %v17869_v13 = vand.u32 4294901760, %v1474_v42  ;;  %1470 = vmatprep.subr.mxu1 %v17857_v23  ;;  %v1480_v44 = vsub.f32 %v17840_v6, %v17860_v58 }
  0x63   :  { %22921 = vst [vmem:[#allocation101_spill] sm:$0xff] %v17835_v25  ;;  %22922 = vst [vmem:[#allocation102_spill] sm:$0xff] %v17840_v6  ;;  %v17877_v25 = vand.u32 4294901760, %v1165_v26  ;;  %1280 = vmatpush1.msra.mxu0 %v17853_v5  ;;  %v17887_v42 = vsub.f32 %v1166_v11, %v17865_v15  ;;  %v1486_v55 = vsub.f32 %v17851_v31, %v17872_v2  ;;  %v17901_v6 = vand.u32 4294901760, %v1161_v21 }
  0x64   :  { %22923 = vst [vmem:[#allocation103_spill] sm:$0xff] %v17842_v8  ;;  %22924 = vst [vmem:[#allocation104_spill] sm:$0xff] %v17846_v1  ;;  %v17884_v8 = vand.u32 4294901760, %v17863_v51  ;;  %v17889_v1 = vand.u32 4294901760, %v1162_v60  ;;  %1282 = vmatprep.subr.mxu0 %v17865_v15  ;;  %1476 = vmatpush1.msra.mxu1 %v17869_v13  ;;  %v17904_v11 = vand.u32 4294901760, %v1480_v44 }
  0x65   :  { %22925 = vst [vmem:[#allocation105_spill] sm:$0xff] %v17851_v31  ;;  %22926 = vst [vmem:[#allocation106_spill] sm:$0xff] %v17853_v5  ;;  %1284 = vmatpush1.msra.mxu0 %v17877_v25  ;;  %v17915_v31 = vand.u32 4294901760, %v1486_v55  ;;  %v17923_v44 = vsub.f32 %v1161_v21, %v17901_v6 }
  0x66   :  { %22927 = vst [vmem:[#allocation107_spill] sm:$0xff] %v17857_v23  ;;  %22928 = vst [vmem:[#allocation108_spill] sm:$0xff] %v17860_v58  ;;  %v17896_v23 = vand.u32 4294901760, %v17875_v35  ;;  %v17899_v58 = vsub.f32 %v1165_v26, %v17877_v25  ;;  %1286 = vmatprep.subr.mxu0 %v17889_v1  ;;  %1482 = vmatprep.subr.mxu1 %v17904_v11 }
  0x67   :  { %22929 = vst [vmem:[#allocation109_spill] sm:$0xff] %v17863_v51  ;;  %22930 = vst [vmem:[#allocation110_spill] sm:$0xff] %v17865_v15  ;;  %v1492_v15 = vsub.f32 %v17863_v51, %v17884_v8  ;;  %1288 = vmatpush1.msra.mxu0 %v17901_v6  ;;  %1488 = vmatpush1.msra.mxu1 %v17915_v31 }
  0x68   :  { %22931 = vst [vmem:[#allocation111_spill] sm:$0xff] %v17869_v13  ;;  %22932 = vst [vmem:[#allocation112_spill] sm:$0xff] %v17872_v2  ;;  %v17909_v13 = vand.u32 4294901760, %v17887_v42  ;;  %v17912_v2 = vsub.f32 %v1162_v60, %v17889_v1  ;;  %v1498_v26 = vsub.f32 %v17875_v35, %v17896_v23  ;;  %1567 = vmatprep.subr.mxu0 %v17517_v45 }
  0x69   :  { %22933 = vst [vmem:[#allocation113_spill] sm:$0xff] %v17875_v35  ;;  %22934 = vst [vmem:[#allocation114_spill] sm:$0xff] %v17877_v25  ;;  %v17920_v25 = vand.u32 4294901760, %v17899_v58  ;;  %v17941_v35 = vand.u32 4294901760, %v17923_v44 }
  0x6a   :  { %22935 = vst [vmem:[#allocation115_spill] sm:$0xff] %v17884_v8  ;;  %22936 = vst [vmem:[#allocation116_spill] sm:$0xff] %v17887_v42  ;;  %v17927_v8 = vand.u32 4294901760, %v1492_v15  ;;  %v1504_v60 = vsub.f32 %v17887_v42, %v17909_v13  ;;  %v17932_v55 = vand.u32 4294901760, %v17912_v2 }
  0x6b   :  { %22937 = vst [vmem:[#allocation117_spill] sm:$0xff] %v17889_v1  ;;  %22938 = vst [vmem:[#allocation118_spill] sm:$0xff] %v17896_v23  ;;  %v17936_v23 = vand.u32 4294901760, %v1498_v26  ;;  %v1510_v21 = vsub.f32 %v17899_v58, %v17920_v25  ;;  %v1522_v26 = vsub.f32 %v17923_v44, %v17941_v35 }
  0x6c   :  { %22939 = vst [vmem:[#allocation119_spill] sm:$0xff] %v17899_v58  ;;  %22940 = vst [vmem:[#allocation120_spill] sm:$0xff] %v17901_v6  ;;  %1494 = vmatprep.subr.mxu1 %v17927_v8  ;;  %v17944_v15 = vand.u32 4294901760, %v1504_v60  ;;  %v22225_v60 = vlaneseq }
  0x6d   :  { %22941 = vst [vmem:[#allocation121_spill] sm:$0xff] %v17904_v11  ;;  %22942 = vst [vmem:[#allocation122_spill] sm:$0xff] %v17909_v13  ;;  %v1516_v11 = vsub.f32 %v17912_v2, %v17932_v55  ;;  %1500 = vmatpush1.msra.mxu1 %v17936_v23  ;;  %v17949_v45 = vand.u32 4294901760, %v1510_v21 }
  0x6e   :  { %22943 = vst [vmem:[#allocation123_spill] sm:$0xff] %v17912_v2  ;;  %22944 = vst [vmem:[#allocation124_spill] sm:$0xff] %v17915_v31  ;;  %1506 = vmatprep.subr.mxu1 %v17944_v15  ;;  %v17963_v21 = vshrl.u32 %v22225_v60, 7 }
  0x6f   :  { %22945 = vst [vmem:[#allocation125_spill] sm:$0xff] %v17920_v25  ;;  %22946 = vst [vmem:[#allocation126_spill] sm:$0xff] %v17923_v44  ;;  %v17954_v31 = vand.u32 4294901760, %v1516_v11  ;;  %1512 = vmatpush1.msra.mxu1 %v17949_v45  ;;  %v17957_v25 = vand.u32 4294901760, %v1522_v26  ;;  %v57_v11 = vld [vmem:[%s22065_s3] sm:$0xf] }
  0x70   :  { %22947 = vst [vmem:[#allocation127_spill] sm:$0xff] %v17927_v8  ;;  %22948 = vst [vmem:[#allocation128_spill] sm:$0xff] %v17932_v55 }
  0x71   :  { %22949 = vst [vmem:[#allocation129_spill] sm:$0xff] %v17936_v23  ;;  %22950 = vst [vmem:[#allocation130_spill] sm:$0xff] %v17941_v35  ;;  %1518 = vmatprep.subr.mxu1 %v17954_v31  ;;  %v22250_v23 = vsub.s32 0, %v17963_v21 }
  0x72   :  { %22951 = vst [vmem:[#allocation131_spill] sm:$0xff] %v17944_v15  ;;  %22952 = vst [vmem:[#allocation132_spill] sm:$0xff] %v17949_v45  ;;  %1524 = vmatpush1.msra.mxu1 %v17957_v25  ;;  %v22259_v45 = vsub.s32 1, %v17963_v21 }
  0x73   :  { %22953 = vst [vmem:[#allocation133_spill] sm:$0xff] %v17954_v31  ;;  %22954 = vst [vmem:[#allocation134_spill] sm:$0xff] %v17957_v25  ;;  %1703 = vmatprep.subr.mxu1 %v17512_v41  ;;  %v62_v31 = vrot.slane %v57_v11, %v22250_v23 }
  0x74   :  { %22955 = vst [vmem:[#allocation135_spill] sm:$0xff] %v17963_v21  ;;  %v66_v8 = vrot.slane %v57_v11, %v22259_v45 }
  0xdd   :  { %v159_v26 = vpop.f32.mrf.mxu0  ;;  %v252_v15 = vpop.f32.mrf.mxu1 }
  0xde   :  { %v160_v55 = vadd.f32 %v159_v26, %v62_v31 }
  0xdf   :  { %v161_v25 = vpop.f32.mrf.mxu0  ;;  %v254_v35 = vpop.f32.mrf.mxu1 }
  0xe0   :  { %v162_v2 = vadd.f32 %v161_v25, %v66_v8  ;;  %v253_v51 = vadd.f32 %v252_v15, %v160_v55 }
  0xe1   :  { %v170_v60 = vpop.f32.mrf.mxu0  ;;  %v259_v13 = vpop.f32.mrf.mxu1 }
  0xe2   :  { %v171_v41 = vadd.f32 %v170_v60, %v62_v31  ;;  %v255_v5 = vadd.f32 %v254_v35, %v162_v2 }
  0xe3   :  { %v172_v44 = vpop.f32.mrf.mxu0  ;;  %v261_v58 = vpop.f32.mrf.mxu1 }
  0xe4   :  { %v173_v18 = vadd.f32 %v172_v44, %v66_v8  ;;  %v260_v27 = vadd.f32 %v259_v13, %v171_v41 }
  0xe5   :  { %v336_v42 = vpop.f32.mrf.mxu0  ;;  %v420_v6 = vpop.f32.mrf.mxu1 }
  0xe6   :  { %v337_v23 = vadd.f32 %v336_v42, %v253_v51  ;;  %v262_v32 = vadd.f32 %v261_v58, %v173_v18  ;;  %v22273_v58 = vsub.s32 2, %v17963_v21 }
  0xe7   :  { %v338_v1 = vpop.f32.mrf.mxu0  ;;  %v422_v0 = vpop.f32.mrf.mxu1 }
  0xe8   :  { %v339_v37 = vadd.f32 %v338_v1, %v255_v5  ;;  %v421_v26 = vadd.f32 %v420_v6, %v337_v23 }
  0xe9   :  { %v344_v12 = vpop.f32.mrf.mxu0  ;;  %v429_v45 = vpop.f32.mrf.mxu1 }
  0xea   :  { %v345_v22 = vadd.f32 %v344_v12, %v260_v27  ;;  %v423_v7 = vadd.f32 %v422_v0, %v339_v37 }
  0xeb   :  { %v346_v54 = vpop.f32.mrf.mxu0  ;;  %v431_v16 = vpop.f32.mrf.mxu1 }
  0xec   :  { %v347_v40 = vadd.f32 %v346_v54, %v262_v32  ;;  %v430_v60 = vadd.f32 %v429_v45, %v345_v22  ;;  %v22272_v54 = vsub.s32 3, %v17963_v21  ;;  %v22988_v21 = vld [vmem:[#allocation109_spill] sm:$0xff] }
  0xed   :  { %v507_v25 = vpop.f32.mrf.mxu0  ;;  %v588_v31 = vpop.f32.mrf.mxu1 }
  0xee   :  { %v508_v55 = vadd.f32 %v507_v25, %v421_v26  ;;  %v432_v42 = vadd.f32 %v431_v16, %v347_v40  ;;  %v74_v40 = vrot.slane %v57_v11, %v22272_v54 }
  0xef   :  { %v509_v15 = vpop.f32.mrf.mxu0  ;;  %v590_v51 = vpop.f32.mrf.mxu1 }
  0xf0   :  { %v589_v2 = vadd.f32 %v588_v31, %v508_v55  ;;  %v510_v8 = vadd.f32 %v509_v15, %v423_v7  ;;  %v70_v7 = vrot.slane %v57_v11, %v22273_v58  ;;  %v22987_v58 = vld [vmem:[#allocation105_spill] sm:$0xff] }
  0xf1   :  { %v514_v35 = vpop.f32.mrf.mxu0  ;;  %v595_v1 = vpop.f32.mrf.mxu1 }
  0xf2   :  { %1114 = vst [vmem:[#allocation2 + $0x30] sm:$0xff] %v589_v2  ;;  %v591_v41 = vadd.f32 %v590_v51, %v510_v8  ;;  %v515_v5 = vadd.f32 %v514_v35, %v430_v60 }
  0xf3   :  { %v516_v27 = vpop.f32.mrf.mxu0  ;;  %v597_v32 = vpop.f32.mrf.mxu1 }
  0xf4   :  { %1115 = vst [vmem:[#allocation2] sm:$0xff] %v591_v41  ;;  %v596_v12 = vadd.f32 %v595_v1, %v515_v5  ;;  %v517_v37 = vadd.f32 %v516_v27, %v432_v42 }
  0xf5   :  { %v673_v0 = vpop.f32.mrf.mxu0  ;;  %v766_v16 = vpop.f32.mrf.mxu1 }
  0xf6   :  { %1118 = vst [vmem:[#allocation2 + $0x8] sm:$0xff] %v596_v12  ;;  %v598_v45 = vadd.f32 %v597_v32, %v517_v37  ;;  %v674_v44 = vadd.f32 %v673_v0, %v70_v7 }
  0xf7   :  { %v675_v22 = vpop.f32.mrf.mxu0  ;;  %v768_v6 = vpop.f32.mrf.mxu1 }
  0xf8   :  { %1119 = vst [vmem:[#allocation2 + $0x20] sm:$0xff] %v598_v45  ;;  %v676_v15 = vadd.f32 %v675_v22, %v74_v40  ;;  %v767_v8 = vadd.f32 %v766_v16, %v674_v44 }
  0xf9   :  { %v1127_v18 = vld [vmem:[#allocation2 + $0x30] sm:$0x3]  ;;  %v684_v23 = vpop.f32.mrf.mxu0  ;;  %v773_v26 = vpop.f32.mrf.mxu1 }
  0xfa   :  { %v16829_v13 = vmul.f32 -1.442695, %v1127_v18  ;;  %v685_v51 = vadd.f32 %v684_v23, %v70_v7  ;;  %v769_v41 = vadd.f32 %v768_v6, %v676_v15 }
  0xfb   :  { %v1128_v25 = vld [vmem:[#allocation2] sm:$0x3]  ;;  %v686_v55 = vpop.f32.mrf.mxu0  ;;  %v775_v60 = vpop.f32.mrf.mxu1 }
  0xfc   :  { %v16830_v31 = vmul.f32 -1.442695, %v1128_v25  ;;  %17189 = vpow2.f32 %v16829_v13  ;;  %v687_v11 = vadd.f32 %v686_v55, %v74_v40  ;;  %v774_v12 = vadd.f32 %v773_v26, %v685_v51 }
  0xfd   :  { %v850_v2 = vpop.f32.mrf.mxu0  ;;  %v934_v35 = vpop.f32.mrf.mxu1 }
  0xfe   :  { %17191 = vpow2.f32 %v16830_v31  ;;  %v851_v5 = vadd.f32 %v850_v2, %v767_v8  ;;  %v776_v45 = vadd.f32 %v775_v60, %v687_v11 }
  0xff   :  { %v852_v42 = vpop.f32.mrf.mxu0  ;;  %v936_v1 = vpop.f32.mrf.mxu1 }
 0x100   :  { %v853_v37 = vadd.f32 %v852_v42, %v769_v41  ;;  %v935_v18 = vadd.f32 %v934_v35, %v851_v5 }
 0x101   :  { %v858_v27 = vpop.f32.mrf.mxu0  ;;  %v943_v32 = vpop.f32.mrf.mxu1 }
 0x102   :  { %v859_v22 = vadd.f32 %v858_v27, %v774_v12  ;;  %v937_v54 = vadd.f32 %v936_v1, %v853_v37 }
 0x103   :  { %v860_v0 = vpop.f32.mrf.mxu0  ;;  %v945_v25 = vpop.f32.mrf.mxu1 }
 0x104   :  { %v861_v31 = vadd.f32 %v860_v0, %v776_v45  ;;  %v944_v44 = vadd.f32 %v943_v32, %v859_v22  ;;  %v22956_v0 = vlaneseq }
 0x105   :  { %v1021_v13 = vpop.f32.mrf.mxu0  ;;  %v1102_v7 = vpop.f32.mrf.mxu1 }
 0x106   :  { %v1022_v16 = vadd.f32 %v1021_v13, %v935_v18  ;;  %v946_v26 = vadd.f32 %v945_v25, %v861_v31  ;;  %v1123_v45 = vand.u32 127, %v22956_v0  ;;  %v22971_v0 = vld [vmem:[#allocation73_spill] sm:$0xff] }
 0x107   :  { %v1023_v23 = vpop.f32.mrf.mxu0  ;;  %v1104_v55 = vpop.f32.mrf.mxu1 }
 0x108   :  { %v1103_v6 = vadd.f32 %v1102_v7, %v1022_v16  ;;  %v1024_v40 = vadd.f32 %v1023_v23, %v937_v54  ;;  %vm1124_vm1 = vcmp.lt.s32.totalorder %v1123_v45, 64  ;;  %v22957_v16 = vmov 0.0   ;;  %v22972_v45 = vld [vmem:[#allocation100_spill] sm:$0xff] }
 0x109   :  { %v1028_v15 = vpop.f32.mrf.mxu0  ;;  %v17190_v2 = vpop.eup %17189  ;;  %v16828_v7 = vsel %vm1124_vm1, 1.0, %v22957_v16 }
 0x10a   :  { %1116 = vst [vmem:[#allocation2 + $0x18] sm:$0xff] %v1103_v6  ;;  %v1105_v8 = vadd.f32 %v1104_v55, %v1024_v40  ;;  %v1029_v51 = vadd.f32 %v1028_v15, %v944_v44  ;;  %v1109_v60 = vpop.f32.mrf.mxu1  ;;  %v1134_v27 = vadd.f32 1.0, %v17190_v2 }
 0x10b   :  { %v17192_v35 = vpop.eup %17191  ;;  %v1030_v42 = vpop.f32.mrf.mxu0 }
 0x10c   :  { %v1140_v41 = vadd.f32 1.0, %v17192_v35  ;;  %1117 = vst [vmem:[#allocation2 + $0x10] sm:$0xff] %v1105_v8  ;;  %v1031_v11 = vadd.f32 %v1030_v42, %v946_v26  ;;  %v1110_v5 = vadd.f32 %v1109_v60, %v1029_v51  ;;  %v1111_v1 = vpop.f32.mrf.mxu1 }
 0x10e   :  { %1120 = vst [vmem:[#allocation2 + $0x28] sm:$0xff] %v1110_v5  ;;  %v1112_v12 = vadd.f32 %v1111_v1, %v1031_v11  ;;  %17193 = vrcp.f32 %v1140_v41  ;;  %v22962_v41 = vld [vmem:[#allocation78_spill] sm:$0xff]  ;;  %v22963_v11 = vld [vmem:[#allocation55_spill] sm:$0xff] }
 0x10f   :  { %17195 = vrcp.f32 %v1134_v27  ;;  %v22964_v5 = vld [vmem:[#allocation82_spill] sm:$0xff]  ;;  %v22965_v1 = vld [vmem:[#allocation59_spill] sm:$0xff]  ;;  %v22966_v27 = vld [vmem:[#allocation85_spill] sm:$0xff] }
 0x110   :  { %1121 = vst [vmem:[#allocation2 + $0x38] sm:$0xff] %v1112_v12  ;;  %v22967_v12 = vld [vmem:[#allocation62_spill] sm:$0xff] }
 0x111   :  { %v1129_v54 = vld [vmem:[#allocation2 + $0x18] sm:$0x3] }
 0x112   :  { %17197 = vtanh.f32 %v1129_v54  ;;  %v22968_v54 = vld [vmem:[#allocation88_spill] sm:$0xff] }
 0x113   :  { %v1130_v37 = vld [vmem:[#allocation2 + $0x10] sm:$0x3] }
 0x114   :  { %v16831_v32 = vmul.f32 -1.442695, %v1130_v37  ;;  %v22969_v37 = vld [vmem:[#allocation70_spill] sm:$0xff] }
 0x116   :  { %17199 = vpow2.f32 %v16831_v32  ;;  %v22970_v32 = vld [vmem:[#allocation97_spill] sm:$0xff] }
 0x11b   :  { %v17194_v18 = vpop.eup %17193 }
 0x11c   :  { %v17196_v22 = vpop.eup %17195  ;;  %v1150_v13 = vmul.f32 0.0, %v17194_v18  ;;  %v22973_v18 = vld [vmem:[#allocation77_spill] sm:$0xff] }
 0x11f   :  { %v17198_v25 = vpop.eup %17197 }
 0x120   :  { %v1151_v31 = vmul.f32 %v17198_v25, %v17196_v22  ;;  %v22974_v22 = vld [vmem:[#allocation103_spill] sm:$0xff]  ;;  %v22975_v25 = vld [vmem:[#allocation81_spill] sm:$0xff] }
 0x122   :  { %v1152_v23 = vadd.f32 %v1151_v31, %v1150_v13  ;;  %v22976_v13 = vld [vmem:[#allocation106_spill] sm:$0xff]  ;;  %v22977_v31 = vld [vmem:[#allocation84_spill] sm:$0xff] }
 0x123   :  { %v17200_v44 = vpop.eup %17199 }
 0x124   :  { %v1147_v6 = vadd.f32 1.0, %v17200_v44  ;;  %17201 = vtanh.f32 %v1152_v23  ;;  %v17982_v40 = vmul.f32 %v16828_v7, %v1152_v23  ;;  %v22979_v23 = vld [vmem:[#allocation87_spill] sm:$0xff]  ;;  %v22980_v44 = vld [vmem:[#allocation114_spill] sm:$0xff] }
 0x126   :  { %22958 = vst [vmem:[#allocation136_spill] sm:$0xff] %v17982_v40  ;;  %17203 = vrcp.f32 %v1147_v6  ;;  %v22981_v6 = vld [vmem:[#allocation91_spill] sm:$0xff] }
 0x131   :  { %v17202_v55 = vpop.eup %17201 }
 0x133   :  { %v17204_v15 = vpop.eup %17203 }
 0x134   :  { %v1154_v2 = vmul.f32 %v17204_v15, %v17202_v55  ;;  %v22982_v55 = vld [vmem:[#allocation117_spill] sm:$0xff]  ;;  %v22983_v15 = vld [vmem:[#allocation94_spill] sm:$0xff] }
 0x136   :  { %v1155_v26 = vmul.f32 %v16828_v7, %v1154_v2  ;;  %v22978_v7 = vld [vmem:[#allocation110_spill] sm:$0xff]  ;;  %v22984_v2 = vld [vmem:[#allocation120_spill] sm:$0xff] }
 0x138   :  { %v17984_v8 = vand.u32 4294901760, %v1155_v26 }
 0x13a   :  { %1559 = vmatmul.mubr.f32.vlgmr.msra.gmra.mxu1 %v17984_v8  ;;  %v17988_v51 = vsub.f32 %v1155_v26, %v17984_v8  ;;  %v22985_v26 = vld [vmem:[#allocation102_spill] sm:$0xff] }
 0x13b   :  { %1705 = vmatpush1.msra.mxu1 %v17514_v43  ;;  %1798 = vmatprep.mubr.f32.mxu1 %v22957_v16 }
 0x13c   :  { %22959 = vst [vmem:[#allocation137_spill] sm:$0xff] %v17988_v51  ;;  %1707 = vmatprep.subr.mxu1 %v17519_v46  ;;  %v17994_v60 = vand.u32 4294901760, %v17988_v51 }
 0x13d   :  { %1709 = vmatpush1.msra.mxu1 %v17525_v49 }
 0x13e   :  { %22960 = vst [vmem:[#allocation138_spill] sm:$0xff] %v17994_v60  ;;  %1711 = vmatprep.subr.mxu1 %v17534_v53  ;;  %v1325_v35 = vsub.f32 %v17988_v51, %v17994_v60 }
 0x13f   :  { %1713 = vmatpush1.msra.mxu1 %v17543_v57 }
 0x140   :  { %1715 = vmatprep.subr.mxu1 %v17554_v62  ;;  %v18002_v42 = vand.u32 4294901760, %v1325_v35  ;;  %v22986_v35 = vld [vmem:[#allocation7_spill] sm:$0xff] }
 0x141   :  { %1717 = vmatpush1.msra.mxu1 %v17565_v4 }
 0x142   :  { %22961 = vst [vmem:[#allocation139_spill] sm:$0xff] %v18002_v42  ;;  %1719 = vmatprep.subr.mxu1 %v17598_v19  ;;  %1327 = vmatmul.mubr.f32.vlgmr.msra.gmra.mxu0 %v18002_v42 }
 0x143   :  { %1570 = vmatpush1.msra.mxu0 %v17523_v48  ;;  %1721 = vmatpush1.msra.mxu1 %v17608_v24  ;;  %v1203_v48 = vld [vmem:[#allocation4 + $0x150] sm:$0xff] }
 0x144   :  { %1573 = vmatprep.subr.mxu0 %v17532_v52  ;;  %1723 = vmatprep.subr.mxu1 %v17618_v29 }
 0x145   :  { %1576 = vmatpush1.msra.mxu0 %v17541_v56  ;;  %1725 = vmatpush1.msra.mxu1 %v17629_v34  ;;  %v23012_v56 = vld [vmem:[#allocation54_spill] sm:$0xff] }
 0x146   :  { %1579 = vmatprep.subr.mxu0 %v17552_v61  ;;  %1727 = vmatprep.subr.mxu1 %v17641_v39  ;;  %v1204_v61 = vld [vmem:[#allocation4 + $0x158] sm:$0xff] }
 0x147   :  { %1582 = vmatpush1.msra.mxu0 %v17563_v3  ;;  %1729 = vmatpush1.msra.mxu1 %v17653_v50  ;;  %v23009_v3 = vld [vmem:[#allocation51_spill] sm:$0xff] }
 0x148   :  { %1585 = vmatprep.subr.mxu0 %v17576_v9  ;;  %1731 = vmatprep.subr.mxu1 %v17665_v63  ;;  %v1207_v9 = vld [vmem:[#allocation4 + $0x170] sm:$0xff] }
 0x149   :  { %1588 = vmatpush1.msra.mxu0 %v17587_v14  ;;  %1733 = vmatpush1.msra.mxu1 %v17677_v10  ;;  %v23006_v14 = vld [vmem:[#allocation48_spill] sm:$0xff] }
 0x14a   :  { %1591 = vmatprep.subr.mxu0 %v17616_v28  ;;  %1735 = vmatprep.subr.mxu1 %v17710_v36  ;;  %v1208_v28 = vld [vmem:[#allocation4 + $0x178] sm:$0xff] }
 0x14b   :  { %1594 = vmatpush1.msra.mxu0 %v17627_v33  ;;  %1737 = vmatpush1.msra.mxu1 %v17720_v17  ;;  %v18129_v52 = vand.u32 4294901760, %v1208_v28 }
 0x14c   :  { %1597 = vmatprep.subr.mxu0 %v17639_v38  ;;  %1739 = vmatprep.subr.mxu1 %v17730_v30  ;;  %v23003_v38 = vld [vmem:[#allocation44_spill] sm:$0xff] }
 0x14d   :  { %1600 = vmatpush1.msra.mxu0 %v17651_v47  ;;  %1741 = vmatpush1.msra.mxu1 %v17741_v20  ;;  %23015 = vst [vmem:[#allocation149_spill] sm:$0xff] %v18129_v52 }
 0x14e   :  { %1603 = vmatprep.subr.mxu0 %v17663_v59  ;;  %1743 = vmatprep.subr.mxu1 %v22962_v41 }
 0x14f   :  { %1606 = vmatpush1.msra.mxu0 %v22963_v11  ;;  %1745 = vmatpush1.msra.mxu1 %v22964_v5  ;;  %v1212_v11 = vld [vmem:[#allocation4 + $0x198] sm:$0xff] }
 0x150   :  { %1609 = vmatprep.subr.mxu0 %v22965_v1  ;;  %1747 = vmatprep.subr.mxu1 %v22966_v27 }
 0x151   :  { %1612 = vmatpush1.msra.mxu0 %v22967_v12  ;;  %1749 = vmatpush1.msra.mxu1 %v22968_v54  ;;  %v1215_v12 = vld [vmem:[#allocation4 + $0x1b0] sm:$0xff] }
 0x152   :  { %1615 = vmatprep.subr.mxu0 %v22969_v37  ;;  %1751 = vmatprep.subr.mxu1 %v22970_v32  ;;  %v22999_v37 = vld [vmem:[#allocation29_spill] sm:$0xff] }
 0x153   :  { %1618 = vmatpush1.msra.mxu0 %v22971_v0  ;;  %1753 = vmatpush1.msra.mxu1 %v22972_v45 }
 0x154   :  { %1621 = vmatprep.subr.mxu0 %v22973_v18  ;;  %1755 = vmatprep.subr.mxu1 %v22974_v22  ;;  %v1219_v18 = vld [vmem:[#allocation4 + $0x1d0] sm:$0xff] }
 0x155   :  { %1624 = vmatpush1.msra.mxu0 %v22975_v25  ;;  %1757 = vmatpush1.msra.mxu1 %v22976_v13  ;;  %v18091_v1 = vand.u32 4294901760, %v1219_v18 }
 0x156   :  { %1627 = vmatprep.subr.mxu0 %v22977_v31  ;;  %1759 = vmatprep.subr.mxu1 %v22978_v7  ;;  %v1220_v31 = vld [vmem:[#allocation4 + $0x1d8] sm:$0xff] }
 0x157   :  { %1630 = vmatpush1.msra.mxu0 %v22979_v23  ;;  %1761 = vmatpush1.msra.mxu1 %v22980_v44  ;;  %v22992_v23 = vld [vmem:[#allocation123_spill] sm:$0xff] }
 0x158   :  { %1633 = vmatprep.subr.mxu0 %v22981_v6  ;;  %1763 = vmatprep.subr.mxu1 %v22982_v55  ;;  %v22989_v6 = vld [vmem:[#allocation113_spill] sm:$0xff] }
 0x159   :  { %1636 = vmatpush1.msra.mxu0 %v22983_v15  ;;  %1765 = vmatpush1.msra.mxu1 %v22984_v2  ;;  %v22990_v15 = vld [vmem:[#allocation116_spill] sm:$0xff] }
 0x15a   :  { %1639 = vmatprep.subr.mxu0 %v22985_v26  ;;  %1802 = vmatmul.mubr.f32.vlgmr.msra.gmra.mxu1 %v17994_v60  ;;  %v22991_v26 = vld [vmem:[#allocation119_spill] sm:$0xff] }
 0x15b   :  { %1977 = vmatprep.subr.mxu1 %v22986_v35  ;;  %1642 = vmatpush1.msra.mxu0 %v22987_v58  ;;  %v22993_v58 = vld [vmem:[#allocation126_spill] sm:$0xff] }
 0x15c   :  { %1979 = vmatpush1.msra.mxu1 %v17514_v43  ;;  %1645 = vmatprep.subr.mxu0 %v22988_v21  ;;  %v1223_v21 = vld [vmem:[#allocation4 + $0x1f0] sm:$0xff]  ;;  %v1192_v43 = vld [vmem:[#allocation4 + $0xf8] sm:$0xff] }
 0x15d   :  { %1981 = vmatprep.subr.mxu1 %v17519_v46  ;;  %1648 = vmatpush1.msra.mxu0 %v22989_v6  ;;  %v22994_v6 = vld [vmem:[#allocation13_spill] sm:$0xff]  ;;  %v18083_v0 = vand.u32 4294901760, %v1223_v21 }
 0x15e   :  { %1983 = vmatpush1.msra.mxu1 %v17525_v49  ;;  %1651 = vmatprep.subr.mxu0 %v22990_v15  ;;  %v1224_v15 = vld [vmem:[#allocation4 + $0x1f8] sm:$0xff] }
 0x15f   :  { %1985 = vmatprep.subr.mxu1 %v17534_v53  ;;  %1654 = vmatpush1.msra.mxu0 %v22991_v26  ;;  %v22995_v26 = vld [vmem:[#allocation16_spill] sm:$0xff]  ;;  %v18079_v25 = vand.u32 4294901760, %v1224_v15  ;;  %v18103_v33 = vsub.f32 %v1223_v21, %v18083_v0  ;;  %v18117_v21 = vsub.f32 %v1219_v18, %v18091_v1  ;;  %v23016_v18 = vld [vmem:[#allocation58_spill] sm:$0xff] }
 0x160   :  { %1987 = vmatpush1.msra.mxu1 %v17543_v57  ;;  %1657 = vmatprep.subr.mxu0 %v22992_v23  ;;  %v22996_v23 = vld [vmem:[#allocation19_spill] sm:$0xff] }
 0x161   :  { %1989 = vmatprep.subr.mxu1 %v17554_v62  ;;  %1660 = vmatpush1.msra.mxu0 %v22993_v58  ;;  %v22997_v58 = vld [vmem:[#allocation22_spill] sm:$0xff]  ;;  %v18096_v59 = vsub.f32 %v1224_v15, %v18079_v25  ;;  %23004 = vst [vmem:[#allocation141_spill] sm:$0xff] %v18103_v33  ;;  %23010 = vst [vmem:[#allocation145_spill] sm:$0xff] %v18117_v21 }
 0x162   :  { %1693 = vmatprep.mubr.f32.mxu0 %v22957_v16  ;;  %1991 = vmatpush1.msra.mxu1 %v17565_v4 }
 0x163   :  { %1696 = vmatmul.mubr.f32.vlgmr.msra.gmra.mxu0 %v17988_v51  ;;  %1811 = vmatprep.subr.mxu0 %v22994_v6  ;;  %v22998_v6 = vld [vmem:[#allocation26_spill] sm:$0xff]  ;;  %23002 = vst [vmem:[#allocation140_spill] sm:$0xff] %v18096_v59  ;;  %v23071_v51 = vld [vmem:[#allocation112_spill] sm:$0xff] }
 0x164   :  { %1993 = vmatprep.subr.mxu1 %v17598_v19  ;;  %1815 = vmatpush1.msra.mxu0 %v22995_v26  ;;  %v1216_v26 = vld [vmem:[#allocation4 + $0x1b8] sm:$0xff] }
 0x165   :  { %1995 = vmatpush1.msra.mxu1 %v17608_v24  ;;  %1819 = vmatprep.subr.mxu0 %v22996_v23  ;;  %v18087_v23 = vand.u32 4294901760, %v1220_v31  ;;  %v18098_v47 = vand.u32 4294901760, %v1216_v26 }
 0x166   :  { %1997 = vmatprep.subr.mxu1 %v17618_v29  ;;  %1823 = vmatpush1.msra.mxu0 %v22997_v58  ;;  %v23000_v58 = vld [vmem:[#allocation32_spill] sm:$0xff] }
 0x167   :  { %1999 = vmatpush1.msra.mxu1 %v17629_v34  ;;  %1827 = vmatprep.subr.mxu0 %v22998_v6  ;;  %v23001_v6 = vld [vmem:[#allocation35_spill] sm:$0xff]  ;;  %v18110_v15 = vsub.f32 %v1220_v31, %v18087_v23  ;;  %v18124_v31 = vand.u32 4294901760, %v18096_v59  ;;  %v23032_v34 = vld [vmem:[#allocation76_spill] sm:$0xff] }
 0x168   :  { %2001 = vmatprep.subr.mxu1 %v17641_v39  ;;  %1831 = vmatpush1.msra.mxu0 %v22999_v37  ;;  %v1211_v37 = vld [vmem:[#allocation4 + $0x190] sm:$0xff] }
 0x169   :  { %2003 = vmatpush1.msra.mxu1 %v17653_v50  ;;  %1835 = vmatprep.subr.mxu0 %v23000_v58  ;;  %v18105_v58 = vand.u32 4294901760, %v1215_v12  ;;  %23007 = vst [vmem:[#allocation143_spill] sm:$0xff] %v18110_v15  ;;  %23013 = vst [vmem:[#allocation147_spill] sm:$0xff] %v18124_v31  ;;  %v2191_v50 = vsub.f32 %v18096_v59, %v18124_v31 }
 0x16a   :  { %2005 = vmatprep.subr.mxu1 %v17665_v63  ;;  %1839 = vmatpush1.msra.mxu0 %v23001_v6  ;;  %v18112_v6 = vand.u32 4294901760, %v1212_v11  ;;  %v1196_v63 = vld [vmem:[#allocation4 + $0x118] sm:$0xff] }
 0x16b   :  { %2007 = vmatpush1.msra.mxu1 %v17677_v10  ;;  %1843 = vmatprep.subr.mxu0 %v23003_v38  ;;  %23005 = vst [vmem:[#allocation142_spill] sm:$0xff] %v18105_v58  ;;  %v18119_v38 = vand.u32 4294901760, %v1211_v37  ;;  %v18137_v40 = vsub.f32 %v1215_v12, %v18105_v58  ;;  %v23024_v12 = vld [vmem:[#allocation64_spill] sm:$0xff]  ;;  %v18154_v10 = vand.u32 4294901760, %v18117_v21  ;;  %v18195_v4 = vand.u32 4294901760, %v1196_v63 }
 0x16c   :  { %2009 = vmatprep.subr.mxu1 %v17710_v36  ;;  %1847 = vmatpush1.msra.mxu0 %v23006_v14  ;;  %23008 = vst [vmem:[#allocation144_spill] sm:$0xff] %v18112_v6  ;;  %v18127_v14 = vsub.f32 %v1216_v26, %v18098_v47  ;;  %v23020_v26 = vld [vmem:[#allocation61_spill] sm:$0xff]  ;;  %v18211_v53 = vand.u32 4294901760, %v2191_v50 }
 0x16d   :  { %2011 = vmatpush1.msra.mxu1 %v17720_v17  ;;  %1851 = vmatprep.subr.mxu0 %v23009_v3  ;;  %23011 = vst [vmem:[#allocation146_spill] sm:$0xff] %v18119_v38  ;;  %v18134_v3 = vand.u32 4294901760, %v18103_v33  ;;  %23018 = vst [vmem:[#allocation151_spill] sm:$0xff] %v18137_v40  ;;  %v18144_v17 = vand.u32 4294901760, %v18110_v15  ;;  %v1199_v36 = vld [vmem:[#allocation4 + $0x130] sm:$0xff] }
 0x16e   :  { %2013 = vmatprep.subr.mxu1 %v17730_v30  ;;  %1855 = vmatpush1.msra.mxu0 %v23012_v56  ;;  %23014 = vst [vmem:[#allocation148_spill] sm:$0xff] %v18127_v14  ;;  %v18139_v56 = vand.u32 4294901760, %v1207_v9  ;;  %v1200_v30 = vld [vmem:[#allocation4 + $0x138] sm:$0xff]  ;;  %23025 = vst [vmem:[#allocation156_spill] sm:$0xff] %v18154_v10  ;;  %v18183_v24 = vand.u32 4294901760, %v1199_v36 }
 0x16f   :  { %2015 = vmatpush1.msra.mxu1 %v17741_v20  ;;  %1859 = vmatprep.subr.mxu0 %v23016_v18  ;;  %23017 = vst [vmem:[#allocation150_spill] sm:$0xff] %v18134_v3  ;;  %23021 = vst [vmem:[#allocation153_spill] sm:$0xff] %v18144_v17  ;;  %v18147_v20 = vsub.f32 %v1212_v11, %v18112_v6  ;;  %v18149_v18 = vand.u32 4294901760, %v1204_v61  ;;  %v23028_v11 = vld [vmem:[#allocation67_spill] sm:$0xff]  ;;  %v18171_v39 = vand.u32 4294901760, %v1200_v30 }
 0x170   :  { %23019 = vst [vmem:[#allocation152_spill] sm:$0xff] %v18139_v56  ;;  %2017 = vmatprep.subr.mxu1 %v22962_v41  ;;  %1863 = vmatpush1.msra.mxu0 %v23020_v26  ;;  %v18157_v41 = vsub.f32 %v1211_v37, %v18119_v38  ;;  %v18159_v26 = vand.u32 4294901760, %v1203_v48  ;;  %v1195_v37 = vld [vmem:[#allocation4 + $0x110] sm:$0xff]  ;;  %v18181_v29 = vsub.f32 %v1207_v9, %v18139_v56  ;;  %23035 = vst [vmem:[#allocation164_spill] sm:$0xff] %v18183_v24  ;;  %v23040_v9 = vld [vmem:[#allocation83_spill] sm:$0xff] }
 0x171   :  { %23022 = vst [vmem:[#allocation154_spill] sm:$0xff] %v18147_v20  ;;  %23023 = vst [vmem:[#allocation155_spill] sm:$0xff] %v18149_v18  ;;  %2019 = vmatpush1.msra.mxu1 %v22964_v5  ;;  %1867 = vmatprep.subr.mxu0 %v23024_v12  ;;  %v18166_v5 = vand.u32 4294901760, %v18127_v14  ;;  %v18169_v12 = vsub.f32 %v1208_v28, %v18129_v52  ;;  %v23036_v28 = vld [vmem:[#allocation80_spill] sm:$0xff]  ;;  %v18193_v19 = vsub.f32 %v1204_v61, %v18149_v18  ;;  %v23044_v61 = vld [vmem:[#allocation86_spill] sm:$0xff] }
 0x172   :  { %23026 = vst [vmem:[#allocation157_spill] sm:$0xff] %v18157_v41  ;;  %23027 = vst [vmem:[#allocation158_spill] sm:$0xff] %v18159_v26  ;;  %2021 = vmatprep.subr.mxu1 %v22966_v27  ;;  %1871 = vmatpush1.msra.mxu0 %v23028_v11  ;;  %v2197_v27 = vsub.f32 %v18103_v33, %v18134_v3  ;;  %v18178_v11 = vand.u32 4294901760, %v18137_v40  ;;  %v18205_v62 = vsub.f32 %v1203_v48, %v18159_v26  ;;  %v23048_v48 = vld [vmem:[#allocation90_spill] sm:$0xff] }
 0x173   :  { %23029 = vst [vmem:[#allocation159_spill] sm:$0xff] %v18166_v5  ;;  %23030 = vst [vmem:[#allocation160_spill] sm:$0xff] %v18169_v12  ;;  %2023 = vmatpush1.msra.mxu1 %v22968_v54  ;;  %1875 = vmatprep.subr.mxu0 %v23032_v34  ;;  %v2203_v54 = vsub.f32 %v18110_v15, %v18144_v17  ;;  %v18190_v34 = vand.u32 4294901760, %v18147_v20  ;;  %v18207_v57 = vand.u32 4294901760, %v1195_v37  ;;  %v18228_v50 = vand.u32 4294901760, %v18181_v29  ;;  %v23067_v17 = vld [vmem:[#allocation108_spill] sm:$0xff] }
 0x174   :  { %23031 = vst [vmem:[#allocation161_spill] sm:$0xff] %v18171_v39  ;;  %23033 = vst [vmem:[#allocation162_spill] sm:$0xff] %v18178_v11  ;;  %2025 = vmatprep.subr.mxu1 %v22970_v32  ;;  %1879 = vmatpush1.msra.mxu0 %v23036_v28  ;;  %v2209_v32 = vsub.f32 %v18117_v21, %v18154_v10  ;;  %v18202_v28 = vand.u32 4294901760, %v18157_v41  ;;  %v18219_v49 = vsub.f32 %v1200_v30, %v18171_v39  ;;  %v23052_v30 = vld [vmem:[#allocation93_spill] sm:$0xff]  ;;  %v1164_v21 = vld [vmem:[#allocation4 + $0x18] sm:$0xff] }
 0x175   :  { %23034 = vst [vmem:[#allocation163_spill] sm:$0xff] %v18181_v29  ;;  %23037 = vst [vmem:[#allocation165_spill] sm:$0xff] %v18190_v34  ;;  %2027 = vmatpush1.msra.mxu1 %v22972_v45  ;;  %1883 = vmatprep.subr.mxu0 %v23040_v9  ;;  %v2215_v9 = vsub.f32 %v18127_v14, %v18166_v5  ;;  %v18216_v45 = vand.u32 4294901760, %v18169_v12  ;;  %v18223_v46 = vand.u32 4294901760, %v2197_v27  ;;  %v18235_v35 = vand.u32 4294901760, %v2203_v54 }
 0x176   :  { %23038 = vst [vmem:[#allocation166_spill] sm:$0xff] %v18193_v19  ;;  %23039 = vst [vmem:[#allocation167_spill] sm:$0xff] %v18195_v4  ;;  %2029 = vmatprep.subr.mxu1 %v22974_v22  ;;  %1887 = vmatpush1.msra.mxu0 %v23044_v61  ;;  %v2221_v61 = vsub.f32 %v18137_v40, %v18178_v11  ;;  %v18231_v22 = vsub.f32 %v1199_v36, %v18183_v24  ;;  %v1191_v11 = vld [vmem:[#allocation4 + $0xf0] sm:$0xff]  ;;  %v23056_v36 = vld [vmem:[#allocation96_spill] sm:$0xff]  ;;  %v18247_v5 = vand.u32 4294901760, %v2209_v32 }
 0x177   :  { %23041 = vst [vmem:[#allocation168_spill] sm:$0xff] %v18202_v28  ;;  %23042 = vst [vmem:[#allocation169_spill] sm:$0xff] %v18205_v62  ;;  %2031 = vmatpush1.msra.mxu1 %v22976_v13  ;;  %1891 = vmatprep.subr.mxu0 %v23048_v48  ;;  %v2227_v27 = vsub.f32 %v18147_v20, %v18190_v34  ;;  %v18240_v48 = vand.u32 4294901760, %v18193_v19  ;;  %v18243_v13 = vsub.f32 %v1196_v63, %v18195_v4  ;;  %v1188_v34 = vld [vmem:[#allocation4 + $0xd8] sm:$0xff]  ;;  %v23060_v63 = vld [vmem:[#allocation99_spill] sm:$0xff] }
 0x178   :  { %23043 = vst [vmem:[#allocation170_spill] sm:$0xff] %v18207_v57  ;;  %23045 = vst [vmem:[#allocation171_spill] sm:$0xff] %v18211_v53  ;;  %2033 = vmatprep.subr.mxu1 %v22978_v7  ;;  %1895 = vmatpush1.msra.mxu0 %v23052_v30  ;;  %v2233_v54 = vsub.f32 %v18157_v41, %v18202_v28  ;;  %v18252_v30 = vand.u32 4294901760, %v18205_v62  ;;  %v18255_v7 = vsub.f32 %v1195_v37, %v18207_v57  ;;  %v1187_v28 = vld [vmem:[#allocation4 + $0xd0] sm:$0xff]  ;;  %v1168_v20 = vld [vmem:[#allocation4 + $0x38] sm:$0xff] }
 0x179   :  { %23046 = vst [vmem:[#allocation172_spill] sm:$0xff] %v18216_v45  ;;  %23047 = vst [vmem:[#allocation173_spill] sm:$0xff] %v18219_v49  ;;  %2035 = vmatpush1.msra.mxu1 %v22980_v44  ;;  %1899 = vmatprep.subr.mxu0 %v23056_v36  ;;  %v18259_v10 = vand.u32 4294901760, %v2215_v9  ;;  %v2239_v32 = vsub.f32 %v18169_v12, %v18216_v45  ;;  %v18264_v36 = vand.u32 4294901760, %v18219_v49  ;;  %v18266_v44 = vand.u32 4294901760, %v1192_v43  ;;  %v1184_v45 = vld [vmem:[#allocation4 + $0xb8] sm:$0xff] }
 0x17a   :  { %23049 = vst [vmem:[#allocation174_spill] sm:$0xff] %v18223_v46  ;;  %23050 = vst [vmem:[#allocation175_spill] sm:$0xff] %v18228_v50  ;;  %2037 = vmatprep.subr.mxu1 %v22982_v55  ;;  %1903 = vmatpush1.msra.mxu0 %v23060_v63  ;;  %v18270_v37 = vand.u32 4294901760, %v2221_v61  ;;  %v2245_v63 = vsub.f32 %v18181_v29, %v18228_v50  ;;  %v18275_v9 = vand.u32 4294901760, %v18231_v22  ;;  %v18277_v55 = vand.u32 4294901760, %v1191_v11  ;;  %v1183_v50 = vld [vmem:[#allocation4 + $0xb0] sm:$0xff] }
 0x17b   :  { %23051 = vst [vmem:[#allocation176_spill] sm:$0xff] %v18231_v22  ;;  %23053 = vst [vmem:[#allocation177_spill] sm:$0xff] %v18235_v35  ;;  %2039 = vmatpush1.msra.mxu1 %v22984_v2  ;;  %2072 = vmatprep.mubr.f32.mxu1 %v22957_v16  ;;  %v18281_v3 = vand.u32 4294901760, %v2227_v27  ;;  %v2251_v2 = vsub.f32 %v18193_v19, %v18240_v48  ;;  %v18286_v61 = vand.u32 4294901760, %v18243_v13  ;;  %v18288_v31 = vand.u32 4294901760, %v1188_v34  ;;  %v23075_v19 = vld [vmem:[#allocation115_spill] sm:$0xff] }
 0x17c   :  { %23054 = vst [vmem:[#allocation178_spill] sm:$0xff] %v18240_v48  ;;  %23055 = vst [vmem:[#allocation179_spill] sm:$0xff] %v18243_v13  ;;  %1907 = vmatprep.subr.mxu0 %v23067_v17  ;;  %2074 = vmatmul.mubr.f32.vlgmr.msra.gmra.mxu1 %v17984_v8  ;;  %v18292_v60 = vand.u32 4294901760, %v2233_v54  ;;  %v2257_v17 = vsub.f32 %v18205_v62, %v18252_v30  ;;  %v18297_v27 = vand.u32 4294901760, %v18255_v7  ;;  %v18299_v29 = vand.u32 4294901760, %v1187_v28  ;;  %v1180_v48 = vld [vmem:[#allocation4 + $0x98] sm:$0xff] }
 0x17d   :  { %23057 = vst [vmem:[#allocation180_spill] sm:$0xff] %v18247_v5  ;;  %23058 = vst [vmem:[#allocation181_spill] sm:$0xff] %v18252_v30  ;;  %2193 = vmatprep.subr.mxu1 %v18211_v53  ;;  %1911 = vmatpush1.msra.mxu0 %v23071_v51  ;;  %v18303_v12 = vand.u32 4294901760, %v2239_v32  ;;  %v2263_v51 = vsub.f32 %v18219_v49, %v18264_v36  ;;  %v18308_v54 = vsub.f32 %v1192_v43, %v18266_v44  ;;  %v1179_v30 = vld [vmem:[#allocation4 + $0x90] sm:$0xff]  ;;  %v23079_v62 = vld [vmem:[#allocation118_spill] sm:$0xff] }
 0x17e   :  { %23059 = vst [vmem:[#allocation182_spill] sm:$0xff] %v18255_v7  ;;  %23061 = vst [vmem:[#allocation183_spill] sm:$0xff] %v18259_v10  ;;  %2199 = vmatpush1.msra.mxu1 %v18223_v46  ;;  %1915 = vmatprep.subr.mxu0 %v23075_v19  ;;  %v18310_v53 = vand.u32 4294901760, %v1184_v45  ;;  %v18314_v41 = vand.u32 4294901760, %v2245_v63  ;;  %v2269_v19 = vsub.f32 %v18231_v22, %v18275_v9  ;;  %v18321_v46 = vand.u32 4294901760, %v1183_v50  ;;  %v23083_v43 = vld [vmem:[#allocation122_spill] sm:$0xff] }
 0x17f   :  { %23062 = vst [vmem:[#allocation184_spill] sm:$0xff] %v18264_v36  ;;  %23063 = vst [vmem:[#allocation185_spill] sm:$0xff] %v18266_v44  ;;  %2205 = vmatprep.subr.mxu1 %v18235_v35  ;;  %1919 = vmatpush1.msra.mxu0 %v23079_v62  ;;  %v18319_v32 = vsub.f32 %v1191_v11, %v18277_v55  ;;  %v1176_v36 = vld [vmem:[#allocation4 + $0x78] sm:$0xff]  ;;  %v18325_v49 = vand.u32 4294901760, %v2251_v2  ;;  %v2275_v62 = vsub.f32 %v18243_v13, %v18286_v61  ;;  %v23087_v11 = vld [vmem:[#allocation125_spill] sm:$0xff] }
 0x180   :  { %23064 = vst [vmem:[#allocation186_spill] sm:$0xff] %v18270_v37  ;;  %23065 = vst [vmem:[#allocation187_spill] sm:$0xff] %v18275_v9  ;;  %2211 = vmatpush1.msra.mxu1 %v18247_v5  ;;  %1923 = vmatprep.subr.mxu0 %v23083_v43  ;;  %v18330_v63 = vsub.f32 %v1188_v34, %v18288_v31  ;;  %v18332_v35 = vand.u32 4294901760, %v1180_v48  ;;  %v1175_v9 = vld [vmem:[#allocation4 + $0x70] sm:$0xff]  ;;  %v18336_v22 = vand.u32 4294901760, %v2257_v17  ;;  %v18343_v5 = vand.u32 4294901760, %v1179_v30 }
 0x181   :  { %23066 = vst [vmem:[#allocation188_spill] sm:$0xff] %v18277_v55  ;;  %23068 = vst [vmem:[#allocation189_spill] sm:$0xff] %v18281_v3  ;;  %2217 = vmatprep.subr.mxu1 %v18259_v10  ;;  %1927 = vmatpush1.msra.mxu0 %v23087_v11  ;;  %v2281_v43 = vsub.f32 %v18255_v7, %v18297_v27  ;;  %v18341_v2 = vsub.f32 %v1187_v28, %v18299_v29  ;;  %v23091_v34 = vld [vmem:[#allocation128_spill] sm:$0xff]  ;;  %v18347_v13 = vand.u32 4294901760, %v2263_v51  ;;  %v23096_v28 = vld [vmem:[#allocation130_spill] sm:$0xff] }
 0x182   :  { %23069 = vst [vmem:[#allocation190_spill] sm:$0xff] %v18286_v61  ;;  %23070 = vst [vmem:[#allocation191_spill] sm:$0xff] %v18288_v31  ;;  %v1172_v61 = vld [vmem:[#allocation4 + $0x58] sm:$0xff]  ;;  %2223 = vmatpush1.msra.mxu1 %v18270_v37  ;;  %1931 = vmatprep.subr.mxu0 %v23091_v34  ;;  %v18350_v10 = vand.u32 4294901760, %v18308_v54  ;;  %v18353_v17 = vsub.f32 %v1184_v45, %v18310_v53  ;;  %v18355_v11 = vand.u32 4294901760, %v1176_v36  ;;  %v18359_v7 = vand.u32 4294901760, %v2269_v19 }
 0x183   :  { %23072 = vst [vmem:[#allocation192_spill] sm:$0xff] %v18292_v60  ;;  %23073 = vst [vmem:[#allocation193_spill] sm:$0xff] %v18297_v27  ;;  %v1171_v27 = vld [vmem:[#allocation4 + $0x50] sm:$0xff]  ;;  %2229 = vmatprep.subr.mxu1 %v18281_v3  ;;  %1935 = vmatpush1.msra.mxu0 %v23096_v28  ;;  %v18362_v37 = vand.u32 4294901760, %v18319_v32  ;;  %v18365_v51 = vsub.f32 %v1183_v50, %v18321_v46  ;;  %v18367_v34 = vand.u32 4294901760, %v1175_v9  ;;  %v18371_v45 = vand.u32 4294901760, %v2275_v62 }
 0x184   :  { %23074 = vst [vmem:[#allocation194_spill] sm:$0xff] %v18299_v29  ;;  %23076 = vst [vmem:[#allocation195_spill] sm:$0xff] %v18303_v12  ;;  %1968 = vmatprep.mubr.f32.mxu0 %v22957_v16  ;;  %2235 = vmatpush1.msra.mxu1 %v18292_v60  ;;  %v18374_v3 = vand.u32 4294901760, %v18330_v63  ;;  %v18377_v19 = vsub.f32 %v1180_v48, %v18332_v35  ;;  %v18379_v28 = vand.u32 4294901760, %v1172_v61  ;;  %v1167_v40 = vld [vmem:[#allocation4 + $0x30] sm:$0xff]  ;;  %v18383_v50 = vand.u32 4294901760, %v2281_v43 }
 0x185   :  { %23077 = vst [vmem:[#allocation196_spill] sm:$0xff] %v18308_v54  ;;  %23078 = vst [vmem:[#allocation197_spill] sm:$0xff] %v18310_v53  ;;  %1970 = vmatmul.mubr.f32.vlgmr.msra.gmra.mxu0 %v17984_v8  ;;  %2081 = vmatprep.subr.mxu0 %v18079_v25  ;;  %v18386_v14 = vand.u32 4294901760, %v18341_v2  ;;  %v18389_v62 = vsub.f32 %v1179_v30, %v18343_v5  ;;  %v18391_v60 = vand.u32 4294901760, %v1171_v27  ;;  %v18398_v15 = vand.u32 4294901760, %v18353_v17  ;;  %v1163_v30 = vld [vmem:[#allocation4 + $0x10] sm:$0xff] }
 0x186   :  { %23080 = vst [vmem:[#allocation198_spill] sm:$0xff] %v18314_v41  ;;  %23081 = vst [vmem:[#allocation199_spill] sm:$0xff] %v18319_v32  ;;  %2241 = vmatprep.subr.mxu1 %v18303_v12  ;;  %2083 = vmatpush1.msra.mxu0 %v18083_v0  ;;  %v2287_v48 = vsub.f32 %v18308_v54, %v18350_v10  ;;  %v18401_v43 = vsub.f32 %v1176_v36, %v18355_v11  ;;  %v18403_v33 = vand.u32 4294901760, %v1168_v20 }
 0x187   :  { %23082 = vst [vmem:[#allocation200_spill] sm:$0xff] %v18321_v46  ;;  %23084 = vst [vmem:[#allocation201_spill] sm:$0xff] %v18325_v49  ;;  %2247 = vmatpush1.msra.mxu1 %v18314_v41  ;;  %2085 = vmatprep.subr.mxu0 %v18087_v23  ;;  %v2293_v12 = vsub.f32 %v18319_v32, %v18362_v37  ;;  %v18410_v59 = vand.u32 4294901760, %v18365_v51  ;;  %v18415_v54 = vand.u32 4294901760, %v1167_v40  ;;  %v18422_v41 = vand.u32 4294901760, %v18377_v19 }
 0x188   :  { %23085 = vst [vmem:[#allocation202_spill] sm:$0xff] %v18330_v63  ;;  %23086 = vst [vmem:[#allocation203_spill] sm:$0xff] %v18332_v35  ;;  %2253 = vmatprep.subr.mxu1 %v18325_v49  ;;  %2087 = vmatpush1.msra.mxu0 %v18091_v1  ;;  %v2299_v36 = vsub.f32 %v18330_v63, %v18374_v3  ;;  %v18427_v32 = vand.u32 4294901760, %v1164_v21  ;;  %v18434_v49 = vand.u32 4294901760, %v18389_v62  ;;  %v18439_v63 = vand.u32 4294901760, %v1163_v30 }
 0x189   :  { %23088 = vst [vmem:[#allocation204_spill] sm:$0xff] %v18336_v22  ;;  %23089 = vst [vmem:[#allocation205_spill] sm:$0xff] %v18341_v2  ;;  %2259 = vmatpush1.msra.mxu1 %v18336_v22  ;;  %2089 = vmatprep.subr.mxu0 %v18098_v47  ;;  %v2311_v22 = vsub.f32 %v18353_v17, %v18398_v15  ;;  %v18448_v42 = vand.u32 4294901760, %v18401_v43 }
 0x18a   :  { %23090 = vst [vmem:[#allocation206_spill] sm:$0xff] %v18343_v5  ;;  %23092 = vst [vmem:[#allocation207_spill] sm:$0xff] %v18347_v13  ;;  %2265 = vmatprep.subr.mxu1 %v18347_v13  ;;  %2091 = vmatpush1.msra.mxu0 %v18105_v58  ;;  %v2317_v13 = vsub.f32 %v18365_v51, %v18410_v59 }
 0x18b   :  { %23093 = vst [vmem:[#allocation208_spill] sm:$0xff] %v18350_v10  ;;  %23094 = vst [vmem:[#allocation209_spill] sm:$0xff] %v18353_v17  ;;  %v18413_v10 = vsub.f32 %v1175_v9, %v18367_v34  ;;  %v2305_v9 = vsub.f32 %v18341_v2, %v18386_v14  ;;  %2271 = vmatpush1.msra.mxu1 %v18359_v7  ;;  %2093 = vmatprep.subr.mxu0 %v18112_v6 }
 0x18c   :  { %23095 = vst [vmem:[#allocation210_spill] sm:$0xff] %v18355_v11  ;;  %23097 = vst [vmem:[#allocation211_spill] sm:$0xff] %v18359_v7  ;;  %2277 = vmatprep.subr.mxu1 %v18371_v45  ;;  %2095 = vmatpush1.msra.mxu0 %v18119_v38  ;;  %v2323_v7 = vsub.f32 %v18377_v19, %v18422_v41 }
 0x18d   :  { %23098 = vst [vmem:[#allocation212_spill] sm:$0xff] %v18362_v37  ;;  %23099 = vst [vmem:[#allocation213_spill] sm:$0xff] %v18365_v51  ;;  %v18425_v37 = vsub.f32 %v1172_v61, %v18379_v28  ;;  %v18443_v61 = vand.u32 4294901760, %v2287_v48  ;;  %v18460_v48 = vand.u32 4294901760, %v18413_v10  ;;  %2283 = vmatpush1.msra.mxu1 %v18383_v50  ;;  %2097 = vmatprep.subr.mxu0 %v18129_v52 }
 0x18e   :  { %23100 = vst [vmem:[#allocation214_spill] sm:$0xff] %v18367_v34  ;;  %23101 = vst [vmem:[#allocation215_spill] sm:$0xff] %v18371_v45  ;;  %v2329_v45 = vsub.f32 %v18389_v62, %v18434_v49  ;;  %2099 = vmatpush1.msra.mxu0 %v18139_v56  ;;  %2412 = vmatprep.mubr.f32.mxu1 %v22957_v16 }
 0x18f   :  { %23102 = vst [vmem:[#allocation216_spill] sm:$0xff] %v18374_v3  ;;  %23103 = vst [vmem:[#allocation217_spill] sm:$0xff] %v18377_v19  ;;  %v18437_v3 = vsub.f32 %v1171_v27, %v18391_v60  ;;  %v18455_v27 = vand.u32 4294901760, %v2293_v12  ;;  %v18472_v12 = vand.u32 4294901760, %v18425_v37  ;;  %2289 = vmatprep.subr.mxu1 %v18443_v61  ;;  %2101 = vmatprep.subr.mxu0 %v18149_v18 }
 0x190   :  { %23104 = vst [vmem:[#allocation218_spill] sm:$0xff] %v18379_v28  ;;  %23105 = vst [vmem:[#allocation219_spill] sm:$0xff] %v18383_v50  ;;  %v2335_v50 = vsub.f32 %v18401_v43, %v18448_v42  ;;  %2103 = vmatpush1.msra.mxu0 %v18159_v26  ;;  %2176 = vmatprep.mubr.f32.mxu0 %v22957_v16 }
 0x191   :  { %23106 = vst [vmem:[#allocation220_spill] sm:$0xff] %v18386_v14  ;;  %23107 = vst [vmem:[#allocation221_spill] sm:$0xff] %v18389_v62  ;;  %v18451_v14 = vsub.f32 %v1168_v20, %v18403_v33  ;;  %v18467_v20 = vand.u32 4294901760, %v2299_v36  ;;  %v18484_v36 = vand.u32 4294901760, %v18437_v3  ;;  %2295 = vmatpush1.msra.mxu1 %v18455_v27  ;;  %2105 = vmatprep.subr.mxu0 %v18171_v39 }
 0x192   :  { %23108 = vst [vmem:[#allocation222_spill] sm:$0xff] %v18391_v60  ;;  %23109 = vst [vmem:[#allocation223_spill] sm:$0xff] %v18398_v15  ;;  %v18463_v15 = vsub.f32 %v1167_v40, %v18415_v54  ;;  %v18479_v40 = vand.u32 4294901760, %v2305_v9  ;;  %2107 = vmatpush1.msra.mxu0 %v18183_v24 }
 0x193   :  { %23110 = vst [vmem:[#allocation224_spill] sm:$0xff] %v18401_v43  ;;  %23111 = vst [vmem:[#allocation225_spill] sm:$0xff] %v18403_v33  ;;  %v18496_v9 = vand.u32 4294901760, %v18451_v14  ;;  %2301 = vmatprep.subr.mxu1 %v18467_v20  ;;  %2109 = vmatprep.subr.mxu0 %v18195_v4 }
 0x194   :  { %23112 = vst [vmem:[#allocation226_spill] sm:$0xff] %v18410_v59  ;;  %23113 = vst [vmem:[#allocation227_spill] sm:$0xff] %v18413_v10  ;;  %v18475_v59 = vsub.f32 %v1164_v21, %v18427_v32  ;;  %v18491_v21 = vand.u32 4294901760, %v2311_v22  ;;  %v18509_v22 = vand.u32 4294901760, %v2323_v7  ;;  %2307 = vmatpush1.msra.mxu1 %v18479_v40  ;;  %v18527_v7 = vand.u32 4294901760, %v2335_v50  ;;  %2111 = vmatpush1.msra.mxu0 %v18207_v57 }
 0x195   :  { %23114 = vst [vmem:[#allocation228_spill] sm:$0xff] %v18415_v54  ;;  %23115 = vst [vmem:[#allocation229_spill] sm:$0xff] %v18422_v41  ;;  %v18487_v41 = vsub.f32 %v1163_v30, %v18439_v63  ;;  %v2341_v30 = vsub.f32 %v18413_v10, %v18460_v48  ;;  %2113 = vmatprep.subr.mxu0 %v18266_v44 }
 0x196   :  { %23116 = vst [vmem:[#allocation230_spill] sm:$0xff] %v18425_v37  ;;  %23117 = vst [vmem:[#allocation231_spill] sm:$0xff] %v18427_v32  ;;  %2313 = vmatprep.subr.mxu1 %v18491_v21  ;;  %2115 = vmatpush1.msra.mxu0 %v18277_v55 }
 0x197   :  { %23118 = vst [vmem:[#allocation232_spill] sm:$0xff] %v18434_v49  ;;  %23119 = vst [vmem:[#allocation233_spill] sm:$0xff] %v18437_v3  ;;  %v18500_v49 = vand.u32 4294901760, %v2317_v13  ;;  %v18518_v13 = vand.u32 4294901760, %v2329_v45  ;;  %v18533_v45 = vand.u32 4294901760, %v2341_v30  ;;  %2117 = vmatprep.subr.mxu0 %v18288_v31 }
 0x198   :  { %23120 = vst [vmem:[#allocation234_spill] sm:$0xff] %v18439_v63  ;;  %23121 = vst [vmem:[#allocation235_spill] sm:$0xff] %v18443_v61  ;;  %v18505_v61 = vand.u32 4294901760, %v18463_v15  ;;  %2119 = vmatpush1.msra.mxu0 %v18299_v29 }
 0x199   :  { %23122 = vst [vmem:[#allocation236_spill] sm:$0xff] %v18448_v42  ;;  %23123 = vst [vmem:[#allocation237_spill] sm:$0xff] %v18451_v14  ;;  %v2347_v42 = vsub.f32 %v18425_v37, %v18472_v12  ;;  %2319 = vmatpush1.msra.mxu1 %v18500_v49  ;;  %2121 = vmatprep.subr.mxu0 %v18310_v53 }
 0x19a   :  { %23124 = vst [vmem:[#allocation238_spill] sm:$0xff] %v18455_v27  ;;  %23125 = vst [vmem:[#allocation239_spill] sm:$0xff] %v18460_v48  ;;  %v18514_v27 = vand.u32 4294901760, %v18475_v59  ;;  %v2353_v48 = vsub.f32 %v18437_v3, %v18484_v36  ;;  %2325 = vmatprep.subr.mxu1 %v18509_v22  ;;  %2123 = vmatpush1.msra.mxu0 %v18321_v46 }
 0x19b   :  { %23126 = vst [vmem:[#allocation240_spill] sm:$0xff] %v18463_v15  ;;  %23127 = vst [vmem:[#allocation241_spill] sm:$0xff] %v18467_v20  ;;  %v18523_v20 = vand.u32 4294901760, %v18487_v41  ;;  %2331 = vmatpush1.msra.mxu1 %v18518_v13  ;;  %2125 = vmatprep.subr.mxu0 %v18332_v35 }
 0x19c   :  { %23128 = vst [vmem:[#allocation242_spill] sm:$0xff] %v18472_v12  ;;  %23129 = vst [vmem:[#allocation243_spill] sm:$0xff] %v18475_v59  ;;  %v2359_v12 = vsub.f32 %v18451_v14, %v18496_v9  ;;  %v2371_v50 = vsub.f32 %v18475_v59, %v18514_v27  ;;  %2337 = vmatprep.subr.mxu1 %v18527_v7  ;;  %2127 = vmatpush1.msra.mxu0 %v18343_v5 }
 0x19d   :  { %23130 = vst [vmem:[#allocation244_spill] sm:$0xff] %v18479_v40  ;;  %23131 = vst [vmem:[#allocation245_spill] sm:$0xff] %v18484_v36  ;;  %v2365_v40 = vsub.f32 %v18463_v15, %v18505_v61  ;;  %v2377_v30 = vsub.f32 %v18487_v41, %v18523_v20  ;;  %2343 = vmatpush1.msra.mxu1 %v18533_v45  ;;  %2129 = vmatprep.subr.mxu0 %v18355_v11 }
 0x19e   :  { %23132 = vst [vmem:[#allocation246_spill] sm:$0xff] %v18487_v41  ;;  %23133 = vst [vmem:[#allocation247_spill] sm:$0xff] %v18491_v21  ;;  %v18539_v21 = vand.u32 4294901760, %v2347_v42  ;;  %2131 = vmatpush1.msra.mxu0 %v18367_v34 }
 0x19f   :  { %23134 = vst [vmem:[#allocation248_spill] sm:$0xff] %v18496_v9  ;;  %23135 = vst [vmem:[#allocation249_spill] sm:$0xff] %v18500_v49  ;;  %v18545_v49 = vand.u32 4294901760, %v2353_v48  ;;  %v18555_v42 = vand.u32 4294901760, %v2365_v40  ;;  %v18559_v48 = vand.u32 4294901760, %v2371_v50  ;;  %2133 = vmatprep.subr.mxu0 %v18379_v28  ;;  %v23150_v40 = vld [vmem:[#allocation140_spill] sm:$0xff] }
 0x1a0   :  { %23136 = vst [vmem:[#allocation250_spill] sm:$0xff] %v18505_v61  ;;  %23137 = vst [vmem:[#allocation251_spill] sm:$0xff] %v18509_v22  ;;  %v18551_v22 = vand.u32 4294901760, %v2359_v12  ;;  %2349 = vmatprep.subr.mxu1 %v18539_v21  ;;  %2135 = vmatpush1.msra.mxu0 %v18391_v60  ;;  %v23149_v12 = vld [vmem:[#allocation139_spill] sm:$0xff]  ;;  %v23151_v50 = vld [vmem:[#allocation141_spill] sm:$0xff] }
 0x1a1   :  { %23138 = vst [vmem:[#allocation252_spill] sm:$0xff] %v18514_v27  ;;  %23139 = vst [vmem:[#allocation253_spill] sm:$0xff] %v18518_v13  ;;  %2355 = vmatpush1.msra.mxu1 %v18545_v49  ;;  %2137 = vmatprep.subr.mxu0 %v18403_v33 }
 0x1a2   :  { %23140 = vst [vmem:[#allocation254_spill] sm:$0xff] %v18523_v20  ;;  %23141 = vst [vmem:[#allocation255_spill] sm:$0xff] %v18527_v7  ;;  %v18563_v7 = vand.u32 4294901760, %v2377_v30  ;;  %2361 = vmatprep.subr.mxu1 %v18551_v22  ;;  %2139 = vmatpush1.msra.mxu0 %v18415_v54  ;;  %v23152_v30 = vld [vmem:[#allocation143_spill] sm:$0xff] }
 0x1a3   :  { %23142 = vst [vmem:[#allocation256_spill] sm:$0xff] %v18533_v45  ;;  %23143 = vst [vmem:[#allocation257_spill] sm:$0xff] %v18539_v21  ;;  %2367 = vmatpush1.msra.mxu1 %v18555_v42  ;;  %2141 = vmatprep.subr.mxu0 %v18427_v32 }
 0x1a4   :  { %23144 = vst [vmem:[#allocation258_spill] sm:$0xff] %v18545_v49  ;;  %23145 = vst [vmem:[#allocation259_spill] sm:$0xff] %v18551_v22  ;;  %2373 = vmatprep.subr.mxu1 %v18559_v48  ;;  %2143 = vmatpush1.msra.mxu0 %v18439_v63 }
 0x1a5   :  { %23146 = vst [vmem:[#allocation260_spill] sm:$0xff] %v18555_v42  ;;  %23147 = vst [vmem:[#allocation261_spill] sm:$0xff] %v18559_v48  ;;  %2379 = vmatpush1.msra.mxu1 %v18563_v7  ;;  %2182 = vmatmul.mubr.f32.vlgmr.msra.gmra.mxu0 %v23149_v12  ;;  %v23154_v48 = vld [vmem:[#allocation148_spill] sm:$0xff]  ;;  %v23155_v12 = vld [vmem:[#allocation151_spill] sm:$0xff] }
 0x1a6   :  { %23148 = vst [vmem:[#allocation262_spill] sm:$0xff] %v18563_v7  ;;  %2414 = vmatmul.mubr.f32.vlgmr.msra.gmra.mxu1 %v17984_v8  ;;  %2558 = vmatprep.subr.mxu1 %v18079_v25  ;;  %v23153_v7 = vld [vmem:[#allocation145_spill] sm:$0xff] }
 0x1a7   :  { %2560 = vmatpush1.msra.mxu1 %v18083_v0  ;;  %2422 = vmatprep.subr.mxu0 %v23150_v40  ;;  %v23156_v40 = vld [vmem:[#allocation154_spill] sm:$0xff] }
 0x1a8   :  { %2562 = vmatprep.subr.mxu1 %v18087_v23  ;;  %2425 = vmatpush1.msra.mxu0 %v23151_v50  ;;  %v23157_v50 = vld [vmem:[#allocation157_spill] sm:$0xff] }
 0x1a9   :  { %2564 = vmatpush1.msra.mxu1 %v18091_v1  ;;  %2428 = vmatprep.subr.mxu0 %v23152_v30  ;;  %v23158_v30 = vld [vmem:[#allocation160_spill] sm:$0xff] }
 0x1aa   :  { %2566 = vmatprep.subr.mxu1 %v18098_v47  ;;  %2431 = vmatpush1.msra.mxu0 %v23153_v7  ;;  %v23159_v7 = vld [vmem:[#allocation163_spill] sm:$0xff] }
 0x1ab   :  { %2568 = vmatpush1.msra.mxu1 %v18105_v58  ;;  %2434 = vmatprep.subr.mxu0 %v23154_v48  ;;  %v23160_v48 = vld [vmem:[#allocation166_spill] sm:$0xff] }
 0x1ac   :  { %2570 = vmatprep.subr.mxu1 %v18112_v6  ;;  %2437 = vmatpush1.msra.mxu0 %v23155_v12  ;;  %v23161_v12 = vld [vmem:[#allocation169_spill] sm:$0xff] }
 0x1ad   :  { %2572 = vmatpush1.msra.mxu1 %v18119_v38  ;;  %2440 = vmatprep.subr.mxu0 %v23156_v40  ;;  %v23162_v40 = vld [vmem:[#allocation173_spill] sm:$0xff] }
 0x1ae   :  { %2574 = vmatprep.subr.mxu1 %v18129_v52  ;;  %2443 = vmatpush1.msra.mxu0 %v23157_v50  ;;  %v23163_v50 = vld [vmem:[#allocation176_spill] sm:$0xff] }
 0x1af   :  { %2576 = vmatpush1.msra.mxu1 %v18139_v56  ;;  %2446 = vmatprep.subr.mxu0 %v23158_v30  ;;  %v23164_v30 = vld [vmem:[#allocation179_spill] sm:$0xff] }
 0x1b0   :  { %2578 = vmatprep.subr.mxu1 %v18149_v18  ;;  %2449 = vmatpush1.msra.mxu0 %v23159_v7  ;;  %v23165_v7 = vld [vmem:[#allocation182_spill] sm:$0xff] }
 0x1b1   :  { %2580 = vmatpush1.msra.mxu1 %v18159_v26  ;;  %2452 = vmatprep.subr.mxu0 %v23160_v48  ;;  %v23166_v48 = vld [vmem:[#allocation196_spill] sm:$0xff] }
 0x1b2   :  { %2582 = vmatprep.subr.mxu1 %v18171_v39  ;;  %2455 = vmatpush1.msra.mxu0 %v23161_v12  ;;  %v23167_v12 = vld [vmem:[#allocation199_spill] sm:$0xff] }
 0x1b3   :  { %2584 = vmatpush1.msra.mxu1 %v18183_v24  ;;  %2458 = vmatprep.subr.mxu0 %v23162_v40  ;;  %v23168_v40 = vld [vmem:[#allocation202_spill] sm:$0xff] }
 0x1b4   :  { %2586 = vmatprep.subr.mxu1 %v18195_v4  ;;  %2461 = vmatpush1.msra.mxu0 %v23163_v50  ;;  %v23243_v50 = vld [vmem:[#allocation127_spill] sm:$0xff] }
 0x1b5   :  { %2588 = vmatpush1.msra.mxu1 %v18207_v57  ;;  %2464 = vmatprep.subr.mxu0 %v23164_v30  ;;  %v23241_v30 = vld [vmem:[#allocation124_spill] sm:$0xff] }
 0x1b6   :  { %2590 = vmatprep.subr.mxu1 %v18266_v44  ;;  %2467 = vmatpush1.msra.mxu0 %v23165_v7  ;;  %v23239_v7 = vld [vmem:[#allocation121_spill] sm:$0xff] }
 0x1b7   :  { %2592 = vmatpush1.msra.mxu1 %v18277_v55  ;;  %2470 = vmatprep.subr.mxu0 %v23166_v48  ;;  %v23237_v48 = vld [vmem:[#allocation111_spill] sm:$0xff] }
 0x1b8   :  { %2594 = vmatprep.subr.mxu1 %v18288_v31  ;;  %2473 = vmatpush1.msra.mxu0 %v23167_v12  ;;  %v23235_v12 = vld [vmem:[#allocation107_spill] sm:$0xff] }
 0x1b9   :  { %2596 = vmatpush1.msra.mxu1 %v18299_v29  ;;  %2476 = vmatprep.subr.mxu0 %v23168_v40  ;;  %v23233_v40 = vld [vmem:[#allocation104_spill] sm:$0xff] }
 0x1ba   :  { %2598 = vmatprep.subr.mxu1 %v18310_v53  ;;  %2479 = vmatpush1.msra.mxu0 %v18341_v2  ;;  %v23169_v2 = vld [vmem:[#allocation138_spill] sm:$0xff] }
 0x1bb   :  { %2600 = vmatpush1.msra.mxu1 %v18321_v46  ;;  %2482 = vmatprep.subr.mxu0 %v18353_v17  ;;  %v23231_v17 = vld [vmem:[#allocation101_spill] sm:$0xff] }
 0x1bc   :  { %2602 = vmatprep.subr.mxu1 %v18332_v35  ;;  %2485 = vmatpush1.msra.mxu0 %v18365_v51  ;;  %v23229_v51 = vld [vmem:[#allocation98_spill] sm:$0xff] }
 0x1bd   :  { %2604 = vmatpush1.msra.mxu1 %v18343_v5  ;;  %2488 = vmatprep.subr.mxu0 %v18377_v19  ;;  %v23227_v19 = vld [vmem:[#allocation95_spill] sm:$0xff] }
 0x1be   :  { %2606 = vmatprep.subr.mxu1 %v18355_v11  ;;  %2491 = vmatpush1.msra.mxu0 %v18389_v62  ;;  %v23225_v62 = vld [vmem:[#allocation92_spill] sm:$0xff] }
 0x1bf   :  { %2608 = vmatpush1.msra.mxu1 %v18367_v34  ;;  %2653 = vmatprep.mubr.f32.mxu1 %v22957_v16 }
 0x1c0   :  { %2610 = vmatprep.subr.mxu1 %v18379_v28  ;;  %2494 = vmatprep.subr.mxu0 %v18401_v43  ;;  %v23223_v43 = vld [vmem:[#allocation89_spill] sm:$0xff] }
 0x1c1   :  { %2612 = vmatpush1.msra.mxu1 %v18391_v60  ;;  %2497 = vmatpush1.msra.mxu0 %v18413_v10  ;;  %v23221_v10 = vld [vmem:[#allocation79_spill] sm:$0xff] }
 0x1c2   :  { %2614 = vmatprep.subr.mxu1 %v18403_v33  ;;  %2500 = vmatprep.subr.mxu0 %v18425_v37  ;;  %v23219_v37 = vld [vmem:[#allocation75_spill] sm:$0xff] }
 0x1c3   :  { %2616 = vmatpush1.msra.mxu1 %v18415_v54  ;;  %2503 = vmatpush1.msra.mxu0 %v18437_v3  ;;  %v23171_v3 = vld [vmem:[#allocation147_spill] sm:$0xff] }
 0x1c4   :  { %2618 = vmatprep.subr.mxu1 %v18427_v32  ;;  %2506 = vmatprep.subr.mxu0 %v18451_v14  ;;  %v23172_v14 = vld [vmem:[#allocation150_spill] sm:$0xff] }
 0x1c5   :  { %2620 = vmatpush1.msra.mxu1 %v18439_v63  ;;  %2509 = vmatpush1.msra.mxu0 %v18463_v15  ;;  %v23173_v15 = vld [vmem:[#allocation153_spill] sm:$0xff] }
 0x1c6   :  { %2657 = vmatmul.mubr.f32.vlgmr.msra.gmra.mxu1 %v23169_v2  ;;  %2832 = vmatprep.subr.mxu1 %v18079_v25  ;;  %v23170_v2 = vld [vmem:[#allocation137_spill] sm:$0xff] }
 0x1c7   :  { %2834 = vmatpush1.msra.mxu1 %v18083_v0  ;;  %2512 = vmatprep.subr.mxu0 %v18475_v59  ;;  %v23174_v59 = vld [vmem:[#allocation156_spill] sm:$0xff] }
 0x1c8   :  { %2836 = vmatprep.subr.mxu1 %v18087_v23  ;;  %2515 = vmatpush1.msra.mxu0 %v18487_v41  ;;  %v23175_v41 = vld [vmem:[#allocation159_spill] sm:$0xff] }
 0x1c9   :  { %2838 = vmatpush1.msra.mxu1 %v18091_v1  ;;  %2548 = vmatprep.mubr.f32.mxu0 %v22957_v16 }
 0x1ca   :  { %2840 = vmatprep.subr.mxu1 %v18098_v47  ;;  %2551 = vmatmul.mubr.f32.vlgmr.msra.gmra.mxu0 %v23170_v2  ;;  %v23176_v2 = vld [vmem:[#allocation162_spill] sm:$0xff] }
 0x1cb   :  { %2842 = vmatpush1.msra.mxu1 %v18105_v58  ;;  %2666 = vmatprep.subr.mxu0 %v23171_v3  ;;  %v23177_v3 = vld [vmem:[#allocation165_spill] sm:$0xff] }
 0x1cc   :  { %2844 = vmatprep.subr.mxu1 %v18112_v6  ;;  %2670 = vmatpush1.msra.mxu0 %v23172_v14  ;;  %v23178_v14 = vld [vmem:[#allocation168_spill] sm:$0xff]  ;;  %v1158_v6 = vld [vmem:[#allocation2] sm:$0xc]  ;;  %v1157_v58 = vld [vmem:[#allocation2 + $0x30] sm:$0xc] }
 0x1cd   :  { %2846 = vmatpush1.msra.mxu1 %v18119_v38  ;;  %2674 = vmatprep.subr.mxu0 %v23173_v15  ;;  %v23179_v15 = vld [vmem:[#allocation172_spill] sm:$0xff] }
 0x1ce   :  { %2848 = vmatprep.subr.mxu1 %v18129_v52  ;;  %2678 = vmatpush1.msra.mxu0 %v23174_v59  ;;  %v23180_v59 = vld [vmem:[#allocation175_spill] sm:$0xff] }
 0x1cf   :  { %2850 = vmatpush1.msra.mxu1 %v18139_v56  ;;  %2682 = vmatprep.subr.mxu0 %v23175_v41  ;;  %v23181_v41 = vld [vmem:[#allocation178_spill] sm:$0xff] }
 0x1d0   :  { %2852 = vmatprep.subr.mxu1 %v18149_v18  ;;  %2686 = vmatpush1.msra.mxu0 %v23176_v2  ;;  %v23182_v2 = vld [vmem:[#allocation181_spill] sm:$0xff] }
 0x1d1   :  { %2854 = vmatpush1.msra.mxu1 %v18159_v26  ;;  %2690 = vmatprep.subr.mxu0 %v23177_v3  ;;  %v23183_v3 = vld [vmem:[#allocation184_spill] sm:$0xff] }
 0x1d2   :  { %2856 = vmatprep.subr.mxu1 %v18171_v39  ;;  %2694 = vmatpush1.msra.mxu0 %v23178_v14  ;;  %v23184_v14 = vld [vmem:[#allocation187_spill] sm:$0xff] }
 0x1d3   :  { %2858 = vmatpush1.msra.mxu1 %v18183_v24  ;;  %2698 = vmatprep.subr.mxu0 %v23179_v15  ;;  %v23185_v15 = vld [vmem:[#allocation190_spill] sm:$0xff] }
 0x1d4   :  { %2860 = vmatprep.subr.mxu1 %v18195_v4  ;;  %2702 = vmatpush1.msra.mxu0 %v23180_v59  ;;  %v23186_v59 = vld [vmem:[#allocation193_spill] sm:$0xff] }
 0x1d5   :  { %2862 = vmatpush1.msra.mxu1 %v18207_v57  ;;  %2706 = vmatprep.subr.mxu0 %v23181_v41  ;;  %v23187_v41 = vld [vmem:[#allocation208_spill] sm:$0xff] }
 0x1d6   :  { %2864 = vmatprep.subr.mxu1 %v18266_v44  ;;  %2710 = vmatpush1.msra.mxu0 %v23182_v2  ;;  %v23188_v2 = vld [vmem:[#allocation212_spill] sm:$0xff] }
 0x1d7   :  { %2866 = vmatpush1.msra.mxu1 %v18277_v55  ;;  %2714 = vmatprep.subr.mxu0 %v23183_v3  ;;  %v23189_v3 = vld [vmem:[#allocation216_spill] sm:$0xff] }
 0x1d8   :  { %2868 = vmatprep.subr.mxu1 %v18288_v31  ;;  %2718 = vmatpush1.msra.mxu0 %v23184_v14  ;;  %v23190_v14 = vld [vmem:[#allocation220_spill] sm:$0xff] }
 0x1d9   :  { %2870 = vmatpush1.msra.mxu1 %v18299_v29  ;;  %2722 = vmatprep.subr.mxu0 %v23185_v15  ;;  %v23191_v15 = vld [vmem:[#allocation223_spill] sm:$0xff] }
 0x1da   :  { %2872 = vmatprep.subr.mxu1 %v18310_v53  ;;  %2726 = vmatpush1.msra.mxu0 %v23186_v59  ;;  %v23192_v59 = vld [vmem:[#allocation226_spill] sm:$0xff] }
 0x1db   :  { %2874 = vmatpush1.msra.mxu1 %v18321_v46  ;;  %2730 = vmatprep.subr.mxu0 %v23187_v41  ;;  %v23193_v41 = vld [vmem:[#allocation229_spill] sm:$0xff] }
 0x1dc   :  { %2876 = vmatprep.subr.mxu1 %v18332_v35  ;;  %2734 = vmatpush1.msra.mxu0 %v23188_v2  ;;  %v23194_v2 = vld [vmem:[#allocation232_spill] sm:$0xff] }
 0x1dd   :  { %2878 = vmatpush1.msra.mxu1 %v18343_v5  ;;  %2738 = vmatprep.subr.mxu0 %v23189_v3  ;;  %v23198_v3 = vld [vmem:[#allocation25_spill] sm:$0xff] }
 0x1de   :  { %2880 = vmatprep.subr.mxu1 %v18355_v11  ;;  %2742 = vmatpush1.msra.mxu0 %v23190_v14  ;;  %v23195_v14 = vld [vmem:[#allocation236_spill] sm:$0xff]  ;;  %v23262_v11 = vld [vmem:[#allocation9_spill] sm:$0xff] }
 0x1df   :  { %2882 = vmatpush1.msra.mxu1 %v18367_v34  ;;  %2746 = vmatprep.subr.mxu0 %v23191_v15  ;;  %v23196_v15 = vld [vmem:[#allocation239_spill] sm:$0xff]  ;;  %v23260_v34 = vld [vmem:[#allocation117_spill] sm:$0xff] }
 0x1e0   :  { %2884 = vmatprep.subr.mxu1 %v18379_v28  ;;  %2750 = vmatpush1.msra.mxu0 %v23192_v59  ;;  %v23197_v59 = vld [vmem:[#allocation242_spill] sm:$0xff] }
 0x1e1   :  { %2886 = vmatpush1.msra.mxu1 %v18391_v60  ;;  %2754 = vmatprep.subr.mxu0 %v23193_v41  ;;  %v23199_v41 = vld [vmem:[#allocation28_spill] sm:$0xff]  ;;  %v23253_v60 = vld [vmem:[#allocation134_spill] sm:$0xff] }
 0x1e2   :  { %2888 = vmatprep.subr.mxu1 %v18403_v33  ;;  %2758 = vmatpush1.msra.mxu0 %v23194_v2  ;;  %v23200_v2 = vld [vmem:[#allocation31_spill] sm:$0xff]  ;;  %v23251_v33 = vld [vmem:[#allocation133_spill] sm:$0xff]  ;;  %v23258_v28 = vld [vmem:[#allocation110_spill] sm:$0xff] }
 0x1e3   :  { %2890 = vmatpush1.msra.mxu1 %v18415_v54  ;;  %2927 = vmatprep.mubr.f32.mxu1 %v22957_v16  ;;  %v23249_v54 = vld [vmem:[#allocation132_spill] sm:$0xff] }
 0x1e4   :  { %2892 = vmatprep.subr.mxu1 %v18427_v32  ;;  %2762 = vmatprep.subr.mxu0 %v23195_v14  ;;  %v23201_v14 = vld [vmem:[#allocation34_spill] sm:$0xff]  ;;  %v23247_v32 = vld [vmem:[#allocation131_spill] sm:$0xff] }
 0x1e5   :  { %2894 = vmatpush1.msra.mxu1 %v18439_v63  ;;  %2766 = vmatpush1.msra.mxu0 %v23196_v15  ;;  %v23202_v15 = vld [vmem:[#allocation37_spill] sm:$0xff] }
 0x1e6   :  { %2929 = vmatmul.mubr.f32.vlgmr.msra.gmra.mxu1 %v17984_v8  ;;  %2823 = vmatprep.mubr.f32.mxu0 %v22957_v16  ;;  %v23245_v63 = vld [vmem:[#allocation129_spill] sm:$0xff] }
 0x1e7   :  { %2770 = vmatprep.subr.mxu0 %v23197_v59  ;;  %3098 = vmatprep.subr.mxu1 %v23198_v3  ;;  %v23203_v59 = vld [vmem:[#allocation40_spill] sm:$0xff] }
 0x1e8   :  { %2774 = vmatpush1.msra.mxu0 %v18484_v36  ;;  %3104 = vmatpush1.msra.mxu1 %v23199_v41  ;;  %v23204_v36 = vld [vmem:[#allocation43_spill] sm:$0xff]  ;;  %v23217_v3 = vld [vmem:[#allocation72_spill] sm:$0xff] }
 0x1e9   :  { %2778 = vmatprep.subr.mxu0 %v18496_v9  ;;  %3110 = vmatprep.subr.mxu1 %v23200_v2  ;;  %v23205_v41 = vld [vmem:[#allocation47_spill] sm:$0xff]  ;;  %v23207_v2 = vld [vmem:[#allocation57_spill] sm:$0xff] }
 0x1ea   :  { %2782 = vmatpush1.msra.mxu0 %v18505_v61  ;;  %3116 = vmatpush1.msra.mxu1 %v23201_v14  ;;  %v23206_v9 = vld [vmem:[#allocation7_spill] sm:$0xff]  ;;  %v23208_v61 = vld [vmem:[#allocation8_spill] sm:$0xff] }
 0x1eb   :  { %2786 = vmatprep.subr.mxu0 %v18514_v27  ;;  %3122 = vmatprep.subr.mxu1 %v23202_v15  ;;  %v23209_v14 = vld [vmem:[#allocation60_spill] sm:$0xff]  ;;  %v23210_v27 = vld [vmem:[#allocation10_spill] sm:$0xff]  ;;  %v23211_v15 = vld [vmem:[#allocation63_spill] sm:$0xff] }
 0x1ec   :  { %2790 = vmatpush1.msra.mxu0 %v18523_v20  ;;  %3128 = vmatpush1.msra.mxu1 %v23203_v59  ;;  %v23212_v20 = vld [vmem:[#allocation12_spill] sm:$0xff]  ;;  %v23213_v59 = vld [vmem:[#allocation66_spill] sm:$0xff] }
 0x1ed   :  { %2825 = vmatmul.mubr.f32.vlgmr.msra.gmra.mxu0 %v17984_v8  ;;  %3134 = vmatprep.subr.mxu1 %v23204_v36  ;;  %v23214_v8 = vld [vmem:[#allocation15_spill] sm:$0xff]  ;;  %v23215_v36 = vld [vmem:[#allocation69_spill] sm:$0xff] }
 0x1ee   :  { %3140 = vmatpush1.msra.mxu1 %v23205_v41  ;;  %2986 = vmatprep.subr.mxu0 %v23206_v9  ;;  %v23216_v41 = vld [vmem:[#allocation18_spill] sm:$0xff] }
 0x1ef   :  { %3146 = vmatprep.subr.mxu1 %v23207_v2  ;;  %2988 = vmatpush1.msra.mxu0 %v23208_v61  ;;  %v23218_v2 = vld [vmem:[#allocation21_spill] sm:$0xff] }
 0x1f0   :  { %3152 = vmatpush1.msra.mxu1 %v23209_v14  ;;  %2990 = vmatprep.subr.mxu0 %v23210_v27  ;;  %v23220_v14 = vld [vmem:[#allocation24_spill] sm:$0xff] }
 0x1f1   :  { %3158 = vmatprep.subr.mxu1 %v23211_v15  ;;  %2992 = vmatpush1.msra.mxu0 %v23212_v20  ;;  %v23222_v15 = vld [vmem:[#allocation33_spill] sm:$0xff] }
 0x1f2   :  { %3164 = vmatpush1.msra.mxu1 %v23213_v59  ;;  %2994 = vmatprep.subr.mxu0 %v23214_v8  ;;  %v23224_v59 = vld [vmem:[#allocation36_spill] sm:$0xff] }
 0x1f3   :  { %3170 = vmatprep.subr.mxu1 %v23215_v36  ;;  %2996 = vmatpush1.msra.mxu0 %v23216_v41  ;;  %v23226_v36 = vld [vmem:[#allocation39_spill] sm:$0xff] }
 0x1f4   :  { %3176 = vmatpush1.msra.mxu1 %v23217_v3  ;;  %2998 = vmatprep.subr.mxu0 %v23218_v2  ;;  %v23228_v3 = vld [vmem:[#allocation42_spill] sm:$0xff] }
 0x1f5   :  { %3182 = vmatprep.subr.mxu1 %v23219_v37  ;;  %3000 = vmatpush1.msra.mxu0 %v23220_v14  ;;  %v23230_v37 = vld [vmem:[#allocation46_spill] sm:$0xff] }
 0x1f6   :  { %3188 = vmatpush1.msra.mxu1 %v23221_v10  ;;  %3002 = vmatprep.subr.mxu0 %v23222_v15  ;;  %v23232_v10 = vld [vmem:[#allocation50_spill] sm:$0xff] }
 0x1f7   :  { %3194 = vmatprep.subr.mxu1 %v23223_v43  ;;  %3004 = vmatpush1.msra.mxu0 %v23224_v59  ;;  %v23234_v43 = vld [vmem:[#allocation53_spill] sm:$0xff] }
 0x1f8   :  { %3200 = vmatpush1.msra.mxu1 %v23225_v62  ;;  %3006 = vmatprep.subr.mxu0 %v23226_v36  ;;  %v23236_v62 = vld [vmem:[#allocation56_spill] sm:$0xff] }
 0x1f9   :  { %3206 = vmatprep.subr.mxu1 %v23227_v19  ;;  %3008 = vmatpush1.msra.mxu0 %v23228_v3  ;;  %v23238_v19 = vld [vmem:[#allocation65_spill] sm:$0xff] }
 0x1fa   :  { %3212 = vmatpush1.msra.mxu1 %v23229_v51  ;;  %3010 = vmatprep.subr.mxu0 %v23230_v37  ;;  %v23240_v51 = vld [vmem:[#allocation68_spill] sm:$0xff]  ;;  %v1560_v42 = vpop.f32.mrf.mxu1 }
 0x1fb   :  { %3218 = vmatprep.subr.mxu1 %v23231_v17  ;;  %3012 = vmatpush1.msra.mxu0 %v23232_v10  ;;  %v23242_v17 = vld [vmem:[#allocation71_spill] sm:$0xff] }
 0x1fc   :  { %3224 = vmatpush1.msra.mxu1 %v23233_v40  ;;  %3014 = vmatprep.subr.mxu0 %v23234_v43  ;;  %v23244_v40 = vld [vmem:[#allocation74_spill] sm:$0xff]  ;;  %v1562_v22 = vpop.f32.mrf.mxu1 }
 0x1fd   :  { %3230 = vmatprep.subr.mxu1 %v23235_v12  ;;  %3016 = vmatpush1.msra.mxu0 %v23236_v62  ;;  %v23246_v12 = vld [vmem:[#allocation78_spill] sm:$0xff] }
 0x1fe   :  { %3236 = vmatpush1.msra.mxu1 %v23237_v48  ;;  %3018 = vmatprep.subr.mxu0 %v23238_v19  ;;  %v23248_v48 = vld [vmem:[#allocation82_spill] sm:$0xff] }
 0x1ff   :  { %3242 = vmatprep.subr.mxu1 %v23239_v7  ;;  %3020 = vmatpush1.msra.mxu0 %v23240_v51  ;;  %v23250_v7 = vld [vmem:[#allocation85_spill] sm:$0xff] }
 0x200   :  { %3248 = vmatpush1.msra.mxu1 %v23241_v30  ;;  %3022 = vmatprep.subr.mxu0 %v23242_v17  ;;  %v23252_v30 = vld [vmem:[#allocation88_spill] sm:$0xff] }
 0x201   :  { %3254 = vmatprep.subr.mxu1 %v23243_v50  ;;  %3024 = vmatpush1.msra.mxu0 %v23244_v40  ;;  %v23254_v50 = vld [vmem:[#allocation97_spill] sm:$0xff] }
 0x202   :  { %3260 = vmatpush1.msra.mxu1 %v23245_v63  ;;  %3026 = vmatprep.subr.mxu0 %v23246_v12  ;;  %v23255_v63 = vld [vmem:[#allocation100_spill] sm:$0xff]  ;;  %v1328_v5 = vpop.f32.mrf.mxu0 }
 0x203   :  { %3266 = vmatprep.subr.mxu1 %v23247_v32  ;;  %3028 = vmatpush1.msra.mxu0 %v23248_v48  ;;  %v23256_v32 = vld [vmem:[#allocation103_spill] sm:$0xff]  ;;  %v1561_v29 = vadd.f32 %v1560_v42, %v1328_v5 }
 0x204   :  { %3272 = vmatpush1.msra.mxu1 %v23249_v54  ;;  %3030 = vmatprep.subr.mxu0 %v23250_v7  ;;  %v23257_v54 = vld [vmem:[#allocation106_spill] sm:$0xff]  ;;  %v1330_v35 = vpop.f32.mrf.mxu0 }
 0x205   :  { %3278 = vmatprep.subr.mxu1 %v23251_v33  ;;  %3032 = vmatpush1.msra.mxu0 %v23252_v30  ;;  %v23259_v33 = vld [vmem:[#allocation114_spill] sm:$0xff]  ;;  %v1563_v49 = vadd.f32 %v1562_v22, %v1330_v35 }
 0x206   :  { %3284 = vmatpush1.msra.mxu1 %v23253_v60  ;;  %3034 = vmatprep.subr.mxu0 %v23254_v50  ;;  %v23261_v60 = vld [vmem:[#allocation120_spill] sm:$0xff] }
 0x207   :  { %3317 = vmatprep.mubr.f32.mxu1 %v22957_v16  ;;  %3463 = vmatprep.subr.mxu1 %v23206_v9 }
 0x208   :  { %3036 = vmatpush1.msra.mxu0 %v23255_v63  ;;  %3081 = vmatprep.mubr.f32.mxu0 %v22957_v16 }
 0x209   :  { %3038 = vmatprep.subr.mxu0 %v23256_v32 }
 0x20a   :  { %3040 = vmatpush1.msra.mxu0 %v23257_v54 }
 0x20b   :  { %3042 = vmatprep.subr.mxu0 %v23258_v28 }
 0x20c   :  { %3044 = vmatpush1.msra.mxu0 %v23259_v33 }
 0x20d   :  { %3046 = vmatprep.subr.mxu0 %v23260_v34 }
 0x20e   :  { %3048 = vmatpush1.msra.mxu0 %v23261_v60 }
 0x20f   :  { %3327 = vmatprep.subr.mxu0 %v23262_v11 }
 0x21a   :  { %v1803_v21 = vpop.f32.mrf.mxu1 }
 0x21c   :  { %v1805_v44 = vpop.f32.mrf.mxu1 }
 0x223   :  { %v1697_v46 = vpop.f32.mrf.mxu0 }
 0x224   :  { %v1698_v55 = vadd.f32 %v1697_v46, %v1561_v29 }
 0x225   :  { %v1699_v53 = vpop.f32.mrf.mxu0 }
 0x226   :  { %v1700_v45 = vadd.f32 %v1699_v53, %v1563_v49  ;;  %v1804_v24 = vadd.f32 %v1803_v21, %v1698_v55 }
 0x228   :  { %v1806_v57 = vadd.f32 %v1805_v44, %v1700_v45 }
 0x23c   :  { %v2075_v4 = vpop.f32.mrf.mxu1 }
 0x23e   :  { %v2077_v11 = vpop.f32.mrf.mxu1 }
 0x245   :  { %v1971_v31 = vpop.f32.mrf.mxu0 }
 0x246   :  { %v1972_v26 = vadd.f32 %v1971_v31, %v1804_v24 }
 0x247   :  { %v1973_v13 = vpop.f32.mrf.mxu0 }
 0x248   :  { %v1974_v39 = vadd.f32 %v1973_v13, %v1806_v57  ;;  %v2076_v56 = vadd.f32 %v2075_v4, %v1972_v26 }
 0x24a   :  { %v2078_v18 = vadd.f32 %v2077_v11, %v1974_v39  ;;  %v2939_v38 = vrot.slane %v2076_v56, 6 }
 0x24c   :  { %v2940_v52 = vrot.slane %v2078_v18, 6  ;;  %v2947_v5 = vadd.f32 %v2939_v38, %v1157_v58 }
 0x24e   :  { %v2948_v35 = vadd.f32 %v2940_v52, %v1158_v6  ;;  %v16832_v42 = vmul.f32 -1.442695, %v2947_v5 }
 0x250   :  { %v16833_v22 = vmul.f32 -1.442695, %v2948_v35 }
 0x252   :  { %17205 = vpow2.f32 %v16833_v22 }
 0x253   :  { %17207 = vpow2.f32 %v16832_v42 }
 0x25f   :  { %v17206_v26 = vpop.eup %17205 }
 0x260   :  { %v17208_v58 = vpop.eup %17207  ;;  %v2960_v13 = vadd.f32 1.0, %v17206_v26 }
 0x261   :  { %v2954_v5 = vadd.f32 1.0, %v17208_v58 }
 0x262   :  { %17209 = vrcp.f32 %v2960_v13 }
 0x263   :  { %17211 = vrcp.f32 %v2954_v5 }
 0x265   :  { %v2183_v49 = vpop.f32.mrf.mxu0 }
 0x266   :  { %v2415_v46 = vpop.f32.mrf.mxu1 }
 0x267   :  { %v2185_v53 = vpop.f32.mrf.mxu0  ;;  %v2416_v57 = vadd.f32 %v2415_v46, %v2183_v49  ;;  %v1159_v46 = vld [vmem:[#allocation2 + $0x18] sm:$0xc] }
 0x268   :  { %v2417_v44 = vpop.f32.mrf.mxu1 }
 0x269   :  { %v2418_v39 = vadd.f32 %v2417_v44, %v2185_v53  ;;  %v1160_v44 = vld [vmem:[#allocation2 + $0x10] sm:$0xc] }
 0x286   :  { %v2658_v24 = vpop.f32.mrf.mxu1 }
 0x288   :  { %v2660_v56 = vpop.f32.mrf.mxu1 }
 0x28a   :  { %v2552_v29 = vpop.f32.mrf.mxu0 }
 0x28b   :  { %v2553_v4 = vadd.f32 %v2552_v29, %v2416_v57 }
 0x28c   :  { %v2554_v55 = vpop.f32.mrf.mxu0 }
 0x28d   :  { %v2555_v31 = vadd.f32 %v2554_v55, %v2418_v39  ;;  %v2659_v18 = vadd.f32 %v2658_v24, %v2553_v4  ;;  %v17210_v55 = vpop.eup %17209  ;;  %v23263_v4 = vld [vmem:[#allocation136_spill] sm:$0xff] }
 0x28e   :  { %v17212_v39 = vpop.eup %17211 }
 0x28f   :  { %v2661_v11 = vadd.f32 %v2660_v56, %v2555_v31  ;;  %v2971_v31 = vrot.slane %v23263_v4, 6  ;;  %v23274_v4 = vld [vmem:[#allocation45_spill] sm:$0xff] }
 0x2a6   :  { %v2930_v52 = vpop.f32.mrf.mxu1 }
 0x2a8   :  { %v2932_v22 = vpop.f32.mrf.mxu1 }
 0x2ad   :  { %v2826_v38 = vpop.f32.mrf.mxu0 }
 0x2ae   :  { %v2827_v6 = vadd.f32 %v2826_v38, %v2659_v18  ;;  %v2973_v18 = vmul.f32 %v17210_v55, %v2971_v31  ;;  %v23272_v55 = vld [vmem:[#allocation38_spill] sm:$0xff]  ;;  %v23275_v31 = vld [vmem:[#allocation49_spill] sm:$0xff] }
 0x2af   :  { %v2828_v21 = vpop.f32.mrf.mxu0 }
 0x2b0   :  { %v2931_v45 = vadd.f32 %v2930_v52, %v2827_v6  ;;  %v2829_v35 = vadd.f32 %v2828_v21, %v2661_v11 }
 0x2b2   :  { %v2941_v42 = vrot.slane %v2931_v45, 6  ;;  %v2933_v49 = vadd.f32 %v2932_v22, %v2829_v35 }
 0x2b4   :  { %v2949_v53 = vadd.f32 %v2941_v42, %v1159_v46  ;;  %v2942_v29 = vrot.slane %v2933_v49, 6  ;;  %v23265_v49 = vld [vmem:[#allocation11_spill] sm:$0xff]  ;;  %v23266_v46 = vld [vmem:[#allocation14_spill] sm:$0xff] }
 0x2b6   :  { %17213 = vtanh.f32 %v2949_v53  ;;  %v2950_v57 = vadd.f32 %v2942_v29, %v1160_v44  ;;  %v23267_v53 = vld [vmem:[#allocation17_spill] sm:$0xff]  ;;  %v23268_v29 = vld [vmem:[#allocation20_spill] sm:$0xff]  ;;  %v23269_v44 = vld [vmem:[#allocation23_spill] sm:$0xff] }
 0x2b8   :  { %v16834_v24 = vmul.f32 -1.442695, %v2950_v57  ;;  %v23270_v57 = vld [vmem:[#allocation27_spill] sm:$0xff] }
 0x2ba   :  { %17215 = vpow2.f32 %v16834_v24  ;;  %v23271_v24 = vld [vmem:[#allocation30_spill] sm:$0xff] }
 0x2c3   :  { %v17214_v56 = vpop.eup %17213 }
 0x2c4   :  { %v2974_v26 = vmul.f32 %v17214_v56, %v17212_v39  ;;  %v23273_v39 = vld [vmem:[#allocation41_spill] sm:$0xff]  ;;  %v23276_v56 = vld [vmem:[#allocation52_spill] sm:$0xff] }
 0x2c6   :  { %v18789_v52 = vadd.f32 %v2974_v26, %v2973_v18  ;;  %v23277_v18 = vld [vmem:[#allocation55_spill] sm:$0xff] }
 0x2c7   :  { %v17216_v38 = vpop.eup %17215  ;;  %v23278_v26 = vld [vmem:[#allocation59_spill] sm:$0xff] }
 0x2c8   :  { %23264 = vst [vmem:[#allocation139_spill] sm:$0xff] %v18789_v52  ;;  %v2967_v58 = vadd.f32 1.0, %v17216_v38  ;;  %17217 = vtanh.f32 %v18789_v52  ;;  %v23279_v38 = vld [vmem:[#allocation62_spill] sm:$0xff]  ;;  %v23372_v52 = vld [vmem:[#allocation259_spill] sm:$0xff] }
 0x2ca   :  { %17219 = vrcp.f32 %v2967_v58  ;;  %v23280_v58 = vld [vmem:[#allocation70_spill] sm:$0xff] }
 0x2d5   :  { %v17218_v6 = vpop.eup %17217 }
 0x2d7   :  { %v17220_v11 = vpop.eup %17219 }
 0x2d8   :  { %v2977_v21 = vmul.f32 %v17220_v11, %v17218_v6  ;;  %v23281_v6 = vld [vmem:[#allocation73_spill] sm:$0xff] }
 0x2d9   :  { %v23282_v11 = vld [vmem:[#allocation77_spill] sm:$0xff] }
 0x2da   :  { %v2983_v13 = vrot.slane %v2977_v21, 2  ;;  %v23283_v21 = vld [vmem:[#allocation81_spill] sm:$0xff] }
 0x2dc   :  { %v18792_v45 = vand.u32 4294901760, %v2983_v13 }
 0x2de   :  { %3319 = vmatmul.mubr.f32.vlgmr.msra.gmra.mxu1 %v18792_v45  ;;  %v18796_v35 = vsub.f32 %v2983_v13, %v18792_v45  ;;  %v23284_v13 = vld [vmem:[#allocation84_spill] sm:$0xff] }
 0x2df   :  { %3465 = vmatpush1.msra.mxu1 %v23208_v61  ;;  %3558 = vmatprep.mubr.f32.mxu1 %v22957_v16 }
 0x2e0   :  { %3467 = vmatprep.subr.mxu1 %v23210_v27  ;;  %v18802_v5 = vand.u32 4294901760, %v18796_v35 }
 0x2e1   :  { %3469 = vmatpush1.msra.mxu1 %v23212_v20 }
 0x2e2   :  { %3471 = vmatprep.subr.mxu1 %v23214_v8  ;;  %v3085_v22 = vsub.f32 %v18796_v35, %v18802_v5 }
 0x2e3   :  { %3473 = vmatpush1.msra.mxu1 %v23216_v41 }
 0x2e4   :  { %3475 = vmatprep.subr.mxu1 %v23218_v2  ;;  %v18810_v42 = vand.u32 4294901760, %v3085_v22  ;;  %v23285_v22 = vld [vmem:[#allocation87_spill] sm:$0xff] }
 0x2e5   :  { %3477 = vmatpush1.msra.mxu1 %v23220_v14 }
 0x2e6   :  { %3479 = vmatprep.subr.mxu1 %v23222_v15  ;;  %3087 = vmatmul.mubr.f32.vlgmr.msra.gmra.mxu0 %v18810_v42 }
 0x2e7   :  { %3330 = vmatpush1.msra.mxu0 %v23265_v49  ;;  %3481 = vmatpush1.msra.mxu1 %v23224_v59  ;;  %v23370_v49 = vld [vmem:[#allocation258_spill] sm:$0xff] }
 0x2e8   :  { %3333 = vmatprep.subr.mxu0 %v23266_v46  ;;  %3483 = vmatprep.subr.mxu1 %v23226_v36  ;;  %v23368_v46 = vld [vmem:[#allocation257_spill] sm:$0xff] }
 0x2e9   :  { %3336 = vmatpush1.msra.mxu0 %v23267_v53  ;;  %3485 = vmatpush1.msra.mxu1 %v23228_v3  ;;  %v23366_v53 = vld [vmem:[#allocation256_spill] sm:$0xff] }
 0x2ea   :  { %3339 = vmatprep.subr.mxu0 %v23268_v29  ;;  %3487 = vmatprep.subr.mxu1 %v23230_v37  ;;  %v23364_v29 = vld [vmem:[#allocation255_spill] sm:$0xff] }
 0x2eb   :  { %3342 = vmatpush1.msra.mxu0 %v23269_v44  ;;  %3489 = vmatpush1.msra.mxu1 %v23232_v10  ;;  %v23362_v44 = vld [vmem:[#allocation253_spill] sm:$0xff] }
 0x2ec   :  { %3345 = vmatprep.subr.mxu0 %v23270_v57  ;;  %3491 = vmatprep.subr.mxu1 %v23234_v43  ;;  %v23360_v57 = vld [vmem:[#allocation251_spill] sm:$0xff] }
 0x2ed   :  { %3348 = vmatpush1.msra.mxu0 %v23271_v24  ;;  %3493 = vmatpush1.msra.mxu1 %v23236_v62  ;;  %v23358_v24 = vld [vmem:[#allocation249_spill] sm:$0xff] }
 0x2ee   :  { %3351 = vmatprep.subr.mxu0 %v23272_v55  ;;  %3495 = vmatprep.subr.mxu1 %v23238_v19  ;;  %v23356_v55 = vld [vmem:[#allocation247_spill] sm:$0xff] }
 0x2ef   :  { %3354 = vmatpush1.msra.mxu0 %v23273_v39  ;;  %3497 = vmatpush1.msra.mxu1 %v23240_v51  ;;  %v23354_v39 = vld [vmem:[#allocation244_spill] sm:$0xff] }
 0x2f0   :  { %3357 = vmatprep.subr.mxu0 %v23274_v4  ;;  %3499 = vmatprep.subr.mxu1 %v23242_v17  ;;  %v23352_v4 = vld [vmem:[#allocation241_spill] sm:$0xff] }
 0x2f1   :  { %3360 = vmatpush1.msra.mxu0 %v23275_v31  ;;  %3501 = vmatpush1.msra.mxu1 %v23244_v40  ;;  %v23331_v31 = vld [vmem:[#allocation186_spill] sm:$0xff] }
 0x2f2   :  { %3363 = vmatprep.subr.mxu0 %v23276_v56  ;;  %3503 = vmatprep.subr.mxu1 %v23246_v12  ;;  %v23329_v56 = vld [vmem:[#allocation183_spill] sm:$0xff] }
 0x2f3   :  { %3366 = vmatpush1.msra.mxu0 %v23277_v18  ;;  %3505 = vmatpush1.msra.mxu1 %v23248_v48  ;;  %v23328_v18 = vld [vmem:[#allocation122_spill] sm:$0xff] }
 0x2f4   :  { %3369 = vmatprep.subr.mxu0 %v23278_v26  ;;  %3507 = vmatprep.subr.mxu1 %v23250_v7  ;;  %v23326_v26 = vld [vmem:[#allocation118_spill] sm:$0xff] }
 0x2f5   :  { %3372 = vmatpush1.msra.mxu0 %v23279_v38  ;;  %3509 = vmatpush1.msra.mxu1 %v23252_v30  ;;  %v23324_v38 = vld [vmem:[#allocation115_spill] sm:$0xff] }
 0x2f6   :  { %3375 = vmatprep.subr.mxu0 %v23280_v58  ;;  %3511 = vmatprep.subr.mxu1 %v23254_v50  ;;  %v23286_v58 = vld [vmem:[#allocation91_spill] sm:$0xff] }
 0x2f7   :  { %3378 = vmatpush1.msra.mxu0 %v23281_v6  ;;  %3513 = vmatpush1.msra.mxu1 %v23255_v63  ;;  %v23287_v6 = vld [vmem:[#allocation94_spill] sm:$0xff] }
 0x2f8   :  { %3381 = vmatprep.subr.mxu0 %v23282_v11  ;;  %3515 = vmatprep.subr.mxu1 %v23256_v32  ;;  %v23288_v11 = vld [vmem:[#allocation102_spill] sm:$0xff] }
 0x2f9   :  { %3384 = vmatpush1.msra.mxu0 %v23283_v21  ;;  %3517 = vmatpush1.msra.mxu1 %v23257_v54  ;;  %v23294_v21 = vld [vmem:[#allocation123_spill] sm:$0xff] }
 0x2fa   :  { %3387 = vmatprep.subr.mxu0 %v23284_v13  ;;  %3519 = vmatprep.subr.mxu1 %v23258_v28  ;;  %v23289_v13 = vld [vmem:[#allocation105_spill] sm:$0xff] }
 0x2fb   :  { %3390 = vmatpush1.msra.mxu0 %v23285_v22  ;;  %3521 = vmatpush1.msra.mxu1 %v23259_v33  ;;  %v23290_v22 = vld [vmem:[#allocation109_spill] sm:$0xff] }
 0x2fc   :  { %3393 = vmatprep.subr.mxu0 %v23286_v58  ;;  %3523 = vmatprep.subr.mxu1 %v23260_v34  ;;  %v23291_v58 = vld [vmem:[#allocation113_spill] sm:$0xff] }
 0x2fd   :  { %3396 = vmatpush1.msra.mxu0 %v23287_v6  ;;  %3525 = vmatpush1.msra.mxu1 %v23261_v60  ;;  %v23292_v6 = vld [vmem:[#allocation116_spill] sm:$0xff] }
 0x2fe   :  { %3399 = vmatprep.subr.mxu0 %v23288_v11  ;;  %3562 = vmatmul.mubr.f32.vlgmr.msra.gmra.mxu1 %v18802_v5  ;;  %v23293_v11 = vld [vmem:[#allocation119_spill] sm:$0xff] }
 0x2ff   :  { %3737 = vmatprep.subr.mxu1 %v23206_v9  ;;  %3402 = vmatpush1.msra.mxu0 %v23289_v13  ;;  %v23295_v13 = vld [vmem:[#allocation126_spill] sm:$0xff] }
 0x300   :  { %3739 = vmatpush1.msra.mxu1 %v23208_v61  ;;  %3405 = vmatprep.subr.mxu0 %v23290_v22  ;;  %v23301_v22 = vld [vmem:[#allocation29_spill] sm:$0xff] }
 0x301   :  { %3741 = vmatprep.subr.mxu1 %v23210_v27  ;;  %3408 = vmatpush1.msra.mxu0 %v23291_v58  ;;  %v23296_v58 = vld [vmem:[#allocation13_spill] sm:$0xff] }
 0x302   :  { %3743 = vmatpush1.msra.mxu1 %v23212_v20  ;;  %3411 = vmatprep.subr.mxu0 %v23292_v6  ;;  %v23297_v6 = vld [vmem:[#allocation16_spill] sm:$0xff] }
 0x303   :  { %3745 = vmatprep.subr.mxu1 %v23214_v8  ;;  %3414 = vmatpush1.msra.mxu0 %v23293_v11  ;;  %v23298_v11 = vld [vmem:[#allocation19_spill] sm:$0xff] }
 0x304   :  { %3747 = vmatpush1.msra.mxu1 %v23216_v41  ;;  %3417 = vmatprep.subr.mxu0 %v23294_v21  ;;  %v23299_v21 = vld [vmem:[#allocation22_spill] sm:$0xff] }
 0x305   :  { %3749 = vmatprep.subr.mxu1 %v23218_v2  ;;  %3420 = vmatpush1.msra.mxu0 %v23295_v13  ;;  %v23300_v13 = vld [vmem:[#allocation26_spill] sm:$0xff] }
 0x306   :  { %3453 = vmatprep.mubr.f32.mxu0 %v22957_v16  ;;  %3751 = vmatpush1.msra.mxu1 %v23220_v14 }
 0x307   :  { %3456 = vmatmul.mubr.f32.vlgmr.msra.gmra.mxu0 %v18796_v35  ;;  %3571 = vmatprep.subr.mxu0 %v23296_v58  ;;  %v23302_v58 = vld [vmem:[#allocation32_spill] sm:$0xff] }
 0x308   :  { %3753 = vmatprep.subr.mxu1 %v23222_v15  ;;  %3575 = vmatpush1.msra.mxu0 %v23297_v6  ;;  %v23303_v6 = vld [vmem:[#allocation35_spill] sm:$0xff] }
 0x309   :  { %3755 = vmatpush1.msra.mxu1 %v23224_v59  ;;  %3579 = vmatprep.subr.mxu0 %v23298_v11  ;;  %v23304_v11 = vld [vmem:[#allocation44_spill] sm:$0xff] }
 0x30a   :  { %3757 = vmatprep.subr.mxu1 %v23226_v36  ;;  %3583 = vmatpush1.msra.mxu0 %v23299_v21  ;;  %v23305_v21 = vld [vmem:[#allocation48_spill] sm:$0xff] }
 0x30b   :  { %3759 = vmatpush1.msra.mxu1 %v23228_v3  ;;  %3587 = vmatprep.subr.mxu0 %v23300_v13  ;;  %v23306_v13 = vld [vmem:[#allocation51_spill] sm:$0xff] }
 0x30c   :  { %3761 = vmatprep.subr.mxu1 %v23230_v37  ;;  %3591 = vmatpush1.msra.mxu0 %v23301_v22  ;;  %v23307_v22 = vld [vmem:[#allocation54_spill] sm:$0xff] }
 0x30d   :  { %3763 = vmatpush1.msra.mxu1 %v23232_v10  ;;  %3595 = vmatprep.subr.mxu0 %v23302_v58  ;;  %v23308_v58 = vld [vmem:[#allocation58_spill] sm:$0xff] }
 0x30e   :  { %3765 = vmatprep.subr.mxu1 %v23234_v43  ;;  %3599 = vmatpush1.msra.mxu0 %v23303_v6  ;;  %v23309_v6 = vld [vmem:[#allocation61_spill] sm:$0xff] }
 0x30f   :  { %3767 = vmatpush1.msra.mxu1 %v23236_v62  ;;  %3603 = vmatprep.subr.mxu0 %v23304_v11  ;;  %v23310_v11 = vld [vmem:[#allocation64_spill] sm:$0xff] }
 0x310   :  { %3769 = vmatprep.subr.mxu1 %v23238_v19  ;;  %3607 = vmatpush1.msra.mxu0 %v23305_v21  ;;  %v23311_v21 = vld [vmem:[#allocation67_spill] sm:$0xff] }
 0x311   :  { %3771 = vmatpush1.msra.mxu1 %v23240_v51  ;;  %3611 = vmatprep.subr.mxu0 %v23306_v13  ;;  %v23312_v13 = vld [vmem:[#allocation76_spill] sm:$0xff] }
 0x312   :  { %3773 = vmatprep.subr.mxu1 %v23242_v17  ;;  %3615 = vmatpush1.msra.mxu0 %v23307_v22  ;;  %v23313_v22 = vld [vmem:[#allocation80_spill] sm:$0xff] }
 0x313   :  { %3775 = vmatpush1.msra.mxu1 %v23244_v40  ;;  %3619 = vmatprep.subr.mxu0 %v23308_v58  ;;  %v23314_v58 = vld [vmem:[#allocation83_spill] sm:$0xff] }
 0x314   :  { %3777 = vmatprep.subr.mxu1 %v23246_v12  ;;  %3623 = vmatpush1.msra.mxu0 %v23309_v6  ;;  %v23315_v6 = vld [vmem:[#allocation86_spill] sm:$0xff] }
 0x315   :  { %3779 = vmatpush1.msra.mxu1 %v23248_v48  ;;  %3627 = vmatprep.subr.mxu0 %v23310_v11  ;;  %v23316_v11 = vld [vmem:[#allocation90_spill] sm:$0xff] }
 0x316   :  { %3781 = vmatprep.subr.mxu1 %v23250_v7  ;;  %3631 = vmatpush1.msra.mxu0 %v23311_v21  ;;  %v23317_v21 = vld [vmem:[#allocation93_spill] sm:$0xff]  ;;  %v23391_v7 = vld [vmem:[#allocation148_spill] sm:$0xff] }
 0x317   :  { %3783 = vmatpush1.msra.mxu1 %v23252_v30  ;;  %3635 = vmatprep.subr.mxu0 %v23312_v13  ;;  %v23318_v13 = vld [vmem:[#allocation96_spill] sm:$0xff]  ;;  %v23390_v30 = vld [vmem:[#allocation145_spill] sm:$0xff] }
 0x318   :  { %3785 = vmatprep.subr.mxu1 %v23254_v50  ;;  %3639 = vmatpush1.msra.mxu0 %v23313_v22  ;;  %v23319_v22 = vld [vmem:[#allocation99_spill] sm:$0xff] }
 0x319   :  { %3787 = vmatpush1.msra.mxu1 %v23255_v63  ;;  %3643 = vmatprep.subr.mxu0 %v23314_v58  ;;  %v23322_v58 = vld [vmem:[#allocation112_spill] sm:$0xff]  ;;  %v23388_v63 = vld [vmem:[#allocation141_spill] sm:$0xff]  ;;  %v23389_v50 = vld [vmem:[#allocation143_spill] sm:$0xff] }
 0x31a   :  { %3789 = vmatprep.subr.mxu1 %v23256_v32  ;;  %3647 = vmatpush1.msra.mxu0 %v23315_v6  ;;  %v23320_v6 = vld [vmem:[#allocation108_spill] sm:$0xff] }
 0x31b   :  { %3791 = vmatpush1.msra.mxu1 %v23257_v54  ;;  %3651 = vmatprep.subr.mxu0 %v23316_v11  ;;  %v23321_v11 = vld [vmem:[#allocation171_spill] sm:$0xff]  ;;  %v23386_v54 = vld [vmem:[#allocation234_spill] sm:$0xff]  ;;  %v23387_v32 = vld [vmem:[#allocation140_spill] sm:$0xff] }
 0x31c   :  { %3793 = vmatprep.subr.mxu1 %v23258_v28  ;;  %3655 = vmatpush1.msra.mxu0 %v23317_v21  ;;  %v23323_v21 = vld [vmem:[#allocation174_spill] sm:$0xff]  ;;  %v23385_v28 = vld [vmem:[#allocation231_spill] sm:$0xff] }
 0x31d   :  { %3795 = vmatpush1.msra.mxu1 %v23259_v33  ;;  %3659 = vmatprep.subr.mxu0 %v23318_v13  ;;  %v23325_v13 = vld [vmem:[#allocation177_spill] sm:$0xff]  ;;  %v23378_v33 = vld [vmem:[#allocation262_spill] sm:$0xff] }
 0x31e   :  { %3797 = vmatprep.subr.mxu1 %v23260_v34  ;;  %3663 = vmatpush1.msra.mxu0 %v23319_v22  ;;  %v23327_v22 = vld [vmem:[#allocation180_spill] sm:$0xff]  ;;  %v23376_v34 = vld [vmem:[#allocation261_spill] sm:$0xff] }
 0x31f   :  { %3799 = vmatpush1.msra.mxu1 %v23261_v60  ;;  %3832 = vmatprep.mubr.f32.mxu1 %v22957_v16  ;;  %v23374_v60 = vld [vmem:[#allocation260_spill] sm:$0xff] }
 0x320   :  { %3667 = vmatprep.subr.mxu0 %v23320_v6  ;;  %3834 = vmatmul.mubr.f32.vlgmr.msra.gmra.mxu1 %v18792_v45  ;;  %v23330_v6 = vld [vmem:[#allocation125_spill] sm:$0xff] }
 0x321   :  { %3953 = vmatprep.subr.mxu1 %v23321_v11  ;;  %3671 = vmatpush1.msra.mxu0 %v23322_v58  ;;  %v23332_v11 = vld [vmem:[#allocation128_spill] sm:$0xff]  ;;  %v23333_v58 = vld [vmem:[#allocation189_spill] sm:$0xff] }
 0x322   :  { %3959 = vmatpush1.msra.mxu1 %v23323_v21  ;;  %3675 = vmatprep.subr.mxu0 %v23324_v38  ;;  %v23334_v21 = vld [vmem:[#allocation130_spill] sm:$0xff] }
 0x323   :  { %3965 = vmatprep.subr.mxu1 %v23325_v13  ;;  %3679 = vmatpush1.msra.mxu0 %v23326_v26  ;;  %v23335_v13 = vld [vmem:[#allocation192_spill] sm:$0xff]  ;;  %v23348_v26 = vld [vmem:[#allocation235_spill] sm:$0xff]  ;;  %v23350_v38 = vld [vmem:[#allocation238_spill] sm:$0xff] }
 0x324   :  { %3971 = vmatpush1.msra.mxu1 %v23327_v22  ;;  %3683 = vmatprep.subr.mxu0 %v23328_v18  ;;  %v23336_v18 = vld [vmem:[#allocation195_spill] sm:$0xff] }
 0x325   :  { %3977 = vmatprep.subr.mxu1 %v23329_v56  ;;  %3687 = vmatpush1.msra.mxu0 %v23330_v6  ;;  %v23337_v6 = vld [vmem:[#allocation198_spill] sm:$0xff]  ;;  %v23344_v56 = vld [vmem:[#allocation215_spill] sm:$0xff] }
 0x326   :  { %3983 = vmatpush1.msra.mxu1 %v23331_v31  ;;  %3691 = vmatprep.subr.mxu0 %v23332_v11  ;;  %v23338_v11 = vld [vmem:[#allocation201_spill] sm:$0xff]  ;;  %v23342_v31 = vld [vmem:[#allocation211_spill] sm:$0xff] }
 0x327   :  { %3989 = vmatprep.subr.mxu1 %v23333_v58  ;;  %3695 = vmatpush1.msra.mxu0 %v23334_v21  ;;  %v23339_v21 = vld [vmem:[#allocation204_spill] sm:$0xff]  ;;  %v23341_v58 = vld [vmem:[#allocation142_spill] sm:$0xff]  ;;  %v23346_v22 = vld [vmem:[#allocation219_spill] sm:$0xff] }
 0x328   :  { %3728 = vmatprep.mubr.f32.mxu0 %v22957_v16  ;;  %3995 = vmatpush1.msra.mxu1 %v23335_v13  ;;  %v23340_v13 = vld [vmem:[#allocation207_spill] sm:$0xff] }
 0x329   :  { %3730 = vmatmul.mubr.f32.vlgmr.msra.gmra.mxu0 %v18792_v45  ;;  %3841 = vmatprep.subr.mxu0 %v18079_v25 }
 0x32a   :  { %4001 = vmatprep.subr.mxu1 %v23336_v18  ;;  %3843 = vmatpush1.msra.mxu0 %v18083_v0  ;;  %v23343_v18 = vld [vmem:[#allocation144_spill] sm:$0xff] }
 0x32b   :  { %4007 = vmatpush1.msra.mxu1 %v23337_v6  ;;  %3845 = vmatprep.subr.mxu0 %v18087_v23  ;;  %v23345_v6 = vld [vmem:[#allocation146_spill] sm:$0xff] }
 0x32c   :  { %4013 = vmatprep.subr.mxu1 %v23338_v11  ;;  %3847 = vmatpush1.msra.mxu0 %v18091_v1  ;;  %v23347_v11 = vld [vmem:[#allocation149_spill] sm:$0xff] }
 0x32d   :  { %4019 = vmatpush1.msra.mxu1 %v23339_v21  ;;  %3849 = vmatprep.subr.mxu0 %v18098_v47  ;;  %v23349_v21 = vld [vmem:[#allocation152_spill] sm:$0xff] }
 0x32e   :  { %4025 = vmatprep.subr.mxu1 %v23340_v13  ;;  %3851 = vmatpush1.msra.mxu0 %v23341_v58  ;;  %v23351_v13 = vld [vmem:[#allocation155_spill] sm:$0xff] }
 0x32f   :  { %4031 = vmatpush1.msra.mxu1 %v23342_v31  ;;  %3853 = vmatprep.subr.mxu0 %v23343_v18  ;;  %v23353_v31 = vld [vmem:[#allocation158_spill] sm:$0xff] }
 0x330   :  { %4037 = vmatprep.subr.mxu1 %v23344_v56  ;;  %3855 = vmatpush1.msra.mxu0 %v23345_v6  ;;  %v23355_v56 = vld [vmem:[#allocation161_spill] sm:$0xff] }
 0x331   :  { %4043 = vmatpush1.msra.mxu1 %v23346_v22  ;;  %3857 = vmatprep.subr.mxu0 %v23347_v11  ;;  %v23357_v22 = vld [vmem:[#allocation164_spill] sm:$0xff] }
 0x332   :  { %4049 = vmatprep.subr.mxu1 %v23348_v26  ;;  %3859 = vmatpush1.msra.mxu0 %v23349_v21  ;;  %v23359_v26 = vld [vmem:[#allocation167_spill] sm:$0xff] }
 0x333   :  { %4055 = vmatpush1.msra.mxu1 %v23350_v38  ;;  %3861 = vmatprep.subr.mxu0 %v23351_v13  ;;  %v23361_v38 = vld [vmem:[#allocation170_spill] sm:$0xff] }
 0x334   :  { %4061 = vmatprep.subr.mxu1 %v23352_v4  ;;  %3863 = vmatpush1.msra.mxu0 %v23353_v31  ;;  %v23363_v4 = vld [vmem:[#allocation185_spill] sm:$0xff] }
 0x335   :  { %4067 = vmatpush1.msra.mxu1 %v23354_v39  ;;  %3865 = vmatprep.subr.mxu0 %v23355_v56  ;;  %v23365_v39 = vld [vmem:[#allocation188_spill] sm:$0xff] }
 0x336   :  { %4073 = vmatprep.subr.mxu1 %v23356_v55  ;;  %3867 = vmatpush1.msra.mxu0 %v23357_v22  ;;  %v23367_v55 = vld [vmem:[#allocation191_spill] sm:$0xff] }
 0x337   :  { %4079 = vmatpush1.msra.mxu1 %v23358_v24  ;;  %3869 = vmatprep.subr.mxu0 %v23359_v26  ;;  %v23369_v24 = vld [vmem:[#allocation194_spill] sm:$0xff] }
 0x338   :  { %4085 = vmatprep.subr.mxu1 %v23360_v57  ;;  %3871 = vmatpush1.msra.mxu0 %v23361_v38  ;;  %v23371_v57 = vld [vmem:[#allocation197_spill] sm:$0xff] }
 0x339   :  { %4091 = vmatpush1.msra.mxu1 %v23362_v44  ;;  %3873 = vmatprep.subr.mxu0 %v23363_v4  ;;  %v23373_v44 = vld [vmem:[#allocation200_spill] sm:$0xff] }
 0x33a   :  { %4097 = vmatprep.subr.mxu1 %v23364_v29  ;;  %3875 = vmatpush1.msra.mxu0 %v23365_v39  ;;  %v23375_v29 = vld [vmem:[#allocation203_spill] sm:$0xff] }
 0x33b   :  { %4103 = vmatpush1.msra.mxu1 %v23366_v53  ;;  %3877 = vmatprep.subr.mxu0 %v23367_v55  ;;  %v23377_v53 = vld [vmem:[#allocation206_spill] sm:$0xff] }
 0x33c   :  { %4109 = vmatprep.subr.mxu1 %v23368_v46  ;;  %3879 = vmatpush1.msra.mxu0 %v23369_v24  ;;  %v23379_v46 = vld [vmem:[#allocation210_spill] sm:$0xff] }
 0x33d   :  { %4115 = vmatpush1.msra.mxu1 %v23370_v49  ;;  %3881 = vmatprep.subr.mxu0 %v23371_v57  ;;  %v23384_v49 = vld [vmem:[#allocation228_spill] sm:$0xff] }
 0x33e   :  { %4121 = vmatprep.subr.mxu1 %v23372_v52  ;;  %3883 = vmatpush1.msra.mxu0 %v23373_v44  ;;  %v23380_v52 = vld [vmem:[#allocation214_spill] sm:$0xff] }
 0x33f   :  { %4127 = vmatpush1.msra.mxu1 %v23374_v60  ;;  %3885 = vmatprep.subr.mxu0 %v23375_v29  ;;  %v23381_v60 = vld [vmem:[#allocation218_spill] sm:$0xff] }
 0x340   :  { %4133 = vmatprep.subr.mxu1 %v23376_v34  ;;  %3887 = vmatpush1.msra.mxu0 %v23377_v53  ;;  %v23382_v34 = vld [vmem:[#allocation222_spill] sm:$0xff] }
 0x341   :  { %4139 = vmatpush1.msra.mxu1 %v23378_v33  ;;  %4172 = vmatprep.mubr.f32.mxu1 %v22957_v16  ;;  %v23383_v33 = vld [vmem:[#allocation225_spill] sm:$0xff] }
 0x342   :  { %3889 = vmatprep.subr.mxu0 %v23379_v46  ;;  %4174 = vmatmul.mubr.f32.vlgmr.msra.gmra.mxu1 %v18792_v45 }
 0x343   :  { %4318 = vmatprep.subr.mxu1 %v18079_v25  ;;  %3891 = vmatpush1.msra.mxu0 %v23380_v52 }
 0x344   :  { %4320 = vmatpush1.msra.mxu1 %v18083_v0  ;;  %3893 = vmatprep.subr.mxu0 %v23381_v60 }
 0x345   :  { %4322 = vmatprep.subr.mxu1 %v18087_v23  ;;  %3895 = vmatpush1.msra.mxu0 %v23382_v34 }
 0x346   :  { %4324 = vmatpush1.msra.mxu1 %v18091_v1  ;;  %3897 = vmatprep.subr.mxu0 %v23383_v33 }
 0x347   :  { %4326 = vmatprep.subr.mxu1 %v18098_v47  ;;  %3899 = vmatpush1.msra.mxu0 %v23384_v49 }
 0x348   :  { %4328 = vmatpush1.msra.mxu1 %v23341_v58  ;;  %3901 = vmatprep.subr.mxu0 %v23385_v28 }
 0x349   :  { %4330 = vmatprep.subr.mxu1 %v23343_v18  ;;  %3903 = vmatpush1.msra.mxu0 %v23386_v54 }
 0x34a   :  { %3936 = vmatprep.mubr.f32.mxu0 %v22957_v16  ;;  %4332 = vmatpush1.msra.mxu1 %v23345_v6 }
 0x34b   :  { %3942 = vmatmul.mubr.f32.vlgmr.msra.gmra.mxu0 %v18810_v42  ;;  %4182 = vmatprep.subr.mxu0 %v23387_v32  ;;  %v23392_v42 = vld [vmem:[#allocation151_spill] sm:$0xff]  ;;  %v23393_v32 = vld [vmem:[#allocation154_spill] sm:$0xff] }
 0x34c   :  { %4334 = vmatprep.subr.mxu1 %v23347_v11  ;;  %4185 = vmatpush1.msra.mxu0 %v23388_v63  ;;  %v23394_v63 = vld [vmem:[#allocation157_spill] sm:$0xff] }
 0x34d   :  { %4336 = vmatpush1.msra.mxu1 %v23349_v21  ;;  %4188 = vmatprep.subr.mxu0 %v23389_v50  ;;  %v23395_v50 = vld [vmem:[#allocation160_spill] sm:$0xff] }
 0x34e   :  { %4338 = vmatprep.subr.mxu1 %v23351_v13  ;;  %4191 = vmatpush1.msra.mxu0 %v23390_v30  ;;  %v23396_v30 = vld [vmem:[#allocation163_spill] sm:$0xff] }
 0x34f   :  { %4340 = vmatpush1.msra.mxu1 %v23353_v31  ;;  %4194 = vmatprep.subr.mxu0 %v23391_v7  ;;  %v23397_v7 = vld [vmem:[#allocation166_spill] sm:$0xff] }
 0x350   :  { %4342 = vmatprep.subr.mxu1 %v23355_v56  ;;  %4197 = vmatpush1.msra.mxu0 %v23392_v42  ;;  %v23398_v42 = vld [vmem:[#allocation169_spill] sm:$0xff] }
 0x351   :  { %4344 = vmatpush1.msra.mxu1 %v23357_v22  ;;  %4200 = vmatprep.subr.mxu0 %v23393_v32  ;;  %v23399_v32 = vld [vmem:[#allocation173_spill] sm:$0xff] }
 0x352   :  { %4346 = vmatprep.subr.mxu1 %v23359_v26  ;;  %4203 = vmatpush1.msra.mxu0 %v23394_v63  ;;  %v23400_v63 = vld [vmem:[#allocation176_spill] sm:$0xff] }
 0x353   :  { %4348 = vmatpush1.msra.mxu1 %v23361_v38  ;;  %4206 = vmatprep.subr.mxu0 %v23395_v50  ;;  %v23401_v50 = vld [vmem:[#allocation179_spill] sm:$0xff] }
 0x354   :  { %4350 = vmatprep.subr.mxu1 %v23363_v4  ;;  %4209 = vmatpush1.msra.mxu0 %v23396_v30  ;;  %v23402_v30 = vld [vmem:[#allocation182_spill] sm:$0xff] }
 0x355   :  { %4352 = vmatpush1.msra.mxu1 %v23365_v39  ;;  %4212 = vmatprep.subr.mxu0 %v23397_v7  ;;  %v23403_v7 = vld [vmem:[#allocation196_spill] sm:$0xff] }
 0x356   :  { %4354 = vmatprep.subr.mxu1 %v23367_v55  ;;  %4215 = vmatpush1.msra.mxu0 %v23398_v42  ;;  %v23404_v42 = vld [vmem:[#allocation199_spill] sm:$0xff] }
 0x357   :  { %4356 = vmatpush1.msra.mxu1 %v23369_v24  ;;  %4218 = vmatprep.subr.mxu0 %v23399_v32  ;;  %v23405_v32 = vld [vmem:[#allocation202_spill] sm:$0xff] }
 0x358   :  { %4358 = vmatprep.subr.mxu1 %v23371_v57  ;;  %4221 = vmatpush1.msra.mxu0 %v23400_v63  ;;  %v23406_v63 = vld [vmem:[#allocation205_spill] sm:$0xff] }
 0x359   :  { %4360 = vmatpush1.msra.mxu1 %v23373_v44  ;;  %4224 = vmatprep.subr.mxu0 %v23401_v50  ;;  %v23407_v50 = vld [vmem:[#allocation209_spill] sm:$0xff] }
 0x35a   :  { %4362 = vmatprep.subr.mxu1 %v23375_v29  ;;  %4227 = vmatpush1.msra.mxu0 %v23402_v30  ;;  %v23408_v30 = vld [vmem:[#allocation213_spill] sm:$0xff] }
 0x35b   :  { %4364 = vmatpush1.msra.mxu1 %v23377_v53  ;;  %4230 = vmatprep.subr.mxu0 %v23403_v7  ;;  %v23409_v7 = vld [vmem:[#allocation217_spill] sm:$0xff] }
 0x35c   :  { %4366 = vmatprep.subr.mxu1 %v23379_v46  ;;  %4233 = vmatpush1.msra.mxu0 %v23404_v42  ;;  %v23410_v42 = vld [vmem:[#allocation221_spill] sm:$0xff] }
 0x35d   :  { %4368 = vmatpush1.msra.mxu1 %v23380_v52  ;;  %4236 = vmatprep.subr.mxu0 %v23405_v32  ;;  %v23450_v32 = vld [vmem:[#allocation31_spill] sm:$0xff] }
 0x35e   :  { %4370 = vmatprep.subr.mxu1 %v23381_v60  ;;  %4239 = vmatpush1.msra.mxu0 %v23406_v63  ;;  %v23411_v63 = vld [vmem:[#allocation224_spill] sm:$0xff] }
 0x35f   :  { %4372 = vmatpush1.msra.mxu1 %v23382_v34  ;;  %4242 = vmatprep.subr.mxu0 %v23407_v50  ;;  %v23412_v50 = vld [vmem:[#allocation227_spill] sm:$0xff] }
 0x360   :  { %4374 = vmatprep.subr.mxu1 %v23383_v33  ;;  %4245 = vmatpush1.msra.mxu0 %v23408_v30  ;;  %v23413_v30 = vld [vmem:[#allocation230_spill] sm:$0xff] }
 0x361   :  { %4376 = vmatpush1.msra.mxu1 %v23384_v49  ;;  %4248 = vmatprep.subr.mxu0 %v23409_v7  ;;  %v23414_v7 = vld [vmem:[#allocation233_spill] sm:$0xff] }
 0x362   :  { %4378 = vmatprep.subr.mxu1 %v23385_v28  ;;  %4251 = vmatpush1.msra.mxu0 %v23410_v42  ;;  %v23415_v42 = vld [vmem:[#allocation237_spill] sm:$0xff] }
 0x363   :  { %4380 = vmatpush1.msra.mxu1 %v23386_v54  ;;  %4413 = vmatprep.mubr.f32.mxu1 %v22957_v16 }
 0x364   :  { %4254 = vmatprep.subr.mxu0 %v23411_v63  ;;  %4417 = vmatmul.mubr.f32.vlgmr.msra.gmra.mxu1 %v18802_v5  ;;  %v23416_v63 = vld [vmem:[#allocation240_spill] sm:$0xff]  ;;  %v23417_v5 = vld [vmem:[#allocation243_spill] sm:$0xff] }
 0x365   :  { %4592 = vmatprep.subr.mxu1 %v18079_v25  ;;  %4257 = vmatpush1.msra.mxu0 %v23412_v50  ;;  %v23418_v50 = vld [vmem:[#allocation246_spill] sm:$0xff] }
 0x366   :  { %4594 = vmatpush1.msra.mxu1 %v18083_v0  ;;  %4260 = vmatprep.subr.mxu0 %v23413_v30  ;;  %v23448_v30 = vld [vmem:[#allocation28_spill] sm:$0xff] }
 0x367   :  { %4596 = vmatprep.subr.mxu1 %v18087_v23  ;;  %4263 = vmatpush1.msra.mxu0 %v23414_v7  ;;  %v23419_v7 = vld [vmem:[#allocation147_spill] sm:$0xff] }
 0x368   :  { %4598 = vmatpush1.msra.mxu1 %v18091_v1  ;;  %4266 = vmatprep.subr.mxu0 %v23415_v42  ;;  %v23420_v42 = vld [vmem:[#allocation150_spill] sm:$0xff] }
 0x369   :  { %4600 = vmatprep.subr.mxu1 %v18098_v47  ;;  %4269 = vmatpush1.msra.mxu0 %v23416_v63  ;;  %v23421_v63 = vld [vmem:[#allocation153_spill] sm:$0xff] }
 0x36a   :  { %4602 = vmatpush1.msra.mxu1 %v23341_v58  ;;  %4272 = vmatprep.subr.mxu0 %v23417_v5  ;;  %v23422_v5 = vld [vmem:[#allocation156_spill] sm:$0xff]  ;;  %v2978_v58 = vld [vmem:[#allocation2 + $0x30] sm:$0x30] }
 0x36b   :  { %4604 = vmatprep.subr.mxu1 %v23343_v18  ;;  %4275 = vmatpush1.msra.mxu0 %v23418_v50  ;;  %v23423_v50 = vld [vmem:[#allocation159_spill] sm:$0xff] }
 0x36c   :  { %4308 = vmatprep.mubr.f32.mxu0 %v22957_v16  ;;  %4606 = vmatpush1.msra.mxu1 %v23345_v6  ;;  %v2979_v18 = vld [vmem:[#allocation2] sm:$0x30] }
 0x36d   :  { %4311 = vmatmul.mubr.f32.vlgmr.msra.gmra.mxu0 %v18796_v35  ;;  %4426 = vmatprep.subr.mxu0 %v23419_v7  ;;  %v23424_v35 = vld [vmem:[#allocation162_spill] sm:$0xff]  ;;  %v23425_v7 = vld [vmem:[#allocation165_spill] sm:$0xff] }
 0x36e   :  { %4608 = vmatprep.subr.mxu1 %v23347_v11  ;;  %4430 = vmatpush1.msra.mxu0 %v23420_v42  ;;  %v23426_v42 = vld [vmem:[#allocation168_spill] sm:$0xff] }
 0x36f   :  { %4610 = vmatpush1.msra.mxu1 %v23349_v21  ;;  %4434 = vmatprep.subr.mxu0 %v23421_v63  ;;  %v23427_v63 = vld [vmem:[#allocation172_spill] sm:$0xff] }
 0x370   :  { %4612 = vmatprep.subr.mxu1 %v23351_v13  ;;  %4438 = vmatpush1.msra.mxu0 %v23422_v5  ;;  %v23428_v5 = vld [vmem:[#allocation175_spill] sm:$0xff] }
 0x371   :  { %4614 = vmatpush1.msra.mxu1 %v23353_v31  ;;  %4442 = vmatprep.subr.mxu0 %v23423_v50  ;;  %v23429_v50 = vld [vmem:[#allocation178_spill] sm:$0xff] }
 0x372   :  { %4616 = vmatprep.subr.mxu1 %v23355_v56  ;;  %4446 = vmatpush1.msra.mxu0 %v23424_v35  ;;  %v23430_v35 = vld [vmem:[#allocation181_spill] sm:$0xff] }
 0x373   :  { %4618 = vmatpush1.msra.mxu1 %v23357_v22  ;;  %4450 = vmatprep.subr.mxu0 %v23425_v7  ;;  %v23431_v7 = vld [vmem:[#allocation184_spill] sm:$0xff] }
 0x374   :  { %4620 = vmatprep.subr.mxu1 %v23359_v26  ;;  %4454 = vmatpush1.msra.mxu0 %v23426_v42  ;;  %v23432_v42 = vld [vmem:[#allocation187_spill] sm:$0xff] }
 0x375   :  { %4622 = vmatpush1.msra.mxu1 %v23361_v38  ;;  %4458 = vmatprep.subr.mxu0 %v23427_v63  ;;  %v23433_v63 = vld [vmem:[#allocation190_spill] sm:$0xff] }
 0x376   :  { %4624 = vmatprep.subr.mxu1 %v23363_v4  ;;  %4462 = vmatpush1.msra.mxu0 %v23428_v5  ;;  %v23434_v5 = vld [vmem:[#allocation193_spill] sm:$0xff] }
 0x377   :  { %4626 = vmatpush1.msra.mxu1 %v23365_v39  ;;  %4466 = vmatprep.subr.mxu0 %v23429_v50  ;;  %v23435_v50 = vld [vmem:[#allocation208_spill] sm:$0xff] }
 0x378   :  { %4628 = vmatprep.subr.mxu1 %v23367_v55  ;;  %4470 = vmatpush1.msra.mxu0 %v23430_v35  ;;  %v23436_v35 = vld [vmem:[#allocation212_spill] sm:$0xff] }
 0x379   :  { %4630 = vmatpush1.msra.mxu1 %v23369_v24  ;;  %4474 = vmatprep.subr.mxu0 %v23431_v7  ;;  %v23437_v7 = vld [vmem:[#allocation216_spill] sm:$0xff] }
 0x37a   :  { %4632 = vmatprep.subr.mxu1 %v23371_v57  ;;  %4478 = vmatpush1.msra.mxu0 %v23432_v42  ;;  %v23438_v42 = vld [vmem:[#allocation220_spill] sm:$0xff] }
 0x37b   :  { %4634 = vmatpush1.msra.mxu1 %v23373_v44  ;;  %4482 = vmatprep.subr.mxu0 %v23433_v63  ;;  %v23439_v63 = vld [vmem:[#allocation223_spill] sm:$0xff] }
 0x37c   :  { %4636 = vmatprep.subr.mxu1 %v23375_v29  ;;  %4486 = vmatpush1.msra.mxu0 %v23434_v5  ;;  %v23440_v5 = vld [vmem:[#allocation226_spill] sm:$0xff] }
 0x37d   :  { %4638 = vmatpush1.msra.mxu1 %v23377_v53  ;;  %4490 = vmatprep.subr.mxu0 %v23435_v50  ;;  %v23441_v50 = vld [vmem:[#allocation229_spill] sm:$0xff] }
 0x37e   :  { %4640 = vmatprep.subr.mxu1 %v23379_v46  ;;  %4494 = vmatpush1.msra.mxu0 %v23436_v35  ;;  %v23442_v35 = vld [vmem:[#allocation232_spill] sm:$0xff] }
 0x37f   :  { %4642 = vmatpush1.msra.mxu1 %v23380_v52  ;;  %4498 = vmatprep.subr.mxu0 %v23437_v7  ;;  %v23446_v7 = vld [vmem:[#allocation25_spill] sm:$0xff] }
 0x380   :  { %4644 = vmatprep.subr.mxu1 %v23381_v60  ;;  %4502 = vmatpush1.msra.mxu0 %v23438_v42  ;;  %v23443_v42 = vld [vmem:[#allocation236_spill] sm:$0xff] }
 0x381   :  { %4646 = vmatpush1.msra.mxu1 %v23382_v34  ;;  %4506 = vmatprep.subr.mxu0 %v23439_v63  ;;  %v23444_v63 = vld [vmem:[#allocation239_spill] sm:$0xff] }
 0x382   :  { %4648 = vmatprep.subr.mxu1 %v23383_v33  ;;  %4510 = vmatpush1.msra.mxu0 %v23440_v5  ;;  %v23445_v5 = vld [vmem:[#allocation242_spill] sm:$0xff] }
 0x383   :  { %4650 = vmatpush1.msra.mxu1 %v23384_v49  ;;  %4514 = vmatprep.subr.mxu0 %v23441_v50  ;;  %v23447_v50 = vld [vmem:[#allocation245_spill] sm:$0xff]  ;;  %v23455_v49 = vld [vmem:[#allocation254_spill] sm:$0xff] }
 0x384   :  { %4652 = vmatprep.subr.mxu1 %v23385_v28  ;;  %4518 = vmatpush1.msra.mxu0 %v23442_v35  ;;  %v23449_v35 = vld [vmem:[#allocation248_spill] sm:$0xff] }
 0x385   :  { %4654 = vmatpush1.msra.mxu1 %v23386_v54  ;;  %4687 = vmatprep.mubr.f32.mxu1 %v22957_v16  ;;  %v23451_v54 = vld [vmem:[#allocation250_spill] sm:$0xff]  ;;  %v23453_v28 = vld [vmem:[#allocation252_spill] sm:$0xff] }
 0x386   :  { %4522 = vmatprep.subr.mxu0 %v23443_v42  ;;  %4689 = vmatmul.mubr.f32.vlgmr.msra.gmra.mxu1 %v18792_v45  ;;  %v23452_v42 = vld [vmem:[#allocation34_spill] sm:$0xff] }
 0x387   :  { %4526 = vmatpush1.msra.mxu0 %v23444_v63  ;;  %4583 = vmatprep.mubr.f32.mxu0 %v22957_v16  ;;  %v23454_v63 = vld [vmem:[#allocation37_spill] sm:$0xff] }
 0x388   :  { %4530 = vmatprep.subr.mxu0 %v23445_v5  ;;  %4858 = vmatprep.subr.mxu1 %v23446_v7  ;;  %v23456_v5 = vld [vmem:[#allocation40_spill] sm:$0xff] }
 0x389   :  { %4534 = vmatpush1.msra.mxu0 %v23447_v50  ;;  %4864 = vmatpush1.msra.mxu1 %v23448_v30  ;;  %v23457_v50 = vld [vmem:[#allocation43_spill] sm:$0xff] }
 0x38a   :  { %4538 = vmatprep.subr.mxu0 %v23449_v35  ;;  %4870 = vmatprep.subr.mxu1 %v23450_v32  ;;  %v23458_v30 = vld [vmem:[#allocation47_spill] sm:$0xff]  ;;  %v23459_v32 = vld [vmem:[#allocation57_spill] sm:$0xff] }
 0x38b   :  { %4542 = vmatpush1.msra.mxu0 %v23451_v54  ;;  %4876 = vmatpush1.msra.mxu1 %v23452_v42  ;;  %v23460_v42 = vld [vmem:[#allocation60_spill] sm:$0xff]  ;;  %v23491_v54 = vld [vmem:[#allocation117_spill] sm:$0xff] }
 0x38c   :  { %4546 = vmatprep.subr.mxu0 %v23453_v28  ;;  %4882 = vmatprep.subr.mxu1 %v23454_v63  ;;  %v23461_v63 = vld [vmem:[#allocation63_spill] sm:$0xff]  ;;  %v23489_v28 = vld [vmem:[#allocation110_spill] sm:$0xff]  ;;  %v23493_v35 = vld [vmem:[#allocation9_spill] sm:$0xff] }
 0x38d   :  { %4550 = vmatpush1.msra.mxu0 %v23455_v49  ;;  %4888 = vmatpush1.msra.mxu1 %v23456_v5  ;;  %v23462_v5 = vld [vmem:[#allocation66_spill] sm:$0xff] }
 0x38e   :  { %4585 = vmatmul.mubr.f32.vlgmr.msra.gmra.mxu0 %v18792_v45  ;;  %4894 = vmatprep.subr.mxu1 %v23457_v50  ;;  %v23463_v45 = vld [vmem:[#allocation69_spill] sm:$0xff]  ;;  %v23484_v49 = vld [vmem:[#allocation134_spill] sm:$0xff] }
 0x38f   :  { %4900 = vmatpush1.msra.mxu1 %v23458_v30  ;;  %4746 = vmatprep.subr.mxu0 %v23206_v9  ;;  %v23464_v30 = vld [vmem:[#allocation72_spill] sm:$0xff]  ;;  %v23482_v50 = vld [vmem:[#allocation133_spill] sm:$0xff] }
 0x390   :  { %4906 = vmatprep.subr.mxu1 %v23459_v32  ;;  %4748 = vmatpush1.msra.mxu0 %v23208_v61  ;;  %v23465_v32 = vld [vmem:[#allocation75_spill] sm:$0xff] }
 0x391   :  { %4912 = vmatpush1.msra.mxu1 %v23460_v42  ;;  %4750 = vmatprep.subr.mxu0 %v23210_v27  ;;  %v23466_v42 = vld [vmem:[#allocation79_spill] sm:$0xff] }
 0x392   :  { %4918 = vmatprep.subr.mxu1 %v23461_v63  ;;  %4752 = vmatpush1.msra.mxu0 %v23212_v20  ;;  %v23467_v63 = vld [vmem:[#allocation89_spill] sm:$0xff] }
 0x393   :  { %4924 = vmatpush1.msra.mxu1 %v23462_v5  ;;  %4754 = vmatprep.subr.mxu0 %v23214_v8  ;;  %v23468_v5 = vld [vmem:[#allocation92_spill] sm:$0xff] }
 0x394   :  { %4930 = vmatprep.subr.mxu1 %v23463_v45  ;;  %4756 = vmatpush1.msra.mxu0 %v23216_v41  ;;  %v23469_v45 = vld [vmem:[#allocation95_spill] sm:$0xff] }
 0x395   :  { %4936 = vmatpush1.msra.mxu1 %v23464_v30  ;;  %4758 = vmatprep.subr.mxu0 %v23218_v2  ;;  %v23470_v30 = vld [vmem:[#allocation98_spill] sm:$0xff] }
 0x396   :  { %4942 = vmatprep.subr.mxu1 %v23465_v32  ;;  %4760 = vmatpush1.msra.mxu0 %v23220_v14  ;;  %v23471_v32 = vld [vmem:[#allocation101_spill] sm:$0xff] }
 0x397   :  { %4948 = vmatpush1.msra.mxu1 %v23466_v42  ;;  %4762 = vmatprep.subr.mxu0 %v23222_v15  ;;  %v23472_v42 = vld [vmem:[#allocation104_spill] sm:$0xff] }
 0x398   :  { %4954 = vmatprep.subr.mxu1 %v23467_v63  ;;  %4764 = vmatpush1.msra.mxu0 %v23224_v59  ;;  %v23473_v63 = vld [vmem:[#allocation107_spill] sm:$0xff] }
 0x399   :  { %4960 = vmatpush1.msra.mxu1 %v23468_v5  ;;  %4766 = vmatprep.subr.mxu0 %v23226_v36  ;;  %v23474_v5 = vld [vmem:[#allocation111_spill] sm:$0xff] }
 0x39a   :  { %4966 = vmatprep.subr.mxu1 %v23469_v45  ;;  %4768 = vmatpush1.msra.mxu0 %v23228_v3  ;;  %v23475_v45 = vld [vmem:[#allocation121_spill] sm:$0xff] }
 0x39b   :  { %4972 = vmatpush1.msra.mxu1 %v23470_v30  ;;  %4770 = vmatprep.subr.mxu0 %v23230_v37  ;;  %v23476_v30 = vld [vmem:[#allocation124_spill] sm:$0xff] }
 0x39c   :  { %4978 = vmatprep.subr.mxu1 %v23471_v32  ;;  %4772 = vmatpush1.msra.mxu0 %v23232_v10  ;;  %v23477_v32 = vld [vmem:[#allocation127_spill] sm:$0xff] }
 0x39d   :  { %4984 = vmatpush1.msra.mxu1 %v23472_v42  ;;  %4774 = vmatprep.subr.mxu0 %v23234_v43  ;;  %v23478_v42 = vld [vmem:[#allocation129_spill] sm:$0xff] }
 0x39e   :  { %4990 = vmatprep.subr.mxu1 %v23473_v63  ;;  %4776 = vmatpush1.msra.mxu0 %v23236_v62  ;;  %v23479_v63 = vld [vmem:[#allocation131_spill] sm:$0xff]  ;;  %v3320_v34 = vpop.f32.mrf.mxu1 }
 0x39f   :  { %4996 = vmatpush1.msra.mxu1 %v23474_v5  ;;  %4778 = vmatprep.subr.mxu0 %v23238_v19  ;;  %v23480_v5 = vld [vmem:[#allocation132_spill] sm:$0xff] }
 0x3a0   :  { %5002 = vmatprep.subr.mxu1 %v23475_v45  ;;  %4780 = vmatpush1.msra.mxu0 %v23240_v51  ;;  %v23481_v45 = vld [vmem:[#allocation85_spill] sm:$0xff]  ;;  %v3322_v52 = vpop.f32.mrf.mxu1 }
 0x3a1   :  { %5008 = vmatpush1.msra.mxu1 %v23476_v30  ;;  %4782 = vmatprep.subr.mxu0 %v23242_v17  ;;  %v23483_v30 = vld [vmem:[#allocation88_spill] sm:$0xff] }
 0x3a2   :  { %5014 = vmatprep.subr.mxu1 %v23477_v32  ;;  %4784 = vmatpush1.msra.mxu0 %v23244_v40  ;;  %v23485_v32 = vld [vmem:[#allocation97_spill] sm:$0xff] }
 0x3a3   :  { %5020 = vmatpush1.msra.mxu1 %v23478_v42  ;;  %4786 = vmatprep.subr.mxu0 %v23246_v12  ;;  %v23486_v42 = vld [vmem:[#allocation100_spill] sm:$0xff] }
 0x3a4   :  { %5026 = vmatprep.subr.mxu1 %v23479_v63  ;;  %4788 = vmatpush1.msra.mxu0 %v23248_v48  ;;  %v23487_v63 = vld [vmem:[#allocation103_spill] sm:$0xff] }
 0x3a5   :  { %5032 = vmatpush1.msra.mxu1 %v23480_v5  ;;  %4790 = vmatprep.subr.mxu0 %v23481_v45  ;;  %v23488_v5 = vld [vmem:[#allocation106_spill] sm:$0xff] }
 0x3a6   :  { %5038 = vmatprep.subr.mxu1 %v23482_v50  ;;  %4792 = vmatpush1.msra.mxu0 %v23483_v30  ;;  %v23490_v50 = vld [vmem:[#allocation114_spill] sm:$0xff]  ;;  %v3088_v7 = vpop.f32.mrf.mxu0 }
 0x3a7   :  { %5044 = vmatpush1.msra.mxu1 %v23484_v49  ;;  %4794 = vmatprep.subr.mxu0 %v23485_v32  ;;  %v23492_v49 = vld [vmem:[#allocation120_spill] sm:$0xff]  ;;  %v3321_v29 = vadd.f32 %v3320_v34, %v3088_v7 }
 0x3a8   :  { %5077 = vmatprep.mubr.f32.mxu1 %v22957_v16  ;;  %5223 = vmatprep.subr.mxu1 %v23206_v9  ;;  %v3090_v33 = vpop.f32.mrf.mxu0 }
 0x3a9   :  { %4796 = vmatpush1.msra.mxu0 %v23486_v42  ;;  %4841 = vmatprep.mubr.f32.mxu0 %v22957_v16  ;;  %v3323_v53 = vadd.f32 %v3322_v52, %v3090_v33 }
 0x3aa   :  { %4798 = vmatprep.subr.mxu0 %v23487_v63 }
 0x3ab   :  { %4800 = vmatpush1.msra.mxu0 %v23488_v5 }
 0x3ac   :  { %4802 = vmatprep.subr.mxu0 %v23489_v28 }
 0x3ad   :  { %4804 = vmatpush1.msra.mxu0 %v23490_v50 }
 0x3ae   :  { %4806 = vmatprep.subr.mxu0 %v23491_v54 }
 0x3af   :  { %4808 = vmatpush1.msra.mxu0 %v23492_v49 }
 0x3b0   :  { %5087 = vmatprep.subr.mxu0 %v23493_v35 }
 0x3be   :  { %v3563_v44 = vpop.f32.mrf.mxu1 }
 0x3c0   :  { %v3565_v39 = vpop.f32.mrf.mxu1 }
 0x3c7   :  { %v3457_v60 = vpop.f32.mrf.mxu0 }
 0x3c8   :  { %v3458_v55 = vadd.f32 %v3457_v60, %v3321_v29 }
 0x3c9   :  { %v3459_v46 = vpop.f32.mrf.mxu0 }
 0x3ca   :  { %v3460_v24 = vadd.f32 %v3459_v46, %v3323_v53  ;;  %v3564_v22 = vadd.f32 %v3563_v44, %v3458_v55 }
 0x3cc   :  { %v3566_v38 = vadd.f32 %v3565_v39, %v3460_v24 }
 0x3e0   :  { %v3835_v26 = vpop.f32.mrf.mxu1 }
 0x3e2   :  { %v3837_v35 = vpop.f32.mrf.mxu1 }
 0x3e9   :  { %v3731_v57 = vpop.f32.mrf.mxu0 }
 0x3ea   :  { %v3732_v31 = vadd.f32 %v3731_v57, %v3564_v22 }
 0x3eb   :  { %v3733_v4 = vpop.f32.mrf.mxu0 }
 0x3ec   :  { %v3734_v56 = vadd.f32 %v3733_v4, %v3566_v38  ;;  %v3836_v21 = vadd.f32 %v3835_v26, %v3732_v31 }
 0x3ee   :  { %v3838_v13 = vadd.f32 %v3837_v35, %v3734_v56  ;;  %v4699_v6 = vrot.slane %v3836_v21, 4 }
 0x3f0   :  { %v4700_v11 = vrot.slane %v3838_v13, 4  ;;  %v4707_v34 = vadd.f32 %v4699_v6, %v2978_v58 }
 0x3f2   :  { %v4708_v33 = vadd.f32 %v4700_v11, %v2979_v18  ;;  %v16835_v52 = vmul.f32 -1.442695, %v4707_v34 }
 0x3f4   :  { %v16836_v7 = vmul.f32 -1.442695, %v4708_v33 }
 0x3f6   :  { %17221 = vpow2.f32 %v16836_v7 }
 0x3f7   :  { %17223 = vpow2.f32 %v16835_v52 }
 0x402   :  { %v4175_v60 = vpop.f32.mrf.mxu1 }
 0x403   :  { %v17222_v38 = vpop.eup %17221 }
 0x404   :  { %v4177_v44 = vpop.f32.mrf.mxu1  ;;  %v17224_v6 = vpop.eup %17223  ;;  %v4720_v22 = vadd.f32 1.0, %v17222_v38 }
 0x405   :  { %v4714_v34 = vadd.f32 1.0, %v17224_v6 }
 0x406   :  { %17225 = vrcp.f32 %v4720_v22 }
 0x407   :  { %17227 = vrcp.f32 %v4714_v34 }
 0x40b   :  { %v3943_v46 = vpop.f32.mrf.mxu0 }
 0x40c   :  { %v4176_v24 = vadd.f32 %v4175_v60, %v3943_v46  ;;  %v2980_v60 = vld [vmem:[#allocation2 + $0x18] sm:$0x30] }
 0x40d   :  { %v3945_v53 = vpop.f32.mrf.mxu0 }
 0x40e   :  { %v4178_v39 = vadd.f32 %v4177_v44, %v3945_v53  ;;  %v2981_v44 = vld [vmem:[#allocation2 + $0x10] sm:$0x30] }
 0x424   :  { %v4418_v57 = vpop.f32.mrf.mxu1 }
 0x426   :  { %v4420_v56 = vpop.f32.mrf.mxu1 }
 0x42d   :  { %v4312_v29 = vpop.f32.mrf.mxu0 }
 0x42e   :  { %v4313_v4 = vadd.f32 %v4312_v29, %v4176_v24 }
 0x42f   :  { %v4314_v55 = vpop.f32.mrf.mxu0 }
 0x430   :  { %v4315_v31 = vadd.f32 %v4314_v55, %v4178_v39  ;;  %v4419_v26 = vadd.f32 %v4418_v57, %v4313_v4  ;;  %v17226_v55 = vpop.eup %17225  ;;  %v23494_v4 = vld [vmem:[#allocation139_spill] sm:$0xff] }
 0x431   :  { %v17228_v39 = vpop.eup %17227 }
 0x432   :  { %v4421_v21 = vadd.f32 %v4420_v56, %v4315_v31  ;;  %v4731_v31 = vrot.slane %v23494_v4, 6  ;;  %v23505_v4 = vld [vmem:[#allocation45_spill] sm:$0xff] }
 0x446   :  { %v4690_v18 = vpop.f32.mrf.mxu1 }
 0x448   :  { %v4692_v7 = vpop.f32.mrf.mxu1 }
 0x44e   :  { %v4586_v58 = vpop.f32.mrf.mxu0 }
 0x44f   :  { %v4587_v11 = vadd.f32 %v4586_v58, %v4419_v26  ;;  %v4733_v26 = vmul.f32 %v17226_v55, %v4731_v31  ;;  %v23503_v55 = vld [vmem:[#allocation38_spill] sm:$0xff]  ;;  %v23506_v31 = vld [vmem:[#allocation49_spill] sm:$0xff] }
 0x450   :  { %v4588_v13 = vpop.f32.mrf.mxu0 }
 0x451   :  { %v4691_v35 = vadd.f32 %v4690_v18, %v4587_v11  ;;  %v4589_v33 = vadd.f32 %v4588_v13, %v4421_v21 }
 0x453   :  { %v4701_v52 = vrot.slane %v4691_v35, 4  ;;  %v4693_v46 = vadd.f32 %v4692_v7, %v4589_v33 }
 0x455   :  { %v4709_v53 = vadd.f32 %v4701_v52, %v2980_v60  ;;  %v4702_v29 = vrot.slane %v4693_v46, 4  ;;  %v23496_v46 = vld [vmem:[#allocation11_spill] sm:$0xff]  ;;  %v23497_v60 = vld [vmem:[#allocation14_spill] sm:$0xff] }
 0x457   :  { %17229 = vtanh.f32 %v4709_v53  ;;  %v4710_v24 = vadd.f32 %v4702_v29, %v2981_v44  ;;  %v23498_v53 = vld [vmem:[#allocation17_spill] sm:$0xff]  ;;  %v23499_v29 = vld [vmem:[#allocation20_spill] sm:$0xff]  ;;  %v23500_v44 = vld [vmem:[#allocation23_spill] sm:$0xff] }
 0x459   :  { %v16837_v57 = vmul.f32 -1.442695, %v4710_v24  ;;  %v23501_v24 = vld [vmem:[#allocation27_spill] sm:$0xff] }
 0x45b   :  { %17231 = vpow2.f32 %v16837_v57  ;;  %v23502_v57 = vld [vmem:[#allocation30_spill] sm:$0xff] }
 0x464   :  { %v17230_v56 = vpop.eup %17229 }
 0x465   :  { %v4734_v38 = vmul.f32 %v17230_v56, %v17228_v39  ;;  %v23504_v39 = vld [vmem:[#allocation41_spill] sm:$0xff]  ;;  %v23507_v56 = vld [vmem:[#allocation52_spill] sm:$0xff] }
 0x467   :  { %v19213_v18 = vadd.f32 %v4734_v38, %v4733_v26  ;;  %v23508_v26 = vld [vmem:[#allocation55_spill] sm:$0xff] }
 0x468   :  { %v17232_v58 = vpop.eup %17231  ;;  %v23509_v38 = vld [vmem:[#allocation59_spill] sm:$0xff] }
 0x469   :  { %23495 = vst [vmem:[#allocation138_spill] sm:$0xff] %v19213_v18  ;;  %v4727_v6 = vadd.f32 1.0, %v17232_v58  ;;  %17233 = vtanh.f32 %v19213_v18  ;;  %v23510_v58 = vld [vmem:[#allocation62_spill] sm:$0xff]  ;;  %v23603_v18 = vld [vmem:[#allocation259_spill] sm:$0xff] }
 0x46b   :  { %17235 = vrcp.f32 %v4727_v6  ;;  %v23511_v6 = vld [vmem:[#allocation70_spill] sm:$0xff] }
 0x476   :  { %v17234_v11 = vpop.eup %17233 }
 0x478   :  { %v17236_v21 = vpop.eup %17235 }
 0x479   :  { %v4737_v13 = vmul.f32 %v17236_v21, %v17234_v11  ;;  %v23512_v11 = vld [vmem:[#allocation73_spill] sm:$0xff] }
 0x47a   :  { %v23513_v21 = vld [vmem:[#allocation77_spill] sm:$0xff] }
 0x47b   :  { %v4743_v22 = vrot.slane %v4737_v13, 4  ;;  %v23514_v13 = vld [vmem:[#allocation81_spill] sm:$0xff] }
 0x47d   :  { %v19216_v35 = vand.u32 4294901760, %v4743_v22 }
 0x47f   :  { %5079 = vmatmul.mubr.f32.vlgmr.msra.gmra.mxu1 %v19216_v35  ;;  %v19220_v33 = vsub.f32 %v4743_v22, %v19216_v35  ;;  %v23515_v22 = vld [vmem:[#allocation84_spill] sm:$0xff] }
 0x480   :  { %5225 = vmatpush1.msra.mxu1 %v23208_v61  ;;  %5318 = vmatprep.mubr.f32.mxu1 %v22957_v16 }
 0x481   :  { %5227 = vmatprep.subr.mxu1 %v23210_v27  ;;  %v19226_v34 = vand.u32 4294901760, %v19220_v33 }
 0x482   :  { %5229 = vmatpush1.msra.mxu1 %v23212_v20 }
 0x483   :  { %5231 = vmatprep.subr.mxu1 %v23214_v8  ;;  %v4845_v7 = vsub.f32 %v19220_v33, %v19226_v34 }
 0x484   :  { %5233 = vmatpush1.msra.mxu1 %v23216_v41 }
 0x485   :  { %5235 = vmatprep.subr.mxu1 %v23218_v2  ;;  %v19234_v52 = vand.u32 4294901760, %v4845_v7  ;;  %v23516_v7 = vld [vmem:[#allocation87_spill] sm:$0xff] }
 0x486   :  { %5237 = vmatpush1.msra.mxu1 %v23220_v14 }
 0x487   :  { %5239 = vmatprep.subr.mxu1 %v23222_v15  ;;  %4847 = vmatmul.mubr.f32.vlgmr.msra.gmra.mxu0 %v19234_v52 }
 0x488   :  { %5090 = vmatpush1.msra.mxu0 %v23496_v46  ;;  %5241 = vmatpush1.msra.mxu1 %v23224_v59  ;;  %v23601_v46 = vld [vmem:[#allocation258_spill] sm:$0xff] }
 0x489   :  { %5093 = vmatprep.subr.mxu0 %v23497_v60  ;;  %5243 = vmatprep.subr.mxu1 %v23226_v36  ;;  %v23599_v60 = vld [vmem:[#allocation257_spill] sm:$0xff] }
 0x48a   :  { %5096 = vmatpush1.msra.mxu0 %v23498_v53  ;;  %5245 = vmatpush1.msra.mxu1 %v23228_v3  ;;  %v23597_v53 = vld [vmem:[#allocation256_spill] sm:$0xff] }
 0x48b   :  { %5099 = vmatprep.subr.mxu0 %v23499_v29  ;;  %5247 = vmatprep.subr.mxu1 %v23230_v37  ;;  %v23595_v29 = vld [vmem:[#allocation255_spill] sm:$0xff] }
 0x48c   :  { %5102 = vmatpush1.msra.mxu0 %v23500_v44  ;;  %5249 = vmatpush1.msra.mxu1 %v23232_v10  ;;  %v23593_v44 = vld [vmem:[#allocation253_spill] sm:$0xff] }
 0x48d   :  { %5105 = vmatprep.subr.mxu0 %v23501_v24  ;;  %5251 = vmatprep.subr.mxu1 %v23234_v43  ;;  %v23591_v24 = vld [vmem:[#allocation251_spill] sm:$0xff] }
 0x48e   :  { %5108 = vmatpush1.msra.mxu0 %v23502_v57  ;;  %5253 = vmatpush1.msra.mxu1 %v23236_v62  ;;  %v23589_v57 = vld [vmem:[#allocation249_spill] sm:$0xff] }
 0x48f   :  { %5111 = vmatprep.subr.mxu0 %v23503_v55  ;;  %5255 = vmatprep.subr.mxu1 %v23238_v19  ;;  %v23587_v55 = vld [vmem:[#allocation247_spill] sm:$0xff] }
 0x490   :  { %5114 = vmatpush1.msra.mxu0 %v23504_v39  ;;  %5257 = vmatpush1.msra.mxu1 %v23240_v51  ;;  %v23585_v39 = vld [vmem:[#allocation244_spill] sm:$0xff] }
 0x491   :  { %5117 = vmatprep.subr.mxu0 %v23505_v4  ;;  %5259 = vmatprep.subr.mxu1 %v23242_v17  ;;  %v23583_v4 = vld [vmem:[#allocation241_spill] sm:$0xff] }
 0x492   :  { %5120 = vmatpush1.msra.mxu0 %v23506_v31  ;;  %5261 = vmatpush1.msra.mxu1 %v23244_v40  ;;  %v23562_v31 = vld [vmem:[#allocation186_spill] sm:$0xff] }
 0x493   :  { %5123 = vmatprep.subr.mxu0 %v23507_v56  ;;  %5263 = vmatprep.subr.mxu1 %v23246_v12  ;;  %v23560_v56 = vld [vmem:[#allocation183_spill] sm:$0xff] }
 0x494   :  { %5126 = vmatpush1.msra.mxu0 %v23508_v26  ;;  %5265 = vmatpush1.msra.mxu1 %v23248_v48  ;;  %v23559_v26 = vld [vmem:[#allocation122_spill] sm:$0xff] }
 0x495   :  { %5129 = vmatprep.subr.mxu0 %v23509_v38  ;;  %5267 = vmatprep.subr.mxu1 %v23481_v45  ;;  %v23557_v38 = vld [vmem:[#allocation118_spill] sm:$0xff] }
 0x496   :  { %5132 = vmatpush1.msra.mxu0 %v23510_v58  ;;  %5269 = vmatpush1.msra.mxu1 %v23483_v30  ;;  %v23555_v58 = vld [vmem:[#allocation115_spill] sm:$0xff] }
 0x497   :  { %5135 = vmatprep.subr.mxu0 %v23511_v6  ;;  %5271 = vmatprep.subr.mxu1 %v23485_v32  ;;  %v23517_v6 = vld [vmem:[#allocation91_spill] sm:$0xff] }
 0x498   :  { %5138 = vmatpush1.msra.mxu0 %v23512_v11  ;;  %5273 = vmatpush1.msra.mxu1 %v23486_v42  ;;  %v23518_v11 = vld [vmem:[#allocation94_spill] sm:$0xff] }
 0x499   :  { %5141 = vmatprep.subr.mxu0 %v23513_v21  ;;  %5275 = vmatprep.subr.mxu1 %v23487_v63  ;;  %v23519_v21 = vld [vmem:[#allocation102_spill] sm:$0xff] }
 0x49a   :  { %5144 = vmatpush1.msra.mxu0 %v23514_v13  ;;  %5277 = vmatpush1.msra.mxu1 %v23488_v5  ;;  %v23525_v13 = vld [vmem:[#allocation123_spill] sm:$0xff] }
 0x49b   :  { %5147 = vmatprep.subr.mxu0 %v23515_v22  ;;  %5279 = vmatprep.subr.mxu1 %v23489_v28  ;;  %v23520_v22 = vld [vmem:[#allocation105_spill] sm:$0xff] }
 0x49c   :  { %5150 = vmatpush1.msra.mxu0 %v23516_v7  ;;  %5281 = vmatpush1.msra.mxu1 %v23490_v50  ;;  %v23521_v7 = vld [vmem:[#allocation109_spill] sm:$0xff] }
 0x49d   :  { %5153 = vmatprep.subr.mxu0 %v23517_v6  ;;  %5283 = vmatprep.subr.mxu1 %v23491_v54  ;;  %v23522_v6 = vld [vmem:[#allocation113_spill] sm:$0xff] }
 0x49e   :  { %5156 = vmatpush1.msra.mxu0 %v23518_v11  ;;  %5285 = vmatpush1.msra.mxu1 %v23492_v49  ;;  %v23523_v11 = vld [vmem:[#allocation116_spill] sm:$0xff] }
 0x49f   :  { %5159 = vmatprep.subr.mxu0 %v23519_v21  ;;  %5322 = vmatmul.mubr.f32.vlgmr.msra.gmra.mxu1 %v19226_v34  ;;  %v23524_v21 = vld [vmem:[#allocation119_spill] sm:$0xff] }
 0x4a0   :  { %5497 = vmatprep.subr.mxu1 %v23206_v9  ;;  %5162 = vmatpush1.msra.mxu0 %v23520_v22  ;;  %v23526_v22 = vld [vmem:[#allocation126_spill] sm:$0xff] }
 0x4a1   :  { %5499 = vmatpush1.msra.mxu1 %v23208_v61  ;;  %5165 = vmatprep.subr.mxu0 %v23521_v7  ;;  %v23532_v7 = vld [vmem:[#allocation29_spill] sm:$0xff] }
 0x4a2   :  { %5501 = vmatprep.subr.mxu1 %v23210_v27  ;;  %5168 = vmatpush1.msra.mxu0 %v23522_v6  ;;  %v23527_v6 = vld [vmem:[#allocation13_spill] sm:$0xff] }
 0x4a3   :  { %5503 = vmatpush1.msra.mxu1 %v23212_v20  ;;  %5171 = vmatprep.subr.mxu0 %v23523_v11  ;;  %v23528_v11 = vld [vmem:[#allocation16_spill] sm:$0xff] }
 0x4a4   :  { %5505 = vmatprep.subr.mxu1 %v23214_v8  ;;  %5174 = vmatpush1.msra.mxu0 %v23524_v21  ;;  %v23529_v21 = vld [vmem:[#allocation19_spill] sm:$0xff] }
 0x4a5   :  { %5507 = vmatpush1.msra.mxu1 %v23216_v41  ;;  %5177 = vmatprep.subr.mxu0 %v23525_v13  ;;  %v23530_v13 = vld [vmem:[#allocation22_spill] sm:$0xff] }
 0x4a6   :  { %5509 = vmatprep.subr.mxu1 %v23218_v2  ;;  %5180 = vmatpush1.msra.mxu0 %v23526_v22  ;;  %v23531_v22 = vld [vmem:[#allocation26_spill] sm:$0xff] }
 0x4a7   :  { %5213 = vmatprep.mubr.f32.mxu0 %v22957_v16  ;;  %5511 = vmatpush1.msra.mxu1 %v23220_v14 }
 0x4a8   :  { %5216 = vmatmul.mubr.f32.vlgmr.msra.gmra.mxu0 %v19220_v33  ;;  %5331 = vmatprep.subr.mxu0 %v23527_v6  ;;  %v23533_v6 = vld [vmem:[#allocation32_spill] sm:$0xff] }
 0x4a9   :  { %5513 = vmatprep.subr.mxu1 %v23222_v15  ;;  %5335 = vmatpush1.msra.mxu0 %v23528_v11  ;;  %v23534_v11 = vld [vmem:[#allocation35_spill] sm:$0xff] }
 0x4aa   :  { %5515 = vmatpush1.msra.mxu1 %v23224_v59  ;;  %5339 = vmatprep.subr.mxu0 %v23529_v21  ;;  %v23535_v21 = vld [vmem:[#allocation44_spill] sm:$0xff] }
 0x4ab   :  { %5517 = vmatprep.subr.mxu1 %v23226_v36  ;;  %5343 = vmatpush1.msra.mxu0 %v23530_v13  ;;  %v23536_v13 = vld [vmem:[#allocation48_spill] sm:$0xff] }
 0x4ac   :  { %5519 = vmatpush1.msra.mxu1 %v23228_v3  ;;  %5347 = vmatprep.subr.mxu0 %v23531_v22  ;;  %v23537_v22 = vld [vmem:[#allocation51_spill] sm:$0xff] }
 0x4ad   :  { %5521 = vmatprep.subr.mxu1 %v23230_v37  ;;  %5351 = vmatpush1.msra.mxu0 %v23532_v7  ;;  %v23538_v7 = vld [vmem:[#allocation54_spill] sm:$0xff] }
 0x4ae   :  { %5523 = vmatpush1.msra.mxu1 %v23232_v10  ;;  %5355 = vmatprep.subr.mxu0 %v23533_v6  ;;  %v23539_v6 = vld [vmem:[#allocation58_spill] sm:$0xff] }
 0x4af   :  { %5525 = vmatprep.subr.mxu1 %v23234_v43  ;;  %5359 = vmatpush1.msra.mxu0 %v23534_v11  ;;  %v23540_v11 = vld [vmem:[#allocation61_spill] sm:$0xff] }
 0x4b0   :  { %5527 = vmatpush1.msra.mxu1 %v23236_v62  ;;  %5363 = vmatprep.subr.mxu0 %v23535_v21  ;;  %v23541_v21 = vld [vmem:[#allocation64_spill] sm:$0xff] }
 0x4b1   :  { %5529 = vmatprep.subr.mxu1 %v23238_v19  ;;  %5367 = vmatpush1.msra.mxu0 %v23536_v13  ;;  %v23542_v13 = vld [vmem:[#allocation67_spill] sm:$0xff] }
 0x4b2   :  { %5531 = vmatpush1.msra.mxu1 %v23240_v51  ;;  %5371 = vmatprep.subr.mxu0 %v23537_v22  ;;  %v23543_v22 = vld [vmem:[#allocation76_spill] sm:$0xff] }
 0x4b3   :  { %5533 = vmatprep.subr.mxu1 %v23242_v17  ;;  %5375 = vmatpush1.msra.mxu0 %v23538_v7  ;;  %v23544_v7 = vld [vmem:[#allocation80_spill] sm:$0xff] }
 0x4b4   :  { %5535 = vmatpush1.msra.mxu1 %v23244_v40  ;;  %5379 = vmatprep.subr.mxu0 %v23539_v6  ;;  %v23545_v6 = vld [vmem:[#allocation83_spill] sm:$0xff] }
 0x4b5   :  { %5537 = vmatprep.subr.mxu1 %v23246_v12  ;;  %5383 = vmatpush1.msra.mxu0 %v23540_v11  ;;  %v23546_v11 = vld [vmem:[#allocation86_spill] sm:$0xff] }
 0x4b6   :  { %5539 = vmatpush1.msra.mxu1 %v23248_v48  ;;  %5387 = vmatprep.subr.mxu0 %v23541_v21  ;;  %v23547_v21 = vld [vmem:[#allocation90_spill] sm:$0xff] }
 0x4b7   :  { %5541 = vmatprep.subr.mxu1 %v23481_v45  ;;  %5391 = vmatpush1.msra.mxu0 %v23542_v13  ;;  %v23548_v13 = vld [vmem:[#allocation93_spill] sm:$0xff]  ;;  %v23622_v45 = vld [vmem:[#allocation148_spill] sm:$0xff] }
 0x4b8   :  { %5543 = vmatpush1.msra.mxu1 %v23483_v30  ;;  %5395 = vmatprep.subr.mxu0 %v23543_v22  ;;  %v23549_v22 = vld [vmem:[#allocation96_spill] sm:$0xff]  ;;  %v23621_v30 = vld [vmem:[#allocation145_spill] sm:$0xff] }
 0x4b9   :  { %5545 = vmatprep.subr.mxu1 %v23485_v32  ;;  %5399 = vmatpush1.msra.mxu0 %v23544_v7  ;;  %v23550_v7 = vld [vmem:[#allocation99_spill] sm:$0xff] }
 0x4ba   :  { %5547 = vmatpush1.msra.mxu1 %v23486_v42  ;;  %5403 = vmatprep.subr.mxu0 %v23545_v6  ;;  %v23553_v6 = vld [vmem:[#allocation112_spill] sm:$0xff]  ;;  %v23619_v42 = vld [vmem:[#allocation141_spill] sm:$0xff]  ;;  %v23620_v32 = vld [vmem:[#allocation143_spill] sm:$0xff] }
 0x4bb   :  { %5549 = vmatprep.subr.mxu1 %v23487_v63  ;;  %5407 = vmatpush1.msra.mxu0 %v23546_v11  ;;  %v23551_v11 = vld [vmem:[#allocation108_spill] sm:$0xff] }
 0x4bc   :  { %5551 = vmatpush1.msra.mxu1 %v23488_v5  ;;  %5411 = vmatprep.subr.mxu0 %v23547_v21  ;;  %v23552_v21 = vld [vmem:[#allocation171_spill] sm:$0xff]  ;;  %v23617_v5 = vld [vmem:[#allocation234_spill] sm:$0xff]  ;;  %v23618_v63 = vld [vmem:[#allocation140_spill] sm:$0xff] }
 0x4bd   :  { %5553 = vmatprep.subr.mxu1 %v23489_v28  ;;  %5415 = vmatpush1.msra.mxu0 %v23548_v13  ;;  %v23554_v13 = vld [vmem:[#allocation174_spill] sm:$0xff]  ;;  %v23616_v28 = vld [vmem:[#allocation231_spill] sm:$0xff] }
 0x4be   :  { %5555 = vmatpush1.msra.mxu1 %v23490_v50  ;;  %5419 = vmatprep.subr.mxu0 %v23549_v22  ;;  %v23556_v22 = vld [vmem:[#allocation177_spill] sm:$0xff]  ;;  %v23609_v50 = vld [vmem:[#allocation262_spill] sm:$0xff] }
 0x4bf   :  { %5557 = vmatprep.subr.mxu1 %v23491_v54  ;;  %5423 = vmatpush1.msra.mxu0 %v23550_v7  ;;  %v23558_v7 = vld [vmem:[#allocation180_spill] sm:$0xff]  ;;  %v23607_v54 = vld [vmem:[#allocation261_spill] sm:$0xff] }
 0x4c0   :  { %5559 = vmatpush1.msra.mxu1 %v23492_v49  ;;  %5592 = vmatprep.mubr.f32.mxu1 %v22957_v16  ;;  %v23605_v49 = vld [vmem:[#allocation260_spill] sm:$0xff] }
 0x4c1   :  { %5427 = vmatprep.subr.mxu0 %v23551_v11  ;;  %5594 = vmatmul.mubr.f32.vlgmr.msra.gmra.mxu1 %v19216_v35  ;;  %v23561_v11 = vld [vmem:[#allocation125_spill] sm:$0xff] }
 0x4c2   :  { %5713 = vmatprep.subr.mxu1 %v23552_v21  ;;  %5431 = vmatpush1.msra.mxu0 %v23553_v6  ;;  %v23563_v21 = vld [vmem:[#allocation128_spill] sm:$0xff]  ;;  %v23564_v6 = vld [vmem:[#allocation189_spill] sm:$0xff] }
 0x4c3   :  { %5719 = vmatpush1.msra.mxu1 %v23554_v13  ;;  %5435 = vmatprep.subr.mxu0 %v23555_v58  ;;  %v23565_v13 = vld [vmem:[#allocation130_spill] sm:$0xff] }
 0x4c4   :  { %5725 = vmatprep.subr.mxu1 %v23556_v22  ;;  %5439 = vmatpush1.msra.mxu0 %v23557_v38  ;;  %v23566_v22 = vld [vmem:[#allocation192_spill] sm:$0xff]  ;;  %v23579_v38 = vld [vmem:[#allocation235_spill] sm:$0xff]  ;;  %v23581_v58 = vld [vmem:[#allocation238_spill] sm:$0xff] }
 0x4c5   :  { %5731 = vmatpush1.msra.mxu1 %v23558_v7  ;;  %5443 = vmatprep.subr.mxu0 %v23559_v26  ;;  %v23567_v26 = vld [vmem:[#allocation195_spill] sm:$0xff] }
 0x4c6   :  { %5737 = vmatprep.subr.mxu1 %v23560_v56  ;;  %5447 = vmatpush1.msra.mxu0 %v23561_v11  ;;  %v23568_v11 = vld [vmem:[#allocation198_spill] sm:$0xff]  ;;  %v23575_v56 = vld [vmem:[#allocation215_spill] sm:$0xff] }
 0x4c7   :  { %5743 = vmatpush1.msra.mxu1 %v23562_v31  ;;  %5451 = vmatprep.subr.mxu0 %v23563_v21  ;;  %v23569_v21 = vld [vmem:[#allocation201_spill] sm:$0xff]  ;;  %v23573_v31 = vld [vmem:[#allocation211_spill] sm:$0xff] }
 0x4c8   :  { %5749 = vmatprep.subr.mxu1 %v23564_v6  ;;  %5455 = vmatpush1.msra.mxu0 %v23565_v13  ;;  %v23570_v13 = vld [vmem:[#allocation204_spill] sm:$0xff]  ;;  %v23572_v6 = vld [vmem:[#allocation142_spill] sm:$0xff]  ;;  %v23577_v7 = vld [vmem:[#allocation219_spill] sm:$0xff] }
 0x4c9   :  { %5488 = vmatprep.mubr.f32.mxu0 %v22957_v16  ;;  %5755 = vmatpush1.msra.mxu1 %v23566_v22  ;;  %v23571_v22 = vld [vmem:[#allocation207_spill] sm:$0xff] }
 0x4ca   :  { %5490 = vmatmul.mubr.f32.vlgmr.msra.gmra.mxu0 %v19216_v35  ;;  %5601 = vmatprep.subr.mxu0 %v18079_v25 }
 0x4cb   :  { %5761 = vmatprep.subr.mxu1 %v23567_v26  ;;  %5603 = vmatpush1.msra.mxu0 %v18083_v0  ;;  %v23574_v26 = vld [vmem:[#allocation144_spill] sm:$0xff] }
 0x4cc   :  { %5767 = vmatpush1.msra.mxu1 %v23568_v11  ;;  %5605 = vmatprep.subr.mxu0 %v18087_v23  ;;  %v23576_v11 = vld [vmem:[#allocation146_spill] sm:$0xff] }
 0x4cd   :  { %5773 = vmatprep.subr.mxu1 %v23569_v21  ;;  %5607 = vmatpush1.msra.mxu0 %v18091_v1  ;;  %v23578_v21 = vld [vmem:[#allocation149_spill] sm:$0xff] }
 0x4ce   :  { %5779 = vmatpush1.msra.mxu1 %v23570_v13  ;;  %5609 = vmatprep.subr.mxu0 %v18098_v47  ;;  %v23580_v13 = vld [vmem:[#allocation152_spill] sm:$0xff] }
 0x4cf   :  { %5785 = vmatprep.subr.mxu1 %v23571_v22  ;;  %5611 = vmatpush1.msra.mxu0 %v23572_v6  ;;  %v23582_v22 = vld [vmem:[#allocation155_spill] sm:$0xff] }
 0x4d0   :  { %5791 = vmatpush1.msra.mxu1 %v23573_v31  ;;  %5613 = vmatprep.subr.mxu0 %v23574_v26  ;;  %v23584_v31 = vld [vmem:[#allocation158_spill] sm:$0xff] }
 0x4d1   :  { %5797 = vmatprep.subr.mxu1 %v23575_v56  ;;  %5615 = vmatpush1.msra.mxu0 %v23576_v11  ;;  %v23586_v56 = vld [vmem:[#allocation161_spill] sm:$0xff] }
 0x4d2   :  { %5803 = vmatpush1.msra.mxu1 %v23577_v7  ;;  %5617 = vmatprep.subr.mxu0 %v23578_v21  ;;  %v23588_v7 = vld [vmem:[#allocation164_spill] sm:$0xff] }
 0x4d3   :  { %5809 = vmatprep.subr.mxu1 %v23579_v38  ;;  %5619 = vmatpush1.msra.mxu0 %v23580_v13  ;;  %v23590_v38 = vld [vmem:[#allocation167_spill] sm:$0xff] }
 0x4d4   :  { %5815 = vmatpush1.msra.mxu1 %v23581_v58  ;;  %5621 = vmatprep.subr.mxu0 %v23582_v22  ;;  %v23592_v58 = vld [vmem:[#allocation170_spill] sm:$0xff] }
 0x4d5   :  { %5821 = vmatprep.subr.mxu1 %v23583_v4  ;;  %5623 = vmatpush1.msra.mxu0 %v23584_v31  ;;  %v23594_v4 = vld [vmem:[#allocation185_spill] sm:$0xff] }
 0x4d6   :  { %5827 = vmatpush1.msra.mxu1 %v23585_v39  ;;  %5625 = vmatprep.subr.mxu0 %v23586_v56  ;;  %v23596_v39 = vld [vmem:[#allocation188_spill] sm:$0xff] }
 0x4d7   :  { %5833 = vmatprep.subr.mxu1 %v23587_v55  ;;  %5627 = vmatpush1.msra.mxu0 %v23588_v7  ;;  %v23598_v55 = vld [vmem:[#allocation191_spill] sm:$0xff] }
 0x4d8   :  { %5839 = vmatpush1.msra.mxu1 %v23589_v57  ;;  %5629 = vmatprep.subr.mxu0 %v23590_v38  ;;  %v23600_v57 = vld [vmem:[#allocation194_spill] sm:$0xff] }
 0x4d9   :  { %5845 = vmatprep.subr.mxu1 %v23591_v24  ;;  %5631 = vmatpush1.msra.mxu0 %v23592_v58  ;;  %v23602_v24 = vld [vmem:[#allocation197_spill] sm:$0xff] }
 0x4da   :  { %5851 = vmatpush1.msra.mxu1 %v23593_v44  ;;  %5633 = vmatprep.subr.mxu0 %v23594_v4  ;;  %v23604_v44 = vld [vmem:[#allocation200_spill] sm:$0xff] }
 0x4db   :  { %5857 = vmatprep.subr.mxu1 %v23595_v29  ;;  %5635 = vmatpush1.msra.mxu0 %v23596_v39  ;;  %v23606_v29 = vld [vmem:[#allocation203_spill] sm:$0xff] }
 0x4dc   :  { %5863 = vmatpush1.msra.mxu1 %v23597_v53  ;;  %5637 = vmatprep.subr.mxu0 %v23598_v55  ;;  %v23608_v53 = vld [vmem:[#allocation206_spill] sm:$0xff] }
 0x4dd   :  { %5869 = vmatprep.subr.mxu1 %v23599_v60  ;;  %5639 = vmatpush1.msra.mxu0 %v23600_v57  ;;  %v23610_v60 = vld [vmem:[#allocation210_spill] sm:$0xff] }
 0x4de   :  { %5875 = vmatpush1.msra.mxu1 %v23601_v46  ;;  %5641 = vmatprep.subr.mxu0 %v23602_v24  ;;  %v23615_v46 = vld [vmem:[#allocation228_spill] sm:$0xff] }
 0x4df   :  { %5881 = vmatprep.subr.mxu1 %v23603_v18  ;;  %5643 = vmatpush1.msra.mxu0 %v23604_v44  ;;  %v23611_v18 = vld [vmem:[#allocation214_spill] sm:$0xff] }
 0x4e0   :  { %5887 = vmatpush1.msra.mxu1 %v23605_v49  ;;  %5645 = vmatprep.subr.mxu0 %v23606_v29  ;;  %v23612_v49 = vld [vmem:[#allocation218_spill] sm:$0xff] }
 0x4e1   :  { %5893 = vmatprep.subr.mxu1 %v23607_v54  ;;  %5647 = vmatpush1.msra.mxu0 %v23608_v53  ;;  %v23613_v54 = vld [vmem:[#allocation222_spill] sm:$0xff] }
 0x4e2   :  { %5899 = vmatpush1.msra.mxu1 %v23609_v50  ;;  %5932 = vmatprep.mubr.f32.mxu1 %v22957_v16  ;;  %v23614_v50 = vld [vmem:[#allocation225_spill] sm:$0xff] }
 0x4e3   :  { %5649 = vmatprep.subr.mxu0 %v23610_v60  ;;  %5934 = vmatmul.mubr.f32.vlgmr.msra.gmra.mxu1 %v19216_v35 }
 0x4e4   :  { %6078 = vmatprep.subr.mxu1 %v18079_v25  ;;  %5651 = vmatpush1.msra.mxu0 %v23611_v18 }
 0x4e5   :  { %6080 = vmatpush1.msra.mxu1 %v18083_v0  ;;  %5653 = vmatprep.subr.mxu0 %v23612_v49 }
 0x4e6   :  { %6082 = vmatprep.subr.mxu1 %v18087_v23  ;;  %5655 = vmatpush1.msra.mxu0 %v23613_v54 }
 0x4e7   :  { %6084 = vmatpush1.msra.mxu1 %v18091_v1  ;;  %5657 = vmatprep.subr.mxu0 %v23614_v50 }
 0x4e8   :  { %6086 = vmatprep.subr.mxu1 %v18098_v47  ;;  %5659 = vmatpush1.msra.mxu0 %v23615_v46 }
 0x4e9   :  { %6088 = vmatpush1.msra.mxu1 %v23572_v6  ;;  %5661 = vmatprep.subr.mxu0 %v23616_v28 }
 0x4ea   :  { %6090 = vmatprep.subr.mxu1 %v23574_v26  ;;  %5663 = vmatpush1.msra.mxu0 %v23617_v5 }
 0x4eb   :  { %5696 = vmatprep.mubr.f32.mxu0 %v22957_v16  ;;  %6092 = vmatpush1.msra.mxu1 %v23576_v11 }
 0x4ec   :  { %5702 = vmatmul.mubr.f32.vlgmr.msra.gmra.mxu0 %v19234_v52  ;;  %5942 = vmatprep.subr.mxu0 %v23618_v63  ;;  %v23623_v52 = vld [vmem:[#allocation151_spill] sm:$0xff]  ;;  %v23624_v63 = vld [vmem:[#allocation154_spill] sm:$0xff] }
 0x4ed   :  { %6094 = vmatprep.subr.mxu1 %v23578_v21  ;;  %5945 = vmatpush1.msra.mxu0 %v23619_v42  ;;  %v23625_v42 = vld [vmem:[#allocation157_spill] sm:$0xff] }
 0x4ee   :  { %6096 = vmatpush1.msra.mxu1 %v23580_v13  ;;  %5948 = vmatprep.subr.mxu0 %v23620_v32  ;;  %v23626_v32 = vld [vmem:[#allocation160_spill] sm:$0xff] }
 0x4ef   :  { %6098 = vmatprep.subr.mxu1 %v23582_v22  ;;  %5951 = vmatpush1.msra.mxu0 %v23621_v30  ;;  %v23627_v30 = vld [vmem:[#allocation163_spill] sm:$0xff] }
 0x4f0   :  { %6100 = vmatpush1.msra.mxu1 %v23584_v31  ;;  %5954 = vmatprep.subr.mxu0 %v23622_v45  ;;  %v23628_v45 = vld [vmem:[#allocation166_spill] sm:$0xff] }
 0x4f1   :  { %6102 = vmatprep.subr.mxu1 %v23586_v56  ;;  %5957 = vmatpush1.msra.mxu0 %v23623_v52  ;;  %v23629_v52 = vld [vmem:[#allocation169_spill] sm:$0xff] }
 0x4f2   :  { %6104 = vmatpush1.msra.mxu1 %v23588_v7  ;;  %5960 = vmatprep.subr.mxu0 %v23624_v63  ;;  %v23630_v63 = vld [vmem:[#allocation173_spill] sm:$0xff] }
 0x4f3   :  { %6106 = vmatprep.subr.mxu1 %v23590_v38  ;;  %5963 = vmatpush1.msra.mxu0 %v23625_v42  ;;  %v23631_v42 = vld [vmem:[#allocation176_spill] sm:$0xff] }
 0x4f4   :  { %6108 = vmatpush1.msra.mxu1 %v23592_v58  ;;  %5966 = vmatprep.subr.mxu0 %v23626_v32  ;;  %v23632_v32 = vld [vmem:[#allocation179_spill] sm:$0xff] }
 0x4f5   :  { %6110 = vmatprep.subr.mxu1 %v23594_v4  ;;  %5969 = vmatpush1.msra.mxu0 %v23627_v30  ;;  %v23633_v30 = vld [vmem:[#allocation182_spill] sm:$0xff] }
 0x4f6   :  { %6112 = vmatpush1.msra.mxu1 %v23596_v39  ;;  %5972 = vmatprep.subr.mxu0 %v23628_v45  ;;  %v23634_v45 = vld [vmem:[#allocation196_spill] sm:$0xff] }
 0x4f7   :  { %6114 = vmatprep.subr.mxu1 %v23598_v55  ;;  %5975 = vmatpush1.msra.mxu0 %v23629_v52  ;;  %v23635_v52 = vld [vmem:[#allocation199_spill] sm:$0xff] }
 0x4f8   :  { %6116 = vmatpush1.msra.mxu1 %v23600_v57  ;;  %5978 = vmatprep.subr.mxu0 %v23630_v63  ;;  %v23636_v63 = vld [vmem:[#allocation202_spill] sm:$0xff] }
 0x4f9   :  { %6118 = vmatprep.subr.mxu1 %v23602_v24  ;;  %5981 = vmatpush1.msra.mxu0 %v23631_v42  ;;  %v23637_v42 = vld [vmem:[#allocation205_spill] sm:$0xff] }
 0x4fa   :  { %6120 = vmatpush1.msra.mxu1 %v23604_v44  ;;  %5984 = vmatprep.subr.mxu0 %v23632_v32  ;;  %v23638_v32 = vld [vmem:[#allocation209_spill] sm:$0xff] }
 0x4fb   :  { %6122 = vmatprep.subr.mxu1 %v23606_v29  ;;  %5987 = vmatpush1.msra.mxu0 %v23633_v30  ;;  %v23639_v30 = vld [vmem:[#allocation213_spill] sm:$0xff] }
 0x4fc   :  { %6124 = vmatpush1.msra.mxu1 %v23608_v53  ;;  %5990 = vmatprep.subr.mxu0 %v23634_v45  ;;  %v23640_v45 = vld [vmem:[#allocation217_spill] sm:$0xff] }
 0x4fd   :  { %6126 = vmatprep.subr.mxu1 %v23610_v60  ;;  %5993 = vmatpush1.msra.mxu0 %v23635_v52  ;;  %v23641_v52 = vld [vmem:[#allocation221_spill] sm:$0xff] }
 0x4fe   :  { %6128 = vmatpush1.msra.mxu1 %v23611_v18  ;;  %5996 = vmatprep.subr.mxu0 %v23636_v63  ;;  %v23681_v63 = vld [vmem:[#allocation31_spill] sm:$0xff] }
 0x4ff   :  { %6130 = vmatprep.subr.mxu1 %v23612_v49  ;;  %5999 = vmatpush1.msra.mxu0 %v23637_v42  ;;  %v23642_v42 = vld [vmem:[#allocation224_spill] sm:$0xff] }
 0x500   :  { %6132 = vmatpush1.msra.mxu1 %v23613_v54  ;;  %6002 = vmatprep.subr.mxu0 %v23638_v32  ;;  %v23643_v32 = vld [vmem:[#allocation227_spill] sm:$0xff] }
 0x501   :  { %6134 = vmatprep.subr.mxu1 %v23614_v50  ;;  %6005 = vmatpush1.msra.mxu0 %v23639_v30  ;;  %v23644_v30 = vld [vmem:[#allocation230_spill] sm:$0xff] }
 0x502   :  { %6136 = vmatpush1.msra.mxu1 %v23615_v46  ;;  %6008 = vmatprep.subr.mxu0 %v23640_v45  ;;  %v23645_v45 = vld [vmem:[#allocation233_spill] sm:$0xff] }
 0x503   :  { %6138 = vmatprep.subr.mxu1 %v23616_v28  ;;  %6011 = vmatpush1.msra.mxu0 %v23641_v52  ;;  %v23646_v52 = vld [vmem:[#allocation237_spill] sm:$0xff] }
 0x504   :  { %6140 = vmatpush1.msra.mxu1 %v23617_v5  ;;  %6173 = vmatprep.mubr.f32.mxu1 %v22957_v16 }
 0x505   :  { %6014 = vmatprep.subr.mxu0 %v23642_v42  ;;  %6177 = vmatmul.mubr.f32.vlgmr.msra.gmra.mxu1 %v19226_v34  ;;  %v23647_v42 = vld [vmem:[#allocation240_spill] sm:$0xff]  ;;  %v23648_v34 = vld [vmem:[#allocation243_spill] sm:$0xff] }
 0x506   :  { %6352 = vmatprep.subr.mxu1 %v18079_v25  ;;  %6017 = vmatpush1.msra.mxu0 %v23643_v32  ;;  %v23649_v32 = vld [vmem:[#allocation246_spill] sm:$0xff] }
 0x507   :  { %6354 = vmatpush1.msra.mxu1 %v18083_v0  ;;  %6020 = vmatprep.subr.mxu0 %v23644_v30  ;;  %v23679_v30 = vld [vmem:[#allocation28_spill] sm:$0xff] }
 0x508   :  { %6356 = vmatprep.subr.mxu1 %v18087_v23  ;;  %6023 = vmatpush1.msra.mxu0 %v23645_v45  ;;  %v23650_v45 = vld [vmem:[#allocation147_spill] sm:$0xff] }
 0x509   :  { %6358 = vmatpush1.msra.mxu1 %v18091_v1  ;;  %6026 = vmatprep.subr.mxu0 %v23646_v52  ;;  %v23651_v52 = vld [vmem:[#allocation150_spill] sm:$0xff] }
 0x50a   :  { %6360 = vmatprep.subr.mxu1 %v18098_v47  ;;  %6029 = vmatpush1.msra.mxu0 %v23647_v42  ;;  %v23652_v42 = vld [vmem:[#allocation153_spill] sm:$0xff] }
 0x50b   :  { %6362 = vmatpush1.msra.mxu1 %v23572_v6  ;;  %6032 = vmatprep.subr.mxu0 %v23648_v34  ;;  %v23653_v34 = vld [vmem:[#allocation156_spill] sm:$0xff]  ;;  %v4738_v6 = vld [vmem:[#allocation2 + $0x30] sm:$0xc0] }
 0x50c   :  { %6364 = vmatprep.subr.mxu1 %v23574_v26  ;;  %6035 = vmatpush1.msra.mxu0 %v23649_v32  ;;  %v23654_v32 = vld [vmem:[#allocation159_spill] sm:$0xff] }
 0x50d   :  { %6068 = vmatprep.mubr.f32.mxu0 %v22957_v16  ;;  %6366 = vmatpush1.msra.mxu1 %v23576_v11  ;;  %v4739_v26 = vld [vmem:[#allocation2] sm:$0xc0] }
 0x50e   :  { %6071 = vmatmul.mubr.f32.vlgmr.msra.gmra.mxu0 %v19220_v33  ;;  %6186 = vmatprep.subr.mxu0 %v23650_v45  ;;  %v23655_v33 = vld [vmem:[#allocation162_spill] sm:$0xff]  ;;  %v23656_v45 = vld [vmem:[#allocation165_spill] sm:$0xff] }
 0x50f   :  { %6368 = vmatprep.subr.mxu1 %v23578_v21  ;;  %6190 = vmatpush1.msra.mxu0 %v23651_v52  ;;  %v23657_v52 = vld [vmem:[#allocation168_spill] sm:$0xff] }
 0x510   :  { %6370 = vmatpush1.msra.mxu1 %v23580_v13  ;;  %6194 = vmatprep.subr.mxu0 %v23652_v42  ;;  %v23658_v42 = vld [vmem:[#allocation172_spill] sm:$0xff] }
 0x511   :  { %6372 = vmatprep.subr.mxu1 %v23582_v22  ;;  %6198 = vmatpush1.msra.mxu0 %v23653_v34  ;;  %v23659_v34 = vld [vmem:[#allocation175_spill] sm:$0xff] }
 0x512   :  { %6374 = vmatpush1.msra.mxu1 %v23584_v31  ;;  %6202 = vmatprep.subr.mxu0 %v23654_v32  ;;  %v23660_v32 = vld [vmem:[#allocation178_spill] sm:$0xff] }
 0x513   :  { %6376 = vmatprep.subr.mxu1 %v23586_v56  ;;  %6206 = vmatpush1.msra.mxu0 %v23655_v33  ;;  %v23661_v33 = vld [vmem:[#allocation181_spill] sm:$0xff] }
 0x514   :  { %6378 = vmatpush1.msra.mxu1 %v23588_v7  ;;  %6210 = vmatprep.subr.mxu0 %v23656_v45  ;;  %v23662_v45 = vld [vmem:[#allocation184_spill] sm:$0xff] }
 0x515   :  { %6380 = vmatprep.subr.mxu1 %v23590_v38  ;;  %6214 = vmatpush1.msra.mxu0 %v23657_v52  ;;  %v23663_v52 = vld [vmem:[#allocation187_spill] sm:$0xff] }
 0x516   :  { %6382 = vmatpush1.msra.mxu1 %v23592_v58  ;;  %6218 = vmatprep.subr.mxu0 %v23658_v42  ;;  %v23664_v42 = vld [vmem:[#allocation190_spill] sm:$0xff] }
 0x517   :  { %6384 = vmatprep.subr.mxu1 %v23594_v4  ;;  %6222 = vmatpush1.msra.mxu0 %v23659_v34  ;;  %v23665_v34 = vld [vmem:[#allocation193_spill] sm:$0xff] }
 0x518   :  { %6386 = vmatpush1.msra.mxu1 %v23596_v39  ;;  %6226 = vmatprep.subr.mxu0 %v23660_v32  ;;  %v23666_v32 = vld [vmem:[#allocation208_spill] sm:$0xff] }
 0x519   :  { %6388 = vmatprep.subr.mxu1 %v23598_v55  ;;  %6230 = vmatpush1.msra.mxu0 %v23661_v33  ;;  %v23667_v33 = vld [vmem:[#allocation212_spill] sm:$0xff] }
 0x51a   :  { %6390 = vmatpush1.msra.mxu1 %v23600_v57  ;;  %6234 = vmatprep.subr.mxu0 %v23662_v45  ;;  %v23668_v45 = vld [vmem:[#allocation216_spill] sm:$0xff] }
 0x51b   :  { %6392 = vmatprep.subr.mxu1 %v23602_v24  ;;  %6238 = vmatpush1.msra.mxu0 %v23663_v52  ;;  %v23669_v52 = vld [vmem:[#allocation220_spill] sm:$0xff] }
 0x51c   :  { %6394 = vmatpush1.msra.mxu1 %v23604_v44  ;;  %6242 = vmatprep.subr.mxu0 %v23664_v42  ;;  %v23670_v42 = vld [vmem:[#allocation223_spill] sm:$0xff] }
 0x51d   :  { %6396 = vmatprep.subr.mxu1 %v23606_v29  ;;  %6246 = vmatpush1.msra.mxu0 %v23665_v34  ;;  %v23671_v34 = vld [vmem:[#allocation226_spill] sm:$0xff] }
 0x51e   :  { %6398 = vmatpush1.msra.mxu1 %v23608_v53  ;;  %6250 = vmatprep.subr.mxu0 %v23666_v32  ;;  %v23672_v32 = vld [vmem:[#allocation229_spill] sm:$0xff] }
 0x51f   :  { %6400 = vmatprep.subr.mxu1 %v23610_v60  ;;  %6254 = vmatpush1.msra.mxu0 %v23667_v33  ;;  %v23673_v33 = vld [vmem:[#allocation232_spill] sm:$0xff] }
 0x520   :  { %6402 = vmatpush1.msra.mxu1 %v23611_v18  ;;  %6258 = vmatprep.subr.mxu0 %v23668_v45  ;;  %v23677_v45 = vld [vmem:[#allocation25_spill] sm:$0xff] }
 0x521   :  { %6404 = vmatprep.subr.mxu1 %v23612_v49  ;;  %6262 = vmatpush1.msra.mxu0 %v23669_v52  ;;  %v23674_v52 = vld [vmem:[#allocation236_spill] sm:$0xff] }
 0x522   :  { %6406 = vmatpush1.msra.mxu1 %v23613_v54  ;;  %6266 = vmatprep.subr.mxu0 %v23670_v42  ;;  %v23675_v42 = vld [vmem:[#allocation239_spill] sm:$0xff] }
 0x523   :  { %6408 = vmatprep.subr.mxu1 %v23614_v50  ;;  %6270 = vmatpush1.msra.mxu0 %v23671_v34  ;;  %v23676_v34 = vld [vmem:[#allocation242_spill] sm:$0xff] }
 0x524   :  { %6410 = vmatpush1.msra.mxu1 %v23615_v46  ;;  %6274 = vmatprep.subr.mxu0 %v23672_v32  ;;  %v23678_v32 = vld [vmem:[#allocation245_spill] sm:$0xff]  ;;  %v23686_v46 = vld [vmem:[#allocation254_spill] sm:$0xff] }
 0x525   :  { %6412 = vmatprep.subr.mxu1 %v23616_v28  ;;  %6278 = vmatpush1.msra.mxu0 %v23673_v33  ;;  %v23680_v33 = vld [vmem:[#allocation248_spill] sm:$0xff] }
 0x526   :  { %6414 = vmatpush1.msra.mxu1 %v23617_v5  ;;  %6447 = vmatprep.mubr.f32.mxu1 %v22957_v16  ;;  %v23682_v5 = vld [vmem:[#allocation250_spill] sm:$0xff]  ;;  %v23684_v28 = vld [vmem:[#allocation252_spill] sm:$0xff] }
 0x527   :  { %6282 = vmatprep.subr.mxu0 %v23674_v52  ;;  %6449 = vmatmul.mubr.f32.vlgmr.msra.gmra.mxu1 %v19216_v35  ;;  %v23683_v52 = vld [vmem:[#allocation34_spill] sm:$0xff] }
 0x528   :  { %6286 = vmatpush1.msra.mxu0 %v23675_v42  ;;  %6343 = vmatprep.mubr.f32.mxu0 %v22957_v16  ;;  %v23685_v42 = vld [vmem:[#allocation37_spill] sm:$0xff] }
 0x529   :  { %6290 = vmatprep.subr.mxu0 %v23676_v34  ;;  %6618 = vmatprep.subr.mxu1 %v23677_v45  ;;  %v23687_v34 = vld [vmem:[#allocation40_spill] sm:$0xff] }
 0x52a   :  { %6294 = vmatpush1.msra.mxu0 %v23678_v32  ;;  %6624 = vmatpush1.msra.mxu1 %v23679_v30  ;;  %v23688_v32 = vld [vmem:[#allocation43_spill] sm:$0xff] }
 0x52b   :  { %6298 = vmatprep.subr.mxu0 %v23680_v33  ;;  %6630 = vmatprep.subr.mxu1 %v23681_v63  ;;  %v23689_v30 = vld [vmem:[#allocation47_spill] sm:$0xff]  ;;  %v23690_v63 = vld [vmem:[#allocation57_spill] sm:$0xff] }
 0x52c   :  { %6302 = vmatpush1.msra.mxu0 %v23682_v5  ;;  %6636 = vmatpush1.msra.mxu1 %v23683_v52  ;;  %v23691_v52 = vld [vmem:[#allocation60_spill] sm:$0xff]  ;;  %v23722_v5 = vld [vmem:[#allocation117_spill] sm:$0xff] }
 0x52d   :  { %6306 = vmatprep.subr.mxu0 %v23684_v28  ;;  %6642 = vmatprep.subr.mxu1 %v23685_v42  ;;  %v23692_v42 = vld [vmem:[#allocation63_spill] sm:$0xff]  ;;  %v23720_v28 = vld [vmem:[#allocation110_spill] sm:$0xff]  ;;  %v23724_v33 = vld [vmem:[#allocation9_spill] sm:$0xff] }
 0x52e   :  { %6310 = vmatpush1.msra.mxu0 %v23686_v46  ;;  %6648 = vmatpush1.msra.mxu1 %v23687_v34  ;;  %v23693_v34 = vld [vmem:[#allocation66_spill] sm:$0xff] }
 0x52f   :  { %6345 = vmatmul.mubr.f32.vlgmr.msra.gmra.mxu0 %v19216_v35  ;;  %6654 = vmatprep.subr.mxu1 %v23688_v32  ;;  %v23694_v35 = vld [vmem:[#allocation69_spill] sm:$0xff]  ;;  %v23715_v46 = vld [vmem:[#allocation134_spill] sm:$0xff] }
 0x530   :  { %6660 = vmatpush1.msra.mxu1 %v23689_v30  ;;  %6506 = vmatprep.subr.mxu0 %v23206_v9  ;;  %v23695_v30 = vld [vmem:[#allocation72_spill] sm:$0xff]  ;;  %v23713_v32 = vld [vmem:[#allocation133_spill] sm:$0xff] }
 0x531   :  { %6666 = vmatprep.subr.mxu1 %v23690_v63  ;;  %6508 = vmatpush1.msra.mxu0 %v23208_v61  ;;  %v23696_v63 = vld [vmem:[#allocation75_spill] sm:$0xff] }
 0x532   :  { %6672 = vmatpush1.msra.mxu1 %v23691_v52  ;;  %6510 = vmatprep.subr.mxu0 %v23210_v27  ;;  %v23697_v52 = vld [vmem:[#allocation79_spill] sm:$0xff] }
 0x533   :  { %6678 = vmatprep.subr.mxu1 %v23692_v42  ;;  %6512 = vmatpush1.msra.mxu0 %v23212_v20  ;;  %v23698_v42 = vld [vmem:[#allocation89_spill] sm:$0xff] }
 0x534   :  { %6684 = vmatpush1.msra.mxu1 %v23693_v34  ;;  %6514 = vmatprep.subr.mxu0 %v23214_v8  ;;  %v23699_v34 = vld [vmem:[#allocation92_spill] sm:$0xff] }
 0x535   :  { %6690 = vmatprep.subr.mxu1 %v23694_v35  ;;  %6516 = vmatpush1.msra.mxu0 %v23216_v41  ;;  %v23700_v35 = vld [vmem:[#allocation95_spill] sm:$0xff] }
 0x536   :  { %6696 = vmatpush1.msra.mxu1 %v23695_v30  ;;  %6518 = vmatprep.subr.mxu0 %v23218_v2  ;;  %v23701_v30 = vld [vmem:[#allocation98_spill] sm:$0xff] }
 0x537   :  { %6702 = vmatprep.subr.mxu1 %v23696_v63  ;;  %6520 = vmatpush1.msra.mxu0 %v23220_v14  ;;  %v23702_v63 = vld [vmem:[#allocation101_spill] sm:$0xff] }
 0x538   :  { %6708 = vmatpush1.msra.mxu1 %v23697_v52  ;;  %6522 = vmatprep.subr.mxu0 %v23222_v15  ;;  %v23703_v52 = vld [vmem:[#allocation104_spill] sm:$0xff] }
 0x539   :  { %6714 = vmatprep.subr.mxu1 %v23698_v42  ;;  %6524 = vmatpush1.msra.mxu0 %v23224_v59  ;;  %v23704_v42 = vld [vmem:[#allocation107_spill] sm:$0xff] }
 0x53a   :  { %6720 = vmatpush1.msra.mxu1 %v23699_v34  ;;  %6526 = vmatprep.subr.mxu0 %v23226_v36  ;;  %v23705_v34 = vld [vmem:[#allocation111_spill] sm:$0xff] }
 0x53b   :  { %6726 = vmatprep.subr.mxu1 %v23700_v35  ;;  %6528 = vmatpush1.msra.mxu0 %v23228_v3  ;;  %v23706_v35 = vld [vmem:[#allocation121_spill] sm:$0xff] }
 0x53c   :  { %6732 = vmatpush1.msra.mxu1 %v23701_v30  ;;  %6530 = vmatprep.subr.mxu0 %v23230_v37  ;;  %v23707_v30 = vld [vmem:[#allocation124_spill] sm:$0xff] }
 0x53d   :  { %6738 = vmatprep.subr.mxu1 %v23702_v63  ;;  %6532 = vmatpush1.msra.mxu0 %v23232_v10  ;;  %v23708_v63 = vld [vmem:[#allocation127_spill] sm:$0xff] }
 0x53e   :  { %6744 = vmatpush1.msra.mxu1 %v23703_v52  ;;  %6534 = vmatprep.subr.mxu0 %v23234_v43  ;;  %v23709_v52 = vld [vmem:[#allocation129_spill] sm:$0xff] }
 0x53f   :  { %6750 = vmatprep.subr.mxu1 %v23704_v42  ;;  %6536 = vmatpush1.msra.mxu0 %v23236_v62  ;;  %v23710_v42 = vld [vmem:[#allocation131_spill] sm:$0xff]  ;;  %v5080_v54 = vpop.f32.mrf.mxu1 }
 0x540   :  { %6756 = vmatpush1.msra.mxu1 %v23705_v34  ;;  %6538 = vmatprep.subr.mxu0 %v23238_v19  ;;  %v23711_v34 = vld [vmem:[#allocation132_spill] sm:$0xff] }
 0x541   :  { %6762 = vmatprep.subr.mxu1 %v23706_v35  ;;  %6540 = vmatpush1.msra.mxu0 %v23240_v51  ;;  %v23712_v35 = vld [vmem:[#allocation85_spill] sm:$0xff]  ;;  %v5082_v18 = vpop.f32.mrf.mxu1 }
 0x542   :  { %6768 = vmatpush1.msra.mxu1 %v23707_v30  ;;  %6542 = vmatprep.subr.mxu0 %v23242_v17  ;;  %v23714_v30 = vld [vmem:[#allocation88_spill] sm:$0xff] }
 0x543   :  { %6774 = vmatprep.subr.mxu1 %v23708_v63  ;;  %6544 = vmatpush1.msra.mxu0 %v23244_v40  ;;  %v23716_v63 = vld [vmem:[#allocation97_spill] sm:$0xff] }
 0x544   :  { %6780 = vmatpush1.msra.mxu1 %v23709_v52  ;;  %6546 = vmatprep.subr.mxu0 %v23246_v12  ;;  %v23717_v52 = vld [vmem:[#allocation100_spill] sm:$0xff] }
 0x545   :  { %6786 = vmatprep.subr.mxu1 %v23710_v42  ;;  %6548 = vmatpush1.msra.mxu0 %v23248_v48  ;;  %v23718_v42 = vld [vmem:[#allocation103_spill] sm:$0xff] }
 0x546   :  { %6792 = vmatpush1.msra.mxu1 %v23711_v34  ;;  %6550 = vmatprep.subr.mxu0 %v23712_v35  ;;  %v23719_v34 = vld [vmem:[#allocation106_spill] sm:$0xff] }
 0x547   :  { %6798 = vmatprep.subr.mxu1 %v23713_v32  ;;  %6552 = vmatpush1.msra.mxu0 %v23714_v30  ;;  %v23721_v32 = vld [vmem:[#allocation114_spill] sm:$0xff]  ;;  %v4848_v45 = vpop.f32.mrf.mxu0 }
 0x548   :  { %6804 = vmatpush1.msra.mxu1 %v23715_v46  ;;  %6554 = vmatprep.subr.mxu0 %v23716_v63  ;;  %v23723_v46 = vld [vmem:[#allocation120_spill] sm:$0xff]  ;;  %v5081_v29 = vadd.f32 %v5080_v54, %v4848_v45 }
 0x549   :  { %6837 = vmatprep.mubr.f32.mxu1 %v22957_v16  ;;  %6983 = vmatprep.subr.mxu1 %v23206_v9  ;;  %v4850_v50 = vpop.f32.mrf.mxu0 }
 0x54a   :  { %6556 = vmatpush1.msra.mxu0 %v23717_v52  ;;  %6601 = vmatprep.mubr.f32.mxu0 %v22957_v16  ;;  %v5083_v53 = vadd.f32 %v5082_v18, %v4850_v50 }
 0x54b   :  { %6558 = vmatprep.subr.mxu0 %v23718_v42 }
 0x54c   :  { %6560 = vmatpush1.msra.mxu0 %v23719_v34 }
 0x54d   :  { %6562 = vmatprep.subr.mxu0 %v23720_v28 }
 0x54e   :  { %6564 = vmatpush1.msra.mxu0 %v23721_v32 }
 0x54f   :  { %6566 = vmatprep.subr.mxu0 %v23722_v5 }
 0x550   :  { %6568 = vmatpush1.msra.mxu0 %v23723_v46 }
 0x551   :  { %6847 = vmatprep.subr.mxu0 %v23724_v33 }
 0x55f   :  { %v5323_v44 = vpop.f32.mrf.mxu1 }
 0x561   :  { %v5325_v39 = vpop.f32.mrf.mxu1 }
 0x568   :  { %v5217_v49 = vpop.f32.mrf.mxu0 }
 0x569   :  { %v5218_v55 = vadd.f32 %v5217_v49, %v5081_v29 }
 0x56a   :  { %v5219_v60 = vpop.f32.mrf.mxu0 }
 0x56b   :  { %v5220_v57 = vadd.f32 %v5219_v60, %v5083_v53  ;;  %v5324_v7 = vadd.f32 %v5323_v44, %v5218_v55 }
 0x56d   :  { %v5326_v58 = vadd.f32 %v5325_v39, %v5220_v57 }
 0x581   :  { %v5595_v38 = vpop.f32.mrf.mxu1 }
 0x583   :  { %v5597_v33 = vpop.f32.mrf.mxu1 }
 0x58a   :  { %v5491_v24 = vpop.f32.mrf.mxu0 }
 0x58b   :  { %v5492_v31 = vadd.f32 %v5491_v24, %v5324_v7 }
 0x58c   :  { %v5493_v4 = vpop.f32.mrf.mxu0 }
 0x58d   :  { %v5494_v56 = vadd.f32 %v5493_v4, %v5326_v58  ;;  %v5596_v13 = vadd.f32 %v5595_v38, %v5492_v31 }
 0x58f   :  { %v5598_v22 = vadd.f32 %v5597_v33, %v5494_v56  ;;  %v6459_v11 = vrot.slane %v5596_v13, 2 }
 0x591   :  { %v6460_v21 = vrot.slane %v5598_v22, 2  ;;  %v6467_v54 = vadd.f32 %v6459_v11, %v4738_v6 }
 0x593   :  { %v6468_v50 = vadd.f32 %v6460_v21, %v4739_v26  ;;  %v16838_v18 = vmul.f32 -1.442695, %v6467_v54 }
 0x595   :  { %v16839_v45 = vmul.f32 -1.442695, %v6468_v50 }
 0x597   :  { %17237 = vpow2.f32 %v16839_v45 }
 0x598   :  { %17239 = vpow2.f32 %v16838_v18 }
 0x5a3   :  { %v5935_v49 = vpop.f32.mrf.mxu1 }
 0x5a4   :  { %v17238_v58 = vpop.eup %17237 }
 0x5a5   :  { %v5937_v44 = vpop.f32.mrf.mxu1  ;;  %v17240_v11 = vpop.eup %17239  ;;  %v6480_v7 = vadd.f32 1.0, %v17238_v58 }
 0x5a6   :  { %v6474_v54 = vadd.f32 1.0, %v17240_v11 }
 0x5a7   :  { %17241 = vrcp.f32 %v6480_v7 }
 0x5a8   :  { %17243 = vrcp.f32 %v6474_v54 }
 0x5ac   :  { %v5703_v60 = vpop.f32.mrf.mxu0 }
 0x5ad   :  { %v5936_v57 = vadd.f32 %v5935_v49, %v5703_v60  ;;  %v4740_v49 = vld [vmem:[#allocation2 + $0x18] sm:$0xc0] }
 0x5ae   :  { %v5705_v53 = vpop.f32.mrf.mxu0 }
 0x5af   :  { %v5938_v39 = vadd.f32 %v5937_v44, %v5705_v53  ;;  %v4741_v44 = vld [vmem:[#allocation2 + $0x10] sm:$0xc0] }
 0x5c5   :  { %v6178_v24 = vpop.f32.mrf.mxu1 }
 0x5c7   :  { %v6180_v56 = vpop.f32.mrf.mxu1 }
 0x5ce   :  { %v6072_v29 = vpop.f32.mrf.mxu0 }
 0x5cf   :  { %v6073_v4 = vadd.f32 %v6072_v29, %v5936_v57 }
 0x5d0   :  { %v6074_v55 = vpop.f32.mrf.mxu0 }
 0x5d1   :  { %v6075_v31 = vadd.f32 %v6074_v55, %v5938_v39  ;;  %v6179_v38 = vadd.f32 %v6178_v24, %v6073_v4  ;;  %v17242_v55 = vpop.eup %17241  ;;  %v23725_v4 = vld [vmem:[#allocation138_spill] sm:$0xff] }
 0x5d2   :  { %v17244_v39 = vpop.eup %17243 }
 0x5d3   :  { %v6181_v13 = vadd.f32 %v6180_v56, %v6075_v31  ;;  %v6491_v31 = vrot.slane %v23725_v4, 6  ;;  %v23736_v4 = vld [vmem:[#allocation45_spill] sm:$0xff] }
 0x5e7   :  { %v6450_v26 = vpop.f32.mrf.mxu1 }
 0x5e9   :  { %v6452_v45 = vpop.f32.mrf.mxu1 }
 0x5ef   :  { %v6346_v6 = vpop.f32.mrf.mxu0 }
 0x5f0   :  { %v6347_v21 = vadd.f32 %v6346_v6, %v6179_v38  ;;  %v6493_v38 = vmul.f32 %v17242_v55, %v6491_v31  ;;  %v23734_v55 = vld [vmem:[#allocation38_spill] sm:$0xff]  ;;  %v23737_v31 = vld [vmem:[#allocation49_spill] sm:$0xff] }
 0x5f1   :  { %v6348_v22 = vpop.f32.mrf.mxu0 }
 0x5f2   :  { %v6451_v33 = vadd.f32 %v6450_v26, %v6347_v21  ;;  %v6349_v50 = vadd.f32 %v6348_v22, %v6181_v13 }
 0x5f4   :  { %v6461_v18 = vrot.slane %v6451_v33, 2  ;;  %v6453_v60 = vadd.f32 %v6452_v45, %v6349_v50 }
 0x5f6   :  { %v6469_v53 = vadd.f32 %v6461_v18, %v4740_v49  ;;  %v6462_v29 = vrot.slane %v6453_v60, 2  ;;  %v23727_v60 = vld [vmem:[#allocation11_spill] sm:$0xff]  ;;  %v23728_v49 = vld [vmem:[#allocation14_spill] sm:$0xff] }
 0x5f8   :  { %17245 = vtanh.f32 %v6469_v53  ;;  %v6470_v57 = vadd.f32 %v6462_v29, %v4741_v44  ;;  %v23729_v53 = vld [vmem:[#allocation17_spill] sm:$0xff]  ;;  %v23730_v29 = vld [vmem:[#allocation20_spill] sm:$0xff]  ;;  %v23731_v44 = vld [vmem:[#allocation23_spill] sm:$0xff] }
 0x5fa   :  { %v16840_v24 = vmul.f32 -1.442695, %v6470_v57  ;;  %v23732_v57 = vld [vmem:[#allocation27_spill] sm:$0xff] }
 0x5fc   :  { %17247 = vpow2.f32 %v16840_v24  ;;  %v23733_v24 = vld [vmem:[#allocation30_spill] sm:$0xff] }
 0x605   :  { %v17246_v56 = vpop.eup %17245 }
 0x606   :  { %v6494_v58 = vmul.f32 %v17246_v56, %v17244_v39  ;;  %v23735_v39 = vld [vmem:[#allocation41_spill] sm:$0xff]  ;;  %v23738_v56 = vld [vmem:[#allocation52_spill] sm:$0xff] }
 0x608   :  { %v19637_v26 = vadd.f32 %v6494_v58, %v6493_v38  ;;  %v23739_v38 = vld [vmem:[#allocation55_spill] sm:$0xff] }
 0x609   :  { %v17248_v6 = vpop.eup %17247  ;;  %v23740_v58 = vld [vmem:[#allocation59_spill] sm:$0xff] }
 0x60a   :  { %23726 = vst [vmem:[#allocation137_spill] sm:$0xff] %v19637_v26  ;;  %v6487_v11 = vadd.f32 1.0, %v17248_v6  ;;  %17249 = vtanh.f32 %v19637_v26  ;;  %v23741_v6 = vld [vmem:[#allocation62_spill] sm:$0xff]  ;;  %v23834_v26 = vld [vmem:[#allocation259_spill] sm:$0xff] }
 0x60c   :  { %17251 = vrcp.f32 %v6487_v11  ;;  %v23742_v11 = vld [vmem:[#allocation70_spill] sm:$0xff] }
 0x617   :  { %v17250_v21 = vpop.eup %17249 }
 0x619   :  { %v17252_v13 = vpop.eup %17251 }
 0x61a   :  { %v6497_v22 = vmul.f32 %v17252_v13, %v17250_v21  ;;  %v23743_v21 = vld [vmem:[#allocation73_spill] sm:$0xff] }
 0x61b   :  { %v23744_v13 = vld [vmem:[#allocation77_spill] sm:$0xff] }
 0x61c   :  { %v6503_v7 = vrot.slane %v6497_v22, 6  ;;  %v23745_v22 = vld [vmem:[#allocation81_spill] sm:$0xff] }
 0x61e   :  { %v19640_v33 = vand.u32 4294901760, %v6503_v7 }
 0x620   :  { %6839 = vmatmul.mubr.f32.vlgmr.msra.gmra.mxu1 %v19640_v33  ;;  %v19644_v50 = vsub.f32 %v6503_v7, %v19640_v33  ;;  %v23746_v7 = vld [vmem:[#allocation84_spill] sm:$0xff] }
 0x621   :  { %6985 = vmatpush1.msra.mxu1 %v23208_v61  ;;  %7078 = vmatprep.mubr.f32.mxu1 %v22957_v16 }
 0x622   :  { %6987 = vmatprep.subr.mxu1 %v23210_v27  ;;  %v19650_v54 = vand.u32 4294901760, %v19644_v50 }
 0x623   :  { %6989 = vmatpush1.msra.mxu1 %v23212_v20 }
 0x624   :  { %6991 = vmatprep.subr.mxu1 %v23214_v8  ;;  %v6605_v45 = vsub.f32 %v19644_v50, %v19650_v54 }
 0x625   :  { %6993 = vmatpush1.msra.mxu1 %v23216_v41 }
 0x626   :  { %6995 = vmatprep.subr.mxu1 %v23218_v2  ;;  %v19658_v18 = vand.u32 4294901760, %v6605_v45  ;;  %v23747_v45 = vld [vmem:[#allocation87_spill] sm:$0xff] }
 0x627   :  { %6997 = vmatpush1.msra.mxu1 %v23220_v14 }
 0x628   :  { %6999 = vmatprep.subr.mxu1 %v23222_v15  ;;  %6607 = vmatmul.mubr.f32.vlgmr.msra.gmra.mxu0 %v19658_v18 }
 0x629   :  { %6850 = vmatpush1.msra.mxu0 %v23727_v60  ;;  %7001 = vmatpush1.msra.mxu1 %v23224_v59  ;;  %v23832_v60 = vld [vmem:[#allocation258_spill] sm:$0xff] }
 0x62a   :  { %6853 = vmatprep.subr.mxu0 %v23728_v49  ;;  %7003 = vmatprep.subr.mxu1 %v23226_v36  ;;  %v23830_v49 = vld [vmem:[#allocation257_spill] sm:$0xff] }
 0x62b   :  { %6856 = vmatpush1.msra.mxu0 %v23729_v53  ;;  %7005 = vmatpush1.msra.mxu1 %v23228_v3  ;;  %v23828_v53 = vld [vmem:[#allocation256_spill] sm:$0xff] }
 0x62c   :  { %6859 = vmatprep.subr.mxu0 %v23730_v29  ;;  %7007 = vmatprep.subr.mxu1 %v23230_v37  ;;  %v23826_v29 = vld [vmem:[#allocation255_spill] sm:$0xff] }
 0x62d   :  { %6862 = vmatpush1.msra.mxu0 %v23731_v44  ;;  %7009 = vmatpush1.msra.mxu1 %v23232_v10  ;;  %v23824_v44 = vld [vmem:[#allocation253_spill] sm:$0xff] }
 0x62e   :  { %6865 = vmatprep.subr.mxu0 %v23732_v57  ;;  %7011 = vmatprep.subr.mxu1 %v23234_v43  ;;  %v23822_v57 = vld [vmem:[#allocation251_spill] sm:$0xff] }
 0x62f   :  { %6868 = vmatpush1.msra.mxu0 %v23733_v24  ;;  %7013 = vmatpush1.msra.mxu1 %v23236_v62  ;;  %v23820_v24 = vld [vmem:[#allocation249_spill] sm:$0xff] }
 0x630   :  { %6871 = vmatprep.subr.mxu0 %v23734_v55  ;;  %7015 = vmatprep.subr.mxu1 %v23238_v19  ;;  %v23818_v55 = vld [vmem:[#allocation247_spill] sm:$0xff] }
 0x631   :  { %6874 = vmatpush1.msra.mxu0 %v23735_v39  ;;  %7017 = vmatpush1.msra.mxu1 %v23240_v51  ;;  %v23816_v39 = vld [vmem:[#allocation244_spill] sm:$0xff] }
 0x632   :  { %6877 = vmatprep.subr.mxu0 %v23736_v4  ;;  %7019 = vmatprep.subr.mxu1 %v23242_v17  ;;  %v23814_v4 = vld [vmem:[#allocation241_spill] sm:$0xff] }
 0x633   :  { %6880 = vmatpush1.msra.mxu0 %v23737_v31  ;;  %7021 = vmatpush1.msra.mxu1 %v23244_v40  ;;  %v23793_v31 = vld [vmem:[#allocation186_spill] sm:$0xff] }
 0x634   :  { %6883 = vmatprep.subr.mxu0 %v23738_v56  ;;  %7023 = vmatprep.subr.mxu1 %v23246_v12  ;;  %v23791_v56 = vld [vmem:[#allocation183_spill] sm:$0xff] }
 0x635   :  { %6886 = vmatpush1.msra.mxu0 %v23739_v38  ;;  %7025 = vmatpush1.msra.mxu1 %v23248_v48  ;;  %v23790_v38 = vld [vmem:[#allocation122_spill] sm:$0xff] }
 0x636   :  { %6889 = vmatprep.subr.mxu0 %v23740_v58  ;;  %7027 = vmatprep.subr.mxu1 %v23712_v35  ;;  %v23788_v58 = vld [vmem:[#allocation118_spill] sm:$0xff] }
 0x637   :  { %6892 = vmatpush1.msra.mxu0 %v23741_v6  ;;  %7029 = vmatpush1.msra.mxu1 %v23714_v30  ;;  %v23786_v6 = vld [vmem:[#allocation115_spill] sm:$0xff] }
 0x638   :  { %6895 = vmatprep.subr.mxu0 %v23742_v11  ;;  %7031 = vmatprep.subr.mxu1 %v23716_v63  ;;  %v23748_v11 = vld [vmem:[#allocation91_spill] sm:$0xff] }
 0x639   :  { %6898 = vmatpush1.msra.mxu0 %v23743_v21  ;;  %7033 = vmatpush1.msra.mxu1 %v23717_v52  ;;  %v23749_v21 = vld [vmem:[#allocation94_spill] sm:$0xff] }
 0x63a   :  { %6901 = vmatprep.subr.mxu0 %v23744_v13  ;;  %7035 = vmatprep.subr.mxu1 %v23718_v42  ;;  %v23750_v13 = vld [vmem:[#allocation102_spill] sm:$0xff] }
 0x63b   :  { %6904 = vmatpush1.msra.mxu0 %v23745_v22  ;;  %7037 = vmatpush1.msra.mxu1 %v23719_v34  ;;  %v23756_v22 = vld [vmem:[#allocation123_spill] sm:$0xff] }
 0x63c   :  { %6907 = vmatprep.subr.mxu0 %v23746_v7  ;;  %7039 = vmatprep.subr.mxu1 %v23720_v28  ;;  %v23751_v7 = vld [vmem:[#allocation105_spill] sm:$0xff] }
 0x63d   :  { %6910 = vmatpush1.msra.mxu0 %v23747_v45  ;;  %7041 = vmatpush1.msra.mxu1 %v23721_v32  ;;  %v23752_v45 = vld [vmem:[#allocation109_spill] sm:$0xff] }
 0x63e   :  { %6913 = vmatprep.subr.mxu0 %v23748_v11  ;;  %7043 = vmatprep.subr.mxu1 %v23722_v5  ;;  %v23753_v11 = vld [vmem:[#allocation113_spill] sm:$0xff] }
 0x63f   :  { %6916 = vmatpush1.msra.mxu0 %v23749_v21  ;;  %7045 = vmatpush1.msra.mxu1 %v23723_v46  ;;  %v23754_v21 = vld [vmem:[#allocation116_spill] sm:$0xff] }
 0x640   :  { %6919 = vmatprep.subr.mxu0 %v23750_v13  ;;  %7082 = vmatmul.mubr.f32.vlgmr.msra.gmra.mxu1 %v19650_v54  ;;  %v23755_v13 = vld [vmem:[#allocation119_spill] sm:$0xff] }
 0x641   :  { %7257 = vmatprep.subr.mxu1 %v23206_v9  ;;  %6922 = vmatpush1.msra.mxu0 %v23751_v7  ;;  %v23757_v7 = vld [vmem:[#allocation126_spill] sm:$0xff] }
 0x642   :  { %7259 = vmatpush1.msra.mxu1 %v23208_v61  ;;  %6925 = vmatprep.subr.mxu0 %v23752_v45  ;;  %v23763_v45 = vld [vmem:[#allocation29_spill] sm:$0xff] }
 0x643   :  { %7261 = vmatprep.subr.mxu1 %v23210_v27  ;;  %6928 = vmatpush1.msra.mxu0 %v23753_v11  ;;  %v23758_v11 = vld [vmem:[#allocation13_spill] sm:$0xff] }
 0x644   :  { %7263 = vmatpush1.msra.mxu1 %v23212_v20  ;;  %6931 = vmatprep.subr.mxu0 %v23754_v21  ;;  %v23759_v21 = vld [vmem:[#allocation16_spill] sm:$0xff] }
 0x645   :  { %7265 = vmatprep.subr.mxu1 %v23214_v8  ;;  %6934 = vmatpush1.msra.mxu0 %v23755_v13  ;;  %v23760_v13 = vld [vmem:[#allocation19_spill] sm:$0xff] }
 0x646   :  { %7267 = vmatpush1.msra.mxu1 %v23216_v41  ;;  %6937 = vmatprep.subr.mxu0 %v23756_v22  ;;  %v23761_v22 = vld [vmem:[#allocation22_spill] sm:$0xff] }
 0x647   :  { %7269 = vmatprep.subr.mxu1 %v23218_v2  ;;  %6940 = vmatpush1.msra.mxu0 %v23757_v7  ;;  %v23762_v7 = vld [vmem:[#allocation26_spill] sm:$0xff] }
 0x648   :  { %6973 = vmatprep.mubr.f32.mxu0 %v22957_v16  ;;  %7271 = vmatpush1.msra.mxu1 %v23220_v14 }
 0x649   :  { %6976 = vmatmul.mubr.f32.vlgmr.msra.gmra.mxu0 %v19644_v50  ;;  %7091 = vmatprep.subr.mxu0 %v23758_v11  ;;  %v23764_v11 = vld [vmem:[#allocation32_spill] sm:$0xff] }
 0x64a   :  { %7273 = vmatprep.subr.mxu1 %v23222_v15  ;;  %7095 = vmatpush1.msra.mxu0 %v23759_v21  ;;  %v23765_v21 = vld [vmem:[#allocation35_spill] sm:$0xff] }
 0x64b   :  { %7275 = vmatpush1.msra.mxu1 %v23224_v59  ;;  %7099 = vmatprep.subr.mxu0 %v23760_v13  ;;  %v23766_v13 = vld [vmem:[#allocation44_spill] sm:$0xff] }
 0x64c   :  { %7277 = vmatprep.subr.mxu1 %v23226_v36  ;;  %7103 = vmatpush1.msra.mxu0 %v23761_v22  ;;  %v23767_v22 = vld [vmem:[#allocation48_spill] sm:$0xff] }
 0x64d   :  { %7279 = vmatpush1.msra.mxu1 %v23228_v3  ;;  %7107 = vmatprep.subr.mxu0 %v23762_v7  ;;  %v23768_v7 = vld [vmem:[#allocation51_spill] sm:$0xff] }
 0x64e   :  { %7281 = vmatprep.subr.mxu1 %v23230_v37  ;;  %7111 = vmatpush1.msra.mxu0 %v23763_v45  ;;  %v23769_v45 = vld [vmem:[#allocation54_spill] sm:$0xff] }
 0x64f   :  { %7283 = vmatpush1.msra.mxu1 %v23232_v10  ;;  %7115 = vmatprep.subr.mxu0 %v23764_v11  ;;  %v23770_v11 = vld [vmem:[#allocation58_spill] sm:$0xff] }
 0x650   :  { %7285 = vmatprep.subr.mxu1 %v23234_v43  ;;  %7119 = vmatpush1.msra.mxu0 %v23765_v21  ;;  %v23771_v21 = vld [vmem:[#allocation61_spill] sm:$0xff] }
 0x651   :  { %7287 = vmatpush1.msra.mxu1 %v23236_v62  ;;  %7123 = vmatprep.subr.mxu0 %v23766_v13  ;;  %v23772_v13 = vld [vmem:[#allocation64_spill] sm:$0xff] }
 0x652   :  { %7289 = vmatprep.subr.mxu1 %v23238_v19  ;;  %7127 = vmatpush1.msra.mxu0 %v23767_v22  ;;  %v23773_v22 = vld [vmem:[#allocation67_spill] sm:$0xff] }
 0x653   :  { %7291 = vmatpush1.msra.mxu1 %v23240_v51  ;;  %7131 = vmatprep.subr.mxu0 %v23768_v7  ;;  %v23774_v7 = vld [vmem:[#allocation76_spill] sm:$0xff] }
 0x654   :  { %7293 = vmatprep.subr.mxu1 %v23242_v17  ;;  %7135 = vmatpush1.msra.mxu0 %v23769_v45  ;;  %v23775_v45 = vld [vmem:[#allocation80_spill] sm:$0xff] }
 0x655   :  { %7295 = vmatpush1.msra.mxu1 %v23244_v40  ;;  %7139 = vmatprep.subr.mxu0 %v23770_v11  ;;  %v23776_v11 = vld [vmem:[#allocation83_spill] sm:$0xff] }
 0x656   :  { %7297 = vmatprep.subr.mxu1 %v23246_v12  ;;  %7143 = vmatpush1.msra.mxu0 %v23771_v21  ;;  %v23777_v21 = vld [vmem:[#allocation86_spill] sm:$0xff] }
 0x657   :  { %7299 = vmatpush1.msra.mxu1 %v23248_v48  ;;  %7147 = vmatprep.subr.mxu0 %v23772_v13  ;;  %v23778_v13 = vld [vmem:[#allocation90_spill] sm:$0xff] }
 0x658   :  { %7301 = vmatprep.subr.mxu1 %v23712_v35  ;;  %7151 = vmatpush1.msra.mxu0 %v23773_v22  ;;  %v23779_v22 = vld [vmem:[#allocation93_spill] sm:$0xff]  ;;  %v23853_v35 = vld [vmem:[#allocation148_spill] sm:$0xff] }
 0x659   :  { %7303 = vmatpush1.msra.mxu1 %v23714_v30  ;;  %7155 = vmatprep.subr.mxu0 %v23774_v7  ;;  %v23780_v7 = vld [vmem:[#allocation96_spill] sm:$0xff]  ;;  %v23852_v30 = vld [vmem:[#allocation145_spill] sm:$0xff] }
 0x65a   :  { %7305 = vmatprep.subr.mxu1 %v23716_v63  ;;  %7159 = vmatpush1.msra.mxu0 %v23775_v45  ;;  %v23781_v45 = vld [vmem:[#allocation99_spill] sm:$0xff] }
 0x65b   :  { %7307 = vmatpush1.msra.mxu1 %v23717_v52  ;;  %7163 = vmatprep.subr.mxu0 %v23776_v11  ;;  %v23784_v11 = vld [vmem:[#allocation112_spill] sm:$0xff]  ;;  %v23850_v52 = vld [vmem:[#allocation141_spill] sm:$0xff]  ;;  %v23851_v63 = vld [vmem:[#allocation143_spill] sm:$0xff] }
 0x65c   :  { %7309 = vmatprep.subr.mxu1 %v23718_v42  ;;  %7167 = vmatpush1.msra.mxu0 %v23777_v21  ;;  %v23782_v21 = vld [vmem:[#allocation108_spill] sm:$0xff] }
 0x65d   :  { %7311 = vmatpush1.msra.mxu1 %v23719_v34  ;;  %7171 = vmatprep.subr.mxu0 %v23778_v13  ;;  %v23783_v13 = vld [vmem:[#allocation171_spill] sm:$0xff]  ;;  %v23848_v34 = vld [vmem:[#allocation234_spill] sm:$0xff]  ;;  %v23849_v42 = vld [vmem:[#allocation140_spill] sm:$0xff] }
 0x65e   :  { %7313 = vmatprep.subr.mxu1 %v23720_v28  ;;  %7175 = vmatpush1.msra.mxu0 %v23779_v22  ;;  %v23785_v22 = vld [vmem:[#allocation174_spill] sm:$0xff]  ;;  %v23847_v28 = vld [vmem:[#allocation231_spill] sm:$0xff] }
 0x65f   :  { %7315 = vmatpush1.msra.mxu1 %v23721_v32  ;;  %7179 = vmatprep.subr.mxu0 %v23780_v7  ;;  %v23787_v7 = vld [vmem:[#allocation177_spill] sm:$0xff]  ;;  %v23840_v32 = vld [vmem:[#allocation262_spill] sm:$0xff] }
 0x660   :  { %7317 = vmatprep.subr.mxu1 %v23722_v5  ;;  %7183 = vmatpush1.msra.mxu0 %v23781_v45  ;;  %v23789_v45 = vld [vmem:[#allocation180_spill] sm:$0xff]  ;;  %v23838_v5 = vld [vmem:[#allocation261_spill] sm:$0xff] }
 0x661   :  { %7319 = vmatpush1.msra.mxu1 %v23723_v46  ;;  %7352 = vmatprep.mubr.f32.mxu1 %v22957_v16  ;;  %v23836_v46 = vld [vmem:[#allocation260_spill] sm:$0xff] }
 0x662   :  { %7187 = vmatprep.subr.mxu0 %v23782_v21  ;;  %7354 = vmatmul.mubr.f32.vlgmr.msra.gmra.mxu1 %v19640_v33  ;;  %v23792_v21 = vld [vmem:[#allocation125_spill] sm:$0xff] }
 0x663   :  { %7473 = vmatprep.subr.mxu1 %v23783_v13  ;;  %7191 = vmatpush1.msra.mxu0 %v23784_v11  ;;  %v23794_v13 = vld [vmem:[#allocation128_spill] sm:$0xff]  ;;  %v23795_v11 = vld [vmem:[#allocation189_spill] sm:$0xff] }
 0x664   :  { %7479 = vmatpush1.msra.mxu1 %v23785_v22  ;;  %7195 = vmatprep.subr.mxu0 %v23786_v6  ;;  %v23796_v22 = vld [vmem:[#allocation130_spill] sm:$0xff] }
 0x665   :  { %7485 = vmatprep.subr.mxu1 %v23787_v7  ;;  %7199 = vmatpush1.msra.mxu0 %v23788_v58  ;;  %v23797_v7 = vld [vmem:[#allocation192_spill] sm:$0xff]  ;;  %v23810_v58 = vld [vmem:[#allocation235_spill] sm:$0xff]  ;;  %v23812_v6 = vld [vmem:[#allocation238_spill] sm:$0xff] }
 0x666   :  { %7491 = vmatpush1.msra.mxu1 %v23789_v45  ;;  %7203 = vmatprep.subr.mxu0 %v23790_v38  ;;  %v23798_v38 = vld [vmem:[#allocation195_spill] sm:$0xff] }
 0x667   :  { %7497 = vmatprep.subr.mxu1 %v23791_v56  ;;  %7207 = vmatpush1.msra.mxu0 %v23792_v21  ;;  %v23799_v21 = vld [vmem:[#allocation198_spill] sm:$0xff]  ;;  %v23806_v56 = vld [vmem:[#allocation215_spill] sm:$0xff] }
 0x668   :  { %7503 = vmatpush1.msra.mxu1 %v23793_v31  ;;  %7211 = vmatprep.subr.mxu0 %v23794_v13  ;;  %v23800_v13 = vld [vmem:[#allocation201_spill] sm:$0xff]  ;;  %v23804_v31 = vld [vmem:[#allocation211_spill] sm:$0xff] }
 0x669   :  { %7509 = vmatprep.subr.mxu1 %v23795_v11  ;;  %7215 = vmatpush1.msra.mxu0 %v23796_v22  ;;  %v23801_v22 = vld [vmem:[#allocation204_spill] sm:$0xff]  ;;  %v23803_v11 = vld [vmem:[#allocation142_spill] sm:$0xff]  ;;  %v23808_v45 = vld [vmem:[#allocation219_spill] sm:$0xff] }
 0x66a   :  { %7248 = vmatprep.mubr.f32.mxu0 %v22957_v16  ;;  %7515 = vmatpush1.msra.mxu1 %v23797_v7  ;;  %v23802_v7 = vld [vmem:[#allocation207_spill] sm:$0xff] }
 0x66b   :  { %7250 = vmatmul.mubr.f32.vlgmr.msra.gmra.mxu0 %v19640_v33  ;;  %7361 = vmatprep.subr.mxu0 %v18079_v25 }
 0x66c   :  { %7521 = vmatprep.subr.mxu1 %v23798_v38  ;;  %7363 = vmatpush1.msra.mxu0 %v18083_v0  ;;  %v23805_v38 = vld [vmem:[#allocation144_spill] sm:$0xff] }
 0x66d   :  { %7527 = vmatpush1.msra.mxu1 %v23799_v21  ;;  %7365 = vmatprep.subr.mxu0 %v18087_v23  ;;  %v23807_v21 = vld [vmem:[#allocation146_spill] sm:$0xff] }
 0x66e   :  { %7533 = vmatprep.subr.mxu1 %v23800_v13  ;;  %7367 = vmatpush1.msra.mxu0 %v18091_v1  ;;  %v23809_v13 = vld [vmem:[#allocation149_spill] sm:$0xff] }
 0x66f   :  { %7539 = vmatpush1.msra.mxu1 %v23801_v22  ;;  %7369 = vmatprep.subr.mxu0 %v18098_v47  ;;  %v23811_v22 = vld [vmem:[#allocation152_spill] sm:$0xff] }
 0x670   :  { %7545 = vmatprep.subr.mxu1 %v23802_v7  ;;  %7371 = vmatpush1.msra.mxu0 %v23803_v11  ;;  %v23813_v7 = vld [vmem:[#allocation155_spill] sm:$0xff] }
 0x671   :  { %7551 = vmatpush1.msra.mxu1 %v23804_v31  ;;  %7373 = vmatprep.subr.mxu0 %v23805_v38  ;;  %v23815_v31 = vld [vmem:[#allocation158_spill] sm:$0xff] }
 0x672   :  { %7557 = vmatprep.subr.mxu1 %v23806_v56  ;;  %7375 = vmatpush1.msra.mxu0 %v23807_v21  ;;  %v23817_v56 = vld [vmem:[#allocation161_spill] sm:$0xff] }
 0x673   :  { %7563 = vmatpush1.msra.mxu1 %v23808_v45  ;;  %7377 = vmatprep.subr.mxu0 %v23809_v13  ;;  %v23819_v45 = vld [vmem:[#allocation164_spill] sm:$0xff] }
 0x674   :  { %7569 = vmatprep.subr.mxu1 %v23810_v58  ;;  %7379 = vmatpush1.msra.mxu0 %v23811_v22  ;;  %v23821_v58 = vld [vmem:[#allocation167_spill] sm:$0xff] }
 0x675   :  { %7575 = vmatpush1.msra.mxu1 %v23812_v6  ;;  %7381 = vmatprep.subr.mxu0 %v23813_v7  ;;  %v23823_v6 = vld [vmem:[#allocation170_spill] sm:$0xff] }
 0x676   :  { %7581 = vmatprep.subr.mxu1 %v23814_v4  ;;  %7383 = vmatpush1.msra.mxu0 %v23815_v31  ;;  %v23825_v4 = vld [vmem:[#allocation185_spill] sm:$0xff] }
 0x677   :  { %7587 = vmatpush1.msra.mxu1 %v23816_v39  ;;  %7385 = vmatprep.subr.mxu0 %v23817_v56  ;;  %v23827_v39 = vld [vmem:[#allocation188_spill] sm:$0xff] }
 0x678   :  { %7593 = vmatprep.subr.mxu1 %v23818_v55  ;;  %7387 = vmatpush1.msra.mxu0 %v23819_v45  ;;  %v23829_v55 = vld [vmem:[#allocation191_spill] sm:$0xff] }
 0x679   :  { %7599 = vmatpush1.msra.mxu1 %v23820_v24  ;;  %7389 = vmatprep.subr.mxu0 %v23821_v58  ;;  %v23831_v24 = vld [vmem:[#allocation194_spill] sm:$0xff] }
 0x67a   :  { %7605 = vmatprep.subr.mxu1 %v23822_v57  ;;  %7391 = vmatpush1.msra.mxu0 %v23823_v6  ;;  %v23833_v57 = vld [vmem:[#allocation197_spill] sm:$0xff] }
 0x67b   :  { %7611 = vmatpush1.msra.mxu1 %v23824_v44  ;;  %7393 = vmatprep.subr.mxu0 %v23825_v4  ;;  %v23835_v44 = vld [vmem:[#allocation200_spill] sm:$0xff] }
 0x67c   :  { %7617 = vmatprep.subr.mxu1 %v23826_v29  ;;  %7395 = vmatpush1.msra.mxu0 %v23827_v39  ;;  %v23837_v29 = vld [vmem:[#allocation203_spill] sm:$0xff] }
 0x67d   :  { %7623 = vmatpush1.msra.mxu1 %v23828_v53  ;;  %7397 = vmatprep.subr.mxu0 %v23829_v55  ;;  %v23839_v53 = vld [vmem:[#allocation206_spill] sm:$0xff] }
 0x67e   :  { %7629 = vmatprep.subr.mxu1 %v23830_v49  ;;  %7399 = vmatpush1.msra.mxu0 %v23831_v24  ;;  %v23841_v49 = vld [vmem:[#allocation210_spill] sm:$0xff] }
 0x67f   :  { %7635 = vmatpush1.msra.mxu1 %v23832_v60  ;;  %7401 = vmatprep.subr.mxu0 %v23833_v57  ;;  %v23846_v60 = vld [vmem:[#allocation228_spill] sm:$0xff] }
 0x680   :  { %7641 = vmatprep.subr.mxu1 %v23834_v26  ;;  %7403 = vmatpush1.msra.mxu0 %v23835_v44  ;;  %v23842_v26 = vld [vmem:[#allocation214_spill] sm:$0xff] }
 0x681   :  { %7647 = vmatpush1.msra.mxu1 %v23836_v46  ;;  %7405 = vmatprep.subr.mxu0 %v23837_v29  ;;  %v23843_v46 = vld [vmem:[#allocation218_spill] sm:$0xff] }
 0x682   :  { %7653 = vmatprep.subr.mxu1 %v23838_v5  ;;  %7407 = vmatpush1.msra.mxu0 %v23839_v53  ;;  %v23844_v5 = vld [vmem:[#allocation222_spill] sm:$0xff] }
 0x683   :  { %7659 = vmatpush1.msra.mxu1 %v23840_v32  ;;  %7692 = vmatprep.mubr.f32.mxu1 %v22957_v16  ;;  %v23845_v32 = vld [vmem:[#allocation225_spill] sm:$0xff] }
 0x684   :  { %7409 = vmatprep.subr.mxu0 %v23841_v49  ;;  %7694 = vmatmul.mubr.f32.vlgmr.msra.gmra.mxu1 %v19640_v33 }
 0x685   :  { %7838 = vmatprep.subr.mxu1 %v18079_v25  ;;  %7411 = vmatpush1.msra.mxu0 %v23842_v26 }
 0x686   :  { %7840 = vmatpush1.msra.mxu1 %v18083_v0  ;;  %7413 = vmatprep.subr.mxu0 %v23843_v46 }
 0x687   :  { %7842 = vmatprep.subr.mxu1 %v18087_v23  ;;  %7415 = vmatpush1.msra.mxu0 %v23844_v5 }
 0x688   :  { %7844 = vmatpush1.msra.mxu1 %v18091_v1  ;;  %7417 = vmatprep.subr.mxu0 %v23845_v32 }
 0x689   :  { %7846 = vmatprep.subr.mxu1 %v18098_v47  ;;  %7419 = vmatpush1.msra.mxu0 %v23846_v60 }
 0x68a   :  { %7848 = vmatpush1.msra.mxu1 %v23803_v11  ;;  %7421 = vmatprep.subr.mxu0 %v23847_v28 }
 0x68b   :  { %7850 = vmatprep.subr.mxu1 %v23805_v38  ;;  %7423 = vmatpush1.msra.mxu0 %v23848_v34 }
 0x68c   :  { %7456 = vmatprep.mubr.f32.mxu0 %v22957_v16  ;;  %7852 = vmatpush1.msra.mxu1 %v23807_v21 }
 0x68d   :  { %7462 = vmatmul.mubr.f32.vlgmr.msra.gmra.mxu0 %v19658_v18  ;;  %7702 = vmatprep.subr.mxu0 %v23849_v42  ;;  %v23854_v18 = vld [vmem:[#allocation151_spill] sm:$0xff]  ;;  %v23855_v42 = vld [vmem:[#allocation154_spill] sm:$0xff] }
 0x68e   :  { %7854 = vmatprep.subr.mxu1 %v23809_v13  ;;  %7705 = vmatpush1.msra.mxu0 %v23850_v52  ;;  %v23856_v52 = vld [vmem:[#allocation157_spill] sm:$0xff] }
 0x68f   :  { %7856 = vmatpush1.msra.mxu1 %v23811_v22  ;;  %7708 = vmatprep.subr.mxu0 %v23851_v63  ;;  %v23857_v63 = vld [vmem:[#allocation160_spill] sm:$0xff] }
 0x690   :  { %7858 = vmatprep.subr.mxu1 %v23813_v7  ;;  %7711 = vmatpush1.msra.mxu0 %v23852_v30  ;;  %v23858_v30 = vld [vmem:[#allocation163_spill] sm:$0xff] }
 0x691   :  { %7860 = vmatpush1.msra.mxu1 %v23815_v31  ;;  %7714 = vmatprep.subr.mxu0 %v23853_v35  ;;  %v23859_v35 = vld [vmem:[#allocation166_spill] sm:$0xff] }
 0x692   :  { %7862 = vmatprep.subr.mxu1 %v23817_v56  ;;  %7717 = vmatpush1.msra.mxu0 %v23854_v18  ;;  %v23860_v18 = vld [vmem:[#allocation169_spill] sm:$0xff] }
 0x693   :  { %7864 = vmatpush1.msra.mxu1 %v23819_v45  ;;  %7720 = vmatprep.subr.mxu0 %v23855_v42  ;;  %v23861_v42 = vld [vmem:[#allocation173_spill] sm:$0xff] }
 0x694   :  { %7866 = vmatprep.subr.mxu1 %v23821_v58  ;;  %7723 = vmatpush1.msra.mxu0 %v23856_v52  ;;  %v23862_v52 = vld [vmem:[#allocation176_spill] sm:$0xff] }
 0x695   :  { %7868 = vmatpush1.msra.mxu1 %v23823_v6  ;;  %7726 = vmatprep.subr.mxu0 %v23857_v63  ;;  %v23863_v63 = vld [vmem:[#allocation179_spill] sm:$0xff] }
 0x696   :  { %7870 = vmatprep.subr.mxu1 %v23825_v4  ;;  %7729 = vmatpush1.msra.mxu0 %v23858_v30  ;;  %v23864_v30 = vld [vmem:[#allocation182_spill] sm:$0xff] }
 0x697   :  { %7872 = vmatpush1.msra.mxu1 %v23827_v39  ;;  %7732 = vmatprep.subr.mxu0 %v23859_v35  ;;  %v23865_v35 = vld [vmem:[#allocation196_spill] sm:$0xff] }
 0x698   :  { %7874 = vmatprep.subr.mxu1 %v23829_v55  ;;  %7735 = vmatpush1.msra.mxu0 %v23860_v18  ;;  %v23866_v18 = vld [vmem:[#allocation199_spill] sm:$0xff] }
 0x699   :  { %7876 = vmatpush1.msra.mxu1 %v23831_v24  ;;  %7738 = vmatprep.subr.mxu0 %v23861_v42  ;;  %v23867_v42 = vld [vmem:[#allocation202_spill] sm:$0xff] }
 0x69a   :  { %7878 = vmatprep.subr.mxu1 %v23833_v57  ;;  %7741 = vmatpush1.msra.mxu0 %v23862_v52  ;;  %v23868_v52 = vld [vmem:[#allocation205_spill] sm:$0xff] }
 0x69b   :  { %7880 = vmatpush1.msra.mxu1 %v23835_v44  ;;  %7744 = vmatprep.subr.mxu0 %v23863_v63  ;;  %v23869_v63 = vld [vmem:[#allocation209_spill] sm:$0xff] }
 0x69c   :  { %7882 = vmatprep.subr.mxu1 %v23837_v29  ;;  %7747 = vmatpush1.msra.mxu0 %v23864_v30  ;;  %v23870_v30 = vld [vmem:[#allocation213_spill] sm:$0xff] }
 0x69d   :  { %7884 = vmatpush1.msra.mxu1 %v23839_v53  ;;  %7750 = vmatprep.subr.mxu0 %v23865_v35  ;;  %v23871_v35 = vld [vmem:[#allocation217_spill] sm:$0xff] }
 0x69e   :  { %7886 = vmatprep.subr.mxu1 %v23841_v49  ;;  %7753 = vmatpush1.msra.mxu0 %v23866_v18  ;;  %v23872_v18 = vld [vmem:[#allocation221_spill] sm:$0xff] }
 0x69f   :  { %7888 = vmatpush1.msra.mxu1 %v23842_v26  ;;  %7756 = vmatprep.subr.mxu0 %v23867_v42  ;;  %v23912_v42 = vld [vmem:[#allocation31_spill] sm:$0xff] }
 0x6a0   :  { %7890 = vmatprep.subr.mxu1 %v23843_v46  ;;  %7759 = vmatpush1.msra.mxu0 %v23868_v52  ;;  %v23873_v52 = vld [vmem:[#allocation224_spill] sm:$0xff] }
 0x6a1   :  { %7892 = vmatpush1.msra.mxu1 %v23844_v5  ;;  %7762 = vmatprep.subr.mxu0 %v23869_v63  ;;  %v23874_v63 = vld [vmem:[#allocation227_spill] sm:$0xff] }
 0x6a2   :  { %7894 = vmatprep.subr.mxu1 %v23845_v32  ;;  %7765 = vmatpush1.msra.mxu0 %v23870_v30  ;;  %v23875_v30 = vld [vmem:[#allocation230_spill] sm:$0xff] }
 0x6a3   :  { %7896 = vmatpush1.msra.mxu1 %v23846_v60  ;;  %7768 = vmatprep.subr.mxu0 %v23871_v35  ;;  %v23876_v35 = vld [vmem:[#allocation233_spill] sm:$0xff] }
 0x6a4   :  { %7898 = vmatprep.subr.mxu1 %v23847_v28  ;;  %7771 = vmatpush1.msra.mxu0 %v23872_v18  ;;  %v23877_v18 = vld [vmem:[#allocation237_spill] sm:$0xff] }
 0x6a5   :  { %7900 = vmatpush1.msra.mxu1 %v23848_v34  ;;  %7933 = vmatprep.mubr.f32.mxu1 %v22957_v16 }
 0x6a6   :  { %7774 = vmatprep.subr.mxu0 %v23873_v52  ;;  %7937 = vmatmul.mubr.f32.vlgmr.msra.gmra.mxu1 %v19650_v54  ;;  %v23878_v52 = vld [vmem:[#allocation240_spill] sm:$0xff]  ;;  %v23879_v54 = vld [vmem:[#allocation243_spill] sm:$0xff] }
 0x6a7   :  { %8112 = vmatprep.subr.mxu1 %v18079_v25  ;;  %7777 = vmatpush1.msra.mxu0 %v23874_v63  ;;  %v23880_v63 = vld [vmem:[#allocation246_spill] sm:$0xff] }
 0x6a8   :  { %8114 = vmatpush1.msra.mxu1 %v18083_v0  ;;  %7780 = vmatprep.subr.mxu0 %v23875_v30  ;;  %v23910_v30 = vld [vmem:[#allocation28_spill] sm:$0xff] }
 0x6a9   :  { %8116 = vmatprep.subr.mxu1 %v18087_v23  ;;  %7783 = vmatpush1.msra.mxu0 %v23876_v35  ;;  %v23881_v35 = vld [vmem:[#allocation147_spill] sm:$0xff] }
 0x6aa   :  { %8118 = vmatpush1.msra.mxu1 %v18091_v1  ;;  %7786 = vmatprep.subr.mxu0 %v23877_v18  ;;  %v23882_v18 = vld [vmem:[#allocation150_spill] sm:$0xff] }
 0x6ab   :  { %8120 = vmatprep.subr.mxu1 %v18098_v47  ;;  %7789 = vmatpush1.msra.mxu0 %v23878_v52  ;;  %v23883_v52 = vld [vmem:[#allocation153_spill] sm:$0xff] }
 0x6ac   :  { %8122 = vmatpush1.msra.mxu1 %v23803_v11  ;;  %7792 = vmatprep.subr.mxu0 %v23879_v54  ;;  %v23884_v54 = vld [vmem:[#allocation156_spill] sm:$0xff] }
 0x6ad   :  { %8124 = vmatprep.subr.mxu1 %v23805_v38  ;;  %7795 = vmatpush1.msra.mxu0 %v23880_v63  ;;  %v23885_v63 = vld [vmem:[#allocation159_spill] sm:$0xff] }
 0x6ae   :  { %7828 = vmatprep.mubr.f32.mxu0 %v22957_v16  ;;  %8126 = vmatpush1.msra.mxu1 %v23807_v21  ;;  %v6498_v21 = vld [vmem:[#allocation2 + $0x8] sm:$0x3] }
 0x6af   :  { %7831 = vmatmul.mubr.f32.vlgmr.msra.gmra.mxu0 %v19644_v50  ;;  %7946 = vmatprep.subr.mxu0 %v23881_v35  ;;  %v23886_v50 = vld [vmem:[#allocation162_spill] sm:$0xff]  ;;  %v23887_v35 = vld [vmem:[#allocation165_spill] sm:$0xff] }
 0x6b0   :  { %8128 = vmatprep.subr.mxu1 %v23809_v13  ;;  %7950 = vmatpush1.msra.mxu0 %v23882_v18  ;;  %v23888_v18 = vld [vmem:[#allocation168_spill] sm:$0xff]  ;;  %v6499_v13 = vld [vmem:[#allocation2 + $0x20] sm:$0x3] }
 0x6b1   :  { %8130 = vmatpush1.msra.mxu1 %v23811_v22  ;;  %7954 = vmatprep.subr.mxu0 %v23883_v52  ;;  %v23889_v52 = vld [vmem:[#allocation172_spill] sm:$0xff] }
 0x6b2   :  { %8132 = vmatprep.subr.mxu1 %v23813_v7  ;;  %7958 = vmatpush1.msra.mxu0 %v23884_v54  ;;  %v23890_v54 = vld [vmem:[#allocation175_spill] sm:$0xff] }
 0x6b3   :  { %8134 = vmatpush1.msra.mxu1 %v23815_v31  ;;  %7962 = vmatprep.subr.mxu0 %v23885_v63  ;;  %v23891_v63 = vld [vmem:[#allocation178_spill] sm:$0xff] }
 0x6b4   :  { %8136 = vmatprep.subr.mxu1 %v23817_v56  ;;  %7966 = vmatpush1.msra.mxu0 %v23886_v50  ;;  %v23892_v50 = vld [vmem:[#allocation181_spill] sm:$0xff] }
 0x6b5   :  { %8138 = vmatpush1.msra.mxu1 %v23819_v45  ;;  %7970 = vmatprep.subr.mxu0 %v23887_v35  ;;  %v23893_v35 = vld [vmem:[#allocation184_spill] sm:$0xff] }
 0x6b6   :  { %8140 = vmatprep.subr.mxu1 %v23821_v58  ;;  %7974 = vmatpush1.msra.mxu0 %v23888_v18  ;;  %v23894_v18 = vld [vmem:[#allocation187_spill] sm:$0xff] }
 0x6b7   :  { %8142 = vmatpush1.msra.mxu1 %v23823_v6  ;;  %7978 = vmatprep.subr.mxu0 %v23889_v52  ;;  %v23895_v52 = vld [vmem:[#allocation190_spill] sm:$0xff] }
 0x6b8   :  { %8144 = vmatprep.subr.mxu1 %v23825_v4  ;;  %7982 = vmatpush1.msra.mxu0 %v23890_v54  ;;  %v23896_v54 = vld [vmem:[#allocation193_spill] sm:$0xff] }
 0x6b9   :  { %8146 = vmatpush1.msra.mxu1 %v23827_v39  ;;  %7986 = vmatprep.subr.mxu0 %v23891_v63  ;;  %v23897_v63 = vld [vmem:[#allocation208_spill] sm:$0xff] }
 0x6ba   :  { %8148 = vmatprep.subr.mxu1 %v23829_v55  ;;  %7990 = vmatpush1.msra.mxu0 %v23892_v50  ;;  %v23898_v50 = vld [vmem:[#allocation212_spill] sm:$0xff] }
 0x6bb   :  { %8150 = vmatpush1.msra.mxu1 %v23831_v24  ;;  %7994 = vmatprep.subr.mxu0 %v23893_v35  ;;  %v23899_v35 = vld [vmem:[#allocation216_spill] sm:$0xff] }
 0x6bc   :  { %8152 = vmatprep.subr.mxu1 %v23833_v57  ;;  %7998 = vmatpush1.msra.mxu0 %v23894_v18  ;;  %v23900_v18 = vld [vmem:[#allocation220_spill] sm:$0xff] }
 0x6bd   :  { %8154 = vmatpush1.msra.mxu1 %v23835_v44  ;;  %8002 = vmatprep.subr.mxu0 %v23895_v52  ;;  %v23901_v52 = vld [vmem:[#allocation223_spill] sm:$0xff] }
 0x6be   :  { %8156 = vmatprep.subr.mxu1 %v23837_v29  ;;  %8006 = vmatpush1.msra.mxu0 %v23896_v54  ;;  %v23902_v54 = vld [vmem:[#allocation226_spill] sm:$0xff] }
 0x6bf   :  { %8158 = vmatpush1.msra.mxu1 %v23839_v53  ;;  %8010 = vmatprep.subr.mxu0 %v23897_v63  ;;  %v23903_v63 = vld [vmem:[#allocation229_spill] sm:$0xff] }
 0x6c0   :  { %8160 = vmatprep.subr.mxu1 %v23841_v49  ;;  %8014 = vmatpush1.msra.mxu0 %v23898_v50  ;;  %v23904_v50 = vld [vmem:[#allocation232_spill] sm:$0xff] }
 0x6c1   :  { %8162 = vmatpush1.msra.mxu1 %v23842_v26  ;;  %8018 = vmatprep.subr.mxu0 %v23899_v35  ;;  %v23908_v35 = vld [vmem:[#allocation25_spill] sm:$0xff] }
 0x6c2   :  { %8164 = vmatprep.subr.mxu1 %v23843_v46  ;;  %8022 = vmatpush1.msra.mxu0 %v23900_v18  ;;  %v23905_v18 = vld [vmem:[#allocation236_spill] sm:$0xff] }
 0x6c3   :  { %8166 = vmatpush1.msra.mxu1 %v23844_v5  ;;  %8026 = vmatprep.subr.mxu0 %v23901_v52  ;;  %v23906_v52 = vld [vmem:[#allocation239_spill] sm:$0xff] }
 0x6c4   :  { %8168 = vmatprep.subr.mxu1 %v23845_v32  ;;  %8030 = vmatpush1.msra.mxu0 %v23902_v54  ;;  %v23907_v54 = vld [vmem:[#allocation242_spill] sm:$0xff] }
 0x6c5   :  { %8170 = vmatpush1.msra.mxu1 %v23846_v60  ;;  %8034 = vmatprep.subr.mxu0 %v23903_v63  ;;  %v23909_v63 = vld [vmem:[#allocation245_spill] sm:$0xff]  ;;  %v23917_v60 = vld [vmem:[#allocation254_spill] sm:$0xff] }
 0x6c6   :  { %8172 = vmatprep.subr.mxu1 %v23847_v28  ;;  %8038 = vmatpush1.msra.mxu0 %v23904_v50  ;;  %v23911_v50 = vld [vmem:[#allocation248_spill] sm:$0xff] }
 0x6c7   :  { %8174 = vmatpush1.msra.mxu1 %v23848_v34  ;;  %8207 = vmatprep.mubr.f32.mxu1 %v22957_v16  ;;  %v23913_v34 = vld [vmem:[#allocation250_spill] sm:$0xff]  ;;  %v23915_v28 = vld [vmem:[#allocation252_spill] sm:$0xff] }
 0x6c8   :  { %8042 = vmatprep.subr.mxu0 %v23905_v18  ;;  %8209 = vmatmul.mubr.f32.vlgmr.msra.gmra.mxu1 %v19640_v33  ;;  %v23914_v18 = vld [vmem:[#allocation34_spill] sm:$0xff] }
 0x6c9   :  { %8046 = vmatpush1.msra.mxu0 %v23906_v52  ;;  %8103 = vmatprep.mubr.f32.mxu0 %v22957_v16  ;;  %v23916_v52 = vld [vmem:[#allocation37_spill] sm:$0xff] }
 0x6ca   :  { %8050 = vmatprep.subr.mxu0 %v23907_v54  ;;  %8363 = vmatprep.subr.mxu1 %v23908_v35  ;;  %v23918_v54 = vld [vmem:[#allocation40_spill] sm:$0xff] }
 0x6cb   :  { %8054 = vmatpush1.msra.mxu0 %v23909_v63  ;;  %8369 = vmatpush1.msra.mxu1 %v23910_v30  ;;  %v23919_v63 = vld [vmem:[#allocation43_spill] sm:$0xff] }
 0x6cc   :  { %8058 = vmatprep.subr.mxu0 %v23911_v50  ;;  %8375 = vmatprep.subr.mxu1 %v23912_v42  ;;  %v23920_v30 = vld [vmem:[#allocation47_spill] sm:$0xff]  ;;  %v23921_v42 = vld [vmem:[#allocation57_spill] sm:$0xff] }
 0x6cd   :  { %8062 = vmatpush1.msra.mxu0 %v23913_v34  ;;  %8381 = vmatpush1.msra.mxu1 %v23914_v18  ;;  %v23922_v18 = vld [vmem:[#allocation60_spill] sm:$0xff]  ;;  %v23953_v34 = vld [vmem:[#allocation117_spill] sm:$0xff] }
 0x6ce   :  { %8066 = vmatprep.subr.mxu0 %v23915_v28  ;;  %8387 = vmatprep.subr.mxu1 %v23916_v52  ;;  %v23923_v52 = vld [vmem:[#allocation63_spill] sm:$0xff]  ;;  %v23951_v28 = vld [vmem:[#allocation110_spill] sm:$0xff]  ;;  %v23955_v50 = vld [vmem:[#allocation9_spill] sm:$0xff] }
 0x6cf   :  { %8070 = vmatpush1.msra.mxu0 %v23917_v60  ;;  %8393 = vmatpush1.msra.mxu1 %v23918_v54  ;;  %v23924_v54 = vld [vmem:[#allocation66_spill] sm:$0xff] }
 0x6d0   :  { %8105 = vmatmul.mubr.f32.vlgmr.msra.gmra.mxu0 %v19640_v33  ;;  %8399 = vmatprep.subr.mxu1 %v23919_v63  ;;  %v23925_v33 = vld [vmem:[#allocation69_spill] sm:$0xff]  ;;  %v23946_v60 = vld [vmem:[#allocation134_spill] sm:$0xff] }
 0x6d1   :  { %8405 = vmatpush1.msra.mxu1 %v23920_v30  ;;  %8251 = vmatprep.subr.mxu0 %v23206_v9  ;;  %v23926_v30 = vld [vmem:[#allocation72_spill] sm:$0xff]  ;;  %v23944_v63 = vld [vmem:[#allocation133_spill] sm:$0xff] }
 0x6d2   :  { %8411 = vmatprep.subr.mxu1 %v23921_v42  ;;  %8253 = vmatpush1.msra.mxu0 %v23208_v61  ;;  %v23927_v42 = vld [vmem:[#allocation75_spill] sm:$0xff] }
 0x6d3   :  { %8417 = vmatpush1.msra.mxu1 %v23922_v18  ;;  %8255 = vmatprep.subr.mxu0 %v23210_v27  ;;  %v23928_v18 = vld [vmem:[#allocation79_spill] sm:$0xff] }
 0x6d4   :  { %8423 = vmatprep.subr.mxu1 %v23923_v52  ;;  %8257 = vmatpush1.msra.mxu0 %v23212_v20  ;;  %v23929_v52 = vld [vmem:[#allocation89_spill] sm:$0xff] }
 0x6d5   :  { %8429 = vmatpush1.msra.mxu1 %v23924_v54  ;;  %8259 = vmatprep.subr.mxu0 %v23214_v8  ;;  %v23930_v54 = vld [vmem:[#allocation92_spill] sm:$0xff] }
 0x6d6   :  { %8435 = vmatprep.subr.mxu1 %v23925_v33  ;;  %8261 = vmatpush1.msra.mxu0 %v23216_v41  ;;  %v23931_v33 = vld [vmem:[#allocation95_spill] sm:$0xff] }
 0x6d7   :  { %8441 = vmatpush1.msra.mxu1 %v23926_v30  ;;  %8263 = vmatprep.subr.mxu0 %v23218_v2  ;;  %v23932_v30 = vld [vmem:[#allocation98_spill] sm:$0xff] }
 0x6d8   :  { %8447 = vmatprep.subr.mxu1 %v23927_v42  ;;  %8265 = vmatpush1.msra.mxu0 %v23220_v14  ;;  %v23933_v42 = vld [vmem:[#allocation101_spill] sm:$0xff] }
 0x6d9   :  { %8453 = vmatpush1.msra.mxu1 %v23928_v18  ;;  %8267 = vmatprep.subr.mxu0 %v23222_v15  ;;  %v23934_v18 = vld [vmem:[#allocation104_spill] sm:$0xff] }
 0x6da   :  { %8459 = vmatprep.subr.mxu1 %v23929_v52  ;;  %8269 = vmatpush1.msra.mxu0 %v23224_v59  ;;  %v23935_v52 = vld [vmem:[#allocation107_spill] sm:$0xff] }
 0x6db   :  { %8465 = vmatpush1.msra.mxu1 %v23930_v54  ;;  %8271 = vmatprep.subr.mxu0 %v23226_v36  ;;  %v23936_v54 = vld [vmem:[#allocation111_spill] sm:$0xff] }
 0x6dc   :  { %8471 = vmatprep.subr.mxu1 %v23931_v33  ;;  %8273 = vmatpush1.msra.mxu0 %v23228_v3  ;;  %v23937_v33 = vld [vmem:[#allocation121_spill] sm:$0xff] }
 0x6dd   :  { %8477 = vmatpush1.msra.mxu1 %v23932_v30  ;;  %8275 = vmatprep.subr.mxu0 %v23230_v37  ;;  %v23938_v30 = vld [vmem:[#allocation124_spill] sm:$0xff] }
 0x6de   :  { %8483 = vmatprep.subr.mxu1 %v23933_v42  ;;  %8277 = vmatpush1.msra.mxu0 %v23232_v10  ;;  %v23939_v42 = vld [vmem:[#allocation127_spill] sm:$0xff] }
 0x6df   :  { %8489 = vmatpush1.msra.mxu1 %v23934_v18  ;;  %8279 = vmatprep.subr.mxu0 %v23234_v43  ;;  %v23940_v18 = vld [vmem:[#allocation129_spill] sm:$0xff] }
 0x6e0   :  { %8495 = vmatprep.subr.mxu1 %v23935_v52  ;;  %8281 = vmatpush1.msra.mxu0 %v23236_v62  ;;  %v23941_v52 = vld [vmem:[#allocation131_spill] sm:$0xff]  ;;  %v6840_v5 = vpop.f32.mrf.mxu1 }
 0x6e1   :  { %8501 = vmatpush1.msra.mxu1 %v23936_v54  ;;  %8283 = vmatprep.subr.mxu0 %v23238_v19  ;;  %v23942_v54 = vld [vmem:[#allocation132_spill] sm:$0xff] }
 0x6e2   :  { %8507 = vmatprep.subr.mxu1 %v23937_v33  ;;  %8285 = vmatpush1.msra.mxu0 %v23240_v51  ;;  %v23943_v33 = vld [vmem:[#allocation85_spill] sm:$0xff]  ;;  %v6842_v26 = vpop.f32.mrf.mxu1 }
 0x6e3   :  { %8513 = vmatpush1.msra.mxu1 %v23938_v30  ;;  %8287 = vmatprep.subr.mxu0 %v23242_v17  ;;  %v23945_v30 = vld [vmem:[#allocation88_spill] sm:$0xff] }
 0x6e4   :  { %8519 = vmatprep.subr.mxu1 %v23939_v42  ;;  %8289 = vmatpush1.msra.mxu0 %v23244_v40  ;;  %v23947_v42 = vld [vmem:[#allocation97_spill] sm:$0xff] }
 0x6e5   :  { %8525 = vmatpush1.msra.mxu1 %v23940_v18  ;;  %8291 = vmatprep.subr.mxu0 %v23246_v12  ;;  %v23948_v18 = vld [vmem:[#allocation100_spill] sm:$0xff] }
 0x6e6   :  { %8531 = vmatprep.subr.mxu1 %v23941_v52  ;;  %8293 = vmatpush1.msra.mxu0 %v23248_v48  ;;  %v23949_v52 = vld [vmem:[#allocation103_spill] sm:$0xff] }
 0x6e7   :  { %8537 = vmatpush1.msra.mxu1 %v23942_v54  ;;  %8295 = vmatprep.subr.mxu0 %v23943_v33  ;;  %v23950_v54 = vld [vmem:[#allocation106_spill] sm:$0xff] }
 0x6e8   :  { %8543 = vmatprep.subr.mxu1 %v23944_v63  ;;  %8297 = vmatpush1.msra.mxu0 %v23945_v30  ;;  %v23952_v63 = vld [vmem:[#allocation114_spill] sm:$0xff]  ;;  %v6608_v35 = vpop.f32.mrf.mxu0 }
 0x6e9   :  { %8549 = vmatpush1.msra.mxu1 %v23946_v60  ;;  %8299 = vmatprep.subr.mxu0 %v23947_v42  ;;  %v23954_v60 = vld [vmem:[#allocation120_spill] sm:$0xff]  ;;  %v6841_v29 = vadd.f32 %v6840_v5, %v6608_v35 }
 0x6ea   :  { %8582 = vmatprep.mubr.f32.mxu1 %v22957_v16  ;;  %8728 = vmatprep.subr.mxu1 %v23206_v9  ;;  %v6610_v32 = vpop.f32.mrf.mxu0 }
 0x6eb   :  { %8301 = vmatpush1.msra.mxu0 %v23948_v18  ;;  %8346 = vmatprep.mubr.f32.mxu0 %v22957_v16  ;;  %v6843_v53 = vadd.f32 %v6842_v26, %v6610_v32 }
 0x6ec   :  { %8303 = vmatprep.subr.mxu0 %v23949_v52 }
 0x6ed   :  { %8305 = vmatpush1.msra.mxu0 %v23950_v54 }
 0x6ee   :  { %8307 = vmatprep.subr.mxu0 %v23951_v28 }
 0x6ef   :  { %8309 = vmatpush1.msra.mxu0 %v23952_v63 }
 0x6f0   :  { %8311 = vmatprep.subr.mxu0 %v23953_v34 }
 0x6f1   :  { %8313 = vmatpush1.msra.mxu0 %v23954_v60 }
 0x6f2   :  { %8592 = vmatprep.subr.mxu0 %v23955_v50 }
 0x700   :  { %v7083_v44 = vpop.f32.mrf.mxu1 }
 0x702   :  { %v7085_v39 = vpop.f32.mrf.mxu1 }
 0x709   :  { %v6977_v46 = vpop.f32.mrf.mxu0 }
 0x70a   :  { %v6978_v55 = vadd.f32 %v6977_v46, %v6841_v29 }
 0x70b   :  { %v6979_v49 = vpop.f32.mrf.mxu0 }
 0x70c   :  { %v6980_v24 = vadd.f32 %v6979_v49, %v6843_v53  ;;  %v7084_v45 = vadd.f32 %v7083_v44, %v6978_v55 }
 0x70e   :  { %v7086_v6 = vadd.f32 %v7085_v39, %v6980_v24 }
 0x722   :  { %v7355_v58 = vpop.f32.mrf.mxu1 }
 0x724   :  { %v7357_v50 = vpop.f32.mrf.mxu1 }
 0x72b   :  { %v7251_v57 = vpop.f32.mrf.mxu0 }
 0x72c   :  { %v7252_v31 = vadd.f32 %v7251_v57, %v7084_v45 }
 0x72d   :  { %v7253_v4 = vpop.f32.mrf.mxu0 }
 0x72e   :  { %v7254_v56 = vadd.f32 %v7253_v4, %v7086_v6  ;;  %v7356_v22 = vadd.f32 %v7355_v58, %v7252_v31 }
 0x730   :  { %v7358_v7 = vadd.f32 %v7357_v50, %v7254_v56  ;;  %v8215_v11 = vadd.f32 %v7356_v22, %v6498_v21 }
 0x732   :  { %v8216_v38 = vadd.f32 %v7358_v7, %v6499_v13  ;;  %v16841_v5 = vmul.f32 -1.442695, %v8215_v11 }
 0x734   :  { %v16842_v32 = vmul.f32 -1.442695, %v8216_v38 }
 0x736   :  { %17253 = vpow2.f32 %v16842_v32 }
 0x737   :  { %17255 = vpow2.f32 %v16841_v5  ;;  %v6500_v5 = vld [vmem:[#allocation2 + $0x28] sm:$0x3] }
 0x743   :  { %v17254_v4 = vpop.eup %17253 }
 0x744   :  { %v7695_v46 = vpop.f32.mrf.mxu1  ;;  %v17256_v56 = vpop.eup %17255  ;;  %v8228_v11 = vadd.f32 1.0, %v17254_v4 }
 0x745   :  { %v8222_v22 = vadd.f32 1.0, %v17256_v56 }
 0x746   :  { %v7697_v53 = vpop.f32.mrf.mxu1  ;;  %17257 = vrcp.f32 %v8228_v11 }
 0x747   :  { %17259 = vrcp.f32 %v8222_v22 }
 0x74d   :  { %v7463_v35 = vpop.f32.mrf.mxu0 }
 0x74e   :  { %v7696_v29 = vadd.f32 %v7695_v46, %v7463_v35 }
 0x74f   :  { %v7465_v26 = vpop.f32.mrf.mxu0 }
 0x750   :  { %v7698_v57 = vadd.f32 %v7697_v53, %v7465_v26  ;;  %v6501_v26 = vld [vmem:[#allocation2 + $0x38] sm:$0x3] }
 0x766   :  { %v7938_v44 = vpop.f32.mrf.mxu1 }
 0x768   :  { %v7940_v31 = vpop.f32.mrf.mxu1 }
 0x76f   :  { %v7832_v49 = vpop.f32.mrf.mxu0 }
 0x770   :  { %v7833_v55 = vadd.f32 %v7832_v49, %v7696_v29  ;;  %v17258_v29 = vpop.eup %17257 }
 0x771   :  { %v7834_v24 = vpop.f32.mrf.mxu0 }
 0x772   :  { %v7835_v39 = vadd.f32 %v7834_v24, %v7698_v57  ;;  %v7939_v58 = vadd.f32 %v7938_v44, %v7833_v55  ;;  %v17260_v44 = vpop.eup %17259  ;;  %v23956_v24 = vld [vmem:[#allocation137_spill] sm:$0xff] }
 0x773   :  { %v8239_v57 = vrot.slane %v23956_v24, 6  ;;  %v23968_v24 = vld [vmem:[#allocation49_spill] sm:$0xff] }
 0x774   :  { %v7941_v13 = vadd.f32 %v7940_v31, %v7835_v39 }
 0x775   :  { %v8241_v39 = vmul.f32 %v17258_v29, %v8239_v57  ;;  %v23966_v29 = vld [vmem:[#allocation41_spill] sm:$0xff]  ;;  %v23969_v57 = vld [vmem:[#allocation52_spill] sm:$0xff] }
 0x788   :  { %v8210_v6 = vpop.f32.mrf.mxu1 }
 0x78a   :  { %v8212_v32 = vpop.f32.mrf.mxu1 }
 0x790   :  { %v8106_v38 = vpop.f32.mrf.mxu0 }
 0x791   :  { %v8107_v21 = vadd.f32 %v8106_v38, %v7939_v58 }
 0x792   :  { %v8108_v7 = vpop.f32.mrf.mxu0 }
 0x793   :  { %v8211_v45 = vadd.f32 %v8210_v6, %v8107_v21  ;;  %v8109_v50 = vadd.f32 %v8108_v7, %v7941_v13 }
 0x795   :  { %v8217_v35 = vadd.f32 %v8211_v45, %v6500_v5  ;;  %v8213_v46 = vadd.f32 %v8212_v32, %v8109_v50  ;;  %v23958_v50 = vld [vmem:[#allocation11_spill] sm:$0xff]  ;;  %v23959_v32 = vld [vmem:[#allocation14_spill] sm:$0xff]  ;;  %v23960_v5 = vld [vmem:[#allocation17_spill] sm:$0xff] }
 0x797   :  { %17261 = vtanh.f32 %v8217_v35  ;;  %v8218_v49 = vadd.f32 %v8213_v46, %v6501_v26  ;;  %v23961_v35 = vld [vmem:[#allocation20_spill] sm:$0xff]  ;;  %v23962_v46 = vld [vmem:[#allocation23_spill] sm:$0xff] }
 0x798   :  { %v23963_v26 = vld [vmem:[#allocation27_spill] sm:$0xff] }
 0x799   :  { %v16843_v53 = vmul.f32 -1.442695, %v8218_v49  ;;  %v23964_v49 = vld [vmem:[#allocation30_spill] sm:$0xff] }
 0x79b   :  { %17263 = vpow2.f32 %v16843_v53  ;;  %v23965_v53 = vld [vmem:[#allocation38_spill] sm:$0xff] }
 0x7a4   :  { %v17262_v55 = vpop.eup %17261 }
 0x7a5   :  { %v8242_v4 = vmul.f32 %v17262_v55, %v17260_v44  ;;  %v23967_v44 = vld [vmem:[#allocation45_spill] sm:$0xff]  ;;  %v23970_v55 = vld [vmem:[#allocation55_spill] sm:$0xff] }
 0x7a7   :  { %v20061_v31 = vadd.f32 %v8242_v4, %v8241_v39  ;;  %v23971_v39 = vld [vmem:[#allocation59_spill] sm:$0xff]  ;;  %v23972_v4 = vld [vmem:[#allocation62_spill] sm:$0xff] }
 0x7a8   :  { %v17264_v56 = vpop.eup %17263 }
 0x7a9   :  { %23957 = vst [vmem:[#allocation7_spill] sm:$0xff] %v20061_v31  ;;  %v8235_v58 = vadd.f32 1.0, %v17264_v56  ;;  %17265 = vtanh.f32 %v20061_v31  ;;  %v23973_v56 = vld [vmem:[#allocation70_spill] sm:$0xff]  ;;  %v24065_v31 = vld [vmem:[#allocation259_spill] sm:$0xff] }
 0x7ab   :  { %17267 = vrcp.f32 %v8235_v58  ;;  %v23974_v58 = vld [vmem:[#allocation73_spill] sm:$0xff] }
 0x7b6   :  { %v17266_v6 = vpop.eup %17265 }
 0x7b8   :  { %v17268_v38 = vpop.eup %17267 }
 0x7b9   :  { %v8245_v11 = vmul.f32 %v17268_v38, %v17266_v6  ;;  %v23975_v6 = vld [vmem:[#allocation77_spill] sm:$0xff] }
 0x7ba   :  { %v23976_v38 = vld [vmem:[#allocation81_spill] sm:$0xff] }
 0x7bb   :  { %v20064_v21 = vand.u32 4294901760, %v8245_v11 }
 0x7bd   :  { %8584 = vmatmul.mubr.f32.vlgmr.msra.gmra.mxu1 %v20064_v21  ;;  %v20068_v13 = vsub.f32 %v8245_v11, %v20064_v21  ;;  %v23977_v11 = vld [vmem:[#allocation84_spill] sm:$0xff] }
 0x7be   :  { %8730 = vmatpush1.msra.mxu1 %v23208_v61  ;;  %8823 = vmatprep.mubr.f32.mxu1 %v22957_v16 }
 0x7bf   :  { %8732 = vmatprep.subr.mxu1 %v23210_v27  ;;  %v20074_v22 = vand.u32 4294901760, %v20068_v13 }
 0x7c0   :  { %8734 = vmatpush1.msra.mxu1 %v23212_v20 }
 0x7c1   :  { %8736 = vmatprep.subr.mxu1 %v23214_v8  ;;  %v8350_v7 = vsub.f32 %v20068_v13, %v20074_v22 }
 0x7c2   :  { %8738 = vmatpush1.msra.mxu1 %v23216_v41 }
 0x7c3   :  { %8740 = vmatprep.subr.mxu1 %v23218_v2  ;;  %v20082_v45 = vand.u32 4294901760, %v8350_v7  ;;  %v23978_v7 = vld [vmem:[#allocation87_spill] sm:$0xff] }
 0x7c4   :  { %8742 = vmatpush1.msra.mxu1 %v23220_v14 }
 0x7c5   :  { %8744 = vmatprep.subr.mxu1 %v23222_v15  ;;  %8352 = vmatmul.mubr.f32.vlgmr.msra.gmra.mxu0 %v20082_v45 }
 0x7c6   :  { %8595 = vmatpush1.msra.mxu0 %v23958_v50  ;;  %8746 = vmatpush1.msra.mxu1 %v23224_v59  ;;  %v24063_v50 = vld [vmem:[#allocation258_spill] sm:$0xff] }
 0x7c7   :  { %8598 = vmatprep.subr.mxu0 %v23959_v32  ;;  %8748 = vmatprep.subr.mxu1 %v23226_v36  ;;  %v24061_v32 = vld [vmem:[#allocation257_spill] sm:$0xff] }
 0x7c8   :  { %8601 = vmatpush1.msra.mxu0 %v23960_v5  ;;  %8750 = vmatpush1.msra.mxu1 %v23228_v3  ;;  %v24059_v5 = vld [vmem:[#allocation256_spill] sm:$0xff] }
 0x7c9   :  { %8604 = vmatprep.subr.mxu0 %v23961_v35  ;;  %8752 = vmatprep.subr.mxu1 %v23230_v37  ;;  %v24057_v35 = vld [vmem:[#allocation255_spill] sm:$0xff] }
 0x7ca   :  { %8607 = vmatpush1.msra.mxu0 %v23962_v46  ;;  %8754 = vmatpush1.msra.mxu1 %v23232_v10  ;;  %v24055_v46 = vld [vmem:[#allocation253_spill] sm:$0xff] }
 0x7cb   :  { %8610 = vmatprep.subr.mxu0 %v23963_v26  ;;  %8756 = vmatprep.subr.mxu1 %v23234_v43  ;;  %v24053_v26 = vld [vmem:[#allocation251_spill] sm:$0xff] }
 0x7cc   :  { %8613 = vmatpush1.msra.mxu0 %v23964_v49  ;;  %8758 = vmatpush1.msra.mxu1 %v23236_v62  ;;  %v24051_v49 = vld [vmem:[#allocation249_spill] sm:$0xff] }
 0x7cd   :  { %8616 = vmatprep.subr.mxu0 %v23965_v53  ;;  %8760 = vmatprep.subr.mxu1 %v23238_v19  ;;  %v24049_v53 = vld [vmem:[#allocation247_spill] sm:$0xff] }
 0x7ce   :  { %8619 = vmatpush1.msra.mxu0 %v23966_v29  ;;  %8762 = vmatpush1.msra.mxu1 %v23240_v51  ;;  %v24047_v29 = vld [vmem:[#allocation244_spill] sm:$0xff] }
 0x7cf   :  { %8622 = vmatprep.subr.mxu0 %v23967_v44  ;;  %8764 = vmatprep.subr.mxu1 %v23242_v17  ;;  %v24045_v44 = vld [vmem:[#allocation241_spill] sm:$0xff] }
 0x7d0   :  { %8625 = vmatpush1.msra.mxu0 %v23968_v24  ;;  %8766 = vmatpush1.msra.mxu1 %v23244_v40  ;;  %v24024_v24 = vld [vmem:[#allocation186_spill] sm:$0xff] }
 0x7d1   :  { %8628 = vmatprep.subr.mxu0 %v23969_v57  ;;  %8768 = vmatprep.subr.mxu1 %v23246_v12  ;;  %v24022_v57 = vld [vmem:[#allocation183_spill] sm:$0xff] }
 0x7d2   :  { %8631 = vmatpush1.msra.mxu0 %v23970_v55  ;;  %8770 = vmatpush1.msra.mxu1 %v23248_v48  ;;  %v24021_v55 = vld [vmem:[#allocation122_spill] sm:$0xff] }
 0x7d3   :  { %8634 = vmatprep.subr.mxu0 %v23971_v39  ;;  %8772 = vmatprep.subr.mxu1 %v23943_v33  ;;  %v24019_v39 = vld [vmem:[#allocation118_spill] sm:$0xff] }
 0x7d4   :  { %8637 = vmatpush1.msra.mxu0 %v23972_v4  ;;  %8774 = vmatpush1.msra.mxu1 %v23945_v30  ;;  %v24017_v4 = vld [vmem:[#allocation115_spill] sm:$0xff] }
 0x7d5   :  { %8640 = vmatprep.subr.mxu0 %v23973_v56  ;;  %8776 = vmatprep.subr.mxu1 %v23947_v42  ;;  %v23979_v56 = vld [vmem:[#allocation91_spill] sm:$0xff] }
 0x7d6   :  { %8643 = vmatpush1.msra.mxu0 %v23974_v58  ;;  %8778 = vmatpush1.msra.mxu1 %v23948_v18  ;;  %v23980_v58 = vld [vmem:[#allocation94_spill] sm:$0xff] }
 0x7d7   :  { %8646 = vmatprep.subr.mxu0 %v23975_v6  ;;  %8780 = vmatprep.subr.mxu1 %v23949_v52  ;;  %v23981_v6 = vld [vmem:[#allocation102_spill] sm:$0xff] }
 0x7d8   :  { %8649 = vmatpush1.msra.mxu0 %v23976_v38  ;;  %8782 = vmatpush1.msra.mxu1 %v23950_v54  ;;  %v23987_v38 = vld [vmem:[#allocation123_spill] sm:$0xff] }
 0x7d9   :  { %8652 = vmatprep.subr.mxu0 %v23977_v11  ;;  %8784 = vmatprep.subr.mxu1 %v23951_v28  ;;  %v23982_v11 = vld [vmem:[#allocation105_spill] sm:$0xff] }
 0x7da   :  { %8655 = vmatpush1.msra.mxu0 %v23978_v7  ;;  %8786 = vmatpush1.msra.mxu1 %v23952_v63  ;;  %v23983_v7 = vld [vmem:[#allocation109_spill] sm:$0xff] }
 0x7db   :  { %8658 = vmatprep.subr.mxu0 %v23979_v56  ;;  %8788 = vmatprep.subr.mxu1 %v23953_v34  ;;  %v23984_v56 = vld [vmem:[#allocation113_spill] sm:$0xff] }
 0x7dc   :  { %8661 = vmatpush1.msra.mxu0 %v23980_v58  ;;  %8790 = vmatpush1.msra.mxu1 %v23954_v60  ;;  %v23985_v58 = vld [vmem:[#allocation116_spill] sm:$0xff] }
 0x7dd   :  { %8664 = vmatprep.subr.mxu0 %v23981_v6  ;;  %8827 = vmatmul.mubr.f32.vlgmr.msra.gmra.mxu1 %v20074_v22  ;;  %v23986_v6 = vld [vmem:[#allocation119_spill] sm:$0xff] }
 0x7de   :  { %9002 = vmatprep.subr.mxu1 %v23206_v9  ;;  %8667 = vmatpush1.msra.mxu0 %v23982_v11  ;;  %v23988_v11 = vld [vmem:[#allocation126_spill] sm:$0xff] }
 0x7df   :  { %9004 = vmatpush1.msra.mxu1 %v23208_v61  ;;  %8670 = vmatprep.subr.mxu0 %v23983_v7  ;;  %v23994_v7 = vld [vmem:[#allocation29_spill] sm:$0xff] }
 0x7e0   :  { %9006 = vmatprep.subr.mxu1 %v23210_v27  ;;  %8673 = vmatpush1.msra.mxu0 %v23984_v56  ;;  %v23989_v56 = vld [vmem:[#allocation13_spill] sm:$0xff] }
 0x7e1   :  { %9008 = vmatpush1.msra.mxu1 %v23212_v20  ;;  %8676 = vmatprep.subr.mxu0 %v23985_v58  ;;  %v23990_v58 = vld [vmem:[#allocation16_spill] sm:$0xff] }
 0x7e2   :  { %9010 = vmatprep.subr.mxu1 %v23214_v8  ;;  %8679 = vmatpush1.msra.mxu0 %v23986_v6  ;;  %v23991_v6 = vld [vmem:[#allocation19_spill] sm:$0xff] }
 0x7e3   :  { %9012 = vmatpush1.msra.mxu1 %v23216_v41  ;;  %8682 = vmatprep.subr.mxu0 %v23987_v38  ;;  %v23992_v38 = vld [vmem:[#allocation22_spill] sm:$0xff] }
 0x7e4   :  { %9014 = vmatprep.subr.mxu1 %v23218_v2  ;;  %8685 = vmatpush1.msra.mxu0 %v23988_v11  ;;  %v23993_v11 = vld [vmem:[#allocation26_spill] sm:$0xff] }
 0x7e5   :  { %8718 = vmatprep.mubr.f32.mxu0 %v22957_v16  ;;  %9016 = vmatpush1.msra.mxu1 %v23220_v14 }
 0x7e6   :  { %8721 = vmatmul.mubr.f32.vlgmr.msra.gmra.mxu0 %v20068_v13  ;;  %8836 = vmatprep.subr.mxu0 %v23989_v56  ;;  %v23995_v56 = vld [vmem:[#allocation32_spill] sm:$0xff] }
 0x7e7   :  { %9018 = vmatprep.subr.mxu1 %v23222_v15  ;;  %8840 = vmatpush1.msra.mxu0 %v23990_v58  ;;  %v23996_v58 = vld [vmem:[#allocation35_spill] sm:$0xff] }
 0x7e8   :  { %9020 = vmatpush1.msra.mxu1 %v23224_v59  ;;  %8844 = vmatprep.subr.mxu0 %v23991_v6  ;;  %v23997_v6 = vld [vmem:[#allocation44_spill] sm:$0xff] }
 0x7e9   :  { %9022 = vmatprep.subr.mxu1 %v23226_v36  ;;  %8848 = vmatpush1.msra.mxu0 %v23992_v38  ;;  %v23998_v38 = vld [vmem:[#allocation48_spill] sm:$0xff] }
 0x7ea   :  { %9024 = vmatpush1.msra.mxu1 %v23228_v3  ;;  %8852 = vmatprep.subr.mxu0 %v23993_v11  ;;  %v23999_v11 = vld [vmem:[#allocation51_spill] sm:$0xff] }
 0x7eb   :  { %9026 = vmatprep.subr.mxu1 %v23230_v37  ;;  %8856 = vmatpush1.msra.mxu0 %v23994_v7  ;;  %v24000_v7 = vld [vmem:[#allocation54_spill] sm:$0xff] }
 0x7ec   :  { %9028 = vmatpush1.msra.mxu1 %v23232_v10  ;;  %8860 = vmatprep.subr.mxu0 %v23995_v56  ;;  %v24001_v56 = vld [vmem:[#allocation58_spill] sm:$0xff] }
 0x7ed   :  { %9030 = vmatprep.subr.mxu1 %v23234_v43  ;;  %8864 = vmatpush1.msra.mxu0 %v23996_v58  ;;  %v24002_v58 = vld [vmem:[#allocation61_spill] sm:$0xff] }
 0x7ee   :  { %9032 = vmatpush1.msra.mxu1 %v23236_v62  ;;  %8868 = vmatprep.subr.mxu0 %v23997_v6  ;;  %v24003_v6 = vld [vmem:[#allocation64_spill] sm:$0xff] }
 0x7ef   :  { %9034 = vmatprep.subr.mxu1 %v23238_v19  ;;  %8872 = vmatpush1.msra.mxu0 %v23998_v38  ;;  %v24004_v38 = vld [vmem:[#allocation67_spill] sm:$0xff] }
 0x7f0   :  { %9036 = vmatpush1.msra.mxu1 %v23240_v51  ;;  %8876 = vmatprep.subr.mxu0 %v23999_v11  ;;  %v24005_v11 = vld [vmem:[#allocation76_spill] sm:$0xff] }
 0x7f1   :  { %9038 = vmatprep.subr.mxu1 %v23242_v17  ;;  %8880 = vmatpush1.msra.mxu0 %v24000_v7  ;;  %v24006_v7 = vld [vmem:[#allocation80_spill] sm:$0xff] }
 0x7f2   :  { %9040 = vmatpush1.msra.mxu1 %v23244_v40  ;;  %8884 = vmatprep.subr.mxu0 %v24001_v56  ;;  %v24007_v56 = vld [vmem:[#allocation83_spill] sm:$0xff] }
 0x7f3   :  { %9042 = vmatprep.subr.mxu1 %v23246_v12  ;;  %8888 = vmatpush1.msra.mxu0 %v24002_v58  ;;  %v24008_v58 = vld [vmem:[#allocation86_spill] sm:$0xff] }
 0x7f4   :  { %9044 = vmatpush1.msra.mxu1 %v23248_v48  ;;  %8892 = vmatprep.subr.mxu0 %v24003_v6  ;;  %v24009_v6 = vld [vmem:[#allocation90_spill] sm:$0xff] }
 0x7f5   :  { %9046 = vmatprep.subr.mxu1 %v23943_v33  ;;  %8896 = vmatpush1.msra.mxu0 %v24004_v38  ;;  %v24010_v38 = vld [vmem:[#allocation93_spill] sm:$0xff]  ;;  %v24084_v33 = vld [vmem:[#allocation148_spill] sm:$0xff] }
 0x7f6   :  { %9048 = vmatpush1.msra.mxu1 %v23945_v30  ;;  %8900 = vmatprep.subr.mxu0 %v24005_v11  ;;  %v24011_v11 = vld [vmem:[#allocation96_spill] sm:$0xff]  ;;  %v24083_v30 = vld [vmem:[#allocation145_spill] sm:$0xff] }
 0x7f7   :  { %9050 = vmatprep.subr.mxu1 %v23947_v42  ;;  %8904 = vmatpush1.msra.mxu0 %v24006_v7  ;;  %v24012_v7 = vld [vmem:[#allocation99_spill] sm:$0xff] }
 0x7f8   :  { %9052 = vmatpush1.msra.mxu1 %v23948_v18  ;;  %8908 = vmatprep.subr.mxu0 %v24007_v56  ;;  %v24015_v56 = vld [vmem:[#allocation112_spill] sm:$0xff]  ;;  %v24081_v18 = vld [vmem:[#allocation141_spill] sm:$0xff]  ;;  %v24082_v42 = vld [vmem:[#allocation143_spill] sm:$0xff] }
 0x7f9   :  { %9054 = vmatprep.subr.mxu1 %v23949_v52  ;;  %8912 = vmatpush1.msra.mxu0 %v24008_v58  ;;  %v24013_v58 = vld [vmem:[#allocation108_spill] sm:$0xff] }
 0x7fa   :  { %9056 = vmatpush1.msra.mxu1 %v23950_v54  ;;  %8916 = vmatprep.subr.mxu0 %v24009_v6  ;;  %v24014_v6 = vld [vmem:[#allocation171_spill] sm:$0xff]  ;;  %v24079_v54 = vld [vmem:[#allocation234_spill] sm:$0xff]  ;;  %v24080_v52 = vld [vmem:[#allocation140_spill] sm:$0xff] }
 0x7fb   :  { %9058 = vmatprep.subr.mxu1 %v23951_v28  ;;  %8920 = vmatpush1.msra.mxu0 %v24010_v38  ;;  %v24016_v38 = vld [vmem:[#allocation174_spill] sm:$0xff]  ;;  %v24078_v28 = vld [vmem:[#allocation231_spill] sm:$0xff] }
 0x7fc   :  { %9060 = vmatpush1.msra.mxu1 %v23952_v63  ;;  %8924 = vmatprep.subr.mxu0 %v24011_v11  ;;  %v24018_v11 = vld [vmem:[#allocation177_spill] sm:$0xff]  ;;  %v24071_v63 = vld [vmem:[#allocation262_spill] sm:$0xff] }
 0x7fd   :  { %9062 = vmatprep.subr.mxu1 %v23953_v34  ;;  %8928 = vmatpush1.msra.mxu0 %v24012_v7  ;;  %v24020_v7 = vld [vmem:[#allocation180_spill] sm:$0xff]  ;;  %v24069_v34 = vld [vmem:[#allocation261_spill] sm:$0xff] }
 0x7fe   :  { %9064 = vmatpush1.msra.mxu1 %v23954_v60  ;;  %9097 = vmatprep.mubr.f32.mxu1 %v22957_v16  ;;  %v24067_v60 = vld [vmem:[#allocation260_spill] sm:$0xff] }
 0x7ff   :  { %8932 = vmatprep.subr.mxu0 %v24013_v58  ;;  %9099 = vmatmul.mubr.f32.vlgmr.msra.gmra.mxu1 %v20064_v21  ;;  %v24023_v58 = vld [vmem:[#allocation125_spill] sm:$0xff] }
 0x800   :  { %9218 = vmatprep.subr.mxu1 %v24014_v6  ;;  %8936 = vmatpush1.msra.mxu0 %v24015_v56  ;;  %v24025_v6 = vld [vmem:[#allocation128_spill] sm:$0xff]  ;;  %v24026_v56 = vld [vmem:[#allocation189_spill] sm:$0xff] }
 0x801   :  { %9224 = vmatpush1.msra.mxu1 %v24016_v38  ;;  %8940 = vmatprep.subr.mxu0 %v24017_v4  ;;  %v24027_v38 = vld [vmem:[#allocation130_spill] sm:$0xff] }
 0x802   :  { %9230 = vmatprep.subr.mxu1 %v24018_v11  ;;  %8944 = vmatpush1.msra.mxu0 %v24019_v39  ;;  %v24028_v11 = vld [vmem:[#allocation192_spill] sm:$0xff]  ;;  %v24041_v39 = vld [vmem:[#allocation235_spill] sm:$0xff]  ;;  %v24043_v4 = vld [vmem:[#allocation238_spill] sm:$0xff] }
 0x803   :  { %9236 = vmatpush1.msra.mxu1 %v24020_v7  ;;  %8948 = vmatprep.subr.mxu0 %v24021_v55  ;;  %v24029_v55 = vld [vmem:[#allocation195_spill] sm:$0xff] }
 0x804   :  { %9242 = vmatprep.subr.mxu1 %v24022_v57  ;;  %8952 = vmatpush1.msra.mxu0 %v24023_v58  ;;  %v24030_v58 = vld [vmem:[#allocation198_spill] sm:$0xff]  ;;  %v24037_v57 = vld [vmem:[#allocation215_spill] sm:$0xff] }
 0x805   :  { %9248 = vmatpush1.msra.mxu1 %v24024_v24  ;;  %8956 = vmatprep.subr.mxu0 %v24025_v6  ;;  %v24031_v6 = vld [vmem:[#allocation201_spill] sm:$0xff]  ;;  %v24035_v24 = vld [vmem:[#allocation211_spill] sm:$0xff] }
 0x806   :  { %9254 = vmatprep.subr.mxu1 %v24026_v56  ;;  %8960 = vmatpush1.msra.mxu0 %v24027_v38  ;;  %v24032_v38 = vld [vmem:[#allocation204_spill] sm:$0xff]  ;;  %v24034_v56 = vld [vmem:[#allocation142_spill] sm:$0xff]  ;;  %v24039_v7 = vld [vmem:[#allocation219_spill] sm:$0xff] }
 0x807   :  { %8993 = vmatprep.mubr.f32.mxu0 %v22957_v16  ;;  %9260 = vmatpush1.msra.mxu1 %v24028_v11  ;;  %v24033_v11 = vld [vmem:[#allocation207_spill] sm:$0xff] }
 0x808   :  { %8995 = vmatmul.mubr.f32.vlgmr.msra.gmra.mxu0 %v20064_v21  ;;  %9106 = vmatprep.subr.mxu0 %v18079_v25 }
 0x809   :  { %9266 = vmatprep.subr.mxu1 %v24029_v55  ;;  %9108 = vmatpush1.msra.mxu0 %v18083_v0  ;;  %v24036_v55 = vld [vmem:[#allocation144_spill] sm:$0xff] }
 0x80a   :  { %9272 = vmatpush1.msra.mxu1 %v24030_v58  ;;  %9110 = vmatprep.subr.mxu0 %v18087_v23  ;;  %v24038_v58 = vld [vmem:[#allocation146_spill] sm:$0xff] }
 0x80b   :  { %9278 = vmatprep.subr.mxu1 %v24031_v6  ;;  %9112 = vmatpush1.msra.mxu0 %v18091_v1  ;;  %v24040_v6 = vld [vmem:[#allocation149_spill] sm:$0xff] }
 0x80c   :  { %9284 = vmatpush1.msra.mxu1 %v24032_v38  ;;  %9114 = vmatprep.subr.mxu0 %v18098_v47  ;;  %v24042_v38 = vld [vmem:[#allocation152_spill] sm:$0xff] }
 0x80d   :  { %9290 = vmatprep.subr.mxu1 %v24033_v11  ;;  %9116 = vmatpush1.msra.mxu0 %v24034_v56  ;;  %v24044_v11 = vld [vmem:[#allocation155_spill] sm:$0xff] }
 0x80e   :  { %9296 = vmatpush1.msra.mxu1 %v24035_v24  ;;  %9118 = vmatprep.subr.mxu0 %v24036_v55  ;;  %v24046_v24 = vld [vmem:[#allocation158_spill] sm:$0xff] }
 0x80f   :  { %9302 = vmatprep.subr.mxu1 %v24037_v57  ;;  %9120 = vmatpush1.msra.mxu0 %v24038_v58  ;;  %v24048_v57 = vld [vmem:[#allocation161_spill] sm:$0xff] }
 0x810   :  { %9308 = vmatpush1.msra.mxu1 %v24039_v7  ;;  %9122 = vmatprep.subr.mxu0 %v24040_v6  ;;  %v24050_v7 = vld [vmem:[#allocation164_spill] sm:$0xff] }
 0x811   :  { %9314 = vmatprep.subr.mxu1 %v24041_v39  ;;  %9124 = vmatpush1.msra.mxu0 %v24042_v38  ;;  %v24052_v39 = vld [vmem:[#allocation167_spill] sm:$0xff] }
 0x812   :  { %9320 = vmatpush1.msra.mxu1 %v24043_v4  ;;  %9126 = vmatprep.subr.mxu0 %v24044_v11  ;;  %v24054_v4 = vld [vmem:[#allocation170_spill] sm:$0xff] }
 0x813   :  { %9326 = vmatprep.subr.mxu1 %v24045_v44  ;;  %9128 = vmatpush1.msra.mxu0 %v24046_v24  ;;  %v24056_v44 = vld [vmem:[#allocation185_spill] sm:$0xff] }
 0x814   :  { %9332 = vmatpush1.msra.mxu1 %v24047_v29  ;;  %9130 = vmatprep.subr.mxu0 %v24048_v57  ;;  %v24058_v29 = vld [vmem:[#allocation188_spill] sm:$0xff] }
 0x815   :  { %9338 = vmatprep.subr.mxu1 %v24049_v53  ;;  %9132 = vmatpush1.msra.mxu0 %v24050_v7  ;;  %v24060_v53 = vld [vmem:[#allocation191_spill] sm:$0xff] }
 0x816   :  { %9344 = vmatpush1.msra.mxu1 %v24051_v49  ;;  %9134 = vmatprep.subr.mxu0 %v24052_v39  ;;  %v24062_v49 = vld [vmem:[#allocation194_spill] sm:$0xff] }
 0x817   :  { %9350 = vmatprep.subr.mxu1 %v24053_v26  ;;  %9136 = vmatpush1.msra.mxu0 %v24054_v4  ;;  %v24064_v26 = vld [vmem:[#allocation197_spill] sm:$0xff] }
 0x818   :  { %9356 = vmatpush1.msra.mxu1 %v24055_v46  ;;  %9138 = vmatprep.subr.mxu0 %v24056_v44  ;;  %v24066_v46 = vld [vmem:[#allocation200_spill] sm:$0xff] }
 0x819   :  { %9362 = vmatprep.subr.mxu1 %v24057_v35  ;;  %9140 = vmatpush1.msra.mxu0 %v24058_v29  ;;  %v24068_v35 = vld [vmem:[#allocation203_spill] sm:$0xff] }
 0x81a   :  { %9368 = vmatpush1.msra.mxu1 %v24059_v5  ;;  %9142 = vmatprep.subr.mxu0 %v24060_v53  ;;  %v24070_v5 = vld [vmem:[#allocation206_spill] sm:$0xff] }
 0x81b   :  { %9374 = vmatprep.subr.mxu1 %v24061_v32  ;;  %9144 = vmatpush1.msra.mxu0 %v24062_v49  ;;  %v24072_v32 = vld [vmem:[#allocation210_spill] sm:$0xff] }
 0x81c   :  { %9380 = vmatpush1.msra.mxu1 %v24063_v50  ;;  %9146 = vmatprep.subr.mxu0 %v24064_v26  ;;  %v24077_v50 = vld [vmem:[#allocation228_spill] sm:$0xff] }
 0x81d   :  { %9386 = vmatprep.subr.mxu1 %v24065_v31  ;;  %9148 = vmatpush1.msra.mxu0 %v24066_v46  ;;  %v24073_v31 = vld [vmem:[#allocation214_spill] sm:$0xff] }
 0x81e   :  { %9392 = vmatpush1.msra.mxu1 %v24067_v60  ;;  %9150 = vmatprep.subr.mxu0 %v24068_v35  ;;  %v24074_v60 = vld [vmem:[#allocation218_spill] sm:$0xff] }
 0x81f   :  { %9398 = vmatprep.subr.mxu1 %v24069_v34  ;;  %9152 = vmatpush1.msra.mxu0 %v24070_v5  ;;  %v24075_v34 = vld [vmem:[#allocation222_spill] sm:$0xff] }
 0x820   :  { %9404 = vmatpush1.msra.mxu1 %v24071_v63  ;;  %9437 = vmatprep.mubr.f32.mxu1 %v22957_v16  ;;  %v24076_v63 = vld [vmem:[#allocation225_spill] sm:$0xff] }
 0x821   :  { %9154 = vmatprep.subr.mxu0 %v24072_v32  ;;  %9439 = vmatmul.mubr.f32.vlgmr.msra.gmra.mxu1 %v20064_v21 }
 0x822   :  { %9583 = vmatprep.subr.mxu1 %v18079_v25  ;;  %9156 = vmatpush1.msra.mxu0 %v24073_v31 }
 0x823   :  { %9585 = vmatpush1.msra.mxu1 %v18083_v0  ;;  %9158 = vmatprep.subr.mxu0 %v24074_v60 }
 0x824   :  { %9587 = vmatprep.subr.mxu1 %v18087_v23  ;;  %9160 = vmatpush1.msra.mxu0 %v24075_v34 }
 0x825   :  { %9589 = vmatpush1.msra.mxu1 %v18091_v1  ;;  %9162 = vmatprep.subr.mxu0 %v24076_v63 }
 0x826   :  { %9591 = vmatprep.subr.mxu1 %v18098_v47  ;;  %9164 = vmatpush1.msra.mxu0 %v24077_v50 }
 0x827   :  { %9593 = vmatpush1.msra.mxu1 %v24034_v56  ;;  %9166 = vmatprep.subr.mxu0 %v24078_v28 }
 0x828   :  { %9595 = vmatprep.subr.mxu1 %v24036_v55  ;;  %9168 = vmatpush1.msra.mxu0 %v24079_v54 }
 0x829   :  { %9201 = vmatprep.mubr.f32.mxu0 %v22957_v16  ;;  %9597 = vmatpush1.msra.mxu1 %v24038_v58 }
 0x82a   :  { %9207 = vmatmul.mubr.f32.vlgmr.msra.gmra.mxu0 %v20082_v45  ;;  %9447 = vmatprep.subr.mxu0 %v24080_v52  ;;  %v24085_v45 = vld [vmem:[#allocation151_spill] sm:$0xff]  ;;  %v24086_v52 = vld [vmem:[#allocation154_spill] sm:$0xff] }
 0x82b   :  { %9599 = vmatprep.subr.mxu1 %v24040_v6  ;;  %9450 = vmatpush1.msra.mxu0 %v24081_v18  ;;  %v24087_v18 = vld [vmem:[#allocation157_spill] sm:$0xff] }
 0x82c   :  { %9601 = vmatpush1.msra.mxu1 %v24042_v38  ;;  %9453 = vmatprep.subr.mxu0 %v24082_v42  ;;  %v24088_v42 = vld [vmem:[#allocation160_spill] sm:$0xff] }
 0x82d   :  { %9603 = vmatprep.subr.mxu1 %v24044_v11  ;;  %9456 = vmatpush1.msra.mxu0 %v24083_v30  ;;  %v24089_v30 = vld [vmem:[#allocation163_spill] sm:$0xff] }
 0x82e   :  { %9605 = vmatpush1.msra.mxu1 %v24046_v24  ;;  %9459 = vmatprep.subr.mxu0 %v24084_v33  ;;  %v24090_v33 = vld [vmem:[#allocation166_spill] sm:$0xff] }
 0x82f   :  { %9607 = vmatprep.subr.mxu1 %v24048_v57  ;;  %9462 = vmatpush1.msra.mxu0 %v24085_v45  ;;  %v24091_v45 = vld [vmem:[#allocation169_spill] sm:$0xff] }
 0x830   :  { %9609 = vmatpush1.msra.mxu1 %v24050_v7  ;;  %9465 = vmatprep.subr.mxu0 %v24086_v52  ;;  %v24092_v52 = vld [vmem:[#allocation173_spill] sm:$0xff] }
 0x831   :  { %9611 = vmatprep.subr.mxu1 %v24052_v39  ;;  %9468 = vmatpush1.msra.mxu0 %v24087_v18  ;;  %v24093_v18 = vld [vmem:[#allocation176_spill] sm:$0xff] }
 0x832   :  { %9613 = vmatpush1.msra.mxu1 %v24054_v4  ;;  %9471 = vmatprep.subr.mxu0 %v24088_v42  ;;  %v24094_v42 = vld [vmem:[#allocation179_spill] sm:$0xff] }
 0x833   :  { %9615 = vmatprep.subr.mxu1 %v24056_v44  ;;  %9474 = vmatpush1.msra.mxu0 %v24089_v30  ;;  %v24095_v30 = vld [vmem:[#allocation182_spill] sm:$0xff] }
 0x834   :  { %9617 = vmatpush1.msra.mxu1 %v24058_v29  ;;  %9477 = vmatprep.subr.mxu0 %v24090_v33  ;;  %v24096_v33 = vld [vmem:[#allocation196_spill] sm:$0xff] }
 0x835   :  { %9619 = vmatprep.subr.mxu1 %v24060_v53  ;;  %9480 = vmatpush1.msra.mxu0 %v24091_v45  ;;  %v24097_v45 = vld [vmem:[#allocation199_spill] sm:$0xff] }
 0x836   :  { %9621 = vmatpush1.msra.mxu1 %v24062_v49  ;;  %9483 = vmatprep.subr.mxu0 %v24092_v52  ;;  %v24098_v52 = vld [vmem:[#allocation202_spill] sm:$0xff] }
 0x837   :  { %9623 = vmatprep.subr.mxu1 %v24064_v26  ;;  %9486 = vmatpush1.msra.mxu0 %v24093_v18  ;;  %v24099_v18 = vld [vmem:[#allocation205_spill] sm:$0xff] }
 0x838   :  { %9625 = vmatpush1.msra.mxu1 %v24066_v46  ;;  %9489 = vmatprep.subr.mxu0 %v24094_v42  ;;  %v24100_v42 = vld [vmem:[#allocation209_spill] sm:$0xff] }
 0x839   :  { %9627 = vmatprep.subr.mxu1 %v24068_v35  ;;  %9492 = vmatpush1.msra.mxu0 %v24095_v30  ;;  %v24101_v30 = vld [vmem:[#allocation213_spill] sm:$0xff] }
 0x83a   :  { %9629 = vmatpush1.msra.mxu1 %v24070_v5  ;;  %9495 = vmatprep.subr.mxu0 %v24096_v33  ;;  %v24102_v33 = vld [vmem:[#allocation217_spill] sm:$0xff] }
 0x83b   :  { %9631 = vmatprep.subr.mxu1 %v24072_v32  ;;  %9498 = vmatpush1.msra.mxu0 %v24097_v45  ;;  %v24103_v45 = vld [vmem:[#allocation221_spill] sm:$0xff] }
 0x83c   :  { %9633 = vmatpush1.msra.mxu1 %v24073_v31  ;;  %9501 = vmatprep.subr.mxu0 %v24098_v52  ;;  %v24143_v52 = vld [vmem:[#allocation31_spill] sm:$0xff] }
 0x83d   :  { %9635 = vmatprep.subr.mxu1 %v24074_v60  ;;  %9504 = vmatpush1.msra.mxu0 %v24099_v18  ;;  %v24104_v18 = vld [vmem:[#allocation224_spill] sm:$0xff] }
 0x83e   :  { %9637 = vmatpush1.msra.mxu1 %v24075_v34  ;;  %9507 = vmatprep.subr.mxu0 %v24100_v42  ;;  %v24105_v42 = vld [vmem:[#allocation227_spill] sm:$0xff] }
 0x83f   :  { %9639 = vmatprep.subr.mxu1 %v24076_v63  ;;  %9510 = vmatpush1.msra.mxu0 %v24101_v30  ;;  %v24106_v30 = vld [vmem:[#allocation230_spill] sm:$0xff] }
 0x840   :  { %9641 = vmatpush1.msra.mxu1 %v24077_v50  ;;  %9513 = vmatprep.subr.mxu0 %v24102_v33  ;;  %v24107_v33 = vld [vmem:[#allocation233_spill] sm:$0xff] }
 0x841   :  { %9643 = vmatprep.subr.mxu1 %v24078_v28  ;;  %9516 = vmatpush1.msra.mxu0 %v24103_v45  ;;  %v24108_v45 = vld [vmem:[#allocation237_spill] sm:$0xff] }
 0x842   :  { %9645 = vmatpush1.msra.mxu1 %v24079_v54  ;;  %9678 = vmatprep.mubr.f32.mxu1 %v22957_v16 }
 0x843   :  { %9519 = vmatprep.subr.mxu0 %v24104_v18  ;;  %9682 = vmatmul.mubr.f32.vlgmr.msra.gmra.mxu1 %v20074_v22  ;;  %v24109_v18 = vld [vmem:[#allocation240_spill] sm:$0xff]  ;;  %v24110_v22 = vld [vmem:[#allocation243_spill] sm:$0xff] }
 0x844   :  { %9857 = vmatprep.subr.mxu1 %v18079_v25  ;;  %9522 = vmatpush1.msra.mxu0 %v24105_v42  ;;  %v24111_v42 = vld [vmem:[#allocation246_spill] sm:$0xff] }
 0x845   :  { %9859 = vmatpush1.msra.mxu1 %v18083_v0  ;;  %9525 = vmatprep.subr.mxu0 %v24106_v30  ;;  %v24141_v30 = vld [vmem:[#allocation28_spill] sm:$0xff] }
 0x846   :  { %9861 = vmatprep.subr.mxu1 %v18087_v23  ;;  %9528 = vmatpush1.msra.mxu0 %v24107_v33  ;;  %v24112_v33 = vld [vmem:[#allocation147_spill] sm:$0xff] }
 0x847   :  { %9863 = vmatpush1.msra.mxu1 %v18091_v1  ;;  %9531 = vmatprep.subr.mxu0 %v24108_v45  ;;  %v24113_v45 = vld [vmem:[#allocation150_spill] sm:$0xff] }
 0x848   :  { %9865 = vmatprep.subr.mxu1 %v18098_v47  ;;  %9534 = vmatpush1.msra.mxu0 %v24109_v18  ;;  %v24114_v18 = vld [vmem:[#allocation153_spill] sm:$0xff] }
 0x849   :  { %9867 = vmatpush1.msra.mxu1 %v24034_v56  ;;  %9537 = vmatprep.subr.mxu0 %v24110_v22  ;;  %v24115_v22 = vld [vmem:[#allocation156_spill] sm:$0xff] }
 0x84a   :  { %9869 = vmatprep.subr.mxu1 %v24036_v55  ;;  %9540 = vmatpush1.msra.mxu0 %v24111_v42  ;;  %v24116_v42 = vld [vmem:[#allocation159_spill] sm:$0xff]  ;;  %v8246_v56 = vld [vmem:[#allocation2 + $0x8] sm:$0xc] }
 0x84b   :  { %9573 = vmatprep.mubr.f32.mxu0 %v22957_v16  ;;  %9871 = vmatpush1.msra.mxu1 %v24038_v58  ;;  %v8247_v55 = vld [vmem:[#allocation2 + $0x20] sm:$0xc] }
 0x84c   :  { %9576 = vmatmul.mubr.f32.vlgmr.msra.gmra.mxu0 %v20068_v13  ;;  %9691 = vmatprep.subr.mxu0 %v24112_v33  ;;  %v24117_v13 = vld [vmem:[#allocation162_spill] sm:$0xff]  ;;  %v24118_v33 = vld [vmem:[#allocation165_spill] sm:$0xff] }
 0x84d   :  { %9873 = vmatprep.subr.mxu1 %v24040_v6  ;;  %9695 = vmatpush1.msra.mxu0 %v24113_v45  ;;  %v24119_v45 = vld [vmem:[#allocation168_spill] sm:$0xff] }
 0x84e   :  { %9875 = vmatpush1.msra.mxu1 %v24042_v38  ;;  %9699 = vmatprep.subr.mxu0 %v24114_v18  ;;  %v24120_v18 = vld [vmem:[#allocation172_spill] sm:$0xff] }
 0x84f   :  { %9877 = vmatprep.subr.mxu1 %v24044_v11  ;;  %9703 = vmatpush1.msra.mxu0 %v24115_v22  ;;  %v24121_v22 = vld [vmem:[#allocation175_spill] sm:$0xff] }
 0x850   :  { %9879 = vmatpush1.msra.mxu1 %v24046_v24  ;;  %9707 = vmatprep.subr.mxu0 %v24116_v42  ;;  %v24122_v42 = vld [vmem:[#allocation178_spill] sm:$0xff] }
 0x851   :  { %9881 = vmatprep.subr.mxu1 %v24048_v57  ;;  %9711 = vmatpush1.msra.mxu0 %v24117_v13  ;;  %v24123_v13 = vld [vmem:[#allocation181_spill] sm:$0xff] }
 0x852   :  { %9883 = vmatpush1.msra.mxu1 %v24050_v7  ;;  %9715 = vmatprep.subr.mxu0 %v24118_v33  ;;  %v24124_v33 = vld [vmem:[#allocation184_spill] sm:$0xff] }
 0x853   :  { %9885 = vmatprep.subr.mxu1 %v24052_v39  ;;  %9719 = vmatpush1.msra.mxu0 %v24119_v45  ;;  %v24125_v45 = vld [vmem:[#allocation187_spill] sm:$0xff] }
 0x854   :  { %9887 = vmatpush1.msra.mxu1 %v24054_v4  ;;  %9723 = vmatprep.subr.mxu0 %v24120_v18  ;;  %v24126_v18 = vld [vmem:[#allocation190_spill] sm:$0xff] }
 0x855   :  { %9889 = vmatprep.subr.mxu1 %v24056_v44  ;;  %9727 = vmatpush1.msra.mxu0 %v24121_v22  ;;  %v24127_v22 = vld [vmem:[#allocation193_spill] sm:$0xff] }
 0x856   :  { %9891 = vmatpush1.msra.mxu1 %v24058_v29  ;;  %9731 = vmatprep.subr.mxu0 %v24122_v42  ;;  %v24128_v42 = vld [vmem:[#allocation208_spill] sm:$0xff] }
 0x857   :  { %9893 = vmatprep.subr.mxu1 %v24060_v53  ;;  %9735 = vmatpush1.msra.mxu0 %v24123_v13  ;;  %v24129_v13 = vld [vmem:[#allocation212_spill] sm:$0xff] }
 0x858   :  { %9895 = vmatpush1.msra.mxu1 %v24062_v49  ;;  %9739 = vmatprep.subr.mxu0 %v24124_v33  ;;  %v24130_v33 = vld [vmem:[#allocation216_spill] sm:$0xff] }
 0x859   :  { %9897 = vmatprep.subr.mxu1 %v24064_v26  ;;  %9743 = vmatpush1.msra.mxu0 %v24125_v45  ;;  %v24131_v45 = vld [vmem:[#allocation220_spill] sm:$0xff] }
 0x85a   :  { %9899 = vmatpush1.msra.mxu1 %v24066_v46  ;;  %9747 = vmatprep.subr.mxu0 %v24126_v18  ;;  %v24132_v18 = vld [vmem:[#allocation223_spill] sm:$0xff] }
 0x85b   :  { %9901 = vmatprep.subr.mxu1 %v24068_v35  ;;  %9751 = vmatpush1.msra.mxu0 %v24127_v22  ;;  %v24133_v22 = vld [vmem:[#allocation226_spill] sm:$0xff] }
 0x85c   :  { %9903 = vmatpush1.msra.mxu1 %v24070_v5  ;;  %9755 = vmatprep.subr.mxu0 %v24128_v42  ;;  %v24134_v42 = vld [vmem:[#allocation229_spill] sm:$0xff] }
 0x85d   :  { %9905 = vmatprep.subr.mxu1 %v24072_v32  ;;  %9759 = vmatpush1.msra.mxu0 %v24129_v13  ;;  %v24135_v13 = vld [vmem:[#allocation232_spill] sm:$0xff] }
 0x85e   :  { %9907 = vmatpush1.msra.mxu1 %v24073_v31  ;;  %9763 = vmatprep.subr.mxu0 %v24130_v33  ;;  %v24139_v33 = vld [vmem:[#allocation25_spill] sm:$0xff] }
 0x85f   :  { %9909 = vmatprep.subr.mxu1 %v24074_v60  ;;  %9767 = vmatpush1.msra.mxu0 %v24131_v45  ;;  %v24136_v45 = vld [vmem:[#allocation236_spill] sm:$0xff] }
 0x860   :  { %9911 = vmatpush1.msra.mxu1 %v24075_v34  ;;  %9771 = vmatprep.subr.mxu0 %v24132_v18  ;;  %v24137_v18 = vld [vmem:[#allocation239_spill] sm:$0xff] }
 0x861   :  { %9913 = vmatprep.subr.mxu1 %v24076_v63  ;;  %9775 = vmatpush1.msra.mxu0 %v24133_v22  ;;  %v24138_v22 = vld [vmem:[#allocation242_spill] sm:$0xff] }
 0x862   :  { %9915 = vmatpush1.msra.mxu1 %v24077_v50  ;;  %9779 = vmatprep.subr.mxu0 %v24134_v42  ;;  %v24140_v42 = vld [vmem:[#allocation245_spill] sm:$0xff]  ;;  %v24148_v50 = vld [vmem:[#allocation254_spill] sm:$0xff] }
 0x863   :  { %9917 = vmatprep.subr.mxu1 %v24078_v28  ;;  %9783 = vmatpush1.msra.mxu0 %v24135_v13  ;;  %v24142_v13 = vld [vmem:[#allocation248_spill] sm:$0xff] }
 0x864   :  { %9919 = vmatpush1.msra.mxu1 %v24079_v54  ;;  %9952 = vmatprep.mubr.f32.mxu1 %v22957_v16  ;;  %v24144_v54 = vld [vmem:[#allocation250_spill] sm:$0xff]  ;;  %v24146_v28 = vld [vmem:[#allocation252_spill] sm:$0xff] }
 0x865   :  { %9787 = vmatprep.subr.mxu0 %v24136_v45  ;;  %9954 = vmatmul.mubr.f32.vlgmr.msra.gmra.mxu1 %v20064_v21  ;;  %v24145_v45 = vld [vmem:[#allocation34_spill] sm:$0xff] }
 0x866   :  { %9791 = vmatpush1.msra.mxu0 %v24137_v18  ;;  %9848 = vmatprep.mubr.f32.mxu0 %v22957_v16  ;;  %v24147_v18 = vld [vmem:[#allocation37_spill] sm:$0xff] }
 0x867   :  { %9795 = vmatprep.subr.mxu0 %v24138_v22  ;;  %10123 = vmatprep.subr.mxu1 %v24139_v33  ;;  %v24149_v22 = vld [vmem:[#allocation40_spill] sm:$0xff] }
 0x868   :  { %9799 = vmatpush1.msra.mxu0 %v24140_v42  ;;  %10129 = vmatpush1.msra.mxu1 %v24141_v30  ;;  %v24150_v42 = vld [vmem:[#allocation43_spill] sm:$0xff] }
 0x869   :  { %9803 = vmatprep.subr.mxu0 %v24142_v13  ;;  %10135 = vmatprep.subr.mxu1 %v24143_v52  ;;  %v24151_v30 = vld [vmem:[#allocation47_spill] sm:$0xff]  ;;  %v24152_v52 = vld [vmem:[#allocation57_spill] sm:$0xff] }
 0x86a   :  { %9807 = vmatpush1.msra.mxu0 %v24144_v54  ;;  %10141 = vmatpush1.msra.mxu1 %v24145_v45  ;;  %v24153_v45 = vld [vmem:[#allocation60_spill] sm:$0xff]  ;;  %v24184_v54 = vld [vmem:[#allocation117_spill] sm:$0xff] }
 0x86b   :  { %9811 = vmatprep.subr.mxu0 %v24146_v28  ;;  %10147 = vmatprep.subr.mxu1 %v24147_v18  ;;  %v24154_v18 = vld [vmem:[#allocation63_spill] sm:$0xff]  ;;  %v24182_v28 = vld [vmem:[#allocation110_spill] sm:$0xff]  ;;  %v24186_v13 = vld [vmem:[#allocation9_spill] sm:$0xff] }
 0x86c   :  { %9815 = vmatpush1.msra.mxu0 %v24148_v50  ;;  %10153 = vmatpush1.msra.mxu1 %v24149_v22  ;;  %v24155_v22 = vld [vmem:[#allocation66_spill] sm:$0xff] }
 0x86d   :  { %9850 = vmatmul.mubr.f32.vlgmr.msra.gmra.mxu0 %v20064_v21  ;;  %10159 = vmatprep.subr.mxu1 %v24150_v42  ;;  %v24156_v21 = vld [vmem:[#allocation69_spill] sm:$0xff]  ;;  %v24177_v50 = vld [vmem:[#allocation134_spill] sm:$0xff] }
 0x86e   :  { %10165 = vmatpush1.msra.mxu1 %v24151_v30  ;;  %10011 = vmatprep.subr.mxu0 %v23206_v9  ;;  %v24157_v30 = vld [vmem:[#allocation72_spill] sm:$0xff]  ;;  %v24175_v42 = vld [vmem:[#allocation133_spill] sm:$0xff] }
 0x86f   :  { %10171 = vmatprep.subr.mxu1 %v24152_v52  ;;  %10013 = vmatpush1.msra.mxu0 %v23208_v61  ;;  %v24158_v52 = vld [vmem:[#allocation75_spill] sm:$0xff] }
 0x870   :  { %10177 = vmatpush1.msra.mxu1 %v24153_v45  ;;  %10015 = vmatprep.subr.mxu0 %v23210_v27  ;;  %v24159_v45 = vld [vmem:[#allocation79_spill] sm:$0xff] }
 0x871   :  { %10183 = vmatprep.subr.mxu1 %v24154_v18  ;;  %10017 = vmatpush1.msra.mxu0 %v23212_v20  ;;  %v24160_v18 = vld [vmem:[#allocation89_spill] sm:$0xff] }
 0x872   :  { %10189 = vmatpush1.msra.mxu1 %v24155_v22  ;;  %10019 = vmatprep.subr.mxu0 %v23214_v8  ;;  %v24161_v22 = vld [vmem:[#allocation92_spill] sm:$0xff] }
 0x873   :  { %10195 = vmatprep.subr.mxu1 %v24156_v21  ;;  %10021 = vmatpush1.msra.mxu0 %v23216_v41  ;;  %v24162_v21 = vld [vmem:[#allocation95_spill] sm:$0xff] }
 0x874   :  { %10201 = vmatpush1.msra.mxu1 %v24157_v30  ;;  %10023 = vmatprep.subr.mxu0 %v23218_v2  ;;  %v24163_v30 = vld [vmem:[#allocation98_spill] sm:$0xff] }
 0x875   :  { %10207 = vmatprep.subr.mxu1 %v24158_v52  ;;  %10025 = vmatpush1.msra.mxu0 %v23220_v14  ;;  %v24164_v52 = vld [vmem:[#allocation101_spill] sm:$0xff] }
 0x876   :  { %10213 = vmatpush1.msra.mxu1 %v24159_v45  ;;  %10027 = vmatprep.subr.mxu0 %v23222_v15  ;;  %v24165_v45 = vld [vmem:[#allocation104_spill] sm:$0xff] }
 0x877   :  { %10219 = vmatprep.subr.mxu1 %v24160_v18  ;;  %10029 = vmatpush1.msra.mxu0 %v23224_v59  ;;  %v24166_v18 = vld [vmem:[#allocation107_spill] sm:$0xff] }
 0x878   :  { %10225 = vmatpush1.msra.mxu1 %v24161_v22  ;;  %10031 = vmatprep.subr.mxu0 %v23226_v36  ;;  %v24167_v22 = vld [vmem:[#allocation111_spill] sm:$0xff] }
 0x879   :  { %10231 = vmatprep.subr.mxu1 %v24162_v21  ;;  %10033 = vmatpush1.msra.mxu0 %v23228_v3  ;;  %v24168_v21 = vld [vmem:[#allocation121_spill] sm:$0xff] }
 0x87a   :  { %10237 = vmatpush1.msra.mxu1 %v24163_v30  ;;  %10035 = vmatprep.subr.mxu0 %v23230_v37  ;;  %v24169_v30 = vld [vmem:[#allocation124_spill] sm:$0xff] }
 0x87b   :  { %10243 = vmatprep.subr.mxu1 %v24164_v52  ;;  %10037 = vmatpush1.msra.mxu0 %v23232_v10  ;;  %v24170_v52 = vld [vmem:[#allocation127_spill] sm:$0xff] }
 0x87c   :  { %10249 = vmatpush1.msra.mxu1 %v24165_v45  ;;  %10039 = vmatprep.subr.mxu0 %v23234_v43  ;;  %v24171_v45 = vld [vmem:[#allocation129_spill] sm:$0xff] }
 0x87d   :  { %10255 = vmatprep.subr.mxu1 %v24166_v18  ;;  %10041 = vmatpush1.msra.mxu0 %v23236_v62  ;;  %v24172_v18 = vld [vmem:[#allocation131_spill] sm:$0xff]  ;;  %v8585_v34 = vpop.f32.mrf.mxu1 }
 0x87e   :  { %10261 = vmatpush1.msra.mxu1 %v24167_v22  ;;  %10043 = vmatprep.subr.mxu0 %v23238_v19  ;;  %v24173_v22 = vld [vmem:[#allocation132_spill] sm:$0xff] }
 0x87f   :  { %10267 = vmatprep.subr.mxu1 %v24168_v21  ;;  %10045 = vmatpush1.msra.mxu0 %v23240_v51  ;;  %v24174_v21 = vld [vmem:[#allocation85_spill] sm:$0xff]  ;;  %v8587_v31 = vpop.f32.mrf.mxu1 }
 0x880   :  { %10273 = vmatpush1.msra.mxu1 %v24169_v30  ;;  %10047 = vmatprep.subr.mxu0 %v23242_v17  ;;  %v24176_v30 = vld [vmem:[#allocation88_spill] sm:$0xff] }
 0x881   :  { %10279 = vmatprep.subr.mxu1 %v24170_v52  ;;  %10049 = vmatpush1.msra.mxu0 %v23244_v40  ;;  %v24178_v52 = vld [vmem:[#allocation97_spill] sm:$0xff] }
 0x882   :  { %10285 = vmatpush1.msra.mxu1 %v24171_v45  ;;  %10051 = vmatprep.subr.mxu0 %v23246_v12  ;;  %v24179_v45 = vld [vmem:[#allocation100_spill] sm:$0xff] }
 0x883   :  { %10291 = vmatprep.subr.mxu1 %v24172_v18  ;;  %10053 = vmatpush1.msra.mxu0 %v23248_v48  ;;  %v24180_v18 = vld [vmem:[#allocation103_spill] sm:$0xff] }
 0x884   :  { %10297 = vmatpush1.msra.mxu1 %v24173_v22  ;;  %10055 = vmatprep.subr.mxu0 %v24174_v21  ;;  %v24181_v22 = vld [vmem:[#allocation106_spill] sm:$0xff] }
 0x885   :  { %10303 = vmatprep.subr.mxu1 %v24175_v42  ;;  %10057 = vmatpush1.msra.mxu0 %v24176_v30  ;;  %v24183_v42 = vld [vmem:[#allocation114_spill] sm:$0xff]  ;;  %v8353_v33 = vpop.f32.mrf.mxu0 }
 0x886   :  { %10309 = vmatpush1.msra.mxu1 %v24177_v50  ;;  %10059 = vmatprep.subr.mxu0 %v24178_v52  ;;  %v24185_v50 = vld [vmem:[#allocation120_spill] sm:$0xff]  ;;  %v8586_v35 = vadd.f32 %v8585_v34, %v8353_v33 }
 0x887   :  { %10342 = vmatprep.mubr.f32.mxu1 %v22957_v16  ;;  %10488 = vmatprep.subr.mxu1 %v23206_v9  ;;  %v8355_v63 = vpop.f32.mrf.mxu0 }
 0x888   :  { %10061 = vmatpush1.msra.mxu0 %v24179_v45  ;;  %10106 = vmatprep.mubr.f32.mxu0 %v22957_v16  ;;  %v8588_v5 = vadd.f32 %v8587_v31, %v8355_v63 }
 0x889   :  { %10063 = vmatprep.subr.mxu0 %v24180_v18 }
 0x88a   :  { %10065 = vmatpush1.msra.mxu0 %v24181_v22 }
 0x88b   :  { %10067 = vmatprep.subr.mxu0 %v24182_v28 }
 0x88c   :  { %10069 = vmatpush1.msra.mxu0 %v24183_v42 }
 0x88d   :  { %10071 = vmatprep.subr.mxu0 %v24184_v54 }
 0x88e   :  { %10073 = vmatpush1.msra.mxu0 %v24185_v50 }
 0x88f   :  { %10352 = vmatprep.subr.mxu0 %v24186_v13 }
 0x89d   :  { %v8828_v46 = vpop.f32.mrf.mxu1 }
 0x89f   :  { %v8830_v29 = vpop.f32.mrf.mxu1 }
 0x8a6   :  { %v8722_v60 = vpop.f32.mrf.mxu0 }
 0x8a7   :  { %v8723_v53 = vadd.f32 %v8722_v60, %v8586_v35 }
 0x8a8   :  { %v8724_v32 = vpop.f32.mrf.mxu0 }
 0x8a9   :  { %v8725_v49 = vadd.f32 %v8724_v32, %v8588_v5  ;;  %v8829_v7 = vadd.f32 %v8828_v46, %v8723_v53 }
 0x8ab   :  { %v8831_v4 = vadd.f32 %v8830_v29, %v8725_v49 }
 0x8bf   :  { %v9100_v39 = vpop.f32.mrf.mxu1 }
 0x8c1   :  { %v9102_v13 = vpop.f32.mrf.mxu1 }
 0x8c8   :  { %v8996_v26 = vpop.f32.mrf.mxu0 }
 0x8c9   :  { %v8997_v24 = vadd.f32 %v8996_v26, %v8829_v7 }
 0x8ca   :  { %v8998_v44 = vpop.f32.mrf.mxu0 }
 0x8cb   :  { %v8999_v57 = vadd.f32 %v8998_v44, %v8831_v4  ;;  %v9101_v38 = vadd.f32 %v9100_v39, %v8997_v24 }
 0x8cd   :  { %v9103_v11 = vadd.f32 %v9102_v13, %v8999_v57  ;;  %v9964_v58 = vrot.slane %v9101_v38, 6 }
 0x8cf   :  { %v9965_v6 = vrot.slane %v9103_v11, 6  ;;  %v9972_v34 = vadd.f32 %v9964_v58, %v8246_v56 }
 0x8d1   :  { %v9973_v63 = vadd.f32 %v9965_v6, %v8247_v55  ;;  %v16844_v31 = vmul.f32 -1.442695, %v9972_v34 }
 0x8d3   :  { %v16845_v33 = vmul.f32 -1.442695, %v9973_v63 }
 0x8d5   :  { %17269 = vpow2.f32 %v16845_v33 }
 0x8d6   :  { %17271 = vpow2.f32 %v16844_v31 }
 0x8e1   :  { %v9440_v60 = vpop.f32.mrf.mxu1 }
 0x8e2   :  { %v17270_v4 = vpop.eup %17269 }
 0x8e3   :  { %v9442_v46 = vpop.f32.mrf.mxu1  ;;  %v17272_v58 = vpop.eup %17271  ;;  %v9985_v7 = vadd.f32 1.0, %v17270_v4 }
 0x8e4   :  { %v9979_v34 = vadd.f32 1.0, %v17272_v58 }
 0x8e5   :  { %17273 = vrcp.f32 %v9985_v7 }
 0x8e6   :  { %17275 = vrcp.f32 %v9979_v34 }
 0x8ea   :  { %v9208_v32 = vpop.f32.mrf.mxu0 }
 0x8eb   :  { %v9441_v49 = vadd.f32 %v9440_v60, %v9208_v32  ;;  %v8248_v60 = vld [vmem:[#allocation2 + $0x28] sm:$0xc] }
 0x8ec   :  { %v9210_v5 = vpop.f32.mrf.mxu0 }
 0x8ed   :  { %v9443_v29 = vadd.f32 %v9442_v46, %v9210_v5  ;;  %v8249_v46 = vld [vmem:[#allocation2 + $0x38] sm:$0xc] }
 0x903   :  { %v9683_v26 = vpop.f32.mrf.mxu1 }
 0x905   :  { %v9685_v57 = vpop.f32.mrf.mxu1 }
 0x90c   :  { %v9577_v35 = vpop.f32.mrf.mxu0 }
 0x90d   :  { %v9578_v44 = vadd.f32 %v9577_v35, %v9441_v49 }
 0x90e   :  { %v9579_v53 = vpop.f32.mrf.mxu0 }
 0x90f   :  { %v9580_v24 = vadd.f32 %v9579_v53, %v9443_v29  ;;  %v9684_v39 = vadd.f32 %v9683_v26, %v9578_v44  ;;  %v17274_v53 = vpop.eup %17273  ;;  %v24187_v44 = vld [vmem:[#allocation7_spill] sm:$0xff] }
 0x910   :  { %v17276_v29 = vpop.eup %17275 }
 0x911   :  { %v9686_v38 = vadd.f32 %v9685_v57, %v9580_v24  ;;  %v9996_v24 = vrot.slane %v24187_v44, 6  ;;  %v24198_v44 = vld [vmem:[#allocation45_spill] sm:$0xff] }
 0x925   :  { %v9955_v55 = vpop.f32.mrf.mxu1 }
 0x927   :  { %v9957_v33 = vpop.f32.mrf.mxu1 }
 0x92d   :  { %v9851_v56 = vpop.f32.mrf.mxu0 }
 0x92e   :  { %v9852_v6 = vadd.f32 %v9851_v56, %v9684_v39  ;;  %v9998_v39 = vmul.f32 %v17274_v53, %v9996_v24  ;;  %v24196_v53 = vld [vmem:[#allocation38_spill] sm:$0xff]  ;;  %v24199_v24 = vld [vmem:[#allocation49_spill] sm:$0xff] }
 0x92f   :  { %v9853_v11 = vpop.f32.mrf.mxu0 }
 0x930   :  { %v9956_v13 = vadd.f32 %v9955_v55, %v9852_v6  ;;  %v9854_v63 = vadd.f32 %v9853_v11, %v9686_v38 }
 0x932   :  { %v9966_v31 = vrot.slane %v9956_v13, 6  ;;  %v9958_v32 = vadd.f32 %v9957_v33, %v9854_v63 }
 0x934   :  { %v9974_v5 = vadd.f32 %v9966_v31, %v8248_v60  ;;  %v9967_v35 = vrot.slane %v9958_v32, 6  ;;  %v24189_v32 = vld [vmem:[#allocation11_spill] sm:$0xff]  ;;  %v24190_v60 = vld [vmem:[#allocation14_spill] sm:$0xff] }
 0x936   :  { %17277 = vtanh.f32 %v9974_v5  ;;  %v9975_v49 = vadd.f32 %v9967_v35, %v8249_v46  ;;  %v24191_v5 = vld [vmem:[#allocation17_spill] sm:$0xff]  ;;  %v24192_v35 = vld [vmem:[#allocation20_spill] sm:$0xff]  ;;  %v24193_v46 = vld [vmem:[#allocation23_spill] sm:$0xff] }
 0x938   :  { %v16846_v26 = vmul.f32 -1.442695, %v9975_v49  ;;  %v24194_v49 = vld [vmem:[#allocation27_spill] sm:$0xff] }
 0x93a   :  { %17279 = vpow2.f32 %v16846_v26  ;;  %v24195_v26 = vld [vmem:[#allocation30_spill] sm:$0xff] }
 0x943   :  { %v17278_v57 = vpop.eup %17277 }
 0x944   :  { %v9999_v4 = vmul.f32 %v17278_v57, %v17276_v29  ;;  %v24197_v29 = vld [vmem:[#allocation41_spill] sm:$0xff]  ;;  %v24200_v57 = vld [vmem:[#allocation52_spill] sm:$0xff] }
 0x946   :  { %v20485_v55 = vadd.f32 %v9999_v4, %v9998_v39  ;;  %v24201_v39 = vld [vmem:[#allocation55_spill] sm:$0xff] }
 0x947   :  { %v17280_v56 = vpop.eup %17279  ;;  %v24202_v4 = vld [vmem:[#allocation59_spill] sm:$0xff] }
 0x948   :  { %24188 = vst [vmem:[#allocation8_spill] sm:$0xff] %v20485_v55  ;;  %v9992_v58 = vadd.f32 1.0, %v17280_v56  ;;  %17281 = vtanh.f32 %v20485_v55  ;;  %v24203_v56 = vld [vmem:[#allocation62_spill] sm:$0xff]  ;;  %v24296_v55 = vld [vmem:[#allocation259_spill] sm:$0xff] }
 0x94a   :  { %17283 = vrcp.f32 %v9992_v58  ;;  %v24204_v58 = vld [vmem:[#allocation70_spill] sm:$0xff] }
 0x955   :  { %v17282_v6 = vpop.eup %17281 }
 0x957   :  { %v17284_v38 = vpop.eup %17283 }
 0x958   :  { %v10002_v11 = vmul.f32 %v17284_v38, %v17282_v6  ;;  %v24205_v6 = vld [vmem:[#allocation73_spill] sm:$0xff] }
 0x959   :  { %v24206_v38 = vld [vmem:[#allocation77_spill] sm:$0xff] }
 0x95a   :  { %v10008_v7 = vrot.slane %v10002_v11, 2  ;;  %v24207_v11 = vld [vmem:[#allocation81_spill] sm:$0xff] }
 0x95c   :  { %v20488_v13 = vand.u32 4294901760, %v10008_v7 }
 0x95e   :  { %10344 = vmatmul.mubr.f32.vlgmr.msra.gmra.mxu1 %v20488_v13  ;;  %v20492_v63 = vsub.f32 %v10008_v7, %v20488_v13  ;;  %v24208_v7 = vld [vmem:[#allocation84_spill] sm:$0xff] }
 0x95f   :  { %10490 = vmatpush1.msra.mxu1 %v23208_v61  ;;  %10583 = vmatprep.mubr.f32.mxu1 %v22957_v16 }
 0x960   :  { %10492 = vmatprep.subr.mxu1 %v23210_v27  ;;  %v20498_v34 = vand.u32 4294901760, %v20492_v63 }
 0x961   :  { %10494 = vmatpush1.msra.mxu1 %v23212_v20 }
 0x962   :  { %10496 = vmatprep.subr.mxu1 %v23214_v8  ;;  %v10110_v33 = vsub.f32 %v20492_v63, %v20498_v34 }
 0x963   :  { %10498 = vmatpush1.msra.mxu1 %v23216_v41 }
 0x964   :  { %10500 = vmatprep.subr.mxu1 %v23218_v2  ;;  %v20506_v31 = vand.u32 4294901760, %v10110_v33  ;;  %v24209_v33 = vld [vmem:[#allocation87_spill] sm:$0xff] }
 0x965   :  { %10502 = vmatpush1.msra.mxu1 %v23220_v14 }
 0x966   :  { %10504 = vmatprep.subr.mxu1 %v23222_v15  ;;  %10112 = vmatmul.mubr.f32.vlgmr.msra.gmra.mxu0 %v20506_v31 }
 0x967   :  { %10355 = vmatpush1.msra.mxu0 %v24189_v32  ;;  %10506 = vmatpush1.msra.mxu1 %v23224_v59  ;;  %v24294_v32 = vld [vmem:[#allocation258_spill] sm:$0xff] }
 0x968   :  { %10358 = vmatprep.subr.mxu0 %v24190_v60  ;;  %10508 = vmatprep.subr.mxu1 %v23226_v36  ;;  %v24292_v60 = vld [vmem:[#allocation257_spill] sm:$0xff] }
 0x969   :  { %10361 = vmatpush1.msra.mxu0 %v24191_v5  ;;  %10510 = vmatpush1.msra.mxu1 %v23228_v3  ;;  %v24290_v5 = vld [vmem:[#allocation256_spill] sm:$0xff] }
 0x96a   :  { %10364 = vmatprep.subr.mxu0 %v24192_v35  ;;  %10512 = vmatprep.subr.mxu1 %v23230_v37  ;;  %v24288_v35 = vld [vmem:[#allocation255_spill] sm:$0xff] }
 0x96b   :  { %10367 = vmatpush1.msra.mxu0 %v24193_v46  ;;  %10514 = vmatpush1.msra.mxu1 %v23232_v10  ;;  %v24286_v46 = vld [vmem:[#allocation253_spill] sm:$0xff] }
 0x96c   :  { %10370 = vmatprep.subr.mxu0 %v24194_v49  ;;  %10516 = vmatprep.subr.mxu1 %v23234_v43  ;;  %v24284_v49 = vld [vmem:[#allocation251_spill] sm:$0xff] }
 0x96d   :  { %10373 = vmatpush1.msra.mxu0 %v24195_v26  ;;  %10518 = vmatpush1.msra.mxu1 %v23236_v62  ;;  %v24282_v26 = vld [vmem:[#allocation249_spill] sm:$0xff] }
 0x96e   :  { %10376 = vmatprep.subr.mxu0 %v24196_v53  ;;  %10520 = vmatprep.subr.mxu1 %v23238_v19  ;;  %v24280_v53 = vld [vmem:[#allocation247_spill] sm:$0xff] }
 0x96f   :  { %10379 = vmatpush1.msra.mxu0 %v24197_v29  ;;  %10522 = vmatpush1.msra.mxu1 %v23240_v51  ;;  %v24278_v29 = vld [vmem:[#allocation244_spill] sm:$0xff] }
 0x970   :  { %10382 = vmatprep.subr.mxu0 %v24198_v44  ;;  %10524 = vmatprep.subr.mxu1 %v23242_v17  ;;  %v24276_v44 = vld [vmem:[#allocation241_spill] sm:$0xff] }
 0x971   :  { %10385 = vmatpush1.msra.mxu0 %v24199_v24  ;;  %10526 = vmatpush1.msra.mxu1 %v23244_v40  ;;  %v24255_v24 = vld [vmem:[#allocation186_spill] sm:$0xff] }
 0x972   :  { %10388 = vmatprep.subr.mxu0 %v24200_v57  ;;  %10528 = vmatprep.subr.mxu1 %v23246_v12  ;;  %v24253_v57 = vld [vmem:[#allocation183_spill] sm:$0xff] }
 0x973   :  { %10391 = vmatpush1.msra.mxu0 %v24201_v39  ;;  %10530 = vmatpush1.msra.mxu1 %v23248_v48  ;;  %v24252_v39 = vld [vmem:[#allocation122_spill] sm:$0xff] }
 0x974   :  { %10394 = vmatprep.subr.mxu0 %v24202_v4  ;;  %10532 = vmatprep.subr.mxu1 %v24174_v21  ;;  %v24250_v4 = vld [vmem:[#allocation118_spill] sm:$0xff] }
 0x975   :  { %10397 = vmatpush1.msra.mxu0 %v24203_v56  ;;  %10534 = vmatpush1.msra.mxu1 %v24176_v30  ;;  %v24248_v56 = vld [vmem:[#allocation115_spill] sm:$0xff] }
 0x976   :  { %10400 = vmatprep.subr.mxu0 %v24204_v58  ;;  %10536 = vmatprep.subr.mxu1 %v24178_v52  ;;  %v24210_v58 = vld [vmem:[#allocation91_spill] sm:$0xff] }
 0x977   :  { %10403 = vmatpush1.msra.mxu0 %v24205_v6  ;;  %10538 = vmatpush1.msra.mxu1 %v24179_v45  ;;  %v24211_v6 = vld [vmem:[#allocation94_spill] sm:$0xff] }
 0x978   :  { %10406 = vmatprep.subr.mxu0 %v24206_v38  ;;  %10540 = vmatprep.subr.mxu1 %v24180_v18  ;;  %v24212_v38 = vld [vmem:[#allocation102_spill] sm:$0xff] }
 0x979   :  { %10409 = vmatpush1.msra.mxu0 %v24207_v11  ;;  %10542 = vmatpush1.msra.mxu1 %v24181_v22  ;;  %v24218_v11 = vld [vmem:[#allocation123_spill] sm:$0xff] }
 0x97a   :  { %10412 = vmatprep.subr.mxu0 %v24208_v7  ;;  %10544 = vmatprep.subr.mxu1 %v24182_v28  ;;  %v24213_v7 = vld [vmem:[#allocation105_spill] sm:$0xff] }
 0x97b   :  { %10415 = vmatpush1.msra.mxu0 %v24209_v33  ;;  %10546 = vmatpush1.msra.mxu1 %v24183_v42  ;;  %v24214_v33 = vld [vmem:[#allocation109_spill] sm:$0xff] }
 0x97c   :  { %10418 = vmatprep.subr.mxu0 %v24210_v58  ;;  %10548 = vmatprep.subr.mxu1 %v24184_v54  ;;  %v24215_v58 = vld [vmem:[#allocation113_spill] sm:$0xff] }
 0x97d   :  { %10421 = vmatpush1.msra.mxu0 %v24211_v6  ;;  %10550 = vmatpush1.msra.mxu1 %v24185_v50  ;;  %v24216_v6 = vld [vmem:[#allocation116_spill] sm:$0xff] }
 0x97e   :  { %10424 = vmatprep.subr.mxu0 %v24212_v38  ;;  %10587 = vmatmul.mubr.f32.vlgmr.msra.gmra.mxu1 %v20498_v34  ;;  %v24217_v38 = vld [vmem:[#allocation119_spill] sm:$0xff] }
 0x97f   :  { %10762 = vmatprep.subr.mxu1 %v23206_v9  ;;  %10427 = vmatpush1.msra.mxu0 %v24213_v7  ;;  %v24219_v7 = vld [vmem:[#allocation126_spill] sm:$0xff] }
 0x980   :  { %10764 = vmatpush1.msra.mxu1 %v23208_v61  ;;  %10430 = vmatprep.subr.mxu0 %v24214_v33  ;;  %v24225_v33 = vld [vmem:[#allocation29_spill] sm:$0xff] }
 0x981   :  { %10766 = vmatprep.subr.mxu1 %v23210_v27  ;;  %10433 = vmatpush1.msra.mxu0 %v24215_v58  ;;  %v24220_v58 = vld [vmem:[#allocation13_spill] sm:$0xff] }
 0x982   :  { %10768 = vmatpush1.msra.mxu1 %v23212_v20  ;;  %10436 = vmatprep.subr.mxu0 %v24216_v6  ;;  %v24221_v6 = vld [vmem:[#allocation16_spill] sm:$0xff] }
 0x983   :  { %10770 = vmatprep.subr.mxu1 %v23214_v8  ;;  %10439 = vmatpush1.msra.mxu0 %v24217_v38  ;;  %v24222_v38 = vld [vmem:[#allocation19_spill] sm:$0xff] }
 0x984   :  { %10772 = vmatpush1.msra.mxu1 %v23216_v41  ;;  %10442 = vmatprep.subr.mxu0 %v24218_v11  ;;  %v24223_v11 = vld [vmem:[#allocation22_spill] sm:$0xff] }
 0x985   :  { %10774 = vmatprep.subr.mxu1 %v23218_v2  ;;  %10445 = vmatpush1.msra.mxu0 %v24219_v7  ;;  %v24224_v7 = vld [vmem:[#allocation26_spill] sm:$0xff] }
 0x986   :  { %10478 = vmatprep.mubr.f32.mxu0 %v22957_v16  ;;  %10776 = vmatpush1.msra.mxu1 %v23220_v14 }
 0x987   :  { %10481 = vmatmul.mubr.f32.vlgmr.msra.gmra.mxu0 %v20492_v63  ;;  %10596 = vmatprep.subr.mxu0 %v24220_v58  ;;  %v24226_v58 = vld [vmem:[#allocation32_spill] sm:$0xff] }
 0x988   :  { %10778 = vmatprep.subr.mxu1 %v23222_v15  ;;  %10600 = vmatpush1.msra.mxu0 %v24221_v6  ;;  %v24227_v6 = vld [vmem:[#allocation35_spill] sm:$0xff] }
 0x989   :  { %10780 = vmatpush1.msra.mxu1 %v23224_v59  ;;  %10604 = vmatprep.subr.mxu0 %v24222_v38  ;;  %v24228_v38 = vld [vmem:[#allocation44_spill] sm:$0xff] }
 0x98a   :  { %10782 = vmatprep.subr.mxu1 %v23226_v36  ;;  %10608 = vmatpush1.msra.mxu0 %v24223_v11  ;;  %v24229_v11 = vld [vmem:[#allocation48_spill] sm:$0xff] }
 0x98b   :  { %10784 = vmatpush1.msra.mxu1 %v23228_v3  ;;  %10612 = vmatprep.subr.mxu0 %v24224_v7  ;;  %v24230_v7 = vld [vmem:[#allocation51_spill] sm:$0xff] }
 0x98c   :  { %10786 = vmatprep.subr.mxu1 %v23230_v37  ;;  %10616 = vmatpush1.msra.mxu0 %v24225_v33  ;;  %v24231_v33 = vld [vmem:[#allocation54_spill] sm:$0xff] }
 0x98d   :  { %10788 = vmatpush1.msra.mxu1 %v23232_v10  ;;  %10620 = vmatprep.subr.mxu0 %v24226_v58  ;;  %v24232_v58 = vld [vmem:[#allocation58_spill] sm:$0xff] }
 0x98e   :  { %10790 = vmatprep.subr.mxu1 %v23234_v43  ;;  %10624 = vmatpush1.msra.mxu0 %v24227_v6  ;;  %v24233_v6 = vld [vmem:[#allocation61_spill] sm:$0xff] }
 0x98f   :  { %10792 = vmatpush1.msra.mxu1 %v23236_v62  ;;  %10628 = vmatprep.subr.mxu0 %v24228_v38  ;;  %v24234_v38 = vld [vmem:[#allocation64_spill] sm:$0xff] }
 0x990   :  { %10794 = vmatprep.subr.mxu1 %v23238_v19  ;;  %10632 = vmatpush1.msra.mxu0 %v24229_v11  ;;  %v24235_v11 = vld [vmem:[#allocation67_spill] sm:$0xff] }
 0x991   :  { %10796 = vmatpush1.msra.mxu1 %v23240_v51  ;;  %10636 = vmatprep.subr.mxu0 %v24230_v7  ;;  %v24236_v7 = vld [vmem:[#allocation76_spill] sm:$0xff] }
 0x992   :  { %10798 = vmatprep.subr.mxu1 %v23242_v17  ;;  %10640 = vmatpush1.msra.mxu0 %v24231_v33  ;;  %v24237_v33 = vld [vmem:[#allocation80_spill] sm:$0xff] }
 0x993   :  { %10800 = vmatpush1.msra.mxu1 %v23244_v40  ;;  %10644 = vmatprep.subr.mxu0 %v24232_v58  ;;  %v24238_v58 = vld [vmem:[#allocation83_spill] sm:$0xff] }
 0x994   :  { %10802 = vmatprep.subr.mxu1 %v23246_v12  ;;  %10648 = vmatpush1.msra.mxu0 %v24233_v6  ;;  %v24239_v6 = vld [vmem:[#allocation86_spill] sm:$0xff] }
 0x995   :  { %10804 = vmatpush1.msra.mxu1 %v23248_v48  ;;  %10652 = vmatprep.subr.mxu0 %v24234_v38  ;;  %v24240_v38 = vld [vmem:[#allocation90_spill] sm:$0xff] }
 0x996   :  { %10806 = vmatprep.subr.mxu1 %v24174_v21  ;;  %10656 = vmatpush1.msra.mxu0 %v24235_v11  ;;  %v24241_v11 = vld [vmem:[#allocation93_spill] sm:$0xff]  ;;  %v24315_v21 = vld [vmem:[#allocation148_spill] sm:$0xff] }
 0x997   :  { %10808 = vmatpush1.msra.mxu1 %v24176_v30  ;;  %10660 = vmatprep.subr.mxu0 %v24236_v7  ;;  %v24242_v7 = vld [vmem:[#allocation96_spill] sm:$0xff]  ;;  %v24314_v30 = vld [vmem:[#allocation145_spill] sm:$0xff] }
 0x998   :  { %10810 = vmatprep.subr.mxu1 %v24178_v52  ;;  %10664 = vmatpush1.msra.mxu0 %v24237_v33  ;;  %v24243_v33 = vld [vmem:[#allocation99_spill] sm:$0xff] }
 0x999   :  { %10812 = vmatpush1.msra.mxu1 %v24179_v45  ;;  %10668 = vmatprep.subr.mxu0 %v24238_v58  ;;  %v24246_v58 = vld [vmem:[#allocation112_spill] sm:$0xff]  ;;  %v24312_v45 = vld [vmem:[#allocation141_spill] sm:$0xff]  ;;  %v24313_v52 = vld [vmem:[#allocation143_spill] sm:$0xff] }
 0x99a   :  { %10814 = vmatprep.subr.mxu1 %v24180_v18  ;;  %10672 = vmatpush1.msra.mxu0 %v24239_v6  ;;  %v24244_v6 = vld [vmem:[#allocation108_spill] sm:$0xff] }
 0x99b   :  { %10816 = vmatpush1.msra.mxu1 %v24181_v22  ;;  %10676 = vmatprep.subr.mxu0 %v24240_v38  ;;  %v24245_v38 = vld [vmem:[#allocation171_spill] sm:$0xff]  ;;  %v24310_v22 = vld [vmem:[#allocation234_spill] sm:$0xff]  ;;  %v24311_v18 = vld [vmem:[#allocation140_spill] sm:$0xff] }
 0x99c   :  { %10818 = vmatprep.subr.mxu1 %v24182_v28  ;;  %10680 = vmatpush1.msra.mxu0 %v24241_v11  ;;  %v24247_v11 = vld [vmem:[#allocation174_spill] sm:$0xff]  ;;  %v24309_v28 = vld [vmem:[#allocation231_spill] sm:$0xff] }
 0x99d   :  { %10820 = vmatpush1.msra.mxu1 %v24183_v42  ;;  %10684 = vmatprep.subr.mxu0 %v24242_v7  ;;  %v24249_v7 = vld [vmem:[#allocation177_spill] sm:$0xff]  ;;  %v24302_v42 = vld [vmem:[#allocation262_spill] sm:$0xff] }
 0x99e   :  { %10822 = vmatprep.subr.mxu1 %v24184_v54  ;;  %10688 = vmatpush1.msra.mxu0 %v24243_v33  ;;  %v24251_v33 = vld [vmem:[#allocation180_spill] sm:$0xff]  ;;  %v24300_v54 = vld [vmem:[#allocation261_spill] sm:$0xff] }
 0x99f   :  { %10824 = vmatpush1.msra.mxu1 %v24185_v50  ;;  %10857 = vmatprep.mubr.f32.mxu1 %v22957_v16  ;;  %v24298_v50 = vld [vmem:[#allocation260_spill] sm:$0xff] }
 0x9a0   :  { %10692 = vmatprep.subr.mxu0 %v24244_v6  ;;  %10859 = vmatmul.mubr.f32.vlgmr.msra.gmra.mxu1 %v20488_v13  ;;  %v24254_v6 = vld [vmem:[#allocation125_spill] sm:$0xff] }
 0x9a1   :  { %10978 = vmatprep.subr.mxu1 %v24245_v38  ;;  %10696 = vmatpush1.msra.mxu0 %v24246_v58  ;;  %v24256_v38 = vld [vmem:[#allocation128_spill] sm:$0xff]  ;;  %v24257_v58 = vld [vmem:[#allocation189_spill] sm:$0xff] }
 0x9a2   :  { %10984 = vmatpush1.msra.mxu1 %v24247_v11  ;;  %10700 = vmatprep.subr.mxu0 %v24248_v56  ;;  %v24258_v11 = vld [vmem:[#allocation130_spill] sm:$0xff] }
 0x9a3   :  { %10990 = vmatprep.subr.mxu1 %v24249_v7  ;;  %10704 = vmatpush1.msra.mxu0 %v24250_v4  ;;  %v24259_v7 = vld [vmem:[#allocation192_spill] sm:$0xff]  ;;  %v24272_v4 = vld [vmem:[#allocation235_spill] sm:$0xff]  ;;  %v24274_v56 = vld [vmem:[#allocation238_spill] sm:$0xff] }
 0x9a4   :  { %10996 = vmatpush1.msra.mxu1 %v24251_v33  ;;  %10708 = vmatprep.subr.mxu0 %v24252_v39  ;;  %v24260_v39 = vld [vmem:[#allocation195_spill] sm:$0xff] }
 0x9a5   :  { %11002 = vmatprep.subr.mxu1 %v24253_v57  ;;  %10712 = vmatpush1.msra.mxu0 %v24254_v6  ;;  %v24261_v6 = vld [vmem:[#allocation198_spill] sm:$0xff]  ;;  %v24268_v57 = vld [vmem:[#allocation215_spill] sm:$0xff] }
 0x9a6   :  { %11008 = vmatpush1.msra.mxu1 %v24255_v24  ;;  %10716 = vmatprep.subr.mxu0 %v24256_v38  ;;  %v24262_v38 = vld [vmem:[#allocation201_spill] sm:$0xff]  ;;  %v24266_v24 = vld [vmem:[#allocation211_spill] sm:$0xff] }
 0x9a7   :  { %11014 = vmatprep.subr.mxu1 %v24257_v58  ;;  %10720 = vmatpush1.msra.mxu0 %v24258_v11  ;;  %v24263_v11 = vld [vmem:[#allocation204_spill] sm:$0xff]  ;;  %v24265_v58 = vld [vmem:[#allocation142_spill] sm:$0xff]  ;;  %v24270_v33 = vld [vmem:[#allocation219_spill] sm:$0xff] }
 0x9a8   :  { %10753 = vmatprep.mubr.f32.mxu0 %v22957_v16  ;;  %11020 = vmatpush1.msra.mxu1 %v24259_v7  ;;  %v24264_v7 = vld [vmem:[#allocation207_spill] sm:$0xff] }
 0x9a9   :  { %10755 = vmatmul.mubr.f32.vlgmr.msra.gmra.mxu0 %v20488_v13  ;;  %10866 = vmatprep.subr.mxu0 %v18079_v25 }
 0x9aa   :  { %11026 = vmatprep.subr.mxu1 %v24260_v39  ;;  %10868 = vmatpush1.msra.mxu0 %v18083_v0  ;;  %v24267_v39 = vld [vmem:[#allocation144_spill] sm:$0xff] }
 0x9ab   :  { %11032 = vmatpush1.msra.mxu1 %v24261_v6  ;;  %10870 = vmatprep.subr.mxu0 %v18087_v23  ;;  %v24269_v6 = vld [vmem:[#allocation146_spill] sm:$0xff] }
 0x9ac   :  { %11038 = vmatprep.subr.mxu1 %v24262_v38  ;;  %10872 = vmatpush1.msra.mxu0 %v18091_v1  ;;  %v24271_v38 = vld [vmem:[#allocation149_spill] sm:$0xff] }
 0x9ad   :  { %11044 = vmatpush1.msra.mxu1 %v24263_v11  ;;  %10874 = vmatprep.subr.mxu0 %v18098_v47  ;;  %v24273_v11 = vld [vmem:[#allocation152_spill] sm:$0xff] }
 0x9ae   :  { %11050 = vmatprep.subr.mxu1 %v24264_v7  ;;  %10876 = vmatpush1.msra.mxu0 %v24265_v58  ;;  %v24275_v7 = vld [vmem:[#allocation155_spill] sm:$0xff] }
 0x9af   :  { %11056 = vmatpush1.msra.mxu1 %v24266_v24  ;;  %10878 = vmatprep.subr.mxu0 %v24267_v39  ;;  %v24277_v24 = vld [vmem:[#allocation158_spill] sm:$0xff] }
 0x9b0   :  { %11062 = vmatprep.subr.mxu1 %v24268_v57  ;;  %10880 = vmatpush1.msra.mxu0 %v24269_v6  ;;  %v24279_v57 = vld [vmem:[#allocation161_spill] sm:$0xff] }
 0x9b1   :  { %11068 = vmatpush1.msra.mxu1 %v24270_v33  ;;  %10882 = vmatprep.subr.mxu0 %v24271_v38  ;;  %v24281_v33 = vld [vmem:[#allocation164_spill] sm:$0xff] }
 0x9b2   :  { %11074 = vmatprep.subr.mxu1 %v24272_v4  ;;  %10884 = vmatpush1.msra.mxu0 %v24273_v11  ;;  %v24283_v4 = vld [vmem:[#allocation167_spill] sm:$0xff] }
 0x9b3   :  { %11080 = vmatpush1.msra.mxu1 %v24274_v56  ;;  %10886 = vmatprep.subr.mxu0 %v24275_v7  ;;  %v24285_v56 = vld [vmem:[#allocation170_spill] sm:$0xff] }
 0x9b4   :  { %11086 = vmatprep.subr.mxu1 %v24276_v44  ;;  %10888 = vmatpush1.msra.mxu0 %v24277_v24  ;;  %v24287_v44 = vld [vmem:[#allocation185_spill] sm:$0xff] }
 0x9b5   :  { %11092 = vmatpush1.msra.mxu1 %v24278_v29  ;;  %10890 = vmatprep.subr.mxu0 %v24279_v57  ;;  %v24289_v29 = vld [vmem:[#allocation188_spill] sm:$0xff] }
 0x9b6   :  { %11098 = vmatprep.subr.mxu1 %v24280_v53  ;;  %10892 = vmatpush1.msra.mxu0 %v24281_v33  ;;  %v24291_v53 = vld [vmem:[#allocation191_spill] sm:$0xff] }
 0x9b7   :  { %11104 = vmatpush1.msra.mxu1 %v24282_v26  ;;  %10894 = vmatprep.subr.mxu0 %v24283_v4  ;;  %v24293_v26 = vld [vmem:[#allocation194_spill] sm:$0xff] }
 0x9b8   :  { %11110 = vmatprep.subr.mxu1 %v24284_v49  ;;  %10896 = vmatpush1.msra.mxu0 %v24285_v56  ;;  %v24295_v49 = vld [vmem:[#allocation197_spill] sm:$0xff] }
 0x9b9   :  { %11116 = vmatpush1.msra.mxu1 %v24286_v46  ;;  %10898 = vmatprep.subr.mxu0 %v24287_v44  ;;  %v24297_v46 = vld [vmem:[#allocation200_spill] sm:$0xff] }
 0x9ba   :  { %11122 = vmatprep.subr.mxu1 %v24288_v35  ;;  %10900 = vmatpush1.msra.mxu0 %v24289_v29  ;;  %v24299_v35 = vld [vmem:[#allocation203_spill] sm:$0xff] }
 0x9bb   :  { %11128 = vmatpush1.msra.mxu1 %v24290_v5  ;;  %10902 = vmatprep.subr.mxu0 %v24291_v53  ;;  %v24301_v5 = vld [vmem:[#allocation206_spill] sm:$0xff] }
 0x9bc   :  { %11134 = vmatprep.subr.mxu1 %v24292_v60  ;;  %10904 = vmatpush1.msra.mxu0 %v24293_v26  ;;  %v24303_v60 = vld [vmem:[#allocation210_spill] sm:$0xff] }
 0x9bd   :  { %11140 = vmatpush1.msra.mxu1 %v24294_v32  ;;  %10906 = vmatprep.subr.mxu0 %v24295_v49  ;;  %v24308_v32 = vld [vmem:[#allocation228_spill] sm:$0xff] }
 0x9be   :  { %11146 = vmatprep.subr.mxu1 %v24296_v55  ;;  %10908 = vmatpush1.msra.mxu0 %v24297_v46  ;;  %v24304_v55 = vld [vmem:[#allocation214_spill] sm:$0xff] }
 0x9bf   :  { %11152 = vmatpush1.msra.mxu1 %v24298_v50  ;;  %10910 = vmatprep.subr.mxu0 %v24299_v35  ;;  %v24305_v50 = vld [vmem:[#allocation218_spill] sm:$0xff] }
 0x9c0   :  { %11158 = vmatprep.subr.mxu1 %v24300_v54  ;;  %10912 = vmatpush1.msra.mxu0 %v24301_v5  ;;  %v24306_v54 = vld [vmem:[#allocation222_spill] sm:$0xff] }
 0x9c1   :  { %11164 = vmatpush1.msra.mxu1 %v24302_v42  ;;  %11197 = vmatprep.mubr.f32.mxu1 %v22957_v16  ;;  %v24307_v42 = vld [vmem:[#allocation225_spill] sm:$0xff] }
 0x9c2   :  { %10914 = vmatprep.subr.mxu0 %v24303_v60  ;;  %11199 = vmatmul.mubr.f32.vlgmr.msra.gmra.mxu1 %v20488_v13 }
 0x9c3   :  { %11343 = vmatprep.subr.mxu1 %v18079_v25  ;;  %10916 = vmatpush1.msra.mxu0 %v24304_v55 }
 0x9c4   :  { %11345 = vmatpush1.msra.mxu1 %v18083_v0  ;;  %10918 = vmatprep.subr.mxu0 %v24305_v50 }
 0x9c5   :  { %11347 = vmatprep.subr.mxu1 %v18087_v23  ;;  %10920 = vmatpush1.msra.mxu0 %v24306_v54 }
 0x9c6   :  { %11349 = vmatpush1.msra.mxu1 %v18091_v1  ;;  %10922 = vmatprep.subr.mxu0 %v24307_v42 }
 0x9c7   :  { %11351 = vmatprep.subr.mxu1 %v18098_v47  ;;  %10924 = vmatpush1.msra.mxu0 %v24308_v32 }
 0x9c8   :  { %11353 = vmatpush1.msra.mxu1 %v24265_v58  ;;  %10926 = vmatprep.subr.mxu0 %v24309_v28 }
 0x9c9   :  { %11355 = vmatprep.subr.mxu1 %v24267_v39  ;;  %10928 = vmatpush1.msra.mxu0 %v24310_v22 }
 0x9ca   :  { %10961 = vmatprep.mubr.f32.mxu0 %v22957_v16  ;;  %11357 = vmatpush1.msra.mxu1 %v24269_v6 }
 0x9cb   :  { %10967 = vmatmul.mubr.f32.vlgmr.msra.gmra.mxu0 %v20506_v31  ;;  %11207 = vmatprep.subr.mxu0 %v24311_v18  ;;  %v24316_v31 = vld [vmem:[#allocation151_spill] sm:$0xff]  ;;  %v24317_v18 = vld [vmem:[#allocation154_spill] sm:$0xff] }
 0x9cc   :  { %11359 = vmatprep.subr.mxu1 %v24271_v38  ;;  %11210 = vmatpush1.msra.mxu0 %v24312_v45  ;;  %v24318_v45 = vld [vmem:[#allocation157_spill] sm:$0xff] }
 0x9cd   :  { %11361 = vmatpush1.msra.mxu1 %v24273_v11  ;;  %11213 = vmatprep.subr.mxu0 %v24313_v52  ;;  %v24319_v52 = vld [vmem:[#allocation160_spill] sm:$0xff] }
 0x9ce   :  { %11363 = vmatprep.subr.mxu1 %v24275_v7  ;;  %11216 = vmatpush1.msra.mxu0 %v24314_v30  ;;  %v24320_v30 = vld [vmem:[#allocation163_spill] sm:$0xff] }
 0x9cf   :  { %11365 = vmatpush1.msra.mxu1 %v24277_v24  ;;  %11219 = vmatprep.subr.mxu0 %v24315_v21  ;;  %v24321_v21 = vld [vmem:[#allocation166_spill] sm:$0xff] }
 0x9d0   :  { %11367 = vmatprep.subr.mxu1 %v24279_v57  ;;  %11222 = vmatpush1.msra.mxu0 %v24316_v31  ;;  %v24322_v31 = vld [vmem:[#allocation169_spill] sm:$0xff] }
 0x9d1   :  { %11369 = vmatpush1.msra.mxu1 %v24281_v33  ;;  %11225 = vmatprep.subr.mxu0 %v24317_v18  ;;  %v24323_v18 = vld [vmem:[#allocation173_spill] sm:$0xff] }
 0x9d2   :  { %11371 = vmatprep.subr.mxu1 %v24283_v4  ;;  %11228 = vmatpush1.msra.mxu0 %v24318_v45  ;;  %v24324_v45 = vld [vmem:[#allocation176_spill] sm:$0xff] }
 0x9d3   :  { %11373 = vmatpush1.msra.mxu1 %v24285_v56  ;;  %11231 = vmatprep.subr.mxu0 %v24319_v52  ;;  %v24325_v52 = vld [vmem:[#allocation179_spill] sm:$0xff] }
 0x9d4   :  { %11375 = vmatprep.subr.mxu1 %v24287_v44  ;;  %11234 = vmatpush1.msra.mxu0 %v24320_v30  ;;  %v24326_v30 = vld [vmem:[#allocation182_spill] sm:$0xff] }
 0x9d5   :  { %11377 = vmatpush1.msra.mxu1 %v24289_v29  ;;  %11237 = vmatprep.subr.mxu0 %v24321_v21  ;;  %v24327_v21 = vld [vmem:[#allocation196_spill] sm:$0xff] }
 0x9d6   :  { %11379 = vmatprep.subr.mxu1 %v24291_v53  ;;  %11240 = vmatpush1.msra.mxu0 %v24322_v31  ;;  %v24328_v31 = vld [vmem:[#allocation199_spill] sm:$0xff] }
 0x9d7   :  { %11381 = vmatpush1.msra.mxu1 %v24293_v26  ;;  %11243 = vmatprep.subr.mxu0 %v24323_v18  ;;  %v24329_v18 = vld [vmem:[#allocation202_spill] sm:$0xff] }
 0x9d8   :  { %11383 = vmatprep.subr.mxu1 %v24295_v49  ;;  %11246 = vmatpush1.msra.mxu0 %v24324_v45  ;;  %v24330_v45 = vld [vmem:[#allocation205_spill] sm:$0xff] }
 0x9d9   :  { %11385 = vmatpush1.msra.mxu1 %v24297_v46  ;;  %11249 = vmatprep.subr.mxu0 %v24325_v52  ;;  %v24331_v52 = vld [vmem:[#allocation209_spill] sm:$0xff] }
 0x9da   :  { %11387 = vmatprep.subr.mxu1 %v24299_v35  ;;  %11252 = vmatpush1.msra.mxu0 %v24326_v30  ;;  %v24332_v30 = vld [vmem:[#allocation213_spill] sm:$0xff] }
 0x9db   :  { %11389 = vmatpush1.msra.mxu1 %v24301_v5  ;;  %11255 = vmatprep.subr.mxu0 %v24327_v21  ;;  %v24333_v21 = vld [vmem:[#allocation217_spill] sm:$0xff] }
 0x9dc   :  { %11391 = vmatprep.subr.mxu1 %v24303_v60  ;;  %11258 = vmatpush1.msra.mxu0 %v24328_v31  ;;  %v24334_v31 = vld [vmem:[#allocation221_spill] sm:$0xff] }
 0x9dd   :  { %11393 = vmatpush1.msra.mxu1 %v24304_v55  ;;  %11261 = vmatprep.subr.mxu0 %v24329_v18  ;;  %v24374_v18 = vld [vmem:[#allocation31_spill] sm:$0xff] }
 0x9de   :  { %11395 = vmatprep.subr.mxu1 %v24305_v50  ;;  %11264 = vmatpush1.msra.mxu0 %v24330_v45  ;;  %v24335_v45 = vld [vmem:[#allocation224_spill] sm:$0xff] }
 0x9df   :  { %11397 = vmatpush1.msra.mxu1 %v24306_v54  ;;  %11267 = vmatprep.subr.mxu0 %v24331_v52  ;;  %v24336_v52 = vld [vmem:[#allocation227_spill] sm:$0xff] }
 0x9e0   :  { %11399 = vmatprep.subr.mxu1 %v24307_v42  ;;  %11270 = vmatpush1.msra.mxu0 %v24332_v30  ;;  %v24337_v30 = vld [vmem:[#allocation230_spill] sm:$0xff] }
 0x9e1   :  { %11401 = vmatpush1.msra.mxu1 %v24308_v32  ;;  %11273 = vmatprep.subr.mxu0 %v24333_v21  ;;  %v24338_v21 = vld [vmem:[#allocation233_spill] sm:$0xff] }
 0x9e2   :  { %11403 = vmatprep.subr.mxu1 %v24309_v28  ;;  %11276 = vmatpush1.msra.mxu0 %v24334_v31  ;;  %v24339_v31 = vld [vmem:[#allocation237_spill] sm:$0xff] }
 0x9e3   :  { %11405 = vmatpush1.msra.mxu1 %v24310_v22  ;;  %11438 = vmatprep.mubr.f32.mxu1 %v22957_v16 }
 0x9e4   :  { %11279 = vmatprep.subr.mxu0 %v24335_v45  ;;  %11442 = vmatmul.mubr.f32.vlgmr.msra.gmra.mxu1 %v20498_v34  ;;  %v24340_v45 = vld [vmem:[#allocation240_spill] sm:$0xff]  ;;  %v24341_v34 = vld [vmem:[#allocation243_spill] sm:$0xff] }
 0x9e5   :  { %11617 = vmatprep.subr.mxu1 %v18079_v25  ;;  %11282 = vmatpush1.msra.mxu0 %v24336_v52  ;;  %v24342_v52 = vld [vmem:[#allocation246_spill] sm:$0xff] }
 0x9e6   :  { %11619 = vmatpush1.msra.mxu1 %v18083_v0  ;;  %11285 = vmatprep.subr.mxu0 %v24337_v30  ;;  %v24372_v30 = vld [vmem:[#allocation28_spill] sm:$0xff] }
 0x9e7   :  { %11621 = vmatprep.subr.mxu1 %v18087_v23  ;;  %11288 = vmatpush1.msra.mxu0 %v24338_v21  ;;  %v24343_v21 = vld [vmem:[#allocation147_spill] sm:$0xff] }
 0x9e8   :  { %11623 = vmatpush1.msra.mxu1 %v18091_v1  ;;  %11291 = vmatprep.subr.mxu0 %v24339_v31  ;;  %v24344_v31 = vld [vmem:[#allocation150_spill] sm:$0xff] }
 0x9e9   :  { %11625 = vmatprep.subr.mxu1 %v18098_v47  ;;  %11294 = vmatpush1.msra.mxu0 %v24340_v45  ;;  %v24345_v45 = vld [vmem:[#allocation153_spill] sm:$0xff] }
 0x9ea   :  { %11627 = vmatpush1.msra.mxu1 %v24265_v58  ;;  %11297 = vmatprep.subr.mxu0 %v24341_v34  ;;  %v24346_v34 = vld [vmem:[#allocation156_spill] sm:$0xff] }
 0x9eb   :  { %11629 = vmatprep.subr.mxu1 %v24267_v39  ;;  %11300 = vmatpush1.msra.mxu0 %v24342_v52  ;;  %v24347_v52 = vld [vmem:[#allocation159_spill] sm:$0xff]  ;;  %v10003_v58 = vld [vmem:[#allocation2 + $0x8] sm:$0x30] }
 0x9ec   :  { %11333 = vmatprep.mubr.f32.mxu0 %v22957_v16  ;;  %11631 = vmatpush1.msra.mxu1 %v24269_v6  ;;  %v10004_v39 = vld [vmem:[#allocation2 + $0x20] sm:$0x30] }
 0x9ed   :  { %11336 = vmatmul.mubr.f32.vlgmr.msra.gmra.mxu0 %v20492_v63  ;;  %11451 = vmatprep.subr.mxu0 %v24343_v21  ;;  %v24348_v63 = vld [vmem:[#allocation162_spill] sm:$0xff]  ;;  %v24349_v21 = vld [vmem:[#allocation165_spill] sm:$0xff] }
 0x9ee   :  { %11633 = vmatprep.subr.mxu1 %v24271_v38  ;;  %11455 = vmatpush1.msra.mxu0 %v24344_v31  ;;  %v24350_v31 = vld [vmem:[#allocation168_spill] sm:$0xff] }
 0x9ef   :  { %11635 = vmatpush1.msra.mxu1 %v24273_v11  ;;  %11459 = vmatprep.subr.mxu0 %v24345_v45  ;;  %v24351_v45 = vld [vmem:[#allocation172_spill] sm:$0xff] }
 0x9f0   :  { %11637 = vmatprep.subr.mxu1 %v24275_v7  ;;  %11463 = vmatpush1.msra.mxu0 %v24346_v34  ;;  %v24352_v34 = vld [vmem:[#allocation175_spill] sm:$0xff] }
 0x9f1   :  { %11639 = vmatpush1.msra.mxu1 %v24277_v24  ;;  %11467 = vmatprep.subr.mxu0 %v24347_v52  ;;  %v24353_v52 = vld [vmem:[#allocation178_spill] sm:$0xff] }
 0x9f2   :  { %11641 = vmatprep.subr.mxu1 %v24279_v57  ;;  %11471 = vmatpush1.msra.mxu0 %v24348_v63  ;;  %v24354_v63 = vld [vmem:[#allocation181_spill] sm:$0xff] }
 0x9f3   :  { %11643 = vmatpush1.msra.mxu1 %v24281_v33  ;;  %11475 = vmatprep.subr.mxu0 %v24349_v21  ;;  %v24355_v21 = vld [vmem:[#allocation184_spill] sm:$0xff] }
 0x9f4   :  { %11645 = vmatprep.subr.mxu1 %v24283_v4  ;;  %11479 = vmatpush1.msra.mxu0 %v24350_v31  ;;  %v24356_v31 = vld [vmem:[#allocation187_spill] sm:$0xff] }
 0x9f5   :  { %11647 = vmatpush1.msra.mxu1 %v24285_v56  ;;  %11483 = vmatprep.subr.mxu0 %v24351_v45  ;;  %v24357_v45 = vld [vmem:[#allocation190_spill] sm:$0xff] }
 0x9f6   :  { %11649 = vmatprep.subr.mxu1 %v24287_v44  ;;  %11487 = vmatpush1.msra.mxu0 %v24352_v34  ;;  %v24358_v34 = vld [vmem:[#allocation193_spill] sm:$0xff] }
 0x9f7   :  { %11651 = vmatpush1.msra.mxu1 %v24289_v29  ;;  %11491 = vmatprep.subr.mxu0 %v24353_v52  ;;  %v24359_v52 = vld [vmem:[#allocation208_spill] sm:$0xff] }
 0x9f8   :  { %11653 = vmatprep.subr.mxu1 %v24291_v53  ;;  %11495 = vmatpush1.msra.mxu0 %v24354_v63  ;;  %v24360_v63 = vld [vmem:[#allocation212_spill] sm:$0xff] }
 0x9f9   :  { %11655 = vmatpush1.msra.mxu1 %v24293_v26  ;;  %11499 = vmatprep.subr.mxu0 %v24355_v21  ;;  %v24361_v21 = vld [vmem:[#allocation216_spill] sm:$0xff] }
 0x9fa   :  { %11657 = vmatprep.subr.mxu1 %v24295_v49  ;;  %11503 = vmatpush1.msra.mxu0 %v24356_v31  ;;  %v24362_v31 = vld [vmem:[#allocation220_spill] sm:$0xff] }
 0x9fb   :  { %11659 = vmatpush1.msra.mxu1 %v24297_v46  ;;  %11507 = vmatprep.subr.mxu0 %v24357_v45  ;;  %v24363_v45 = vld [vmem:[#allocation223_spill] sm:$0xff] }
 0x9fc   :  { %11661 = vmatprep.subr.mxu1 %v24299_v35  ;;  %11511 = vmatpush1.msra.mxu0 %v24358_v34  ;;  %v24364_v34 = vld [vmem:[#allocation226_spill] sm:$0xff] }
 0x9fd   :  { %11663 = vmatpush1.msra.mxu1 %v24301_v5  ;;  %11515 = vmatprep.subr.mxu0 %v24359_v52  ;;  %v24365_v52 = vld [vmem:[#allocation229_spill] sm:$0xff] }
 0x9fe   :  { %11665 = vmatprep.subr.mxu1 %v24303_v60  ;;  %11519 = vmatpush1.msra.mxu0 %v24360_v63  ;;  %v24366_v63 = vld [vmem:[#allocation232_spill] sm:$0xff] }
 0x9ff   :  { %11667 = vmatpush1.msra.mxu1 %v24304_v55  ;;  %11523 = vmatprep.subr.mxu0 %v24361_v21  ;;  %v24370_v21 = vld [vmem:[#allocation25_spill] sm:$0xff] }
 0xa00   :  { %11669 = vmatprep.subr.mxu1 %v24305_v50  ;;  %11527 = vmatpush1.msra.mxu0 %v24362_v31  ;;  %v24367_v31 = vld [vmem:[#allocation236_spill] sm:$0xff] }
 0xa01   :  { %11671 = vmatpush1.msra.mxu1 %v24306_v54  ;;  %11531 = vmatprep.subr.mxu0 %v24363_v45  ;;  %v24368_v45 = vld [vmem:[#allocation239_spill] sm:$0xff] }
 0xa02   :  { %11673 = vmatprep.subr.mxu1 %v24307_v42  ;;  %11535 = vmatpush1.msra.mxu0 %v24364_v34  ;;  %v24369_v34 = vld [vmem:[#allocation242_spill] sm:$0xff] }
 0xa03   :  { %11675 = vmatpush1.msra.mxu1 %v24308_v32  ;;  %11539 = vmatprep.subr.mxu0 %v24365_v52  ;;  %v24371_v52 = vld [vmem:[#allocation245_spill] sm:$0xff]  ;;  %v24379_v32 = vld [vmem:[#allocation254_spill] sm:$0xff] }
 0xa04   :  { %11677 = vmatprep.subr.mxu1 %v24309_v28  ;;  %11543 = vmatpush1.msra.mxu0 %v24366_v63  ;;  %v24373_v63 = vld [vmem:[#allocation248_spill] sm:$0xff] }
 0xa05   :  { %11679 = vmatpush1.msra.mxu1 %v24310_v22  ;;  %11712 = vmatprep.mubr.f32.mxu1 %v22957_v16  ;;  %v24375_v22 = vld [vmem:[#allocation250_spill] sm:$0xff]  ;;  %v24377_v28 = vld [vmem:[#allocation252_spill] sm:$0xff] }
 0xa06   :  { %11547 = vmatprep.subr.mxu0 %v24367_v31  ;;  %11714 = vmatmul.mubr.f32.vlgmr.msra.gmra.mxu1 %v20488_v13  ;;  %v24376_v31 = vld [vmem:[#allocation34_spill] sm:$0xff] }
 0xa07   :  { %11551 = vmatpush1.msra.mxu0 %v24368_v45  ;;  %11608 = vmatprep.mubr.f32.mxu0 %v22957_v16  ;;  %v24378_v45 = vld [vmem:[#allocation37_spill] sm:$0xff] }
 0xa08   :  { %11555 = vmatprep.subr.mxu0 %v24369_v34  ;;  %11883 = vmatprep.subr.mxu1 %v24370_v21  ;;  %v24380_v34 = vld [vmem:[#allocation40_spill] sm:$0xff] }
 0xa09   :  { %11559 = vmatpush1.msra.mxu0 %v24371_v52  ;;  %11889 = vmatpush1.msra.mxu1 %v24372_v30  ;;  %v24381_v52 = vld [vmem:[#allocation43_spill] sm:$0xff] }
 0xa0a   :  { %11563 = vmatprep.subr.mxu0 %v24373_v63  ;;  %11895 = vmatprep.subr.mxu1 %v24374_v18  ;;  %v24382_v30 = vld [vmem:[#allocation47_spill] sm:$0xff]  ;;  %v24383_v18 = vld [vmem:[#allocation57_spill] sm:$0xff] }
 0xa0b   :  { %11567 = vmatpush1.msra.mxu0 %v24375_v22  ;;  %11901 = vmatpush1.msra.mxu1 %v24376_v31  ;;  %v24384_v31 = vld [vmem:[#allocation60_spill] sm:$0xff]  ;;  %v24415_v22 = vld [vmem:[#allocation117_spill] sm:$0xff] }
 0xa0c   :  { %11571 = vmatprep.subr.mxu0 %v24377_v28  ;;  %11907 = vmatprep.subr.mxu1 %v24378_v45  ;;  %v24385_v45 = vld [vmem:[#allocation63_spill] sm:$0xff]  ;;  %v24413_v28 = vld [vmem:[#allocation110_spill] sm:$0xff]  ;;  %v24417_v63 = vld [vmem:[#allocation9_spill] sm:$0xff] }
 0xa0d   :  { %11575 = vmatpush1.msra.mxu0 %v24379_v32  ;;  %11913 = vmatpush1.msra.mxu1 %v24380_v34  ;;  %v24386_v34 = vld [vmem:[#allocation66_spill] sm:$0xff] }
 0xa0e   :  { %11610 = vmatmul.mubr.f32.vlgmr.msra.gmra.mxu0 %v20488_v13  ;;  %11919 = vmatprep.subr.mxu1 %v24381_v52  ;;  %v24387_v13 = vld [vmem:[#allocation69_spill] sm:$0xff]  ;;  %v24408_v32 = vld [vmem:[#allocation134_spill] sm:$0xff] }
 0xa0f   :  { %11925 = vmatpush1.msra.mxu1 %v24382_v30  ;;  %11771 = vmatprep.subr.mxu0 %v23206_v9  ;;  %v24388_v30 = vld [vmem:[#allocation72_spill] sm:$0xff]  ;;  %v24406_v52 = vld [vmem:[#allocation133_spill] sm:$0xff] }
 0xa10   :  { %11931 = vmatprep.subr.mxu1 %v24383_v18  ;;  %11773 = vmatpush1.msra.mxu0 %v23208_v61  ;;  %v24389_v18 = vld [vmem:[#allocation75_spill] sm:$0xff] }
 0xa11   :  { %11937 = vmatpush1.msra.mxu1 %v24384_v31  ;;  %11775 = vmatprep.subr.mxu0 %v23210_v27  ;;  %v24390_v31 = vld [vmem:[#allocation79_spill] sm:$0xff] }
 0xa12   :  { %11943 = vmatprep.subr.mxu1 %v24385_v45  ;;  %11777 = vmatpush1.msra.mxu0 %v23212_v20  ;;  %v24391_v45 = vld [vmem:[#allocation89_spill] sm:$0xff] }
 0xa13   :  { %11949 = vmatpush1.msra.mxu1 %v24386_v34  ;;  %11779 = vmatprep.subr.mxu0 %v23214_v8  ;;  %v24392_v34 = vld [vmem:[#allocation92_spill] sm:$0xff] }
 0xa14   :  { %11955 = vmatprep.subr.mxu1 %v24387_v13  ;;  %11781 = vmatpush1.msra.mxu0 %v23216_v41  ;;  %v24393_v13 = vld [vmem:[#allocation95_spill] sm:$0xff] }
 0xa15   :  { %11961 = vmatpush1.msra.mxu1 %v24388_v30  ;;  %11783 = vmatprep.subr.mxu0 %v23218_v2  ;;  %v24394_v30 = vld [vmem:[#allocation98_spill] sm:$0xff] }
 0xa16   :  { %11967 = vmatprep.subr.mxu1 %v24389_v18  ;;  %11785 = vmatpush1.msra.mxu0 %v23220_v14  ;;  %v24395_v18 = vld [vmem:[#allocation101_spill] sm:$0xff] }
 0xa17   :  { %11973 = vmatpush1.msra.mxu1 %v24390_v31  ;;  %11787 = vmatprep.subr.mxu0 %v23222_v15  ;;  %v24396_v31 = vld [vmem:[#allocation104_spill] sm:$0xff] }
 0xa18   :  { %11979 = vmatprep.subr.mxu1 %v24391_v45  ;;  %11789 = vmatpush1.msra.mxu0 %v23224_v59  ;;  %v24397_v45 = vld [vmem:[#allocation107_spill] sm:$0xff] }
 0xa19   :  { %11985 = vmatpush1.msra.mxu1 %v24392_v34  ;;  %11791 = vmatprep.subr.mxu0 %v23226_v36  ;;  %v24398_v34 = vld [vmem:[#allocation111_spill] sm:$0xff] }
 0xa1a   :  { %11991 = vmatprep.subr.mxu1 %v24393_v13  ;;  %11793 = vmatpush1.msra.mxu0 %v23228_v3  ;;  %v24399_v13 = vld [vmem:[#allocation121_spill] sm:$0xff] }
 0xa1b   :  { %11997 = vmatpush1.msra.mxu1 %v24394_v30  ;;  %11795 = vmatprep.subr.mxu0 %v23230_v37  ;;  %v24400_v30 = vld [vmem:[#allocation124_spill] sm:$0xff] }
 0xa1c   :  { %12003 = vmatprep.subr.mxu1 %v24395_v18  ;;  %11797 = vmatpush1.msra.mxu0 %v23232_v10  ;;  %v24401_v18 = vld [vmem:[#allocation127_spill] sm:$0xff] }
 0xa1d   :  { %12009 = vmatpush1.msra.mxu1 %v24396_v31  ;;  %11799 = vmatprep.subr.mxu0 %v23234_v43  ;;  %v24402_v31 = vld [vmem:[#allocation129_spill] sm:$0xff] }
 0xa1e   :  { %12015 = vmatprep.subr.mxu1 %v24397_v45  ;;  %11801 = vmatpush1.msra.mxu0 %v23236_v62  ;;  %v24403_v45 = vld [vmem:[#allocation131_spill] sm:$0xff]  ;;  %v10345_v54 = vpop.f32.mrf.mxu1 }
 0xa1f   :  { %12021 = vmatpush1.msra.mxu1 %v24398_v34  ;;  %11803 = vmatprep.subr.mxu0 %v23238_v19  ;;  %v24404_v34 = vld [vmem:[#allocation132_spill] sm:$0xff] }
 0xa20   :  { %12027 = vmatprep.subr.mxu1 %v24399_v13  ;;  %11805 = vmatpush1.msra.mxu0 %v23240_v51  ;;  %v24405_v13 = vld [vmem:[#allocation85_spill] sm:$0xff]  ;;  %v10347_v55 = vpop.f32.mrf.mxu1 }
 0xa21   :  { %12033 = vmatpush1.msra.mxu1 %v24400_v30  ;;  %11807 = vmatprep.subr.mxu0 %v23242_v17  ;;  %v24407_v30 = vld [vmem:[#allocation88_spill] sm:$0xff] }
 0xa22   :  { %12039 = vmatprep.subr.mxu1 %v24401_v18  ;;  %11809 = vmatpush1.msra.mxu0 %v23244_v40  ;;  %v24409_v18 = vld [vmem:[#allocation97_spill] sm:$0xff] }
 0xa23   :  { %12045 = vmatpush1.msra.mxu1 %v24402_v31  ;;  %11811 = vmatprep.subr.mxu0 %v23246_v12  ;;  %v24410_v31 = vld [vmem:[#allocation100_spill] sm:$0xff] }
 0xa24   :  { %12051 = vmatprep.subr.mxu1 %v24403_v45  ;;  %11813 = vmatpush1.msra.mxu0 %v23248_v48  ;;  %v24411_v45 = vld [vmem:[#allocation103_spill] sm:$0xff] }
 0xa25   :  { %12057 = vmatpush1.msra.mxu1 %v24404_v34  ;;  %11815 = vmatprep.subr.mxu0 %v24405_v13  ;;  %v24412_v34 = vld [vmem:[#allocation106_spill] sm:$0xff] }
 0xa26   :  { %12063 = vmatprep.subr.mxu1 %v24406_v52  ;;  %11817 = vmatpush1.msra.mxu0 %v24407_v30  ;;  %v24414_v52 = vld [vmem:[#allocation114_spill] sm:$0xff]  ;;  %v10113_v21 = vpop.f32.mrf.mxu0 }
 0xa27   :  { %12069 = vmatpush1.msra.mxu1 %v24408_v32  ;;  %11819 = vmatprep.subr.mxu0 %v24409_v18  ;;  %v24416_v32 = vld [vmem:[#allocation120_spill] sm:$0xff]  ;;  %v10346_v35 = vadd.f32 %v10345_v54, %v10113_v21 }
 0xa28   :  { %12102 = vmatprep.mubr.f32.mxu1 %v22957_v16  ;;  %12248 = vmatprep.subr.mxu1 %v23206_v9  ;;  %v10115_v42 = vpop.f32.mrf.mxu0 }
 0xa29   :  { %11821 = vmatpush1.msra.mxu0 %v24410_v31  ;;  %11866 = vmatprep.mubr.f32.mxu0 %v22957_v16  ;;  %v10348_v5 = vadd.f32 %v10347_v55, %v10115_v42 }
 0xa2a   :  { %11823 = vmatprep.subr.mxu0 %v24411_v45 }
 0xa2b   :  { %11825 = vmatpush1.msra.mxu0 %v24412_v34 }
 0xa2c   :  { %11827 = vmatprep.subr.mxu0 %v24413_v28 }
 0xa2d   :  { %11829 = vmatpush1.msra.mxu0 %v24414_v52 }
 0xa2e   :  { %11831 = vmatprep.subr.mxu0 %v24415_v22 }
 0xa2f   :  { %11833 = vmatpush1.msra.mxu0 %v24416_v32 }
 0xa30   :  { %12112 = vmatprep.subr.mxu0 %v24417_v63 }
 0xa3e   :  { %v10588_v46 = vpop.f32.mrf.mxu1 }
 0xa40   :  { %v10590_v29 = vpop.f32.mrf.mxu1 }
 0xa47   :  { %v10482_v50 = vpop.f32.mrf.mxu0 }
 0xa48   :  { %v10483_v53 = vadd.f32 %v10482_v50, %v10346_v35 }
 0xa49   :  { %v10484_v60 = vpop.f32.mrf.mxu0 }
 0xa4a   :  { %v10485_v26 = vadd.f32 %v10484_v60, %v10348_v5  ;;  %v10589_v33 = vadd.f32 %v10588_v46, %v10483_v53 }
 0xa4c   :  { %v10591_v56 = vadd.f32 %v10590_v29, %v10485_v26 }
 0xa60   :  { %v10860_v4 = vpop.f32.mrf.mxu1 }
 0xa62   :  { %v10862_v63 = vpop.f32.mrf.mxu1 }
 0xa69   :  { %v10756_v49 = vpop.f32.mrf.mxu0 }
 0xa6a   :  { %v10757_v24 = vadd.f32 %v10756_v49, %v10589_v33 }
 0xa6b   :  { %v10758_v44 = vpop.f32.mrf.mxu0 }
 0xa6c   :  { %v10759_v57 = vadd.f32 %v10758_v44, %v10591_v56  ;;  %v10861_v11 = vadd.f32 %v10860_v4, %v10757_v24 }
 0xa6e   :  { %v10863_v7 = vadd.f32 %v10862_v63, %v10759_v57  ;;  %v11724_v6 = vrot.slane %v10861_v11, 4 }
 0xa70   :  { %v11725_v38 = vrot.slane %v10863_v7, 4  ;;  %v11732_v54 = vadd.f32 %v11724_v6, %v10003_v58 }
 0xa72   :  { %v11733_v42 = vadd.f32 %v11725_v38, %v10004_v39  ;;  %v16847_v55 = vmul.f32 -1.442695, %v11732_v54 }
 0xa74   :  { %v16848_v21 = vmul.f32 -1.442695, %v11733_v42 }
 0xa76   :  { %17285 = vpow2.f32 %v16848_v21 }
 0xa77   :  { %17287 = vpow2.f32 %v16847_v55 }
 0xa82   :  { %v11200_v50 = vpop.f32.mrf.mxu1 }
 0xa83   :  { %v17286_v56 = vpop.eup %17285 }
 0xa84   :  { %v11202_v46 = vpop.f32.mrf.mxu1  ;;  %v17288_v6 = vpop.eup %17287  ;;  %v11745_v33 = vadd.f32 1.0, %v17286_v56 }
 0xa85   :  { %v11739_v54 = vadd.f32 1.0, %v17288_v6 }
 0xa86   :  { %17289 = vrcp.f32 %v11745_v33 }
 0xa87   :  { %17291 = vrcp.f32 %v11739_v54 }
 0xa8b   :  { %v10968_v60 = vpop.f32.mrf.mxu0 }
 0xa8c   :  { %v11201_v26 = vadd.f32 %v11200_v50, %v10968_v60  ;;  %v10005_v50 = vld [vmem:[#allocation2 + $0x28] sm:$0x30] }
 0xa8d   :  { %v10970_v5 = vpop.f32.mrf.mxu0 }
 0xa8e   :  { %v11203_v29 = vadd.f32 %v11202_v46, %v10970_v5  ;;  %v10006_v46 = vld [vmem:[#allocation2 + $0x38] sm:$0x30] }
 0xaa4   :  { %v11443_v49 = vpop.f32.mrf.mxu1 }
 0xaa6   :  { %v11445_v57 = vpop.f32.mrf.mxu1 }
 0xaad   :  { %v11337_v35 = vpop.f32.mrf.mxu0 }
 0xaae   :  { %v11338_v44 = vadd.f32 %v11337_v35, %v11201_v26 }
 0xaaf   :  { %v11339_v53 = vpop.f32.mrf.mxu0 }
 0xab0   :  { %v11340_v24 = vadd.f32 %v11339_v53, %v11203_v29  ;;  %v11444_v4 = vadd.f32 %v11443_v49, %v11338_v44  ;;  %v17290_v53 = vpop.eup %17289  ;;  %v24418_v44 = vld [vmem:[#allocation8_spill] sm:$0xff] }
 0xab1   :  { %v17292_v29 = vpop.eup %17291 }
 0xab2   :  { %v11446_v11 = vadd.f32 %v11445_v57, %v11340_v24  ;;  %v11756_v24 = vrot.slane %v24418_v44, 6  ;;  %v24429_v44 = vld [vmem:[#allocation45_spill] sm:$0xff] }
 0xac6   :  { %v11715_v39 = vpop.f32.mrf.mxu1 }
 0xac8   :  { %v11717_v21 = vpop.f32.mrf.mxu1 }
 0xace   :  { %v11611_v58 = vpop.f32.mrf.mxu0 }
 0xacf   :  { %v11612_v38 = vadd.f32 %v11611_v58, %v11444_v4  ;;  %v11758_v4 = vmul.f32 %v17290_v53, %v11756_v24  ;;  %v24427_v53 = vld [vmem:[#allocation38_spill] sm:$0xff]  ;;  %v24430_v24 = vld [vmem:[#allocation49_spill] sm:$0xff] }
 0xad0   :  { %v11613_v7 = vpop.f32.mrf.mxu0 }
 0xad1   :  { %v11716_v63 = vadd.f32 %v11715_v39, %v11612_v38  ;;  %v11614_v42 = vadd.f32 %v11613_v7, %v11446_v11 }
 0xad3   :  { %v11726_v55 = vrot.slane %v11716_v63, 4  ;;  %v11718_v60 = vadd.f32 %v11717_v21, %v11614_v42 }
 0xad5   :  { %v11734_v5 = vadd.f32 %v11726_v55, %v10005_v50  ;;  %v11727_v35 = vrot.slane %v11718_v60, 4  ;;  %v24420_v60 = vld [vmem:[#allocation11_spill] sm:$0xff]  ;;  %v24421_v50 = vld [vmem:[#allocation14_spill] sm:$0xff] }
 0xad7   :  { %17293 = vtanh.f32 %v11734_v5  ;;  %v11735_v26 = vadd.f32 %v11727_v35, %v10006_v46  ;;  %v24422_v5 = vld [vmem:[#allocation17_spill] sm:$0xff]  ;;  %v24423_v35 = vld [vmem:[#allocation20_spill] sm:$0xff]  ;;  %v24424_v46 = vld [vmem:[#allocation23_spill] sm:$0xff] }
 0xad9   :  { %v16849_v49 = vmul.f32 -1.442695, %v11735_v26  ;;  %v24425_v26 = vld [vmem:[#allocation27_spill] sm:$0xff] }
 0xadb   :  { %17295 = vpow2.f32 %v16849_v49  ;;  %v24426_v49 = vld [vmem:[#allocation30_spill] sm:$0xff] }
 0xae4   :  { %v17294_v57 = vpop.eup %17293 }
 0xae5   :  { %v11759_v56 = vmul.f32 %v17294_v57, %v17292_v29  ;;  %v24428_v29 = vld [vmem:[#allocation41_spill] sm:$0xff]  ;;  %v24431_v57 = vld [vmem:[#allocation52_spill] sm:$0xff] }
 0xae7   :  { %v20909_v39 = vadd.f32 %v11759_v56, %v11758_v4  ;;  %v24432_v4 = vld [vmem:[#allocation55_spill] sm:$0xff] }
 0xae8   :  { %v17296_v58 = vpop.eup %17295  ;;  %v24433_v56 = vld [vmem:[#allocation59_spill] sm:$0xff] }
 0xae9   :  { %24419 = vst [vmem:[#allocation10_spill] sm:$0xff] %v20909_v39  ;;  %v11752_v6 = vadd.f32 1.0, %v17296_v58  ;;  %17297 = vtanh.f32 %v20909_v39  ;;  %v24434_v58 = vld [vmem:[#allocation62_spill] sm:$0xff]  ;;  %v24527_v39 = vld [vmem:[#allocation259_spill] sm:$0xff] }
 0xaeb   :  { %17299 = vrcp.f32 %v11752_v6  ;;  %v24435_v6 = vld [vmem:[#allocation70_spill] sm:$0xff] }
 0xaf6   :  { %v17298_v38 = vpop.eup %17297 }
 0xaf8   :  { %v17300_v11 = vpop.eup %17299 }
 0xaf9   :  { %v11762_v7 = vmul.f32 %v17300_v11, %v17298_v38  ;;  %v24436_v38 = vld [vmem:[#allocation73_spill] sm:$0xff] }
 0xafa   :  { %v24437_v11 = vld [vmem:[#allocation77_spill] sm:$0xff] }
 0xafb   :  { %v11768_v33 = vrot.slane %v11762_v7, 4  ;;  %v24438_v7 = vld [vmem:[#allocation81_spill] sm:$0xff] }
 0xafd   :  { %v20912_v63 = vand.u32 4294901760, %v11768_v33 }
 0xaff   :  { %12104 = vmatmul.mubr.f32.vlgmr.msra.gmra.mxu1 %v20912_v63  ;;  %v20916_v42 = vsub.f32 %v11768_v33, %v20912_v63  ;;  %v24439_v33 = vld [vmem:[#allocation84_spill] sm:$0xff] }
 0xb00   :  { %12250 = vmatpush1.msra.mxu1 %v23208_v61  ;;  %12343 = vmatprep.mubr.f32.mxu1 %v22957_v16 }
 0xb01   :  { %12252 = vmatprep.subr.mxu1 %v23210_v27  ;;  %v20922_v54 = vand.u32 4294901760, %v20916_v42 }
 0xb02   :  { %12254 = vmatpush1.msra.mxu1 %v23212_v20 }
 0xb03   :  { %12256 = vmatprep.subr.mxu1 %v23214_v8  ;;  %v11870_v21 = vsub.f32 %v20916_v42, %v20922_v54 }
 0xb04   :  { %12258 = vmatpush1.msra.mxu1 %v23216_v41 }
 0xb05   :  { %12260 = vmatprep.subr.mxu1 %v23218_v2  ;;  %v20930_v55 = vand.u32 4294901760, %v11870_v21  ;;  %v24440_v21 = vld [vmem:[#allocation87_spill] sm:$0xff] }
 0xb06   :  { %12262 = vmatpush1.msra.mxu1 %v23220_v14 }
 0xb07   :  { %12264 = vmatprep.subr.mxu1 %v23222_v15  ;;  %11872 = vmatmul.mubr.f32.vlgmr.msra.gmra.mxu0 %v20930_v55 }
 0xb08   :  { %12115 = vmatpush1.msra.mxu0 %v24420_v60  ;;  %12266 = vmatpush1.msra.mxu1 %v23224_v59  ;;  %v24525_v60 = vld [vmem:[#allocation258_spill] sm:$0xff] }
 0xb09   :  { %12118 = vmatprep.subr.mxu0 %v24421_v50  ;;  %12268 = vmatprep.subr.mxu1 %v23226_v36  ;;  %v24523_v50 = vld [vmem:[#allocation257_spill] sm:$0xff] }
 0xb0a   :  { %12121 = vmatpush1.msra.mxu0 %v24422_v5  ;;  %12270 = vmatpush1.msra.mxu1 %v23228_v3  ;;  %v24521_v5 = vld [vmem:[#allocation256_spill] sm:$0xff] }
 0xb0b   :  { %12124 = vmatprep.subr.mxu0 %v24423_v35  ;;  %12272 = vmatprep.subr.mxu1 %v23230_v37  ;;  %v24519_v35 = vld [vmem:[#allocation255_spill] sm:$0xff] }
 0xb0c   :  { %12127 = vmatpush1.msra.mxu0 %v24424_v46  ;;  %12274 = vmatpush1.msra.mxu1 %v23232_v10  ;;  %v24517_v46 = vld [vmem:[#allocation253_spill] sm:$0xff] }
 0xb0d   :  { %12130 = vmatprep.subr.mxu0 %v24425_v26  ;;  %12276 = vmatprep.subr.mxu1 %v23234_v43  ;;  %v24515_v26 = vld [vmem:[#allocation251_spill] sm:$0xff] }
 0xb0e   :  { %12133 = vmatpush1.msra.mxu0 %v24426_v49  ;;  %12278 = vmatpush1.msra.mxu1 %v23236_v62  ;;  %v24513_v49 = vld [vmem:[#allocation249_spill] sm:$0xff] }
 0xb0f   :  { %12136 = vmatprep.subr.mxu0 %v24427_v53  ;;  %12280 = vmatprep.subr.mxu1 %v23238_v19  ;;  %v24511_v53 = vld [vmem:[#allocation247_spill] sm:$0xff] }
 0xb10   :  { %12139 = vmatpush1.msra.mxu0 %v24428_v29  ;;  %12282 = vmatpush1.msra.mxu1 %v23240_v51  ;;  %v24509_v29 = vld [vmem:[#allocation244_spill] sm:$0xff] }
 0xb11   :  { %12142 = vmatprep.subr.mxu0 %v24429_v44  ;;  %12284 = vmatprep.subr.mxu1 %v23242_v17  ;;  %v24507_v44 = vld [vmem:[#allocation241_spill] sm:$0xff] }
 0xb12   :  { %12145 = vmatpush1.msra.mxu0 %v24430_v24  ;;  %12286 = vmatpush1.msra.mxu1 %v23244_v40  ;;  %v24486_v24 = vld [vmem:[#allocation186_spill] sm:$0xff] }
 0xb13   :  { %12148 = vmatprep.subr.mxu0 %v24431_v57  ;;  %12288 = vmatprep.subr.mxu1 %v23246_v12  ;;  %v24484_v57 = vld [vmem:[#allocation183_spill] sm:$0xff] }
 0xb14   :  { %12151 = vmatpush1.msra.mxu0 %v24432_v4  ;;  %12290 = vmatpush1.msra.mxu1 %v23248_v48  ;;  %v24483_v4 = vld [vmem:[#allocation122_spill] sm:$0xff] }
 0xb15   :  { %12154 = vmatprep.subr.mxu0 %v24433_v56  ;;  %12292 = vmatprep.subr.mxu1 %v24405_v13  ;;  %v24481_v56 = vld [vmem:[#allocation118_spill] sm:$0xff] }
 0xb16   :  { %12157 = vmatpush1.msra.mxu0 %v24434_v58  ;;  %12294 = vmatpush1.msra.mxu1 %v24407_v30  ;;  %v24479_v58 = vld [vmem:[#allocation115_spill] sm:$0xff] }
 0xb17   :  { %12160 = vmatprep.subr.mxu0 %v24435_v6  ;;  %12296 = vmatprep.subr.mxu1 %v24409_v18  ;;  %v24441_v6 = vld [vmem:[#allocation91_spill] sm:$0xff] }
 0xb18   :  { %12163 = vmatpush1.msra.mxu0 %v24436_v38  ;;  %12298 = vmatpush1.msra.mxu1 %v24410_v31  ;;  %v24442_v38 = vld [vmem:[#allocation94_spill] sm:$0xff] }
 0xb19   :  { %12166 = vmatprep.subr.mxu0 %v24437_v11  ;;  %12300 = vmatprep.subr.mxu1 %v24411_v45  ;;  %v24443_v11 = vld [vmem:[#allocation102_spill] sm:$0xff] }
 0xb1a   :  { %12169 = vmatpush1.msra.mxu0 %v24438_v7  ;;  %12302 = vmatpush1.msra.mxu1 %v24412_v34  ;;  %v24449_v7 = vld [vmem:[#allocation123_spill] sm:$0xff] }
 0xb1b   :  { %12172 = vmatprep.subr.mxu0 %v24439_v33  ;;  %12304 = vmatprep.subr.mxu1 %v24413_v28  ;;  %v24444_v33 = vld [vmem:[#allocation105_spill] sm:$0xff] }
 0xb1c   :  { %12175 = vmatpush1.msra.mxu0 %v24440_v21  ;;  %12306 = vmatpush1.msra.mxu1 %v24414_v52  ;;  %v24445_v21 = vld [vmem:[#allocation109_spill] sm:$0xff] }
 0xb1d   :  { %12178 = vmatprep.subr.mxu0 %v24441_v6  ;;  %12308 = vmatprep.subr.mxu1 %v24415_v22  ;;  %v24446_v6 = vld [vmem:[#allocation113_spill] sm:$0xff] }
 0xb1e   :  { %12181 = vmatpush1.msra.mxu0 %v24442_v38  ;;  %12310 = vmatpush1.msra.mxu1 %v24416_v32  ;;  %v24447_v38 = vld [vmem:[#allocation116_spill] sm:$0xff] }
 0xb1f   :  { %12184 = vmatprep.subr.mxu0 %v24443_v11  ;;  %12347 = vmatmul.mubr.f32.vlgmr.msra.gmra.mxu1 %v20922_v54  ;;  %v24448_v11 = vld [vmem:[#allocation119_spill] sm:$0xff] }
 0xb20   :  { %12522 = vmatprep.subr.mxu1 %v23206_v9  ;;  %12187 = vmatpush1.msra.mxu0 %v24444_v33  ;;  %v24450_v33 = vld [vmem:[#allocation126_spill] sm:$0xff] }
 0xb21   :  { %12524 = vmatpush1.msra.mxu1 %v23208_v61  ;;  %12190 = vmatprep.subr.mxu0 %v24445_v21  ;;  %v24456_v21 = vld [vmem:[#allocation29_spill] sm:$0xff] }
 0xb22   :  { %12526 = vmatprep.subr.mxu1 %v23210_v27  ;;  %12193 = vmatpush1.msra.mxu0 %v24446_v6  ;;  %v24451_v6 = vld [vmem:[#allocation13_spill] sm:$0xff] }
 0xb23   :  { %12528 = vmatpush1.msra.mxu1 %v23212_v20  ;;  %12196 = vmatprep.subr.mxu0 %v24447_v38  ;;  %v24452_v38 = vld [vmem:[#allocation16_spill] sm:$0xff] }
 0xb24   :  { %12530 = vmatprep.subr.mxu1 %v23214_v8  ;;  %12199 = vmatpush1.msra.mxu0 %v24448_v11  ;;  %v24453_v11 = vld [vmem:[#allocation19_spill] sm:$0xff] }
 0xb25   :  { %12532 = vmatpush1.msra.mxu1 %v23216_v41  ;;  %12202 = vmatprep.subr.mxu0 %v24449_v7  ;;  %v24454_v7 = vld [vmem:[#allocation22_spill] sm:$0xff] }
 0xb26   :  { %12534 = vmatprep.subr.mxu1 %v23218_v2  ;;  %12205 = vmatpush1.msra.mxu0 %v24450_v33  ;;  %v24455_v33 = vld [vmem:[#allocation26_spill] sm:$0xff] }
 0xb27   :  { %12238 = vmatprep.mubr.f32.mxu0 %v22957_v16  ;;  %12536 = vmatpush1.msra.mxu1 %v23220_v14 }
 0xb28   :  { %12241 = vmatmul.mubr.f32.vlgmr.msra.gmra.mxu0 %v20916_v42  ;;  %12356 = vmatprep.subr.mxu0 %v24451_v6  ;;  %v24457_v6 = vld [vmem:[#allocation32_spill] sm:$0xff] }
 0xb29   :  { %12538 = vmatprep.subr.mxu1 %v23222_v15  ;;  %12360 = vmatpush1.msra.mxu0 %v24452_v38  ;;  %v24458_v38 = vld [vmem:[#allocation35_spill] sm:$0xff] }
 0xb2a   :  { %12540 = vmatpush1.msra.mxu1 %v23224_v59  ;;  %12364 = vmatprep.subr.mxu0 %v24453_v11  ;;  %v24459_v11 = vld [vmem:[#allocation44_spill] sm:$0xff] }
 0xb2b   :  { %12542 = vmatprep.subr.mxu1 %v23226_v36  ;;  %12368 = vmatpush1.msra.mxu0 %v24454_v7  ;;  %v24460_v7 = vld [vmem:[#allocation48_spill] sm:$0xff] }
 0xb2c   :  { %12544 = vmatpush1.msra.mxu1 %v23228_v3  ;;  %12372 = vmatprep.subr.mxu0 %v24455_v33  ;;  %v24461_v33 = vld [vmem:[#allocation51_spill] sm:$0xff] }
 0xb2d   :  { %12546 = vmatprep.subr.mxu1 %v23230_v37  ;;  %12376 = vmatpush1.msra.mxu0 %v24456_v21  ;;  %v24462_v21 = vld [vmem:[#allocation54_spill] sm:$0xff] }
 0xb2e   :  { %12548 = vmatpush1.msra.mxu1 %v23232_v10  ;;  %12380 = vmatprep.subr.mxu0 %v24457_v6  ;;  %v24463_v6 = vld [vmem:[#allocation58_spill] sm:$0xff] }
 0xb2f   :  { %12550 = vmatprep.subr.mxu1 %v23234_v43  ;;  %12384 = vmatpush1.msra.mxu0 %v24458_v38  ;;  %v24464_v38 = vld [vmem:[#allocation61_spill] sm:$0xff] }
 0xb30   :  { %12552 = vmatpush1.msra.mxu1 %v23236_v62  ;;  %12388 = vmatprep.subr.mxu0 %v24459_v11  ;;  %v24465_v11 = vld [vmem:[#allocation64_spill] sm:$0xff] }
 0xb31   :  { %12554 = vmatprep.subr.mxu1 %v23238_v19  ;;  %12392 = vmatpush1.msra.mxu0 %v24460_v7  ;;  %v24466_v7 = vld [vmem:[#allocation67_spill] sm:$0xff] }
 0xb32   :  { %12556 = vmatpush1.msra.mxu1 %v23240_v51  ;;  %12396 = vmatprep.subr.mxu0 %v24461_v33  ;;  %v24467_v33 = vld [vmem:[#allocation76_spill] sm:$0xff] }
 0xb33   :  { %12558 = vmatprep.subr.mxu1 %v23242_v17  ;;  %12400 = vmatpush1.msra.mxu0 %v24462_v21  ;;  %v24468_v21 = vld [vmem:[#allocation80_spill] sm:$0xff] }
 0xb34   :  { %12560 = vmatpush1.msra.mxu1 %v23244_v40  ;;  %12404 = vmatprep.subr.mxu0 %v24463_v6  ;;  %v24469_v6 = vld [vmem:[#allocation83_spill] sm:$0xff] }
 0xb35   :  { %12562 = vmatprep.subr.mxu1 %v23246_v12  ;;  %12408 = vmatpush1.msra.mxu0 %v24464_v38  ;;  %v24470_v38 = vld [vmem:[#allocation86_spill] sm:$0xff] }
 0xb36   :  { %12564 = vmatpush1.msra.mxu1 %v23248_v48  ;;  %12412 = vmatprep.subr.mxu0 %v24465_v11  ;;  %v24471_v11 = vld [vmem:[#allocation90_spill] sm:$0xff] }
 0xb37   :  { %12566 = vmatprep.subr.mxu1 %v24405_v13  ;;  %12416 = vmatpush1.msra.mxu0 %v24466_v7  ;;  %v24472_v7 = vld [vmem:[#allocation93_spill] sm:$0xff]  ;;  %v24546_v13 = vld [vmem:[#allocation148_spill] sm:$0xff] }
 0xb38   :  { %12568 = vmatpush1.msra.mxu1 %v24407_v30  ;;  %12420 = vmatprep.subr.mxu0 %v24467_v33  ;;  %v24473_v33 = vld [vmem:[#allocation96_spill] sm:$0xff]  ;;  %v24545_v30 = vld [vmem:[#allocation145_spill] sm:$0xff] }
 0xb39   :  { %12570 = vmatprep.subr.mxu1 %v24409_v18  ;;  %12424 = vmatpush1.msra.mxu0 %v24468_v21  ;;  %v24474_v21 = vld [vmem:[#allocation99_spill] sm:$0xff] }
 0xb3a   :  { %12572 = vmatpush1.msra.mxu1 %v24410_v31  ;;  %12428 = vmatprep.subr.mxu0 %v24469_v6  ;;  %v24477_v6 = vld [vmem:[#allocation112_spill] sm:$0xff]  ;;  %v24543_v31 = vld [vmem:[#allocation141_spill] sm:$0xff]  ;;  %v24544_v18 = vld [vmem:[#allocation143_spill] sm:$0xff] }
 0xb3b   :  { %12574 = vmatprep.subr.mxu1 %v24411_v45  ;;  %12432 = vmatpush1.msra.mxu0 %v24470_v38  ;;  %v24475_v38 = vld [vmem:[#allocation108_spill] sm:$0xff] }
 0xb3c   :  { %12576 = vmatpush1.msra.mxu1 %v24412_v34  ;;  %12436 = vmatprep.subr.mxu0 %v24471_v11  ;;  %v24476_v11 = vld [vmem:[#allocation171_spill] sm:$0xff]  ;;  %v24541_v34 = vld [vmem:[#allocation234_spill] sm:$0xff]  ;;  %v24542_v45 = vld [vmem:[#allocation140_spill] sm:$0xff] }
 0xb3d   :  { %12578 = vmatprep.subr.mxu1 %v24413_v28  ;;  %12440 = vmatpush1.msra.mxu0 %v24472_v7  ;;  %v24478_v7 = vld [vmem:[#allocation174_spill] sm:$0xff]  ;;  %v24540_v28 = vld [vmem:[#allocation231_spill] sm:$0xff] }
 0xb3e   :  { %12580 = vmatpush1.msra.mxu1 %v24414_v52  ;;  %12444 = vmatprep.subr.mxu0 %v24473_v33  ;;  %v24480_v33 = vld [vmem:[#allocation177_spill] sm:$0xff]  ;;  %v24533_v52 = vld [vmem:[#allocation262_spill] sm:$0xff] }
 0xb3f   :  { %12582 = vmatprep.subr.mxu1 %v24415_v22  ;;  %12448 = vmatpush1.msra.mxu0 %v24474_v21  ;;  %v24482_v21 = vld [vmem:[#allocation180_spill] sm:$0xff]  ;;  %v24531_v22 = vld [vmem:[#allocation261_spill] sm:$0xff] }
 0xb40   :  { %12584 = vmatpush1.msra.mxu1 %v24416_v32  ;;  %12617 = vmatprep.mubr.f32.mxu1 %v22957_v16  ;;  %v24529_v32 = vld [vmem:[#allocation260_spill] sm:$0xff] }
 0xb41   :  { %12452 = vmatprep.subr.mxu0 %v24475_v38  ;;  %12619 = vmatmul.mubr.f32.vlgmr.msra.gmra.mxu1 %v20912_v63  ;;  %v24485_v38 = vld [vmem:[#allocation125_spill] sm:$0xff] }
 0xb42   :  { %12738 = vmatprep.subr.mxu1 %v24476_v11  ;;  %12456 = vmatpush1.msra.mxu0 %v24477_v6  ;;  %v24487_v11 = vld [vmem:[#allocation128_spill] sm:$0xff]  ;;  %v24488_v6 = vld [vmem:[#allocation189_spill] sm:$0xff] }
 0xb43   :  { %12744 = vmatpush1.msra.mxu1 %v24478_v7  ;;  %12460 = vmatprep.subr.mxu0 %v24479_v58  ;;  %v24489_v7 = vld [vmem:[#allocation130_spill] sm:$0xff] }
 0xb44   :  { %12750 = vmatprep.subr.mxu1 %v24480_v33  ;;  %12464 = vmatpush1.msra.mxu0 %v24481_v56  ;;  %v24490_v33 = vld [vmem:[#allocation192_spill] sm:$0xff]  ;;  %v24503_v56 = vld [vmem:[#allocation235_spill] sm:$0xff]  ;;  %v24505_v58 = vld [vmem:[#allocation238_spill] sm:$0xff] }
 0xb45   :  { %12756 = vmatpush1.msra.mxu1 %v24482_v21  ;;  %12468 = vmatprep.subr.mxu0 %v24483_v4  ;;  %v24491_v4 = vld [vmem:[#allocation195_spill] sm:$0xff] }
 0xb46   :  { %12762 = vmatprep.subr.mxu1 %v24484_v57  ;;  %12472 = vmatpush1.msra.mxu0 %v24485_v38  ;;  %v24492_v38 = vld [vmem:[#allocation198_spill] sm:$0xff]  ;;  %v24499_v57 = vld [vmem:[#allocation215_spill] sm:$0xff] }
 0xb47   :  { %12768 = vmatpush1.msra.mxu1 %v24486_v24  ;;  %12476 = vmatprep.subr.mxu0 %v24487_v11  ;;  %v24493_v11 = vld [vmem:[#allocation201_spill] sm:$0xff]  ;;  %v24497_v24 = vld [vmem:[#allocation211_spill] sm:$0xff] }
 0xb48   :  { %12774 = vmatprep.subr.mxu1 %v24488_v6  ;;  %12480 = vmatpush1.msra.mxu0 %v24489_v7  ;;  %v24494_v7 = vld [vmem:[#allocation204_spill] sm:$0xff]  ;;  %v24496_v6 = vld [vmem:[#allocation142_spill] sm:$0xff]  ;;  %v24501_v21 = vld [vmem:[#allocation219_spill] sm:$0xff] }
 0xb49   :  { %12513 = vmatprep.mubr.f32.mxu0 %v22957_v16  ;;  %12780 = vmatpush1.msra.mxu1 %v24490_v33  ;;  %v24495_v33 = vld [vmem:[#allocation207_spill] sm:$0xff] }
 0xb4a   :  { %12515 = vmatmul.mubr.f32.vlgmr.msra.gmra.mxu0 %v20912_v63  ;;  %12626 = vmatprep.subr.mxu0 %v18079_v25 }
 0xb4b   :  { %12786 = vmatprep.subr.mxu1 %v24491_v4  ;;  %12628 = vmatpush1.msra.mxu0 %v18083_v0  ;;  %v24498_v4 = vld [vmem:[#allocation144_spill] sm:$0xff] }
 0xb4c   :  { %12792 = vmatpush1.msra.mxu1 %v24492_v38  ;;  %12630 = vmatprep.subr.mxu0 %v18087_v23  ;;  %v24500_v38 = vld [vmem:[#allocation146_spill] sm:$0xff] }
 0xb4d   :  { %12798 = vmatprep.subr.mxu1 %v24493_v11  ;;  %12632 = vmatpush1.msra.mxu0 %v18091_v1  ;;  %v24502_v11 = vld [vmem:[#allocation149_spill] sm:$0xff] }
 0xb4e   :  { %12804 = vmatpush1.msra.mxu1 %v24494_v7  ;;  %12634 = vmatprep.subr.mxu0 %v18098_v47  ;;  %v24504_v7 = vld [vmem:[#allocation152_spill] sm:$0xff] }
 0xb4f   :  { %12810 = vmatprep.subr.mxu1 %v24495_v33  ;;  %12636 = vmatpush1.msra.mxu0 %v24496_v6  ;;  %v24506_v33 = vld [vmem:[#allocation155_spill] sm:$0xff] }
 0xb50   :  { %12816 = vmatpush1.msra.mxu1 %v24497_v24  ;;  %12638 = vmatprep.subr.mxu0 %v24498_v4  ;;  %v24508_v24 = vld [vmem:[#allocation158_spill] sm:$0xff] }
 0xb51   :  { %12822 = vmatprep.subr.mxu1 %v24499_v57  ;;  %12640 = vmatpush1.msra.mxu0 %v24500_v38  ;;  %v24510_v57 = vld [vmem:[#allocation161_spill] sm:$0xff] }
 0xb52   :  { %12828 = vmatpush1.msra.mxu1 %v24501_v21  ;;  %12642 = vmatprep.subr.mxu0 %v24502_v11  ;;  %v24512_v21 = vld [vmem:[#allocation164_spill] sm:$0xff] }
 0xb53   :  { %12834 = vmatprep.subr.mxu1 %v24503_v56  ;;  %12644 = vmatpush1.msra.mxu0 %v24504_v7  ;;  %v24514_v56 = vld [vmem:[#allocation167_spill] sm:$0xff] }
 0xb54   :  { %12840 = vmatpush1.msra.mxu1 %v24505_v58  ;;  %12646 = vmatprep.subr.mxu0 %v24506_v33  ;;  %v24516_v58 = vld [vmem:[#allocation170_spill] sm:$0xff] }
 0xb55   :  { %12846 = vmatprep.subr.mxu1 %v24507_v44  ;;  %12648 = vmatpush1.msra.mxu0 %v24508_v24  ;;  %v24518_v44 = vld [vmem:[#allocation185_spill] sm:$0xff] }
 0xb56   :  { %12852 = vmatpush1.msra.mxu1 %v24509_v29  ;;  %12650 = vmatprep.subr.mxu0 %v24510_v57  ;;  %v24520_v29 = vld [vmem:[#allocation188_spill] sm:$0xff] }
 0xb57   :  { %12858 = vmatprep.subr.mxu1 %v24511_v53  ;;  %12652 = vmatpush1.msra.mxu0 %v24512_v21  ;;  %v24522_v53 = vld [vmem:[#allocation191_spill] sm:$0xff] }
 0xb58   :  { %12864 = vmatpush1.msra.mxu1 %v24513_v49  ;;  %12654 = vmatprep.subr.mxu0 %v24514_v56  ;;  %v24524_v49 = vld [vmem:[#allocation194_spill] sm:$0xff] }
 0xb59   :  { %12870 = vmatprep.subr.mxu1 %v24515_v26  ;;  %12656 = vmatpush1.msra.mxu0 %v24516_v58  ;;  %v24526_v26 = vld [vmem:[#allocation197_spill] sm:$0xff] }
 0xb5a   :  { %12876 = vmatpush1.msra.mxu1 %v24517_v46  ;;  %12658 = vmatprep.subr.mxu0 %v24518_v44  ;;  %v24528_v46 = vld [vmem:[#allocation200_spill] sm:$0xff] }
 0xb5b   :  { %12882 = vmatprep.subr.mxu1 %v24519_v35  ;;  %12660 = vmatpush1.msra.mxu0 %v24520_v29  ;;  %v24530_v35 = vld [vmem:[#allocation203_spill] sm:$0xff] }
 0xb5c   :  { %12888 = vmatpush1.msra.mxu1 %v24521_v5  ;;  %12662 = vmatprep.subr.mxu0 %v24522_v53  ;;  %v24532_v5 = vld [vmem:[#allocation206_spill] sm:$0xff] }
 0xb5d   :  { %12894 = vmatprep.subr.mxu1 %v24523_v50  ;;  %12664 = vmatpush1.msra.mxu0 %v24524_v49  ;;  %v24534_v50 = vld [vmem:[#allocation210_spill] sm:$0xff] }
 0xb5e   :  { %12900 = vmatpush1.msra.mxu1 %v24525_v60  ;;  %12666 = vmatprep.subr.mxu0 %v24526_v26  ;;  %v24539_v60 = vld [vmem:[#allocation228_spill] sm:$0xff] }
 0xb5f   :  { %12906 = vmatprep.subr.mxu1 %v24527_v39  ;;  %12668 = vmatpush1.msra.mxu0 %v24528_v46  ;;  %v24535_v39 = vld [vmem:[#allocation214_spill] sm:$0xff] }
 0xb60   :  { %12912 = vmatpush1.msra.mxu1 %v24529_v32  ;;  %12670 = vmatprep.subr.mxu0 %v24530_v35  ;;  %v24536_v32 = vld [vmem:[#allocation218_spill] sm:$0xff] }
 0xb61   :  { %12918 = vmatprep.subr.mxu1 %v24531_v22  ;;  %12672 = vmatpush1.msra.mxu0 %v24532_v5  ;;  %v24537_v22 = vld [vmem:[#allocation222_spill] sm:$0xff] }
 0xb62   :  { %12924 = vmatpush1.msra.mxu1 %v24533_v52  ;;  %12957 = vmatprep.mubr.f32.mxu1 %v22957_v16  ;;  %v24538_v52 = vld [vmem:[#allocation225_spill] sm:$0xff] }
 0xb63   :  { %12674 = vmatprep.subr.mxu0 %v24534_v50  ;;  %12959 = vmatmul.mubr.f32.vlgmr.msra.gmra.mxu1 %v20912_v63 }
 0xb64   :  { %13103 = vmatprep.subr.mxu1 %v18079_v25  ;;  %12676 = vmatpush1.msra.mxu0 %v24535_v39 }
 0xb65   :  { %13105 = vmatpush1.msra.mxu1 %v18083_v0  ;;  %12678 = vmatprep.subr.mxu0 %v24536_v32 }
 0xb66   :  { %13107 = vmatprep.subr.mxu1 %v18087_v23  ;;  %12680 = vmatpush1.msra.mxu0 %v24537_v22 }
 0xb67   :  { %13109 = vmatpush1.msra.mxu1 %v18091_v1  ;;  %12682 = vmatprep.subr.mxu0 %v24538_v52 }
 0xb68   :  { %13111 = vmatprep.subr.mxu1 %v18098_v47  ;;  %12684 = vmatpush1.msra.mxu0 %v24539_v60 }
 0xb69   :  { %13113 = vmatpush1.msra.mxu1 %v24496_v6  ;;  %12686 = vmatprep.subr.mxu0 %v24540_v28 }
 0xb6a   :  { %13115 = vmatprep.subr.mxu1 %v24498_v4  ;;  %12688 = vmatpush1.msra.mxu0 %v24541_v34 }
 0xb6b   :  { %12721 = vmatprep.mubr.f32.mxu0 %v22957_v16  ;;  %13117 = vmatpush1.msra.mxu1 %v24500_v38 }
 0xb6c   :  { %12727 = vmatmul.mubr.f32.vlgmr.msra.gmra.mxu0 %v20930_v55  ;;  %12967 = vmatprep.subr.mxu0 %v24542_v45  ;;  %v24547_v55 = vld [vmem:[#allocation151_spill] sm:$0xff]  ;;  %v24548_v45 = vld [vmem:[#allocation154_spill] sm:$0xff] }
 0xb6d   :  { %13119 = vmatprep.subr.mxu1 %v24502_v11  ;;  %12970 = vmatpush1.msra.mxu0 %v24543_v31  ;;  %v24549_v31 = vld [vmem:[#allocation157_spill] sm:$0xff] }
 0xb6e   :  { %13121 = vmatpush1.msra.mxu1 %v24504_v7  ;;  %12973 = vmatprep.subr.mxu0 %v24544_v18  ;;  %v24550_v18 = vld [vmem:[#allocation160_spill] sm:$0xff] }
 0xb6f   :  { %13123 = vmatprep.subr.mxu1 %v24506_v33  ;;  %12976 = vmatpush1.msra.mxu0 %v24545_v30  ;;  %v24551_v30 = vld [vmem:[#allocation163_spill] sm:$0xff] }
 0xb70   :  { %13125 = vmatpush1.msra.mxu1 %v24508_v24  ;;  %12979 = vmatprep.subr.mxu0 %v24546_v13  ;;  %v24552_v13 = vld [vmem:[#allocation166_spill] sm:$0xff] }
 0xb71   :  { %13127 = vmatprep.subr.mxu1 %v24510_v57  ;;  %12982 = vmatpush1.msra.mxu0 %v24547_v55  ;;  %v24553_v55 = vld [vmem:[#allocation169_spill] sm:$0xff] }
 0xb72   :  { %13129 = vmatpush1.msra.mxu1 %v24512_v21  ;;  %12985 = vmatprep.subr.mxu0 %v24548_v45  ;;  %v24554_v45 = vld [vmem:[#allocation173_spill] sm:$0xff] }
 0xb73   :  { %13131 = vmatprep.subr.mxu1 %v24514_v56  ;;  %12988 = vmatpush1.msra.mxu0 %v24549_v31  ;;  %v24555_v31 = vld [vmem:[#allocation176_spill] sm:$0xff] }
 0xb74   :  { %13133 = vmatpush1.msra.mxu1 %v24516_v58  ;;  %12991 = vmatprep.subr.mxu0 %v24550_v18  ;;  %v24556_v18 = vld [vmem:[#allocation179_spill] sm:$0xff] }
 0xb75   :  { %13135 = vmatprep.subr.mxu1 %v24518_v44  ;;  %12994 = vmatpush1.msra.mxu0 %v24551_v30  ;;  %v24557_v30 = vld [vmem:[#allocation182_spill] sm:$0xff] }
 0xb76   :  { %13137 = vmatpush1.msra.mxu1 %v24520_v29  ;;  %12997 = vmatprep.subr.mxu0 %v24552_v13  ;;  %v24558_v13 = vld [vmem:[#allocation196_spill] sm:$0xff] }
 0xb77   :  { %13139 = vmatprep.subr.mxu1 %v24522_v53  ;;  %13000 = vmatpush1.msra.mxu0 %v24553_v55  ;;  %v24559_v55 = vld [vmem:[#allocation199_spill] sm:$0xff] }
 0xb78   :  { %13141 = vmatpush1.msra.mxu1 %v24524_v49  ;;  %13003 = vmatprep.subr.mxu0 %v24554_v45  ;;  %v24560_v45 = vld [vmem:[#allocation202_spill] sm:$0xff] }
 0xb79   :  { %13143 = vmatprep.subr.mxu1 %v24526_v26  ;;  %13006 = vmatpush1.msra.mxu0 %v24555_v31  ;;  %v24561_v31 = vld [vmem:[#allocation205_spill] sm:$0xff] }
 0xb7a   :  { %13145 = vmatpush1.msra.mxu1 %v24528_v46  ;;  %13009 = vmatprep.subr.mxu0 %v24556_v18  ;;  %v24562_v18 = vld [vmem:[#allocation209_spill] sm:$0xff] }
 0xb7b   :  { %13147 = vmatprep.subr.mxu1 %v24530_v35  ;;  %13012 = vmatpush1.msra.mxu0 %v24557_v30  ;;  %v24563_v30 = vld [vmem:[#allocation213_spill] sm:$0xff] }
 0xb7c   :  { %13149 = vmatpush1.msra.mxu1 %v24532_v5  ;;  %13015 = vmatprep.subr.mxu0 %v24558_v13  ;;  %v24564_v13 = vld [vmem:[#allocation217_spill] sm:$0xff] }
 0xb7d   :  { %13151 = vmatprep.subr.mxu1 %v24534_v50  ;;  %13018 = vmatpush1.msra.mxu0 %v24559_v55  ;;  %v24565_v55 = vld [vmem:[#allocation221_spill] sm:$0xff] }
 0xb7e   :  { %13153 = vmatpush1.msra.mxu1 %v24535_v39  ;;  %13021 = vmatprep.subr.mxu0 %v24560_v45  ;;  %v24605_v45 = vld [vmem:[#allocation31_spill] sm:$0xff] }
 0xb7f   :  { %13155 = vmatprep.subr.mxu1 %v24536_v32  ;;  %13024 = vmatpush1.msra.mxu0 %v24561_v31  ;;  %v24566_v31 = vld [vmem:[#allocation224_spill] sm:$0xff] }
 0xb80   :  { %13157 = vmatpush1.msra.mxu1 %v24537_v22  ;;  %13027 = vmatprep.subr.mxu0 %v24562_v18  ;;  %v24567_v18 = vld [vmem:[#allocation227_spill] sm:$0xff] }
 0xb81   :  { %13159 = vmatprep.subr.mxu1 %v24538_v52  ;;  %13030 = vmatpush1.msra.mxu0 %v24563_v30  ;;  %v24568_v30 = vld [vmem:[#allocation230_spill] sm:$0xff] }
 0xb82   :  { %13161 = vmatpush1.msra.mxu1 %v24539_v60  ;;  %13033 = vmatprep.subr.mxu0 %v24564_v13  ;;  %v24569_v13 = vld [vmem:[#allocation233_spill] sm:$0xff] }
 0xb83   :  { %13163 = vmatprep.subr.mxu1 %v24540_v28  ;;  %13036 = vmatpush1.msra.mxu0 %v24565_v55  ;;  %v24570_v55 = vld [vmem:[#allocation237_spill] sm:$0xff] }
 0xb84   :  { %13165 = vmatpush1.msra.mxu1 %v24541_v34  ;;  %13198 = vmatprep.mubr.f32.mxu1 %v22957_v16 }
 0xb85   :  { %13039 = vmatprep.subr.mxu0 %v24566_v31  ;;  %13202 = vmatmul.mubr.f32.vlgmr.msra.gmra.mxu1 %v20922_v54  ;;  %v24571_v31 = vld [vmem:[#allocation240_spill] sm:$0xff]  ;;  %v24572_v54 = vld [vmem:[#allocation243_spill] sm:$0xff] }
 0xb86   :  { %13377 = vmatprep.subr.mxu1 %v18079_v25  ;;  %13042 = vmatpush1.msra.mxu0 %v24567_v18  ;;  %v24573_v18 = vld [vmem:[#allocation246_spill] sm:$0xff] }
 0xb87   :  { %13379 = vmatpush1.msra.mxu1 %v18083_v0  ;;  %13045 = vmatprep.subr.mxu0 %v24568_v30  ;;  %v24603_v30 = vld [vmem:[#allocation28_spill] sm:$0xff] }
 0xb88   :  { %13381 = vmatprep.subr.mxu1 %v18087_v23  ;;  %13048 = vmatpush1.msra.mxu0 %v24569_v13  ;;  %v24574_v13 = vld [vmem:[#allocation147_spill] sm:$0xff] }
 0xb89   :  { %13383 = vmatpush1.msra.mxu1 %v18091_v1  ;;  %13051 = vmatprep.subr.mxu0 %v24570_v55  ;;  %v24575_v55 = vld [vmem:[#allocation150_spill] sm:$0xff] }
 0xb8a   :  { %13385 = vmatprep.subr.mxu1 %v18098_v47  ;;  %13054 = vmatpush1.msra.mxu0 %v24571_v31  ;;  %v24576_v31 = vld [vmem:[#allocation153_spill] sm:$0xff] }
 0xb8b   :  { %13387 = vmatpush1.msra.mxu1 %v24496_v6  ;;  %13057 = vmatprep.subr.mxu0 %v24572_v54  ;;  %v24577_v54 = vld [vmem:[#allocation156_spill] sm:$0xff] }
 0xb8c   :  { %13389 = vmatprep.subr.mxu1 %v24498_v4  ;;  %13060 = vmatpush1.msra.mxu0 %v24573_v18  ;;  %v24578_v18 = vld [vmem:[#allocation159_spill] sm:$0xff]  ;;  %v11763_v6 = vld [vmem:[#allocation2 + $0x8] sm:$0xc0] }
 0xb8d   :  { %13093 = vmatprep.mubr.f32.mxu0 %v22957_v16  ;;  %13391 = vmatpush1.msra.mxu1 %v24500_v38  ;;  %v11764_v4 = vld [vmem:[#allocation2 + $0x20] sm:$0xc0] }
 0xb8e   :  { %13096 = vmatmul.mubr.f32.vlgmr.msra.gmra.mxu0 %v20916_v42  ;;  %13211 = vmatprep.subr.mxu0 %v24574_v13  ;;  %v24579_v42 = vld [vmem:[#allocation162_spill] sm:$0xff]  ;;  %v24580_v13 = vld [vmem:[#allocation165_spill] sm:$0xff] }
 0xb8f   :  { %13393 = vmatprep.subr.mxu1 %v24502_v11  ;;  %13215 = vmatpush1.msra.mxu0 %v24575_v55  ;;  %v24581_v55 = vld [vmem:[#allocation168_spill] sm:$0xff] }
 0xb90   :  { %13395 = vmatpush1.msra.mxu1 %v24504_v7  ;;  %13219 = vmatprep.subr.mxu0 %v24576_v31  ;;  %v24582_v31 = vld [vmem:[#allocation172_spill] sm:$0xff] }
 0xb91   :  { %13397 = vmatprep.subr.mxu1 %v24506_v33  ;;  %13223 = vmatpush1.msra.mxu0 %v24577_v54  ;;  %v24583_v54 = vld [vmem:[#allocation175_spill] sm:$0xff] }
 0xb92   :  { %13399 = vmatpush1.msra.mxu1 %v24508_v24  ;;  %13227 = vmatprep.subr.mxu0 %v24578_v18  ;;  %v24584_v18 = vld [vmem:[#allocation178_spill] sm:$0xff] }
 0xb93   :  { %13401 = vmatprep.subr.mxu1 %v24510_v57  ;;  %13231 = vmatpush1.msra.mxu0 %v24579_v42  ;;  %v24585_v42 = vld [vmem:[#allocation181_spill] sm:$0xff] }
 0xb94   :  { %13403 = vmatpush1.msra.mxu1 %v24512_v21  ;;  %13235 = vmatprep.subr.mxu0 %v24580_v13  ;;  %v24586_v13 = vld [vmem:[#allocation184_spill] sm:$0xff] }
 0xb95   :  { %13405 = vmatprep.subr.mxu1 %v24514_v56  ;;  %13239 = vmatpush1.msra.mxu0 %v24581_v55  ;;  %v24587_v55 = vld [vmem:[#allocation187_spill] sm:$0xff] }
 0xb96   :  { %13407 = vmatpush1.msra.mxu1 %v24516_v58  ;;  %13243 = vmatprep.subr.mxu0 %v24582_v31  ;;  %v24588_v31 = vld [vmem:[#allocation190_spill] sm:$0xff] }
 0xb97   :  { %13409 = vmatprep.subr.mxu1 %v24518_v44  ;;  %13247 = vmatpush1.msra.mxu0 %v24583_v54  ;;  %v24589_v54 = vld [vmem:[#allocation193_spill] sm:$0xff] }
 0xb98   :  { %13411 = vmatpush1.msra.mxu1 %v24520_v29  ;;  %13251 = vmatprep.subr.mxu0 %v24584_v18  ;;  %v24590_v18 = vld [vmem:[#allocation208_spill] sm:$0xff] }
 0xb99   :  { %13413 = vmatprep.subr.mxu1 %v24522_v53  ;;  %13255 = vmatpush1.msra.mxu0 %v24585_v42  ;;  %v24591_v42 = vld [vmem:[#allocation212_spill] sm:$0xff] }
 0xb9a   :  { %13415 = vmatpush1.msra.mxu1 %v24524_v49  ;;  %13259 = vmatprep.subr.mxu0 %v24586_v13  ;;  %v24592_v13 = vld [vmem:[#allocation216_spill] sm:$0xff] }
 0xb9b   :  { %13417 = vmatprep.subr.mxu1 %v24526_v26  ;;  %13263 = vmatpush1.msra.mxu0 %v24587_v55  ;;  %v24593_v55 = vld [vmem:[#allocation220_spill] sm:$0xff] }
 0xb9c   :  { %13419 = vmatpush1.msra.mxu1 %v24528_v46  ;;  %13267 = vmatprep.subr.mxu0 %v24588_v31  ;;  %v24594_v31 = vld [vmem:[#allocation223_spill] sm:$0xff] }
 0xb9d   :  { %13421 = vmatprep.subr.mxu1 %v24530_v35  ;;  %13271 = vmatpush1.msra.mxu0 %v24589_v54  ;;  %v24595_v54 = vld [vmem:[#allocation226_spill] sm:$0xff] }
 0xb9e   :  { %13423 = vmatpush1.msra.mxu1 %v24532_v5  ;;  %13275 = vmatprep.subr.mxu0 %v24590_v18  ;;  %v24596_v18 = vld [vmem:[#allocation229_spill] sm:$0xff] }
 0xb9f   :  { %13425 = vmatprep.subr.mxu1 %v24534_v50  ;;  %13279 = vmatpush1.msra.mxu0 %v24591_v42  ;;  %v24597_v42 = vld [vmem:[#allocation232_spill] sm:$0xff] }
 0xba0   :  { %13427 = vmatpush1.msra.mxu1 %v24535_v39  ;;  %13283 = vmatprep.subr.mxu0 %v24592_v13  ;;  %v24601_v13 = vld [vmem:[#allocation25_spill] sm:$0xff] }
 0xba1   :  { %13429 = vmatprep.subr.mxu1 %v24536_v32  ;;  %13287 = vmatpush1.msra.mxu0 %v24593_v55  ;;  %v24598_v55 = vld [vmem:[#allocation236_spill] sm:$0xff] }
 0xba2   :  { %13431 = vmatpush1.msra.mxu1 %v24537_v22  ;;  %13291 = vmatprep.subr.mxu0 %v24594_v31  ;;  %v24599_v31 = vld [vmem:[#allocation239_spill] sm:$0xff] }
 0xba3   :  { %13433 = vmatprep.subr.mxu1 %v24538_v52  ;;  %13295 = vmatpush1.msra.mxu0 %v24595_v54  ;;  %v24600_v54 = vld [vmem:[#allocation242_spill] sm:$0xff] }
 0xba4   :  { %13435 = vmatpush1.msra.mxu1 %v24539_v60  ;;  %13299 = vmatprep.subr.mxu0 %v24596_v18  ;;  %v24602_v18 = vld [vmem:[#allocation245_spill] sm:$0xff]  ;;  %v24610_v60 = vld [vmem:[#allocation254_spill] sm:$0xff] }
 0xba5   :  { %13437 = vmatprep.subr.mxu1 %v24540_v28  ;;  %13303 = vmatpush1.msra.mxu0 %v24597_v42  ;;  %v24604_v42 = vld [vmem:[#allocation248_spill] sm:$0xff] }
 0xba6   :  { %13439 = vmatpush1.msra.mxu1 %v24541_v34  ;;  %13472 = vmatprep.mubr.f32.mxu1 %v22957_v16  ;;  %v24606_v34 = vld [vmem:[#allocation250_spill] sm:$0xff]  ;;  %v24608_v28 = vld [vmem:[#allocation252_spill] sm:$0xff] }
 0xba7   :  { %13307 = vmatprep.subr.mxu0 %v24598_v55  ;;  %13474 = vmatmul.mubr.f32.vlgmr.msra.gmra.mxu1 %v20912_v63  ;;  %v24607_v55 = vld [vmem:[#allocation34_spill] sm:$0xff] }
 0xba8   :  { %13311 = vmatpush1.msra.mxu0 %v24599_v31  ;;  %13368 = vmatprep.mubr.f32.mxu0 %v22957_v16  ;;  %v24609_v31 = vld [vmem:[#allocation37_spill] sm:$0xff] }
 0xba9   :  { %13315 = vmatprep.subr.mxu0 %v24600_v54  ;;  %13640 = vmatprep.subr.mxu1 %v24601_v13  ;;  %v24611_v54 = vld [vmem:[#allocation40_spill] sm:$0xff]  ;;  %v24612_v13 = vld [vmem:[#allocation43_spill] sm:$0xff] }
 0xbaa   :  { %13319 = vmatpush1.msra.mxu0 %v24602_v18  ;;  %13646 = vmatpush1.msra.mxu1 %v24603_v30  ;;  %v24613_v30 = vld [vmem:[#allocation47_spill] sm:$0xff] }
 0xbab   :  { %13323 = vmatprep.subr.mxu0 %v24604_v42  ;;  %13652 = vmatprep.subr.mxu1 %v24605_v45  ;;  %v24614_v45 = vld [vmem:[#allocation57_spill] sm:$0xff] }
 0xbac   :  { %13327 = vmatpush1.msra.mxu0 %v24606_v34  ;;  %13658 = vmatpush1.msra.mxu1 %v24607_v55  ;;  %v24615_v55 = vld [vmem:[#allocation60_spill] sm:$0xff]  ;;  %v24646_v34 = vld [vmem:[#allocation117_spill] sm:$0xff] }
 0xbad   :  { %13331 = vmatprep.subr.mxu0 %v24608_v28  ;;  %13664 = vmatprep.subr.mxu1 %v24609_v31  ;;  %v24616_v31 = vld [vmem:[#allocation63_spill] sm:$0xff]  ;;  %v24644_v28 = vld [vmem:[#allocation110_spill] sm:$0xff]  ;;  %v24648_v42 = vld [vmem:[#allocation9_spill] sm:$0xff] }
 0xbae   :  { %13335 = vmatpush1.msra.mxu0 %v24610_v60  ;;  %13670 = vmatpush1.msra.mxu1 %v24611_v54  ;;  %v24617_v54 = vld [vmem:[#allocation66_spill] sm:$0xff] }
 0xbaf   :  { %13370 = vmatmul.mubr.f32.vlgmr.msra.gmra.mxu0 %v20912_v63  ;;  %13676 = vmatprep.subr.mxu1 %v24612_v13  ;;  %v24618_v63 = vld [vmem:[#allocation69_spill] sm:$0xff]  ;;  %v24619_v13 = vld [vmem:[#allocation72_spill] sm:$0xff]  ;;  %v24639_v60 = vld [vmem:[#allocation134_spill] sm:$0xff] }
 0xbb0   :  { %13682 = vmatpush1.msra.mxu1 %v24613_v30  ;;  %13528 = vmatprep.subr.mxu0 %v23206_v9  ;;  %v24620_v30 = vld [vmem:[#allocation75_spill] sm:$0xff] }
 0xbb1   :  { %13688 = vmatprep.subr.mxu1 %v24614_v45  ;;  %13530 = vmatpush1.msra.mxu0 %v23208_v61  ;;  %v24621_v45 = vld [vmem:[#allocation79_spill] sm:$0xff] }
 0xbb2   :  { %13694 = vmatpush1.msra.mxu1 %v24615_v55  ;;  %13532 = vmatprep.subr.mxu0 %v23210_v27  ;;  %v24622_v55 = vld [vmem:[#allocation89_spill] sm:$0xff] }
 0xbb3   :  { %13700 = vmatprep.subr.mxu1 %v24616_v31  ;;  %13534 = vmatpush1.msra.mxu0 %v23212_v20  ;;  %v24623_v31 = vld [vmem:[#allocation92_spill] sm:$0xff] }
 0xbb4   :  { %13706 = vmatpush1.msra.mxu1 %v24617_v54  ;;  %13536 = vmatprep.subr.mxu0 %v23214_v8  ;;  %v24624_v54 = vld [vmem:[#allocation95_spill] sm:$0xff] }
 0xbb5   :  { %13712 = vmatprep.subr.mxu1 %v24618_v63  ;;  %13538 = vmatpush1.msra.mxu0 %v23216_v41  ;;  %v24625_v63 = vld [vmem:[#allocation98_spill] sm:$0xff] }
 0xbb6   :  { %13718 = vmatpush1.msra.mxu1 %v24619_v13  ;;  %13540 = vmatprep.subr.mxu0 %v23218_v2  ;;  %v24626_v13 = vld [vmem:[#allocation101_spill] sm:$0xff] }
 0xbb7   :  { %13724 = vmatprep.subr.mxu1 %v24620_v30  ;;  %13542 = vmatpush1.msra.mxu0 %v23220_v14  ;;  %v24627_v30 = vld [vmem:[#allocation104_spill] sm:$0xff] }
 0xbb8   :  { %13730 = vmatpush1.msra.mxu1 %v24621_v45  ;;  %13544 = vmatprep.subr.mxu0 %v23222_v15  ;;  %v24628_v45 = vld [vmem:[#allocation107_spill] sm:$0xff] }
 0xbb9   :  { %13736 = vmatprep.subr.mxu1 %v24622_v55  ;;  %13546 = vmatpush1.msra.mxu0 %v23224_v59  ;;  %v24629_v55 = vld [vmem:[#allocation111_spill] sm:$0xff] }
 0xbba   :  { %13742 = vmatpush1.msra.mxu1 %v24623_v31  ;;  %13548 = vmatprep.subr.mxu0 %v23226_v36  ;;  %v24630_v31 = vld [vmem:[#allocation121_spill] sm:$0xff] }
 0xbbb   :  { %13748 = vmatprep.subr.mxu1 %v24624_v54  ;;  %13550 = vmatpush1.msra.mxu0 %v23228_v3  ;;  %v24631_v54 = vld [vmem:[#allocation124_spill] sm:$0xff] }
 0xbbc   :  { %13754 = vmatpush1.msra.mxu1 %v24625_v63  ;;  %13552 = vmatprep.subr.mxu0 %v23230_v37  ;;  %v24632_v63 = vld [vmem:[#allocation127_spill] sm:$0xff] }
 0xbbd   :  { %13760 = vmatprep.subr.mxu1 %v24626_v13  ;;  %13554 = vmatpush1.msra.mxu0 %v23232_v10  ;;  %v24633_v13 = vld [vmem:[#allocation129_spill] sm:$0xff] }
 0xbbe   :  { %13766 = vmatpush1.msra.mxu1 %v24627_v30  ;;  %13556 = vmatprep.subr.mxu0 %v23234_v43  ;;  %v24634_v30 = vld [vmem:[#allocation131_spill] sm:$0xff] }
 0xbbf   :  { %13772 = vmatprep.subr.mxu1 %v24628_v45  ;;  %13558 = vmatpush1.msra.mxu0 %v23236_v62  ;;  %v24635_v45 = vld [vmem:[#allocation132_spill] sm:$0xff]  ;;  %v12105_v22 = vpop.f32.mrf.mxu1 }
 0xbc0   :  { %13778 = vmatpush1.msra.mxu1 %v24629_v55  ;;  %13560 = vmatprep.subr.mxu0 %v23238_v19  ;;  %v24636_v55 = vld [vmem:[#allocation85_spill] sm:$0xff] }
 0xbc1   :  { %13784 = vmatprep.subr.mxu1 %v24630_v31  ;;  %13562 = vmatpush1.msra.mxu0 %v23240_v51  ;;  %v24637_v31 = vld [vmem:[#allocation133_spill] sm:$0xff]  ;;  %v12107_v39 = vpop.f32.mrf.mxu1 }
 0xbc2   :  { %13790 = vmatpush1.msra.mxu1 %v24631_v54  ;;  %13564 = vmatprep.subr.mxu0 %v23242_v17  ;;  %v24638_v54 = vld [vmem:[#allocation88_spill] sm:$0xff] }
 0xbc3   :  { %13796 = vmatprep.subr.mxu1 %v24632_v63  ;;  %13566 = vmatpush1.msra.mxu0 %v23244_v40  ;;  %v24640_v63 = vld [vmem:[#allocation97_spill] sm:$0xff] }
 0xbc4   :  { %13802 = vmatpush1.msra.mxu1 %v24633_v13  ;;  %13568 = vmatprep.subr.mxu0 %v23246_v12  ;;  %v24641_v13 = vld [vmem:[#allocation100_spill] sm:$0xff] }
 0xbc5   :  { %13808 = vmatprep.subr.mxu1 %v24634_v30  ;;  %13570 = vmatpush1.msra.mxu0 %v23248_v48  ;;  %v24642_v30 = vld [vmem:[#allocation103_spill] sm:$0xff] }
 0xbc6   :  { %13814 = vmatpush1.msra.mxu1 %v24635_v45  ;;  %13572 = vmatprep.subr.mxu0 %v24636_v55  ;;  %v24643_v45 = vld [vmem:[#allocation106_spill] sm:$0xff] }
 0xbc7   :  { %13820 = vmatprep.subr.mxu1 %v24637_v31  ;;  %13574 = vmatpush1.msra.mxu0 %v24638_v54  ;;  %v24645_v31 = vld [vmem:[#allocation114_spill] sm:$0xff]  ;;  %v11873_v18 = vpop.f32.mrf.mxu0 }
 0xbc8   :  { %13826 = vmatpush1.msra.mxu1 %v24639_v60  ;;  %13576 = vmatprep.subr.mxu0 %v24640_v63  ;;  %v24647_v60 = vld [vmem:[#allocation120_spill] sm:$0xff]  ;;  %v12106_v35 = vadd.f32 %v12105_v22, %v11873_v18 }
 0xbc9   :  { %13859 = vmatprep.mubr.f32.mxu1 %v22957_v16  ;;  %14005 = vmatprep.subr.mxu1 %v23206_v9  ;;  %v11875_v52 = vpop.f32.mrf.mxu0 }
 0xbca   :  { %13578 = vmatpush1.msra.mxu0 %v24641_v13  ;;  %13623 = vmatprep.mubr.f32.mxu0 %v22957_v16  ;;  %v12108_v5 = vadd.f32 %v12107_v39, %v11875_v52 }
 0xbcb   :  { %13580 = vmatprep.subr.mxu0 %v24642_v30 }
 0xbcc   :  { %13582 = vmatpush1.msra.mxu0 %v24643_v45 }
 0xbcd   :  { %13584 = vmatprep.subr.mxu0 %v24644_v28 }
 0xbce   :  { %13586 = vmatpush1.msra.mxu0 %v24645_v31 }
 0xbcf   :  { %13588 = vmatprep.subr.mxu0 %v24646_v34 }
 0xbd0   :  { %13590 = vmatpush1.msra.mxu0 %v24647_v60 }
 0xbd1   :  { %13869 = vmatprep.subr.mxu0 %v24648_v42 }
 0xbdf   :  { %v12348_v46 = vpop.f32.mrf.mxu1 }
 0xbe1   :  { %v12350_v29 = vpop.f32.mrf.mxu1 }
 0xbe8   :  { %v12242_v32 = vpop.f32.mrf.mxu0 }
 0xbe9   :  { %v12243_v53 = vadd.f32 %v12242_v32, %v12106_v35 }
 0xbea   :  { %v12244_v50 = vpop.f32.mrf.mxu0 }
 0xbeb   :  { %v12245_v49 = vadd.f32 %v12244_v50, %v12108_v5  ;;  %v12349_v21 = vadd.f32 %v12348_v46, %v12243_v53 }
 0xbed   :  { %v12351_v58 = vadd.f32 %v12350_v29, %v12245_v49 }
 0xc01   :  { %v12620_v56 = vpop.f32.mrf.mxu1 }
 0xc03   :  { %v12622_v42 = vpop.f32.mrf.mxu1 }
 0xc0a   :  { %v12516_v26 = vpop.f32.mrf.mxu0 }
 0xc0b   :  { %v12517_v24 = vadd.f32 %v12516_v26, %v12349_v21 }
 0xc0c   :  { %v12518_v44 = vpop.f32.mrf.mxu0 }
 0xc0d   :  { %v12519_v57 = vadd.f32 %v12518_v44, %v12351_v58  ;;  %v12621_v7 = vadd.f32 %v12620_v56, %v12517_v24 }
 0xc0f   :  { %v12623_v33 = vadd.f32 %v12622_v42, %v12519_v57  ;;  %v13484_v38 = vrot.slane %v12621_v7, 2 }
 0xc11   :  { %v13485_v11 = vrot.slane %v12623_v33, 2  ;;  %v13492_v18 = vadd.f32 %v13484_v38, %v11763_v6 }
 0xc13   :  { %v13493_v52 = vadd.f32 %v13485_v11, %v11764_v4  ;;  %v16850_v39 = vmul.f32 -1.442695, %v13492_v18 }
 0xc15   :  { %v16851_v22 = vmul.f32 -1.442695, %v13493_v52 }
 0xc17   :  { %17301 = vpow2.f32 %v16851_v22 }
 0xc18   :  { %17303 = vpow2.f32 %v16850_v39 }
 0xc23   :  { %v12960_v32 = vpop.f32.mrf.mxu1 }
 0xc24   :  { %v17302_v58 = vpop.eup %17301 }
 0xc25   :  { %v12962_v46 = vpop.f32.mrf.mxu1  ;;  %v17304_v38 = vpop.eup %17303  ;;  %v13505_v21 = vadd.f32 1.0, %v17302_v58 }
 0xc26   :  { %v13499_v18 = vadd.f32 1.0, %v17304_v38 }
 0xc27   :  { %17305 = vrcp.f32 %v13505_v21 }
 0xc28   :  { %17307 = vrcp.f32 %v13499_v18 }
 0xc2c   :  { %v12728_v50 = vpop.f32.mrf.mxu0 }
 0xc2d   :  { %v12961_v49 = vadd.f32 %v12960_v32, %v12728_v50  ;;  %v11765_v32 = vld [vmem:[#allocation2 + $0x28] sm:$0xc0] }
 0xc2e   :  { %v12730_v5 = vpop.f32.mrf.mxu0 }
 0xc2f   :  { %v12963_v29 = vadd.f32 %v12962_v46, %v12730_v5  ;;  %v11766_v46 = vld [vmem:[#allocation2 + $0x38] sm:$0xc0] }
 0xc45   :  { %v13203_v26 = vpop.f32.mrf.mxu1 }
 0xc47   :  { %v13205_v57 = vpop.f32.mrf.mxu1 }
 0xc4e   :  { %v13097_v35 = vpop.f32.mrf.mxu0 }
 0xc4f   :  { %v13098_v44 = vadd.f32 %v13097_v35, %v12961_v49 }
 0xc50   :  { %v13099_v53 = vpop.f32.mrf.mxu0 }
 0xc51   :  { %v13100_v24 = vadd.f32 %v13099_v53, %v12963_v29  ;;  %v13204_v56 = vadd.f32 %v13203_v26, %v13098_v44  ;;  %v17306_v53 = vpop.eup %17305  ;;  %v24649_v44 = vld [vmem:[#allocation10_spill] sm:$0xff] }
 0xc52   :  { %v17308_v29 = vpop.eup %17307 }
 0xc53   :  { %v13206_v7 = vadd.f32 %v13205_v57, %v13100_v24  ;;  %v13516_v24 = vrot.slane %v24649_v44, 6  ;;  %v24659_v44 = vld [vmem:[#allocation45_spill] sm:$0xff] }
 0xc67   :  { %v13475_v4 = vpop.f32.mrf.mxu1 }
 0xc69   :  { %v13477_v22 = vpop.f32.mrf.mxu1 }
 0xc6f   :  { %v13371_v6 = vpop.f32.mrf.mxu0 }
 0xc70   :  { %v13372_v11 = vadd.f32 %v13371_v6, %v13204_v56  ;;  %v13518_v56 = vmul.f32 %v17306_v53, %v13516_v24  ;;  %v24657_v53 = vld [vmem:[#allocation38_spill] sm:$0xff]  ;;  %v24660_v24 = vld [vmem:[#allocation49_spill] sm:$0xff] }
 0xc71   :  { %v13373_v33 = vpop.f32.mrf.mxu0 }
 0xc72   :  { %v13476_v42 = vadd.f32 %v13475_v4, %v13372_v11  ;;  %v13374_v52 = vadd.f32 %v13373_v33, %v13206_v7 }
 0xc74   :  { %v13486_v39 = vrot.slane %v13476_v42, 2  ;;  %v13478_v50 = vadd.f32 %v13477_v22, %v13374_v52 }
 0xc76   :  { %v13494_v5 = vadd.f32 %v13486_v39, %v11765_v32  ;;  %v13487_v35 = vrot.slane %v13478_v50, 2  ;;  %v24650_v50 = vld [vmem:[#allocation11_spill] sm:$0xff]  ;;  %v24651_v32 = vld [vmem:[#allocation14_spill] sm:$0xff] }
 0xc78   :  { %17309 = vtanh.f32 %v13494_v5  ;;  %v13495_v49 = vadd.f32 %v13487_v35, %v11766_v46  ;;  %v24652_v5 = vld [vmem:[#allocation17_spill] sm:$0xff]  ;;  %v24653_v35 = vld [vmem:[#allocation20_spill] sm:$0xff]  ;;  %v24654_v46 = vld [vmem:[#allocation23_spill] sm:$0xff] }
 0xc7a   :  { %v16852_v26 = vmul.f32 -1.442695, %v13495_v49  ;;  %v24655_v49 = vld [vmem:[#allocation27_spill] sm:$0xff] }
 0xc7c   :  { %17311 = vpow2.f32 %v16852_v26  ;;  %v24656_v26 = vld [vmem:[#allocation30_spill] sm:$0xff] }
 0xc85   :  { %v17310_v57 = vpop.eup %17309 }
 0xc86   :  { %v13519_v58 = vmul.f32 %v17310_v57, %v17308_v29  ;;  %v24658_v29 = vld [vmem:[#allocation41_spill] sm:$0xff]  ;;  %v24661_v57 = vld [vmem:[#allocation52_spill] sm:$0xff] }
 0xc88   :  { %v21333_v4 = vadd.f32 %v13519_v58, %v13518_v56  ;;  %v24662_v56 = vld [vmem:[#allocation55_spill] sm:$0xff] }
 0xc89   :  { %v17312_v6 = vpop.eup %17311  ;;  %v24663_v58 = vld [vmem:[#allocation59_spill] sm:$0xff] }
 0xc8a   :  { %v13512_v38 = vadd.f32 1.0, %v17312_v6  ;;  %17313 = vtanh.f32 %v21333_v4  ;;  %v24664_v6 = vld [vmem:[#allocation62_spill] sm:$0xff] }
 0xc8c   :  { %17315 = vrcp.f32 %v13512_v38  ;;  %v24665_v38 = vld [vmem:[#allocation70_spill] sm:$0xff] }
 0xc97   :  { %v17314_v11 = vpop.eup %17313 }
 0xc99   :  { %v17316_v7 = vpop.eup %17315 }
 0xc9a   :  { %v13522_v33 = vmul.f32 %v17316_v7, %v17314_v11  ;;  %v24666_v11 = vld [vmem:[#allocation73_spill] sm:$0xff] }
 0xc9b   :  { %v24667_v7 = vld [vmem:[#allocation77_spill] sm:$0xff] }
 0xc9c   :  { %v13525_v21 = vrot.slane %v13522_v33, 6  ;;  %v24668_v33 = vld [vmem:[#allocation81_spill] sm:$0xff] }
 0xc9e   :  { %v21336_v42 = vand.u32 4294901760, %v13525_v21 }
 0xca0   :  { %13861 = vmatmul.mubr.f32.vlgmr.msra.gmra.mxu1 %v21336_v42  ;;  %v21340_v52 = vsub.f32 %v13525_v21, %v21336_v42  ;;  %v24669_v21 = vld [vmem:[#allocation84_spill] sm:$0xff] }
 0xca1   :  { %14007 = vmatpush1.msra.mxu1 %v23208_v61  ;;  %14100 = vmatprep.mubr.f32.mxu1 %v22957_v16 }
 0xca2   :  { %14009 = vmatprep.subr.mxu1 %v23210_v27  ;;  %v21346_v18 = vand.u32 4294901760, %v21340_v52 }
 0xca3   :  { %14011 = vmatpush1.msra.mxu1 %v23212_v20 }
 0xca4   :  { %14013 = vmatprep.subr.mxu1 %v23214_v8  ;;  %v13627_v22 = vsub.f32 %v21340_v52, %v21346_v18 }
 0xca5   :  { %14015 = vmatpush1.msra.mxu1 %v23216_v41 }
 0xca6   :  { %14017 = vmatprep.subr.mxu1 %v23218_v2  ;;  %v21354_v39 = vand.u32 4294901760, %v13627_v22  ;;  %v24670_v22 = vld [vmem:[#allocation87_spill] sm:$0xff] }
 0xca7   :  { %14019 = vmatpush1.msra.mxu1 %v23220_v14 }
 0xca8   :  { %14021 = vmatprep.subr.mxu1 %v23222_v15  ;;  %13629 = vmatmul.mubr.f32.vlgmr.msra.gmra.mxu0 %v21354_v39 }
 0xca9   :  { %13872 = vmatpush1.msra.mxu0 %v24650_v50  ;;  %14023 = vmatpush1.msra.mxu1 %v23224_v59  ;;  %v24671_v50 = vld [vmem:[#allocation91_spill] sm:$0xff] }
 0xcaa   :  { %13875 = vmatprep.subr.mxu0 %v24651_v32  ;;  %14025 = vmatprep.subr.mxu1 %v23226_v36  ;;  %v24672_v32 = vld [vmem:[#allocation94_spill] sm:$0xff] }
 0xcab   :  { %13878 = vmatpush1.msra.mxu0 %v24652_v5  ;;  %14027 = vmatpush1.msra.mxu1 %v23228_v3  ;;  %v24673_v5 = vld [vmem:[#allocation102_spill] sm:$0xff] }
 0xcac   :  { %13881 = vmatprep.subr.mxu0 %v24653_v35  ;;  %14029 = vmatprep.subr.mxu1 %v23230_v37  ;;  %v24674_v35 = vld [vmem:[#allocation105_spill] sm:$0xff] }
 0xcad   :  { %13884 = vmatpush1.msra.mxu0 %v24654_v46  ;;  %14031 = vmatpush1.msra.mxu1 %v23232_v10  ;;  %v24675_v46 = vld [vmem:[#allocation109_spill] sm:$0xff] }
 0xcae   :  { %13887 = vmatprep.subr.mxu0 %v24655_v49  ;;  %14033 = vmatprep.subr.mxu1 %v23234_v43  ;;  %v24676_v49 = vld [vmem:[#allocation113_spill] sm:$0xff] }
 0xcaf   :  { %13890 = vmatpush1.msra.mxu0 %v24656_v26  ;;  %14035 = vmatpush1.msra.mxu1 %v23236_v62  ;;  %v24677_v26 = vld [vmem:[#allocation116_spill] sm:$0xff] }
 0xcb0   :  { %13893 = vmatprep.subr.mxu0 %v24657_v53  ;;  %14037 = vmatprep.subr.mxu1 %v23238_v19  ;;  %v24678_v53 = vld [vmem:[#allocation119_spill] sm:$0xff] }
 0xcb1   :  { %13896 = vmatpush1.msra.mxu0 %v24658_v29  ;;  %14039 = vmatpush1.msra.mxu1 %v23240_v51  ;;  %v24708_v29 = vld [vmem:[#allocation174_spill] sm:$0xff] }
 0xcb2   :  { %13899 = vmatprep.subr.mxu0 %v24659_v44  ;;  %14041 = vmatprep.subr.mxu1 %v23242_v17  ;;  %v24710_v44 = vld [vmem:[#allocation177_spill] sm:$0xff] }
 0xcb3   :  { %13902 = vmatpush1.msra.mxu0 %v24660_v24  ;;  %14043 = vmatpush1.msra.mxu1 %v23244_v40  ;;  %v24712_v24 = vld [vmem:[#allocation180_spill] sm:$0xff] }
 0xcb4   :  { %13905 = vmatprep.subr.mxu0 %v24661_v57  ;;  %14045 = vmatprep.subr.mxu1 %v23246_v12  ;;  %v24714_v57 = vld [vmem:[#allocation183_spill] sm:$0xff] }
 0xcb5   :  { %13908 = vmatpush1.msra.mxu0 %v24662_v56  ;;  %14047 = vmatpush1.msra.mxu1 %v23248_v48  ;;  %v24715_v56 = vld [vmem:[#allocation125_spill] sm:$0xff] }
 0xcb6   :  { %13911 = vmatprep.subr.mxu0 %v24663_v58  ;;  %14049 = vmatprep.subr.mxu1 %v24636_v55  ;;  %v24716_v58 = vld [vmem:[#allocation186_spill] sm:$0xff] }
 0xcb7   :  { %13914 = vmatpush1.msra.mxu0 %v24664_v6  ;;  %14051 = vmatpush1.msra.mxu1 %v24638_v54  ;;  %v24717_v6 = vld [vmem:[#allocation128_spill] sm:$0xff] }
 0xcb8   :  { %13917 = vmatprep.subr.mxu0 %v24665_v38  ;;  %14053 = vmatprep.subr.mxu1 %v24640_v63  ;;  %v24718_v38 = vld [vmem:[#allocation189_spill] sm:$0xff] }
 0xcb9   :  { %13920 = vmatpush1.msra.mxu0 %v24666_v11  ;;  %14055 = vmatpush1.msra.mxu1 %v24641_v13  ;;  %v24719_v11 = vld [vmem:[#allocation130_spill] sm:$0xff] }
 0xcba   :  { %13923 = vmatprep.subr.mxu0 %v24667_v7  ;;  %14057 = vmatprep.subr.mxu1 %v24642_v30  ;;  %v24720_v7 = vld [vmem:[#allocation192_spill] sm:$0xff] }
 0xcbb   :  { %13926 = vmatpush1.msra.mxu0 %v24668_v33  ;;  %14059 = vmatpush1.msra.mxu1 %v24643_v45  ;;  %v24721_v33 = vld [vmem:[#allocation195_spill] sm:$0xff] }
 0xcbc   :  { %13929 = vmatprep.subr.mxu0 %v24669_v21  ;;  %14061 = vmatprep.subr.mxu1 %v24644_v28  ;;  %v24722_v21 = vld [vmem:[#allocation198_spill] sm:$0xff] }
 0xcbd   :  { %13932 = vmatpush1.msra.mxu0 %v24670_v22  ;;  %14063 = vmatpush1.msra.mxu1 %v24645_v31  ;;  %v24723_v22 = vld [vmem:[#allocation201_spill] sm:$0xff] }
 0xcbe   :  { %13935 = vmatprep.subr.mxu0 %v24671_v50  ;;  %14065 = vmatprep.subr.mxu1 %v24646_v34  ;;  %v24724_v50 = vld [vmem:[#allocation204_spill] sm:$0xff] }
 0xcbf   :  { %13938 = vmatpush1.msra.mxu0 %v24672_v32  ;;  %14067 = vmatpush1.msra.mxu1 %v24647_v60  ;;  %v24725_v32 = vld [vmem:[#allocation207_spill] sm:$0xff] }
 0xcc0   :  { %13941 = vmatprep.subr.mxu0 %v24673_v5  ;;  %14104 = vmatmul.mubr.f32.vlgmr.msra.gmra.mxu1 %v21346_v18  ;;  %v24726_v5 = vld [vmem:[#allocation142_spill] sm:$0xff] }
 0xcc1   :  { %14279 = vmatprep.subr.mxu1 %v23206_v9  ;;  %13944 = vmatpush1.msra.mxu0 %v24674_v35  ;;  %v24679_v9 = vld [vmem:[#allocation123_spill] sm:$0xff] }
 0xcc2   :  { %14281 = vmatpush1.msra.mxu1 %v23208_v61  ;;  %13947 = vmatprep.subr.mxu0 %v24675_v46  ;;  %v24680_v61 = vld [vmem:[#allocation126_spill] sm:$0xff]  ;;  %v24727_v35 = vld [vmem:[#allocation211_spill] sm:$0xff]  ;;  %v24728_v46 = vld [vmem:[#allocation144_spill] sm:$0xff] }
 0xcc3   :  { %14283 = vmatprep.subr.mxu1 %v23210_v27  ;;  %13950 = vmatpush1.msra.mxu0 %v24676_v49  ;;  %v24681_v27 = vld [vmem:[#allocation13_spill] sm:$0xff]  ;;  %v24729_v49 = vld [vmem:[#allocation215_spill] sm:$0xff] }
 0xcc4   :  { %14285 = vmatpush1.msra.mxu1 %v23212_v20  ;;  %13953 = vmatprep.subr.mxu0 %v24677_v26  ;;  %v24682_v20 = vld [vmem:[#allocation16_spill] sm:$0xff]  ;;  %v24730_v26 = vld [vmem:[#allocation146_spill] sm:$0xff] }
 0xcc5   :  { %14287 = vmatprep.subr.mxu1 %v23214_v8  ;;  %13956 = vmatpush1.msra.mxu0 %v24678_v53  ;;  %v24685_v8 = vld [vmem:[#allocation26_spill] sm:$0xff]  ;;  %v24731_v53 = vld [vmem:[#allocation219_spill] sm:$0xff] }
 0xcc6   :  { %14289 = vmatpush1.msra.mxu1 %v23216_v41  ;;  %13959 = vmatprep.subr.mxu0 %v24679_v9  ;;  %v24683_v41 = vld [vmem:[#allocation19_spill] sm:$0xff]  ;;  %v24732_v9 = vld [vmem:[#allocation149_spill] sm:$0xff] }
 0xcc7   :  { %14291 = vmatprep.subr.mxu1 %v23218_v2  ;;  %13962 = vmatpush1.msra.mxu0 %v24680_v61  ;;  %v24684_v2 = vld [vmem:[#allocation22_spill] sm:$0xff]  ;;  %v24733_v61 = vld [vmem:[#allocation235_spill] sm:$0xff] }
 0xcc8   :  { %13995 = vmatprep.mubr.f32.mxu0 %v22957_v16  ;;  %14293 = vmatpush1.msra.mxu1 %v23220_v14  ;;  %v24686_v14 = vld [vmem:[#allocation29_spill] sm:$0xff] }
 0xcc9   :  { %13998 = vmatmul.mubr.f32.vlgmr.msra.gmra.mxu0 %v21340_v52  ;;  %14113 = vmatprep.subr.mxu0 %v24681_v27  ;;  %v24734_v27 = vld [vmem:[#allocation152_spill] sm:$0xff] }
 0xcca   :  { %14295 = vmatprep.subr.mxu1 %v23222_v15  ;;  %14117 = vmatpush1.msra.mxu0 %v24682_v20  ;;  %v24687_v15 = vld [vmem:[#allocation32_spill] sm:$0xff]  ;;  %v24735_v20 = vld [vmem:[#allocation238_spill] sm:$0xff] }
 0xccb   :  { %14297 = vmatpush1.msra.mxu1 %v23224_v59  ;;  %14121 = vmatprep.subr.mxu0 %v24683_v41  ;;  %v24688_v59 = vld [vmem:[#allocation35_spill] sm:$0xff] }
 0xccc   :  { %14299 = vmatprep.subr.mxu1 %v23226_v36  ;;  %14125 = vmatpush1.msra.mxu0 %v24684_v2  ;;  %v24689_v36 = vld [vmem:[#allocation44_spill] sm:$0xff]  ;;  %v24736_v41 = vld [vmem:[#allocation155_spill] sm:$0xff]  ;;  %v24737_v2 = vld [vmem:[#allocation241_spill] sm:$0xff] }
 0xccd   :  { %14301 = vmatpush1.msra.mxu1 %v23228_v3  ;;  %14129 = vmatprep.subr.mxu0 %v24685_v8  ;;  %v24690_v3 = vld [vmem:[#allocation48_spill] sm:$0xff]  ;;  %v24738_v8 = vld [vmem:[#allocation158_spill] sm:$0xff] }
 0xcce   :  { %14303 = vmatprep.subr.mxu1 %v23230_v37  ;;  %14133 = vmatpush1.msra.mxu0 %v24686_v14  ;;  %v24691_v37 = vld [vmem:[#allocation51_spill] sm:$0xff]  ;;  %v24739_v14 = vld [vmem:[#allocation244_spill] sm:$0xff] }
 0xccf   :  { %14305 = vmatpush1.msra.mxu1 %v23232_v10  ;;  %14137 = vmatprep.subr.mxu0 %v24687_v15  ;;  %v24692_v10 = vld [vmem:[#allocation54_spill] sm:$0xff]  ;;  %v24740_v15 = vld [vmem:[#allocation161_spill] sm:$0xff] }
 0xcd0   :  { %14307 = vmatprep.subr.mxu1 %v23234_v43  ;;  %14141 = vmatpush1.msra.mxu0 %v24688_v59  ;;  %v24693_v43 = vld [vmem:[#allocation58_spill] sm:$0xff]  ;;  %v24741_v59 = vld [vmem:[#allocation247_spill] sm:$0xff] }
 0xcd1   :  { %14309 = vmatpush1.msra.mxu1 %v23236_v62  ;;  %14145 = vmatprep.subr.mxu0 %v24689_v36  ;;  %v24694_v62 = vld [vmem:[#allocation61_spill] sm:$0xff]  ;;  %v24742_v36 = vld [vmem:[#allocation164_spill] sm:$0xff] }
 0xcd2   :  { %14311 = vmatprep.subr.mxu1 %v23238_v19  ;;  %14149 = vmatpush1.msra.mxu0 %v24690_v3  ;;  %v24695_v19 = vld [vmem:[#allocation64_spill] sm:$0xff]  ;;  %v24743_v3 = vld [vmem:[#allocation249_spill] sm:$0xff] }
 0xcd3   :  { %14313 = vmatpush1.msra.mxu1 %v23240_v51  ;;  %14153 = vmatprep.subr.mxu0 %v24691_v37  ;;  %v24696_v51 = vld [vmem:[#allocation67_spill] sm:$0xff] }
 0xcd4   :  { %14315 = vmatprep.subr.mxu1 %v23242_v17  ;;  %14157 = vmatpush1.msra.mxu0 %v24692_v10  ;;  %v24697_v17 = vld [vmem:[#allocation76_spill] sm:$0xff]  ;;  %v24744_v37 = vld [vmem:[#allocation167_spill] sm:$0xff] }
 0xcd5   :  { %14317 = vmatpush1.msra.mxu1 %v23244_v40  ;;  %14161 = vmatprep.subr.mxu0 %v24693_v43  ;;  %v24698_v40 = vld [vmem:[#allocation80_spill] sm:$0xff]  ;;  %v24745_v10 = vld [vmem:[#allocation251_spill] sm:$0xff]  ;;  %v24746_v43 = vld [vmem:[#allocation170_spill] sm:$0xff] }
 0xcd6   :  { %14319 = vmatprep.subr.mxu1 %v23246_v12  ;;  %14165 = vmatpush1.msra.mxu0 %v24694_v62  ;;  %v24699_v12 = vld [vmem:[#allocation83_spill] sm:$0xff]  ;;  %v24747_v62 = vld [vmem:[#allocation253_spill] sm:$0xff] }
 0xcd7   :  { %14321 = vmatpush1.msra.mxu1 %v23248_v48  ;;  %14169 = vmatprep.subr.mxu0 %v24695_v19  ;;  %v24700_v48 = vld [vmem:[#allocation86_spill] sm:$0xff]  ;;  %v24748_v19 = vld [vmem:[#allocation185_spill] sm:$0xff] }
 0xcd8   :  { %14323 = vmatprep.subr.mxu1 %v24636_v55  ;;  %14173 = vmatpush1.msra.mxu0 %v24696_v51  ;;  %v24701_v55 = vld [vmem:[#allocation90_spill] sm:$0xff]  ;;  %v24749_v51 = vld [vmem:[#allocation255_spill] sm:$0xff] }
 0xcd9   :  { %14325 = vmatpush1.msra.mxu1 %v24638_v54  ;;  %14177 = vmatprep.subr.mxu0 %v24697_v17  ;;  %v24702_v54 = vld [vmem:[#allocation93_spill] sm:$0xff]  ;;  %v24750_v17 = vld [vmem:[#allocation188_spill] sm:$0xff] }
 0xcda   :  { %14327 = vmatprep.subr.mxu1 %v24640_v63  ;;  %14181 = vmatpush1.msra.mxu0 %v24698_v40  ;;  %v24703_v63 = vld [vmem:[#allocation96_spill] sm:$0xff] }
 0xcdb   :  { %14329 = vmatpush1.msra.mxu1 %v24641_v13  ;;  %14185 = vmatprep.subr.mxu0 %v24699_v12  ;;  %v24704_v13 = vld [vmem:[#allocation99_spill] sm:$0xff]  ;;  %v24751_v40 = vld [vmem:[#allocation256_spill] sm:$0xff] }
 0xcdc   :  { %14331 = vmatprep.subr.mxu1 %v24642_v30  ;;  %14189 = vmatpush1.msra.mxu0 %v24700_v48  ;;  %v24705_v30 = vld [vmem:[#allocation108_spill] sm:$0xff]  ;;  %v24752_v12 = vld [vmem:[#allocation191_spill] sm:$0xff]  ;;  %v24753_v48 = vld [vmem:[#allocation257_spill] sm:$0xff] }
 0xcdd   :  { %14333 = vmatpush1.msra.mxu1 %v24643_v45  ;;  %14193 = vmatprep.subr.mxu0 %v24701_v55  ;;  %v24706_v45 = vld [vmem:[#allocation171_spill] sm:$0xff]  ;;  %v24754_v55 = vld [vmem:[#allocation194_spill] sm:$0xff] }
 0xcde   :  { %14335 = vmatprep.subr.mxu1 %v24644_v28  ;;  %14197 = vmatpush1.msra.mxu0 %v24702_v54  ;;  %v24707_v28 = vld [vmem:[#allocation112_spill] sm:$0xff]  ;;  %v24755_v54 = vld [vmem:[#allocation258_spill] sm:$0xff] }
 0xcdf   :  { %14337 = vmatpush1.msra.mxu1 %v24645_v31  ;;  %14201 = vmatprep.subr.mxu0 %v24703_v63  ;;  %v24709_v31 = vld [vmem:[#allocation115_spill] sm:$0xff]  ;;  %v24756_v63 = vld [vmem:[#allocation197_spill] sm:$0xff] }
 0xce0   :  { %14339 = vmatprep.subr.mxu1 %v24646_v34  ;;  %14205 = vmatpush1.msra.mxu0 %v24704_v13  ;;  %v24711_v34 = vld [vmem:[#allocation118_spill] sm:$0xff]  ;;  %v24757_v13 = vld [vmem:[#allocation259_spill] sm:$0xff] }
 0xce1   :  { %14341 = vmatpush1.msra.mxu1 %v24647_v60  ;;  %14374 = vmatprep.mubr.f32.mxu1 %v22957_v16  ;;  %v24713_v60 = vld [vmem:[#allocation122_spill] sm:$0xff] }
 0xce2   :  { %14209 = vmatprep.subr.mxu0 %v24705_v30  ;;  %14376 = vmatmul.mubr.f32.vlgmr.msra.gmra.mxu1 %v21336_v42  ;;  %v24758_v30 = vld [vmem:[#allocation200_spill] sm:$0xff] }
 0xce3   :  { %14495 = vmatprep.subr.mxu1 %v24706_v45  ;;  %14213 = vmatpush1.msra.mxu0 %v24707_v28  ;;  %v24759_v45 = vld [vmem:[#allocation260_spill] sm:$0xff]  ;;  %v24760_v28 = vld [vmem:[#allocation203_spill] sm:$0xff] }
 0xce4   :  { %14501 = vmatpush1.msra.mxu1 %v24708_v29  ;;  %14217 = vmatprep.subr.mxu0 %v24709_v31  ;;  %v24761_v29 = vld [vmem:[#allocation261_spill] sm:$0xff]  ;;  %v24762_v31 = vld [vmem:[#allocation206_spill] sm:$0xff] }
 0xce5   :  { %14507 = vmatprep.subr.mxu1 %v24710_v44  ;;  %14221 = vmatpush1.msra.mxu0 %v24711_v34  ;;  %v24763_v44 = vld [vmem:[#allocation262_spill] sm:$0xff] }
 0xce6   :  { %14513 = vmatpush1.msra.mxu1 %v24712_v24  ;;  %14225 = vmatprep.subr.mxu0 %v24713_v60  ;;  %v24764_v34 = vld [vmem:[#allocation210_spill] sm:$0xff] }
 0xce7   :  { %14519 = vmatprep.subr.mxu1 %v24714_v57  ;;  %14229 = vmatpush1.msra.mxu0 %v24715_v56  ;;  %v24765_v24 = vld [vmem:[#allocation214_spill] sm:$0xff]  ;;  %v24768_v56 = vld [vmem:[#allocation225_spill] sm:$0xff] }
 0xce8   :  { %14525 = vmatpush1.msra.mxu1 %v24716_v58  ;;  %14233 = vmatprep.subr.mxu0 %v24717_v6  ;;  %v24766_v60 = vld [vmem:[#allocation218_spill] sm:$0xff]  ;;  %v24769_v58 = vld [vmem:[#allocation228_spill] sm:$0xff]  ;;  %v24770_v6 = vld [vmem:[#allocation231_spill] sm:$0xff] }
 0xce9   :  { %14531 = vmatprep.subr.mxu1 %v24718_v38  ;;  %14237 = vmatpush1.msra.mxu0 %v24719_v11  ;;  %v24767_v57 = vld [vmem:[#allocation222_spill] sm:$0xff]  ;;  %v24772_v11 = vld [vmem:[#allocation140_spill] sm:$0xff] }
 0xcea   :  { %14270 = vmatprep.mubr.f32.mxu0 %v22957_v16  ;;  %14537 = vmatpush1.msra.mxu1 %v24720_v7  ;;  %v24771_v38 = vld [vmem:[#allocation234_spill] sm:$0xff]  ;;  %v24773_v7 = vld [vmem:[#allocation141_spill] sm:$0xff] }
 0xceb   :  { %14272 = vmatmul.mubr.f32.vlgmr.msra.gmra.mxu0 %v21336_v42  ;;  %14383 = vmatprep.subr.mxu0 %v18079_v25 }
 0xcec   :  { %14543 = vmatprep.subr.mxu1 %v24721_v33  ;;  %14385 = vmatpush1.msra.mxu0 %v18083_v0  ;;  %v24774_v33 = vld [vmem:[#allocation143_spill] sm:$0xff] }
 0xced   :  { %14549 = vmatpush1.msra.mxu1 %v24722_v21  ;;  %14387 = vmatprep.subr.mxu0 %v18087_v23  ;;  %v24775_v21 = vld [vmem:[#allocation145_spill] sm:$0xff] }
 0xcee   :  { %14555 = vmatprep.subr.mxu1 %v24723_v22  ;;  %14389 = vmatpush1.msra.mxu0 %v18091_v1  ;;  %v24776_v22 = vld [vmem:[#allocation148_spill] sm:$0xff] }
 0xcef   :  { %14561 = vmatpush1.msra.mxu1 %v24724_v50  ;;  %14391 = vmatprep.subr.mxu0 %v18098_v47  ;;  %v24778_v50 = vld [vmem:[#allocation154_spill] sm:$0xff] }
 0xcf0   :  { %14567 = vmatprep.subr.mxu1 %v24725_v32  ;;  %14393 = vmatpush1.msra.mxu0 %v24726_v5  ;;  %v24779_v32 = vld [vmem:[#allocation157_spill] sm:$0xff] }
 0xcf1   :  { %14573 = vmatpush1.msra.mxu1 %v24727_v35  ;;  %14395 = vmatprep.subr.mxu0 %v24728_v46  ;;  %v24780_v35 = vld [vmem:[#allocation160_spill] sm:$0xff] }
 0xcf2   :  { %14579 = vmatprep.subr.mxu1 %v24729_v49  ;;  %14397 = vmatpush1.msra.mxu0 %v24730_v26  ;;  %v24781_v49 = vld [vmem:[#allocation163_spill] sm:$0xff] }
 0xcf3   :  { %14585 = vmatpush1.msra.mxu1 %v24731_v53  ;;  %14399 = vmatprep.subr.mxu0 %v24732_v9  ;;  %v24782_v53 = vld [vmem:[#allocation166_spill] sm:$0xff] }
 0xcf4   :  { %14591 = vmatprep.subr.mxu1 %v24733_v61  ;;  %14401 = vmatpush1.msra.mxu0 %v24734_v27  ;;  %v24783_v61 = vld [vmem:[#allocation169_spill] sm:$0xff] }
 0xcf5   :  { %14597 = vmatpush1.msra.mxu1 %v24735_v20  ;;  %14403 = vmatprep.subr.mxu0 %v24736_v41  ;;  %v24784_v20 = vld [vmem:[#allocation173_spill] sm:$0xff] }
 0xcf6   :  { %14603 = vmatprep.subr.mxu1 %v24737_v2  ;;  %14405 = vmatpush1.msra.mxu0 %v24738_v8  ;;  %v24785_v2 = vld [vmem:[#allocation176_spill] sm:$0xff] }
 0xcf7   :  { %14609 = vmatpush1.msra.mxu1 %v24739_v14  ;;  %14407 = vmatprep.subr.mxu0 %v24740_v15  ;;  %v24786_v14 = vld [vmem:[#allocation179_spill] sm:$0xff] }
 0xcf8   :  { %14615 = vmatprep.subr.mxu1 %v24741_v59  ;;  %14409 = vmatpush1.msra.mxu0 %v24742_v36  ;;  %v24787_v59 = vld [vmem:[#allocation182_spill] sm:$0xff] }
 0xcf9   :  { %14621 = vmatpush1.msra.mxu1 %v24743_v3  ;;  %14411 = vmatprep.subr.mxu0 %v24744_v37  ;;  %v24788_v3 = vld [vmem:[#allocation196_spill] sm:$0xff] }
 0xcfa   :  { %14627 = vmatprep.subr.mxu1 %v24745_v10  ;;  %14413 = vmatpush1.msra.mxu0 %v24746_v43  ;;  %v24789_v10 = vld [vmem:[#allocation199_spill] sm:$0xff] }
 0xcfb   :  { %14633 = vmatpush1.msra.mxu1 %v24747_v62  ;;  %14415 = vmatprep.subr.mxu0 %v24748_v19  ;;  %v24790_v62 = vld [vmem:[#allocation202_spill] sm:$0xff] }
 0xcfc   :  { %14639 = vmatprep.subr.mxu1 %v24749_v51  ;;  %14417 = vmatpush1.msra.mxu0 %v24750_v17  ;;  %v24791_v51 = vld [vmem:[#allocation205_spill] sm:$0xff] }
 0xcfd   :  { %14645 = vmatpush1.msra.mxu1 %v24751_v40  ;;  %14419 = vmatprep.subr.mxu0 %v24752_v12  ;;  %v24792_v40 = vld [vmem:[#allocation209_spill] sm:$0xff] }
 0xcfe   :  { %14651 = vmatprep.subr.mxu1 %v24753_v48  ;;  %14421 = vmatpush1.msra.mxu0 %v24754_v55  ;;  %v24793_v48 = vld [vmem:[#allocation213_spill] sm:$0xff] }
 0xcff   :  { %14657 = vmatpush1.msra.mxu1 %v24755_v54  ;;  %14423 = vmatprep.subr.mxu0 %v24756_v63  ;;  %v24794_v54 = vld [vmem:[#allocation217_spill] sm:$0xff] }
 0xd00   :  { %14663 = vmatprep.subr.mxu1 %v24757_v13  ;;  %14425 = vmatpush1.msra.mxu0 %v24758_v30  ;;  %v24795_v13 = vld [vmem:[#allocation221_spill] sm:$0xff] }
 0xd01   :  { %14669 = vmatpush1.msra.mxu1 %v24759_v45  ;;  %14427 = vmatprep.subr.mxu0 %v24760_v28  ;;  %v24796_v45 = vld [vmem:[#allocation224_spill] sm:$0xff] }
 0xd02   :  { %14675 = vmatprep.subr.mxu1 %v24761_v29  ;;  %14429 = vmatpush1.msra.mxu0 %v24762_v31  ;;  %v24797_v29 = vld [vmem:[#allocation227_spill] sm:$0xff] }
 0xd03   :  { %14681 = vmatpush1.msra.mxu1 %v24763_v44  ;;  %14714 = vmatprep.mubr.f32.mxu1 %v22957_v16  ;;  %v24798_v44 = vld [vmem:[#allocation230_spill] sm:$0xff] }
 0xd04   :  { %14431 = vmatprep.subr.mxu0 %v24764_v34  ;;  %14716 = vmatmul.mubr.f32.vlgmr.msra.gmra.mxu1 %v21336_v42 }
 0xd05   :  { %14860 = vmatprep.subr.mxu1 %v18079_v25  ;;  %14433 = vmatpush1.msra.mxu0 %v24765_v24 }
 0xd06   :  { %14862 = vmatpush1.msra.mxu1 %v18083_v0  ;;  %14435 = vmatprep.subr.mxu0 %v24766_v60 }
 0xd07   :  { %14864 = vmatprep.subr.mxu1 %v18087_v23  ;;  %14437 = vmatpush1.msra.mxu0 %v24767_v57 }
 0xd08   :  { %14866 = vmatpush1.msra.mxu1 %v18091_v1  ;;  %14439 = vmatprep.subr.mxu0 %v24768_v56 }
 0xd09   :  { %14868 = vmatprep.subr.mxu1 %v18098_v47  ;;  %14441 = vmatpush1.msra.mxu0 %v24769_v58 }
 0xd0a   :  { %14870 = vmatpush1.msra.mxu1 %v24726_v5  ;;  %14443 = vmatprep.subr.mxu0 %v24770_v6 }
 0xd0b   :  { %14872 = vmatprep.subr.mxu1 %v24728_v46  ;;  %14445 = vmatpush1.msra.mxu0 %v24771_v38 }
 0xd0c   :  { %14478 = vmatprep.mubr.f32.mxu0 %v22957_v16  ;;  %14874 = vmatpush1.msra.mxu1 %v24730_v26 }
 0xd0d   :  { %14484 = vmatmul.mubr.f32.vlgmr.msra.gmra.mxu0 %v21354_v39  ;;  %14724 = vmatprep.subr.mxu0 %v24772_v11  ;;  %v24777_v39 = vld [vmem:[#allocation151_spill] sm:$0xff]  ;;  %v24799_v11 = vld [vmem:[#allocation233_spill] sm:$0xff] }
 0xd0e   :  { %14876 = vmatprep.subr.mxu1 %v24732_v9  ;;  %14727 = vmatpush1.msra.mxu0 %v24773_v7  ;;  %v24800_v7 = vld [vmem:[#allocation237_spill] sm:$0xff] }
 0xd0f   :  { %14878 = vmatpush1.msra.mxu1 %v24734_v27  ;;  %14730 = vmatprep.subr.mxu0 %v24774_v33  ;;  %v24801_v33 = vld [vmem:[#allocation240_spill] sm:$0xff] }
 0xd10   :  { %14880 = vmatprep.subr.mxu1 %v24736_v41  ;;  %14733 = vmatpush1.msra.mxu0 %v24775_v21  ;;  %v15296_v21 = vld [vmem:[%s22066_s4 + $0x38] sm:$0xff] }
 0xd11   :  { %14882 = vmatpush1.msra.mxu1 %v24738_v8  ;;  %14736 = vmatprep.subr.mxu0 %v24776_v22  ;;  %v15295_v22 = vld [vmem:[%s22066_s4 + $0x30] sm:$0xff] }
 0xd12   :  { %14884 = vmatprep.subr.mxu1 %v24740_v15  ;;  %14739 = vmatpush1.msra.mxu0 %v24777_v39  ;;  %v15294_v39 = vld [vmem:[%s22066_s4 + $0x28] sm:$0xff] }
 0xd13   :  { %14886 = vmatpush1.msra.mxu1 %v24742_v36  ;;  %14742 = vmatprep.subr.mxu0 %v24778_v50  ;;  %v21699_v50 = vand.u32 4294901760, %v15296_v21 }
 0xd14   :  { %14888 = vmatprep.subr.mxu1 %v24744_v37  ;;  %14745 = vmatpush1.msra.mxu0 %v24779_v32  ;;  %v21701_v32 = vand.u32 4294901760, %v15295_v22 }
 0xd15   :  { %14890 = vmatpush1.msra.mxu1 %v24746_v43  ;;  %14748 = vmatprep.subr.mxu0 %v24780_v35  ;;  %v21703_v35 = vand.u32 4294901760, %v15294_v39 }
 0xd16   :  { %14892 = vmatprep.subr.mxu1 %v24748_v19  ;;  %14751 = vmatpush1.msra.mxu0 %v24781_v49  ;;  %v15292_v49 = vld [vmem:[%s22066_s4 + $0x18] sm:$0xff] }
 0xd17   :  { %14894 = vmatpush1.msra.mxu1 %v24750_v17  ;;  %14754 = vmatprep.subr.mxu0 %v24782_v53  ;;  %v15291_v53 = vld [vmem:[%s22066_s4 + $0x10] sm:$0xff] }
 0xd18   :  { %14896 = vmatprep.subr.mxu1 %v24752_v12  ;;  %14757 = vmatpush1.msra.mxu0 %v24783_v61 }
 0xd19   :  { %14898 = vmatpush1.msra.mxu1 %v24754_v55  ;;  %14760 = vmatprep.subr.mxu0 %v24784_v20  ;;  %v21716_v20 = vand.u32 4294901760, %v15292_v49 }
 0xd1a   :  { %14900 = vmatprep.subr.mxu1 %v24756_v63  ;;  %14763 = vmatpush1.msra.mxu0 %v24785_v2  ;;  %v21718_v2 = vand.u32 4294901760, %v15291_v53 }
 0xd1b   :  { %14902 = vmatpush1.msra.mxu1 %v24758_v30  ;;  %14766 = vmatprep.subr.mxu0 %v24786_v14  ;;  %v21721_v14 = vsub.f32 %v15296_v21, %v21699_v50 }
 0xd1c   :  { %14904 = vmatprep.subr.mxu1 %v24760_v28  ;;  %14769 = vmatpush1.msra.mxu0 %v24787_v59  ;;  %v21724_v59 = vsub.f32 %v15295_v22, %v21701_v32 }
 0xd1d   :  { %14906 = vmatpush1.msra.mxu1 %v24762_v31  ;;  %14772 = vmatprep.subr.mxu0 %v24788_v3  ;;  %v21727_v3 = vsub.f32 %v15294_v39, %v21703_v35 }
 0xd1e   :  { %14908 = vmatprep.subr.mxu1 %v24764_v34  ;;  %14775 = vmatpush1.msra.mxu0 %v24789_v10 }
 0xd1f   :  { %14910 = vmatpush1.msra.mxu1 %v24765_v24  ;;  %14778 = vmatprep.subr.mxu0 %v24790_v62  ;;  %v21734_v62 = vsub.f32 %v15292_v49, %v21716_v20 }
 0xd20   :  { %14912 = vmatprep.subr.mxu1 %v24766_v60  ;;  %14781 = vmatpush1.msra.mxu0 %v24791_v51  ;;  %v15412_v51 = vand.u32 4294901760, %v21721_v14 }
 0xd21   :  { %14914 = vmatpush1.msra.mxu1 %v24767_v57  ;;  %14784 = vmatprep.subr.mxu0 %v24792_v40  ;;  %v15419_v40 = vand.u32 4294901760, %v21724_v59 }
 0xd22   :  { %14916 = vmatprep.subr.mxu1 %v24768_v56  ;;  %14787 = vmatpush1.msra.mxu0 %v24793_v48  ;;  %v15426_v48 = vand.u32 4294901760, %v21727_v3 }
 0xd23   :  { %14918 = vmatpush1.msra.mxu1 %v24769_v58  ;;  %14790 = vmatprep.subr.mxu0 %v24794_v54  ;;  %v21742_v54 = vsub.f32 %v15291_v53, %v21718_v2 }
 0xd24   :  { %14920 = vmatprep.subr.mxu1 %v24770_v6  ;;  %14793 = vmatpush1.msra.mxu0 %v24795_v13 }
 0xd25   :  { %14922 = vmatpush1.msra.mxu1 %v24771_v38  ;;  %14955 = vmatprep.mubr.f32.mxu1 %v22957_v16 }
 0xd26   :  { %14796 = vmatprep.subr.mxu0 %v24796_v45  ;;  %14959 = vmatmul.mubr.f32.vlgmr.msra.gmra.mxu1 %v21346_v18  ;;  %v24807_v18 = vld [vmem:[#allocation156_spill] sm:$0xff]  ;;  %v15413_v45 = vsub.f32 %v21721_v14, %v15412_v51 }
 0xd27   :  { %15134 = vmatprep.subr.mxu1 %v18079_v25  ;;  %14799 = vmatpush1.msra.mxu0 %v24797_v29  ;;  %v24802_v25 = vld [vmem:[#allocation243_spill] sm:$0xff]  ;;  %v15420_v29 = vsub.f32 %v21724_v59, %v15419_v40 }
 0xd28   :  { %15136 = vmatpush1.msra.mxu1 %v18083_v0  ;;  %14802 = vmatprep.subr.mxu0 %v24798_v44  ;;  %v24803_v0 = vld [vmem:[#allocation246_spill] sm:$0xff]  ;;  %v15427_v44 = vsub.f32 %v21727_v3, %v15426_v48 }
 0xd29   :  { %15138 = vmatprep.subr.mxu1 %v18087_v23  ;;  %14805 = vmatpush1.msra.mxu0 %v24799_v11  ;;  %v24806_v23 = vld [vmem:[#allocation153_spill] sm:$0xff]  ;;  %v15440_v11 = vand.u32 4294901760, %v21734_v62 }
 0xd2a   :  { %15140 = vmatpush1.msra.mxu1 %v18091_v1  ;;  %14808 = vmatprep.subr.mxu0 %v24800_v7  ;;  %v24804_v1 = vld [vmem:[#allocation147_spill] sm:$0xff]  ;;  %v15414_v7 = vand.u32 4294901760, %v15413_v45 }
 0xd2b   :  { %15142 = vmatprep.subr.mxu1 %v18098_v47  ;;  %14811 = vmatpush1.msra.mxu0 %v24801_v33  ;;  %v24805_v47 = vld [vmem:[#allocation150_spill] sm:$0xff]  ;;  %v15421_v33 = vand.u32 4294901760, %v15420_v29 }
 0xd2c   :  { %15144 = vmatpush1.msra.mxu1 %v24726_v5  ;;  %14814 = vmatprep.subr.mxu0 %v24802_v25  ;;  %v24808_v5 = vld [vmem:[#allocation159_spill] sm:$0xff] }
 0xd2d   :  { %15146 = vmatprep.subr.mxu1 %v24728_v46  ;;  %14817 = vmatpush1.msra.mxu0 %v24803_v0  ;;  %v24810_v46 = vld [vmem:[#allocation165_spill] sm:$0xff]  ;;  %v15447_v0 = vand.u32 4294901760, %v21742_v54 }
 0xd2e   :  { %14850 = vmatprep.mubr.f32.mxu0 %v22957_v16  ;;  %15148 = vmatpush1.msra.mxu1 %v24730_v26  ;;  %v24811_v26 = vld [vmem:[#allocation168_spill] sm:$0xff] }
 0xd2f   :  { %14853 = vmatmul.mubr.f32.vlgmr.msra.gmra.mxu0 %v21340_v52  ;;  %14968 = vmatprep.subr.mxu0 %v24804_v1  ;;  %v24809_v52 = vld [vmem:[#allocation162_spill] sm:$0xff]  ;;  %v15428_v1 = vand.u32 4294901760, %v15427_v44 }
 0xd30   :  { %15150 = vmatprep.subr.mxu1 %v24732_v9  ;;  %14972 = vmatpush1.msra.mxu0 %v24805_v47  ;;  %v24812_v9 = vld [vmem:[#allocation172_spill] sm:$0xff]  ;;  %v15441_v47 = vsub.f32 %v21734_v62, %v15440_v11 }
 0xd31   :  { %15152 = vmatpush1.msra.mxu1 %v24734_v27  ;;  %14976 = vmatprep.subr.mxu0 %v24806_v23  ;;  %v24813_v27 = vld [vmem:[#allocation175_spill] sm:$0xff] }
 0xd32   :  { %15154 = vmatprep.subr.mxu1 %v24736_v41  ;;  %14980 = vmatpush1.msra.mxu0 %v24807_v18  ;;  %v24814_v41 = vld [vmem:[#allocation178_spill] sm:$0xff]  ;;  %v15448_v18 = vsub.f32 %v21742_v54, %v15447_v0 }
 0xd33   :  { %15156 = vmatpush1.msra.mxu1 %v24738_v8  ;;  %14984 = vmatprep.subr.mxu0 %v24808_v5  ;;  %v24815_v8 = vld [vmem:[#allocation181_spill] sm:$0xff]  ;;  %v15442_v5 = vand.u32 4294901760, %v15441_v47 }
 0xd34   :  { %15158 = vmatprep.subr.mxu1 %v24740_v15  ;;  %14988 = vmatpush1.msra.mxu0 %v24809_v52  ;;  %v24816_v15 = vld [vmem:[#allocation184_spill] sm:$0xff]  ;;  %v15449_v52 = vand.u32 4294901760, %v15448_v18 }
 0xd35   :  { %15160 = vmatpush1.msra.mxu1 %v24742_v36  ;;  %14992 = vmatprep.subr.mxu0 %v24810_v46  ;;  %v24817_v36 = vld [vmem:[#allocation187_spill] sm:$0xff] }
 0xd36   :  { %15162 = vmatprep.subr.mxu1 %v24744_v37  ;;  %14996 = vmatpush1.msra.mxu0 %v24811_v26  ;;  %v24818_v37 = vld [vmem:[#allocation190_spill] sm:$0xff] }
 0xd37   :  { %15164 = vmatpush1.msra.mxu1 %v24746_v43  ;;  %15000 = vmatprep.subr.mxu0 %v24812_v9  ;;  %v24819_v43 = vld [vmem:[#allocation193_spill] sm:$0xff] }
 0xd38   :  { %15166 = vmatprep.subr.mxu1 %v24748_v19  ;;  %15004 = vmatpush1.msra.mxu0 %v24813_v27  ;;  %v24820_v19 = vld [vmem:[#allocation208_spill] sm:$0xff] }
 0xd39   :  { %15168 = vmatpush1.msra.mxu1 %v24750_v17  ;;  %15008 = vmatprep.subr.mxu0 %v24814_v41  ;;  %v24821_v17 = vld [vmem:[#allocation212_spill] sm:$0xff] }
 0xd3a   :  { %15170 = vmatprep.subr.mxu1 %v24752_v12  ;;  %15012 = vmatpush1.msra.mxu0 %v24815_v8  ;;  %v24822_v12 = vld [vmem:[#allocation216_spill] sm:$0xff] }
 0xd3b   :  { %15172 = vmatpush1.msra.mxu1 %v24754_v55  ;;  %15016 = vmatprep.subr.mxu0 %v24816_v15  ;;  %v24823_v55 = vld [vmem:[#allocation220_spill] sm:$0xff] }
 0xd3c   :  { %15174 = vmatprep.subr.mxu1 %v24756_v63  ;;  %15020 = vmatpush1.msra.mxu0 %v24817_v36  ;;  %v24824_v63 = vld [vmem:[#allocation223_spill] sm:$0xff] }
 0xd3d   :  { %15176 = vmatpush1.msra.mxu1 %v24758_v30  ;;  %15024 = vmatprep.subr.mxu0 %v24818_v37  ;;  %v24825_v30 = vld [vmem:[#allocation226_spill] sm:$0xff] }
 0xd3e   :  { %15178 = vmatprep.subr.mxu1 %v24760_v28  ;;  %15028 = vmatpush1.msra.mxu0 %v24819_v43  ;;  %v24826_v28 = vld [vmem:[#allocation229_spill] sm:$0xff] }
 0xd3f   :  { %15180 = vmatpush1.msra.mxu1 %v24762_v31  ;;  %15032 = vmatprep.subr.mxu0 %v24820_v19  ;;  %v24827_v31 = vld [vmem:[#allocation232_spill] sm:$0xff] }
 0xd40   :  { %15182 = vmatprep.subr.mxu1 %v24764_v34  ;;  %15036 = vmatpush1.msra.mxu0 %v24821_v17  ;;  %v24828_v34 = vld [vmem:[#allocation236_spill] sm:$0xff] }
 0xd41   :  { %15184 = vmatpush1.msra.mxu1 %v24765_v24  ;;  %15040 = vmatprep.subr.mxu0 %v24822_v12  ;;  %v24829_v24 = vld [vmem:[#allocation239_spill] sm:$0xff] }
 0xd42   :  { %15186 = vmatprep.subr.mxu1 %v24766_v60  ;;  %15044 = vmatpush1.msra.mxu0 %v24823_v55  ;;  %v24830_v60 = vld [vmem:[#allocation242_spill] sm:$0xff] }
 0xd43   :  { %15188 = vmatpush1.msra.mxu1 %v24767_v57  ;;  %15048 = vmatprep.subr.mxu0 %v24824_v63  ;;  %v24831_v57 = vld [vmem:[#allocation245_spill] sm:$0xff] }
 0xd44   :  { %15190 = vmatprep.subr.mxu1 %v24768_v56  ;;  %15052 = vmatpush1.msra.mxu0 %v24825_v30  ;;  %v24832_v56 = vld [vmem:[#allocation248_spill] sm:$0xff] }
 0xd45   :  { %15192 = vmatpush1.msra.mxu1 %v24769_v58  ;;  %15056 = vmatprep.subr.mxu0 %v24826_v28  ;;  %v24833_v58 = vld [vmem:[#allocation250_spill] sm:$0xff] }
 0xd46   :  { %15194 = vmatprep.subr.mxu1 %v24770_v6  ;;  %15060 = vmatpush1.msra.mxu0 %v24827_v31  ;;  %v24834_v6 = vld [vmem:[#allocation252_spill] sm:$0xff] }
 0xd47   :  { %15196 = vmatpush1.msra.mxu1 %v24771_v38  ;;  %15229 = vmatprep.mubr.f32.mxu1 %v22957_v16  ;;  %v24835_v38 = vld [vmem:[#allocation254_spill] sm:$0xff] }
 0xd48   :  { %15064 = vmatprep.subr.mxu0 %v24828_v34  ;;  %15231 = vmatmul.mubr.f32.vlgmr.msra.gmra.mxu1 %v21336_v42 }
 0xd49   :  { %15068 = vmatpush1.msra.mxu0 %v24829_v24  ;;  %15125 = vmatprep.mubr.f32.mxu0 %v22957_v16  ;;  %v13523_v24 = vld [vmem:[%s22065_s3] sm:$0xf] }
 0xd4a   :  { %15072 = vmatprep.subr.mxu0 %v24830_v60  ;;  %16980 = vmatprep.subr.mxu1 %v22957_v16 }
 0xd4b   :  { %15076 = vmatpush1.msra.mxu0 %v24831_v57  ;;  %16981 = vmatpush3.msra.mxu1 %v15414_v7 }
 0xd4c   :  { %15080 = vmatprep.subr.mxu0 %v24832_v56  ;;  %16982 = vmatprep.subr.mxu1 %v22957_v16  ;;  %v24836_v56 = vld [vmem:[#allocation135_spill] sm:$0xff] }
 0xd4d   :  { %15084 = vmatpush1.msra.mxu0 %v24833_v58  ;;  %16983 = vmatpush3.msra.mxu1 %v15421_v33  ;;  %v24837_v58 = vsub.s32 1, %v24836_v56  ;;  %v24838_v21 = vsub.s32 0, %v24836_v56 }
 0xd4e   :  { %15088 = vmatprep.subr.mxu0 %v24834_v6  ;;  %16984 = vmatprep.subr.mxu1 %v22957_v16 }
 0xd4f   :  { %15092 = vmatpush1.msra.mxu0 %v24835_v38  ;;  %16985 = vmatpush3.msra.mxu1 %v15428_v1  ;;  %v15245_v6 = vrot.slane %v13523_v24, %v24837_v58  ;;  %v15241_v22 = vrot.slane %v13523_v24, %v24838_v21  ;;  %v15282_v21 = vrot.slane %v21333_v4, 6 }
 0xd50   :  { %15127 = vmatmul.mubr.f32.vlgmr.msra.gmra.mxu0 %v21336_v42  ;;  %16961 = vmatprep.subr.mxu0 %v22957_v16  ;;  %v15293_v42 = vld [vmem:[%s22066_s4 + $0x20] sm:$0xff] }
 0xd51   :  { %v21714_v61 = vand.u32 4294901760, %v15293_v42  ;;  %16962 = vmatpush3.msra.mxu0 %v21699_v50  ;;  %16986 = vmatprep.subr.mxu1 %v22957_v16 }
 0xd52   :  { %16963 = vmatprep.subr.mxu0 %v22957_v16  ;;  %16996 = vmatprep.mubr.msk.f32.mxu1 %vm17359_vm2, %v22957_v16 }
 0xd53   :  { %v21731_v10 = vsub.f32 %v15293_v42, %v21714_v61  ;;  %16964 = vmatpush3.msra.mxu0 %v21701_v32  ;;  %16977 = vmatprep.mubr.msk.f32.mxu0 %vm17359_vm2, %v22957_v16 }
 0xd54   :  { %16965 = vmatprep.subr.mxu0 %v22957_v16 }
 0xd55   :  { %v15433_v13 = vand.u32 4294901760, %v21731_v10  ;;  %16966 = vmatpush3.msra.mxu0 %v21703_v35 }
 0xd56   :  { %16967 = vmatprep.subr.mxu0 %v22957_v16 }
 0xd57   :  { %v15434_v25 = vsub.f32 %v21731_v10, %v15433_v13  ;;  %16968 = vmatpush3.msra.mxu0 %v21714_v61 }
 0xd58   :  { %16969 = vmatprep.subr.mxu0 %v22957_v16 }
 0xd59   :  { %16970 = vmatpush3.msra.mxu0 %v21716_v20  ;;  %v15435_v23 = vand.u32 4294901760, %v15434_v25 }
 0xd5a   :  { %16971 = vmatprep.subr.mxu0 %v22957_v16 }
 0xd5b   :  { %16972 = vmatpush3.msra.mxu0 %v21718_v2  ;;  %16987 = vmatpush3.msra.mxu1 %v15435_v23 }
 0xd5c   :  { %16973 = vmatprep.subr.mxu0 %v22957_v16  ;;  %16988 = vmatprep.subr.mxu1 %v22957_v16 }
 0xd5d   :  { %16989 = vmatpush3.msra.mxu1 %v15442_v5 }
 0xd5e   :  { %16990 = vmatprep.subr.mxu1 %v22957_v16 }
 0xd5f   :  { %16991 = vmatpush3.msra.mxu1 %v15449_v52 }
 0xd60   :  { %16992 = vmatprep.subr.mxu1 %v22957_v16  ;;  %v13862_v9 = vpop.f32.mrf.mxu1 }
 0xd62   :  { %v13864_v41 = vpop.f32.mrf.mxu1 }
 0xd68   :  { %v13630_v46 = vpop.f32.mrf.mxu0 }
 0xd69   :  { %v13863_v36 = vadd.f32 %v13862_v9, %v13630_v46 }
 0xd6a   :  { %v13632_v26 = vpop.f32.mrf.mxu0 }
 0xd6b   :  { %v13865_v15 = vadd.f32 %v13864_v41, %v13632_v26 }
 0xd80   :  { %v14105_v37 = vpop.f32.mrf.mxu1 }
 0xd82   :  { %v14107_v12 = vpop.f32.mrf.mxu1 }
 0xd89   :  { %v13999_v27 = vpop.f32.mrf.mxu0 }
 0xd8a   :  { %v14000_v17 = vadd.f32 %v13999_v27, %v13863_v36  ;;  %v24839_v36 = vsub.s32 2, %v24836_v56 }
 0xd8b   :  { %v14001_v8 = vpop.f32.mrf.mxu0 }
 0xd8c   :  { %v14002_v19 = vadd.f32 %v14001_v8, %v13865_v15  ;;  %v14106_v28 = vadd.f32 %v14105_v37, %v14000_v17  ;;  %v15249_v37 = vrot.slane %v13523_v24, %v24839_v36 }
 0xd8e   :  { %v14108_v63 = vadd.f32 %v14107_v12, %v14002_v19 }
 0xda2   :  { %v14377_v30 = vpop.f32.mrf.mxu1 }
 0xda4   :  { %v14379_v60 = vpop.f32.mrf.mxu1 }
 0xdab   :  { %v14273_v43 = vpop.f32.mrf.mxu0 }
 0xdac   :  { %v14274_v34 = vadd.f32 %v14273_v43, %v14106_v28 }
 0xdad   :  { %v14275_v55 = vpop.f32.mrf.mxu0 }
 0xdae   :  { %v14276_v31 = vadd.f32 %v14275_v55, %v14108_v63  ;;  %v14378_v38 = vadd.f32 %v14377_v30, %v14274_v34  ;;  %v24840_v63 = vsub.s32 3, %v24836_v56  ;;  %v15289_v56 = vld [vmem:[%s22066_s4] sm:$0xff] }
 0xdb0   :  { %v14380_v57 = vadd.f32 %v14379_v60, %v14276_v31  ;;  %v15258_v42 = vadd.f32 %v15241_v22, %v14378_v38  ;;  %v15253_v30 = vrot.slane %v13523_v24, %v24840_v63 }
 0xdb2   :  { %v15259_v39 = vadd.f32 %v15245_v6, %v14380_v57  ;;  %v16853_v53 = vmul.f32 -1.442695, %v15258_v42  ;;  %v15290_v6 = vld [vmem:[%s22066_s4 + $0x8] sm:$0xff]  ;;  %s17360_s4 = smov 64  }
 0xdb3   :  { %v21795_v22 = vand.u32 4294901760, %v15290_v6 }
 0xdb4   :  { %v16854_v49 = vmul.f32 -1.442695, %v15259_v39 }
 0xdb5   :  { %16974 = vmatpush3.msra.mxu0 %v21795_v22 }
 0xdb6   :  { %17317 = vpow2.f32 %v16854_v49  ;;  %v21801_v49 = vsub.f32 %v15290_v6, %v21795_v22  ;;  %16975 = vmatprep.subr.mxu0 %v22957_v16 }
 0xdb7   :  { %17319 = vpow2.f32 %v16853_v53  ;;  %v21803_v53 = vand.u32 4294901760, %v15289_v56 }
 0xdb8   :  { %v15454_v4 = vand.u32 4294901760, %v21801_v49 }
 0xdb9   :  { %16976 = vmatpush3.msra.mxu0 %v21803_v53 }
 0xdba   :  { %16999 = vmatprep.subr.mxu0 %v22957_v16 }
 0xdc3   :  { %v17318_v52 = vpop.eup %17317 }
 0xdc4   :  { %v14717_v29 = vpop.f32.mrf.mxu1  ;;  %v17320_v26 = vpop.eup %17319  ;;  %v15271_v8 = vadd.f32 1.0, %v17318_v52 }
 0xdc5   :  { %v15265_v19 = vadd.f32 1.0, %v17320_v26 }
 0xdc6   :  { %v14719_v33 = vpop.f32.mrf.mxu1  ;;  %17321 = vrcp.f32 %v15271_v8 }
 0xdc7   :  { %17323 = vrcp.f32 %v15265_v19 }
 0xdcd   :  { %v14485_v45 = vpop.f32.mrf.mxu0 }
 0xdce   :  { %v14718_v25 = vadd.f32 %v14717_v29, %v14485_v45  ;;  %v21809_v29 = vsub.f32 %v15289_v56, %v21803_v53 }
 0xdcf   :  { %v14487_v44 = vpop.f32.mrf.mxu0 }
 0xdd0   :  { %v14720_v23 = vadd.f32 %v14719_v33, %v14487_v44  ;;  %v15455_v33 = vsub.f32 %v21801_v49, %v15454_v4 }
 0xdd3   :  { %v17322_v58 = vpop.eup %17321 }
 0xdd4   :  { %v17324_v38 = vpop.eup %17323  ;;  %v15284_v39 = vmul.f32 %v17322_v58, %v15282_v21  ;;  %v16856_v58 = vld [vmem:[%s22067_s5] ss:$0 sm:$0xff] }
 0xde6   :  { %v14960_v1 = vpop.f32.mrf.mxu1 }
 0xde8   :  { %v14962_v46 = vpop.f32.mrf.mxu1 }
 0xdef   :  { %v14854_v7 = vpop.f32.mrf.mxu0 }
 0xdf0   :  { %v14855_v18 = vadd.f32 %v14854_v7, %v14718_v25  ;;  %v15461_v25 = vand.u32 4294901760, %v21809_v29 }
 0xdf1   :  { %v14856_v47 = vpop.f32.mrf.mxu0 }
 0xdf2   :  { %v14857_v5 = vadd.f32 %v14856_v47, %v14720_v23  ;;  %v14961_v9 = vadd.f32 %v14960_v1, %v14855_v18  ;;  %v15456_v1 = vand.u32 4294901760, %v15455_v33  ;;  %v15462_v47 = vsub.f32 %v21809_v29, %v15461_v25 }
 0xdf4   :  { %v14963_v43 = vadd.f32 %v14962_v46, %v14857_v5  ;;  %16993 = vmatpush3.msra.mxu1 %v15456_v1  ;;  %v15463_v23 = vand.u32 4294901760, %v15462_v47  ;;  %v16350_v1 = vld [vmem:[%s22070_s8 + $0x8] sm:$0xff] }
 0xdf5   :  { %16994 = vmatprep.subr.mxu1 %v22957_v16  ;;  %v16391_v47 = vand.u32 4294901760, %v16350_v1 }
 0xdf6   :  { %16995 = vmatpush3.msra.mxu1 %v15463_v23  ;;  %v16349_v23 = vld [vmem:[%s22070_s8] sm:$0xff] }
 0xdf7   :  { %17018 = vmatprep.subr.mxu1 %v22957_v16 }
 0xe08   :  { %v15232_v27 = vpop.f32.mrf.mxu1 }
 0xe0a   :  { %v15234_v28 = vpop.f32.mrf.mxu1 }
 0xe10   :  { %v15128_v41 = vpop.f32.mrf.mxu0 }
 0xe11   :  { %v15129_v15 = vadd.f32 %v15128_v41, %v14961_v9 }
 0xe12   :  { %v15130_v17 = vpop.f32.mrf.mxu0 }
 0xe13   :  { %v15233_v12 = vadd.f32 %v15232_v27, %v15129_v15  ;;  %v15131_v55 = vadd.f32 %v15130_v17, %v14963_v43 }
 0xe15   :  { %v15260_v31 = vadd.f32 %v15249_v37, %v15233_v12  ;;  %v15235_v34 = vadd.f32 %v15234_v28, %v15131_v55 }
 0xe17   :  { %17325 = vtanh.f32 %v15260_v31  ;;  %v15261_v60 = vadd.f32 %v15253_v30, %v15235_v34 }
 0xe19   :  { %v16855_v57 = vmul.f32 -1.442695, %v15261_v60 }
 0xe1b   :  { %17327 = vpow2.f32 %v16855_v57 }
 0xe24   :  { %v17326_v24 = vpop.eup %17325 }
 0xe25   :  { %v15285_v42 = vmul.f32 %v17326_v24, %v17324_v38 }
 0xe27   :  { %v15286_v45 = vadd.f32 %v15285_v42, %v15284_v39 }
 0xe28   :  { %v17328_v44 = vpop.eup %17327 }
 0xe29   :  { %v15278_v7 = vadd.f32 1.0, %v17328_v44  ;;  %17329 = vtanh.f32 %v15286_v45 }
 0xe2b   :  { %17331 = vrcp.f32 %v15278_v7 }
 0xe36   :  { %v17330_v18 = vpop.eup %17329 }
 0xe38   :  { %v17332_v5 = vpop.eup %17331 }
 0xe39   :  { %v15288_v52 = vmul.f32 %v17332_v5, %v17330_v18  ;;  %v22033_v18 = vsub.f32 %v16350_v1, %v16391_v47  ;;  %v16394_v5 = vand.u32 4294901760, %v16349_v23 }
 0xe3b   :  { %15305 = vrot.lane.b32.xlu0 %v15288_v52, %s17360_s4  ;;  %v16470_v52 = vand.u32 4294901760, %v22033_v18 }
 0xead   :  { %v15306_v46 = vpop.permute.xlu0 %15305 }
 0xeae   :  { %v15308_v26 = vsel %vm15307_vm3, %v15306_v46, 0  ;;  %v16476_v46 = vsub.f32 %v16349_v23, %v16394_v5 }
 0xeaf   :  { %v21826_v9 = vand.u32 4294901760, %v15308_v26 }
 0xeb1   :  { %v15384_v27 = vsub.f32 %v15308_v26, %v21826_v9  ;;  %16997 = vmatmul.mubr.f32.vlgmr.msra.gmra.mxu1 %v21826_v9  ;;  %v16471_v26 = vsub.f32 %v22033_v18, %v16470_v52 }
 0xeb2   :  { %17019 = vmatpush3.msra.mxu1 %v21699_v50  ;;  %17034 = vmatprep.mubr.msk.f32.mxu1 %vm17359_vm2, %v22957_v16 }
 0xeb3   :  { %v15385_v41 = vand.u32 4294901760, %v15384_v27  ;;  %17020 = vmatprep.subr.mxu1 %v22957_v16 }
 0xeb4   :  { %17021 = vmatpush3.msra.mxu1 %v21701_v32 }
 0xeb5   :  { %v15386_v8 = vsub.f32 %v15384_v27, %v15385_v41  ;;  %17022 = vmatprep.subr.mxu1 %v22957_v16 }
 0xeb6   :  { %17023 = vmatpush3.msra.mxu1 %v21703_v35 }
 0xeb7   :  { %v15387_v15 = vand.u32 4294901760, %v15386_v8  ;;  %17024 = vmatprep.subr.mxu1 %v22957_v16 }
 0xeb8   :  { %17025 = vmatpush3.msra.mxu1 %v21714_v61 }
 0xeb9   :  { %17026 = vmatprep.subr.mxu1 %v22957_v16  ;;  %16978 = vmatmul.mubr.f32.vlgmr.msra.gmra.mxu0 %v15387_v15 }
 0xeba   :  { %17000 = vmatpush3.msra.mxu0 %v21721_v14  ;;  %17027 = vmatpush3.msra.mxu1 %v21716_v20 }
 0xebb   :  { %17001 = vmatprep.subr.mxu0 %v22957_v16  ;;  %17028 = vmatprep.subr.mxu1 %v22957_v16 }
 0xebc   :  { %17002 = vmatpush3.msra.mxu0 %v21724_v59  ;;  %17029 = vmatpush3.msra.mxu1 %v21718_v2 }
 0xebd   :  { %17003 = vmatprep.subr.mxu0 %v22957_v16  ;;  %17030 = vmatprep.subr.mxu1 %v22957_v16 }
 0xebe   :  { %17004 = vmatpush3.msra.mxu0 %v21727_v3  ;;  %17031 = vmatpush3.msra.mxu1 %v21795_v22 }
 0xebf   :  { %17005 = vmatprep.subr.mxu0 %v22957_v16  ;;  %17032 = vmatprep.subr.mxu1 %v22957_v16 }
 0xec0   :  { %17006 = vmatpush3.msra.mxu0 %v21731_v10  ;;  %17033 = vmatpush3.msra.mxu1 %v21803_v53  ;;  %v15848_v10 = vld [vmem:[%s22068_s6] sm:$0xff] }
 0xec1   :  { %17007 = vmatprep.subr.mxu0 %v22957_v16  ;;  %17035 = vmatmul.mubr.f32.vlgmr.msra.gmra.mxu1 %v15385_v41 }
 0xec2   :  { %17056 = vmatprep.subr.mxu1 %v22957_v16  ;;  %17008 = vmatpush3.msra.mxu0 %v21734_v62 }
 0xec3   :  { %17057 = vmatpush3.msra.mxu1 %v21699_v50  ;;  %17009 = vmatprep.subr.mxu0 %v22957_v16  ;;  %v15851_v50 = vld [vmem:[%s22068_s6 + $0x18] sm:$0xff] }
 0xec4   :  { %17058 = vmatprep.subr.mxu1 %v22957_v16  ;;  %17010 = vmatpush3.msra.mxu0 %v21742_v54 }
 0xec5   :  { %17059 = vmatpush3.msra.mxu1 %v21701_v32  ;;  %17011 = vmatprep.subr.mxu0 %v22957_v16  ;;  %v21919_v32 = vand.u32 4294901760, %v15851_v50 }
 0xec6   :  { %17060 = vmatprep.subr.mxu1 %v22957_v16  ;;  %17012 = vmatpush3.msra.mxu0 %v21801_v49 }
 0xec7   :  { %17061 = vmatpush3.msra.mxu1 %v21703_v35  ;;  %17013 = vmatprep.subr.mxu0 %v22957_v16  ;;  %v15850_v35 = vld [vmem:[%s22068_s6 + $0x10] sm:$0xff] }
 0xec8   :  { %17062 = vmatprep.subr.mxu1 %v22957_v16  ;;  %17014 = vmatpush3.msra.mxu0 %v21809_v29 }
 0xec9   :  { %17015 = vmatprep.mubr.msk.f32.mxu0 %vm17359_vm2, %v22957_v16  ;;  %17063 = vmatpush3.msra.mxu1 %v21714_v61  ;;  %v21925_v61 = vsub.f32 %v15851_v50, %v21919_v32 }
 0xeca   :  { %17016 = vmatmul.mubr.f32.vlgmr.msra.gmra.mxu0 %v15384_v27  ;;  %17037 = vmatprep.subr.mxu0 %v22957_v16  ;;  %v16472_v27 = vand.u32 4294901760, %v16471_v26 }
 0xecb   :  { %17064 = vmatprep.subr.mxu1 %v22957_v16  ;;  %17038 = vmatpush3.msra.mxu0 %v15412_v51  ;;  %v15969_v14 = vand.u32 4294901760, %v21925_v61 }
 0xecc   :  { %17065 = vmatpush3.msra.mxu1 %v21716_v20  ;;  %17039 = vmatprep.subr.mxu0 %v22957_v16  ;;  %v21927_v20 = vand.u32 4294901760, %v15850_v35 }
 0xecd   :  { %17066 = vmatprep.subr.mxu1 %v22957_v16  ;;  %17040 = vmatpush3.msra.mxu0 %v15419_v40  ;;  %v15970_v62 = vsub.f32 %v21925_v61, %v15969_v14 }
 0xece   :  { %17067 = vmatpush3.msra.mxu1 %v21718_v2  ;;  %17041 = vmatprep.subr.mxu0 %v22957_v16  ;;  %v15849_v2 = vld [vmem:[%s22068_s6 + $0x8] sm:$0xff]  ;;  %v21936_v59 = vsub.f32 %v15850_v35, %v21927_v20 }
 0xecf   :  { %17068 = vmatprep.subr.mxu1 %v22957_v16  ;;  %17042 = vmatpush3.msra.mxu0 %v15426_v48  ;;  %v21938_v3 = vand.u32 4294901760, %v15849_v2  ;;  %v21952_v48 = vand.u32 4294901760, %v15848_v10  ;;  %v15971_v54 = vand.u32 4294901760, %v15970_v62 }
 0xed0   :  { %17069 = vmatpush3.msra.mxu1 %v21795_v22  ;;  %17043 = vmatprep.subr.mxu0 %v22957_v16  ;;  %v15976_v51 = vand.u32 4294901760, %v21936_v59 }
 0xed1   :  { %17070 = vmatprep.subr.mxu1 %v22957_v16  ;;  %17044 = vmatpush3.msra.mxu0 %v15433_v13  ;;  %v21950_v40 = vsub.f32 %v15849_v2, %v21938_v3  ;;  %v16857_v2 = vld [vmem:[%s22069_s7] ss:$0 sm:$0xff] }
 0xed2   :  { %17071 = vmatpush3.msra.mxu1 %v21803_v53  ;;  %17072 = vmatprep.mubr.msk.f32.mxu1 %vm17359_vm2, %v22957_v16  ;;  %v15977_v13 = vsub.f32 %v21936_v59, %v15976_v51 }
 0xed3   :  { %17045 = vmatprep.subr.mxu0 %v22957_v16  ;;  %17073 = vmatmul.mubr.f32.vlgmr.msra.gmra.mxu1 %v21826_v9 }
 0xed4   :  { %17046 = vmatpush3.msra.mxu0 %v15440_v11  ;;  %17053 = vmatprep.mubr.msk.f32.mxu0 %vm17359_vm2, %v22957_v16  ;;  %v15983_v11 = vand.u32 4294901760, %v21950_v40  ;;  %v15978_v36 = vand.u32 4294901760, %v15977_v13 }
 0xed5   :  { %17047 = vmatprep.subr.mxu0 %v22957_v16  ;;  %17086 = vmatprep.subr.mxu1 %v22957_v16 }
 0xed6   :  { %17048 = vmatpush3.msra.mxu0 %v15447_v0  ;;  %17094 = vmatprep.mubr.msk.f32.mxu1 %vm17359_vm2, %v22957_v16  ;;  %v21961_v0 = vsub.f32 %v15848_v10, %v21952_v48  ;;  %v15984_v37 = vsub.f32 %v21950_v40, %v15983_v11 }
 0xed7   :  { %17049 = vmatprep.subr.mxu0 %v22957_v16  ;;  %17087 = vmatpush3.msra.mxu1 %v15971_v54 }
 0xed8   :  { %17050 = vmatpush3.msra.mxu0 %v15454_v4  ;;  %v15990_v43 = vand.u32 4294901760, %v21961_v0  ;;  %17088 = vmatprep.subr.mxu1 %v22957_v16  ;;  %v15985_v19 = vand.u32 4294901760, %v15984_v37 }
 0xed9   :  { %17051 = vmatprep.subr.mxu0 %v22957_v16  ;;  %17089 = vmatpush3.msra.mxu1 %v15978_v36 }
 0xeda   :  { %17052 = vmatpush3.msra.mxu0 %v15461_v25  ;;  %v15991_v17 = vsub.f32 %v21961_v0, %v15990_v43  ;;  %17090 = vmatprep.subr.mxu1 %v22957_v16 }
 0xedb   :  { %17054 = vmatmul.mubr.f32.vlgmr.msra.gmra.mxu0 %v21826_v9  ;;  %17075 = vmatprep.subr.mxu0 %v22957_v16  ;;  %v16477_v9 = vand.u32 4294901760, %v16476_v46 }
 0xedc   :  { %17083 = vmatprep.mubr.msk.f32.mxu0 %vm17359_vm2, %v22957_v16  ;;  %17076 = vmatpush3.msra.mxu0 %v21919_v32  ;;  %v15992_v12 = vand.u32 4294901760, %v15991_v17 }
 0xedd   :  { %17077 = vmatprep.subr.mxu0 %v22957_v16  ;;  %17091 = vmatpush3.msra.mxu1 %v15985_v19  ;;  %v16478_v41 = vsub.f32 %v16476_v46, %v16477_v9 }
 0xede   :  { %17078 = vmatpush3.msra.mxu0 %v21927_v20  ;;  %17092 = vmatprep.subr.mxu1 %v22957_v16 }
 0xedf   :  { %17079 = vmatprep.subr.mxu0 %v22957_v16  ;;  %17093 = vmatpush3.msra.mxu1 %v15992_v12  ;;  %v16479_v8 = vand.u32 4294901760, %v16478_v41 }
 0xee0   :  { %17080 = vmatpush3.msra.mxu0 %v21938_v3  ;;  %17108 = vmatprep.subr.mxu1 %v22957_v16 }
 0xee1   :  { %17081 = vmatprep.subr.mxu0 %v22957_v16 }
 0xee2   :  { %17082 = vmatpush3.msra.mxu0 %v21952_v48 }
 0xee3   :  { %17097 = vmatprep.subr.mxu0 %v22957_v16 }
 0xf71   :  { %v15500_v55 = vpop.f32.mrf.mxu1 }
 0xf73   :  { %v16998_v63 = vpop.f32.mrf.mxu1 }
 0xf79   :  { %v15389_v30 = vpop.f32.mrf.mxu0 }
 0xf7a   :  { %v15390_v6 = vadd.f32 %v16856_v58, %v15389_v30 }
 0xf7b   :  { %v16979_v28 = vpop.f32.mrf.mxu0 }
 0xf7c   :  { %v15501_v21 = vadd.f32 %v15500_v55, %v15390_v6 }
 0xf81   :  { %v15669_v31 = vpop.f32.mrf.mxu1 }
 0xf83   :  { %v17036_v34 = vpop.f32.mrf.mxu1 }
 0xf84   :  { %v16858_v34 = vld [vmem:[#allocation3] ss:$0 sm:$0xff] }
 0xf8a   :  { %v15588_v60 = vpop.f32.mrf.mxu0 }
 0xf8b   :  { %v15589_v24 = vadd.f32 %v15588_v60, %v15501_v21 }
 0xf8c   :  { %v17017_v57 = vpop.f32.mrf.mxu0 }
 0xf8d   :  { %v15670_v56 = vadd.f32 %v15669_v31, %v15589_v24 }
 0xf93   :  { %v15843_v38 = vpop.f32.mrf.mxu1 }
 0xf95   :  { %v17074_v22 = vpop.f32.mrf.mxu1 }
 0xf9b   :  { %v15764_v39 = vpop.f32.mrf.mxu0 }
 0xf9c   :  { %v15765_v42 = vadd.f32 %v15764_v39, %v15670_v56 }
 0xf9d   :  { %v17055_v49 = vpop.f32.mrf.mxu0 }
 0xf9e   :  { %v15844_v53 = vadd.f32 %v15843_v38, %v15765_v42 }
 0xfa0   :  { %v15847_v45 = vmax.f32 %v15844_v53, 0.0 }
 0xfa2   :  { %v15861_v4 = vsel %vm15859_vm4, %v15847_v45, 0 }
 0xfa3   :  { %v15932_v29 = vand.u32 4294901760, %v15861_v4 }
 0xfa5   :  { %v15933_v44 = vsub.f32 %v15861_v4, %v15932_v29  ;;  %17095 = vmatmul.mubr.f32.vlgmr.msra.gmra.mxu1 %v15932_v29 }
 0xfa6   :  { %17109 = vmatpush3.msra.mxu1 %v21919_v32  ;;  %17116 = vmatprep.mubr.msk.f32.mxu1 %vm17359_vm2, %v22957_v16 }
 0xfa7   :  { %v15934_v7 = vand.u32 4294901760, %v15933_v44  ;;  %17110 = vmatprep.subr.mxu1 %v22957_v16 }
 0xfa8   :  { %17111 = vmatpush3.msra.mxu1 %v21927_v20 }
 0xfa9   :  { %v15935_v33 = vsub.f32 %v15933_v44, %v15934_v7  ;;  %17112 = vmatprep.subr.mxu1 %v22957_v16 }
 0xfaa   :  { %17113 = vmatpush3.msra.mxu1 %v21938_v3 }
 0xfab   :  { %v15936_v25 = vand.u32 4294901760, %v15935_v33  ;;  %17114 = vmatprep.subr.mxu1 %v22957_v16 }
 0xfac   :  { %17115 = vmatpush3.msra.mxu1 %v21952_v48 }
 0xfad   :  { %17117 = vmatmul.mubr.f32.vlgmr.msra.gmra.mxu1 %v15934_v7  ;;  %17130 = vmatprep.subr.mxu1 %v22957_v16 }
 0xfae   :  { %17084 = vmatmul.mubr.f32.vlgmr.msra.gmra.mxu0 %v15936_v25  ;;  %17131 = vmatpush3.msra.mxu1 %v21919_v32 }
 0xfaf   :  { %17098 = vmatpush3.msra.mxu0 %v21925_v61  ;;  %17132 = vmatprep.subr.mxu1 %v22957_v16 }
 0xfb0   :  { %17099 = vmatprep.subr.mxu0 %v22957_v16  ;;  %17133 = vmatpush3.msra.mxu1 %v21927_v20 }
 0xfb1   :  { %17100 = vmatpush3.msra.mxu0 %v21936_v59  ;;  %17134 = vmatprep.subr.mxu1 %v22957_v16 }
 0xfb2   :  { %17101 = vmatprep.subr.mxu0 %v22957_v16  ;;  %17135 = vmatpush3.msra.mxu1 %v21938_v3 }
 0xfb3   :  { %17102 = vmatpush3.msra.mxu0 %v21950_v40  ;;  %17136 = vmatprep.subr.mxu1 %v22957_v16 }
 0xfb4   :  { %17103 = vmatprep.subr.mxu0 %v22957_v16  ;;  %17105 = vmatprep.mubr.msk.f32.mxu0 %vm17359_vm2, %v22957_v16 }
 0xfb5   :  { %17104 = vmatpush3.msra.mxu0 %v21961_v0  ;;  %17137 = vmatpush3.msra.mxu1 %v21952_v48 }
 0xfb6   :  { %17138 = vmatprep.mubr.msk.f32.mxu1 %vm17359_vm2, %v22957_v16  ;;  %17106 = vmatmul.mubr.f32.vlgmr.msra.gmra.mxu0 %v15933_v44 }
 0xfb7   :  { %17119 = vmatprep.subr.mxu0 %v22957_v16  ;;  %17139 = vmatmul.mubr.f32.vlgmr.msra.gmra.mxu1 %v15932_v29 }
 0xfb8   :  { %17120 = vmatpush3.msra.mxu0 %v15969_v14  ;;  %17127 = vmatprep.mubr.msk.f32.mxu0 %vm17359_vm2, %v22957_v16 }
 0xfb9   :  { %17121 = vmatprep.subr.mxu0 %v22957_v16  ;;  %17148 = vmatprep.subr.mxu1 %v22957_v16 }
 0xfba   :  { %17122 = vmatpush3.msra.mxu0 %v15976_v51  ;;  %17152 = vmatprep.mubr.msk.f32.mxu1 %vm17359_vm2, %v22957_v16 }
 0xfbb   :  { %17123 = vmatprep.subr.mxu0 %v22957_v16  ;;  %17149 = vmatpush3.msra.mxu1 %v16472_v27 }
 0xfbc   :  { %17124 = vmatpush3.msra.mxu0 %v15983_v11  ;;  %17150 = vmatprep.subr.mxu1 %v22957_v16 }
 0xfbd   :  { %17125 = vmatprep.subr.mxu0 %v22957_v16  ;;  %17151 = vmatpush3.msra.mxu1 %v16479_v8 }
 0xfbe   :  { %17126 = vmatpush3.msra.mxu0 %v15990_v43  ;;  %17162 = vmatprep.subr.mxu1 %v22957_v16 }
 0xfbf   :  { %17128 = vmatmul.mubr.f32.vlgmr.msra.gmra.mxu0 %v15932_v29  ;;  %17141 = vmatprep.subr.mxu0 %v22957_v16 }
 0xfc0   :  { %17145 = vmatprep.mubr.msk.f32.mxu0 %vm17359_vm2, %v22957_v16  ;;  %17142 = vmatpush3.msra.mxu0 %v16391_v47 }
 0xfc1   :  { %17143 = vmatprep.subr.mxu0 %v22957_v16 }
 0xfc2   :  { %17144 = vmatpush3.msra.mxu0 %v16394_v5 }
 0xfc3   :  { %17155 = vmatprep.subr.mxu0 %v22957_v16 }
0x1065   :  { %v16029_v15 = vpop.f32.mrf.mxu1 }
0x1067   :  { %v17096_v50 = vpop.f32.mrf.mxu1 }
0x106d   :  { %v16186_v32 = vpop.f32.mrf.mxu1 }
0x106e   :  { %v15938_v35 = vpop.f32.mrf.mxu0 }
0x106f   :  { %v17118_v61 = vpop.f32.mrf.mxu1  ;;  %v15939_v14 = vadd.f32 %v16857_v2, %v15938_v35 }
0x1070   :  { %v17085_v20 = vpop.f32.mrf.mxu0 }
0x1071   :  { %v16030_v10 = vadd.f32 %v16029_v15, %v15939_v14 }
0x1076   :  { %v16109_v59 = vpop.f32.mrf.mxu0 }
0x1077   :  { %v16344_v3 = vpop.f32.mrf.mxu1  ;;  %v16110_v40 = vadd.f32 %v16109_v59, %v16030_v10 }
0x1078   :  { %v17107_v62 = vpop.f32.mrf.mxu0 }
0x1079   :  { %v17140_v51 = vpop.f32.mrf.mxu1  ;;  %v16187_v48 = vadd.f32 %v16186_v32, %v16110_v40 }
0x107f   :  { %v16269_v54 = vpop.f32.mrf.mxu0 }
0x1080   :  { %v16270_v13 = vadd.f32 %v16269_v54, %v16187_v48 }
0x1081   :  { %v17129_v11 = vpop.f32.mrf.mxu0 }
0x1082   :  { %v16345_v0 = vadd.f32 %v16344_v3, %v16270_v13 }
0x1084   :  { %v16348_v36 = vmax.f32 %v16345_v0, 0.0 }
0x1086   :  { %v16360_v37 = vsel %vm16358_vm5, %v16348_v36, 0 }
0x1087   :  { %v16429_v43 = vand.u32 4294901760, %v16360_v37 }
0x1089   :  { %v16430_v19 = vsub.f32 %v16360_v37, %v16429_v43  ;;  %17153 = vmatmul.mubr.f32.vlgmr.msra.gmra.mxu1 %v16429_v43 }
0x108a   :  { %17163 = vmatpush3.msra.mxu1 %v16391_v47  ;;  %17166 = vmatprep.mubr.msk.f32.mxu1 %vm17359_vm2, %v22957_v16 }
0x108b   :  { %v16431_v17 = vand.u32 4294901760, %v16430_v19  ;;  %17164 = vmatprep.subr.mxu1 %v22957_v16 }
0x108c   :  { %17165 = vmatpush3.msra.mxu1 %v16394_v5 }
0x108d   :  { %v16432_v12 = vsub.f32 %v16430_v19, %v16431_v17  ;;  %17167 = vmatmul.mubr.f32.vlgmr.msra.gmra.mxu1 %v16431_v17  ;;  %17176 = vmatprep.subr.mxu1 %v22957_v16 }
0x108e   :  { %17177 = vmatpush3.msra.mxu1 %v16391_v47  ;;  %17180 = vmatprep.mubr.msk.f32.mxu1 %vm17359_vm2, %v22957_v16 }
0x108f   :  { %v16433_v55 = vand.u32 4294901760, %v16432_v12  ;;  %17178 = vmatprep.subr.mxu1 %v22957_v16 }
0x1090   :  { %17179 = vmatpush3.msra.mxu1 %v16394_v5 }
0x1091   :  { %17146 = vmatmul.mubr.f32.vlgmr.msra.gmra.mxu0 %v16433_v55  ;;  %17181 = vmatmul.mubr.f32.vlgmr.msra.gmra.mxu1 %v16429_v43 }
0x1092   :  { %17156 = vmatpush3.msra.mxu0 %v22033_v18  ;;  %17159 = vmatprep.mubr.msk.f32.mxu0 %vm17359_vm2, %v22957_v16 }
0x1093   :  { %17157 = vmatprep.subr.mxu0 %v22957_v16 }
0x1094   :  { %17158 = vmatpush3.msra.mxu0 %v16476_v46 }
0x1095   :  { %17169 = vmatprep.subr.mxu0 %v22957_v16  ;;  %17160 = vmatmul.mubr.f32.vlgmr.msra.gmra.mxu0 %v16430_v19 }
0x1096   :  { %17170 = vmatpush3.msra.mxu0 %v16470_v52  ;;  %17173 = vmatprep.mubr.msk.f32.mxu0 %vm17359_vm2, %v22957_v16 }
0x1097   :  { %17171 = vmatprep.subr.mxu0 %v22957_v16 }
0x1098   :  { %17172 = vmatpush3.msra.mxu0 %v16477_v9 }
0x1099   :  { %17174 = vmatmul.mubr.f32.vlgmr.msra.gmra.mxu0 %v16429_v43 }
0x1149   :  { %v16516_v63 = vpop.f32.mrf.mxu1 }
0x114b   :  { %v17154_v30 = vpop.f32.mrf.mxu1 }
0x114d   :  { %v16667_v28 = vpop.f32.mrf.mxu1 }
0x114f   :  { %v17168_v31 = vpop.f32.mrf.mxu1 }
0x1151   :  { %v16435_v60 = vpop.f32.mrf.mxu0  ;;  %v16817_v57 = vpop.f32.mrf.mxu1 }
0x1152   :  { %v16436_v58 = vadd.f32 %v16858_v34, %v16435_v60 }
0x1153   :  { %v17147_v6 = vpop.f32.mrf.mxu0  ;;  %v17182_v38 = vpop.f32.mrf.mxu1 }
0x1154   :  { %v16517_v21 = vadd.f32 %v16516_v63, %v16436_v58 }
0x1155   :  { %v16592_v22 = vpop.f32.mrf.mxu0 }
0x1156   :  { %v16593_v24 = vadd.f32 %v16592_v22, %v16517_v21 }
0x1157   :  { %v17161_v56 = vpop.f32.mrf.mxu0 }
0x1158   :  { %v16668_v39 = vadd.f32 %v16667_v28, %v16593_v24 }
0x1159   :  { %v16744_v42 = vpop.f32.mrf.mxu0 }
0x115a   :  { %v16745_v49 = vadd.f32 %v16744_v42, %v16668_v39 }
0x115b   :  { %v17175_v16 = vpop.f32.mrf.mxu0 }
0x115c   :  { %v16818_v53 = vadd.f32 %v16817_v57, %v16745_v49 }
0x115e   :  { %16822 = vst.msk [vmem:[%s22072_s10] sm:$0x3] %vm16821_vm6, %v16818_v53 }
0x115f   :  { %16827 = vsyncpa [#allocation5], 1 }

</bundles_post_ra>
